<compile_context>
chip_gen: v5e
topology: v5e:2x2
jax: 0.10.0
libtpu: 0.0.40
codegen_flags: <defaults>
</compile_context>

<pallas_src>
import jax
import jax.numpy as jnp
from jax.experimental import pallas as pl
from jax.experimental.pallas import tpu as pltpu

KSIZE = 4                               # every ConvTranspose2d uses a 4x4 kernel
VMEM_LIMIT = 32 * 1024 * 1024           # raise v5e's 16 MiB scoped default; == v7x default
VMEM_BUDGET = 14 * 1024 * 1024          # per-call working-set target (safe on v7x 64 MiB parts)


# ----------------------------- Pallas kernels ------------------------------

def _matmul_kernel(x_ref, w_ref, y_ref):
    """Plain col2im matmul (layer 1: no prologue). f32 accumulate, bf16 store."""
    acc = jnp.dot(x_ref[...].astype(jnp.bfloat16), w_ref[...],
                  preferred_element_type=jnp.float32)
    y_ref[...] = acc.astype(y_ref.dtype)


def _bn_relu_matmul_kernel(x_ref, scale_ref, shift_ref, w_ref, y_ref):
    """Fused prologue (previous layer's BN affine + ReLU) + col2im matmul."""
    x = x_ref[...].astype(jnp.float32) * scale_ref[...] + shift_ref[...]
    x = jnp.maximum(x, 0.0)
    acc = jnp.dot(x.astype(jnp.bfloat16), w_ref[...],
                  preferred_element_type=jnp.float32)
    y_ref[...] = acc.astype(y_ref.dtype)


def _stats_kernel(o_ref, sum_ref, sq_ref):
    """Per-channel sum / sum-of-squares (BN batch stats), f32 accumulation."""
    @pl.when(pl.program_id(0) == 0)
    def _():
        sum_ref[...] = jnp.zeros_like(sum_ref)
        sq_ref[...] = jnp.zeros_like(sq_ref)

    o = o_ref[...].astype(jnp.float32)
    sum_ref[...] += jnp.sum(o, axis=0, keepdims=True)
    sq_ref[...] += jnp.sum(o * o, axis=0, keepdims=True)


def _tanh_kernel(x_ref, o_ref):
    o_ref[...] = jnp.tanh(x_ref[...].astype(jnp.float32))


# ------------------------------- helpers -----------------------------------

def _pick_tile(m, row_in_bytes, row_out_bytes, fixed_bytes=0, want_split=False):
    """Largest multiple-of-8 tile dividing m that fits the VMEM working-set
    budget (double-buffered per-row bytes + resident fixed blocks).  When
    want_split, keep >=2 grid steps so a 'parallel' axis feeds both v7x cores.
    Irregular m (not a multiple of 8) falls back to a single full tile."""
    if m % 8 != 0 or m <= 8:
        return m
    cap = max((VMEM_BUDGET - fixed_bytes) // (2 * (row_in_bytes + row_out_bytes)), 8)
    hi = min(cap, m // 2 if want_split else m)
    hi -= hi % 8
    for t in range(hi, 7, -8):
        if m % t == 0:
            return t
    return m


def _weight_matrix(w_pt, cout_pad=None):
    """PyTorch ConvTranspose2d weight (Cin, Cout, k, k) -> (Cin, k*k*Cout') bf16.

    col2im form uses the weight directly (no kernel flip):
        Y[m, (ky, kx, cout)] = sum_cin X[m, cin] * W[cin, cout, ky, kx]
    Optionally zero-pads Cout -> cout_pad so the matmul N dim is lane-dense.
    """
    cin, cout = w_pt.shape[0], w_pt.shape[1]
    wm = jnp.transpose(w_pt, (0, 2, 3, 1))                 # (cin, ky, kx, cout)
    if cout_pad is not None and cout_pad != cout:
        wm = jnp.pad(wm, ((0, 0), (0, 0), (0, 0), (0, cout_pad - cout)))
        cout = cout_pad
    return wm.reshape(cin, KSIZE * KSIZE * cout).astype(jnp.bfloat16)


def _col2im_s2p1(y, n, h, w, cout):
    """Phase-grouped overlap-add for ConvTranspose2d(k=4, stride=2, pad=1).

    y: (n*h*w, 16*cout) bf16, column order (ky, kx, cout).
    Returns (n, 2h, 2w, cout) bf16.  Each output phase (row/col parity) gets
    exactly 4 taps = pure shifted adds; one transpose interleaves the phases.
    """
    y6 = y.reshape(n, h, w, KSIZE, KSIZE, cout).astype(jnp.float32)

    def shift(a, dy, dx):
        # dy=+1: contribution comes from input row iy = q-1 (zero at q=0)
        # dy=-1: contribution comes from input row iy = q+1 (zero at q=h-1)
        if dy == 1:
            a = jnp.pad(a, ((0, 0), (1, 0), (0, 0), (0, 0)))[:, :h]
        elif dy == -1:
            a = jnp.pad(a, ((0, 0), (0, 1), (0, 0), (0, 0)))[:, 1:]
        if dx == 1:
            a = jnp.pad(a, ((0, 0), (0, 0), (1, 0), (0, 0)))[:, :, :w]
        elif dx == -1:
            a = jnp.pad(a, ((0, 0), (0, 0), (0, 1), (0, 0)))[:, :, 1:]
        return a

    # output index parity -> ((kernel tap, input shift), ...)
    taps = {0: ((1, 0), (3, +1)),     # even outputs: ky=1 from iy=q, ky=3 from iy=q-1
            1: ((2, 0), (0, -1))}     # odd  outputs: ky=2 from iy=q, ky=0 from iy=q+1

    phases = []
    for pr in (0, 1):
        row = []
        for pc in (0, 1):
            acc = None
            for ky, dy in taps[pr]:
                for kx, dx in taps[pc]:
                    t = shift(y6[:, :, :, ky, kx, :], dy, dx)
                    acc = t if acc is None else acc + t
            row.append(acc.astype(jnp.bfloat16))
        phases.append(row)

    ph = jnp.stack([jnp.stack(r, axis=0) for r in phases], axis=0)  # (2,2,n,h,w,c)
    out = ph.transpose(2, 3, 0, 4, 1, 5).reshape(n, 2 * h, 2 * w, cout)
    return out


# ---------------------------- Pallas wrappers -------------------------------

def _deconv_matmul(x_flat, w_mat, scale=None, shift=None):
    m, cin = x_flat.shape
    nd = w_mat.shape[1]
    fixed = 2 * (2 * cin * nd)                       # double-buffered bf16 weight
    tm = _pick_tile(m, 2 * cin, 2 * nd, fixed_bytes=fixed, want_split=True)
    grid = (m // tm,)
    cparams = pltpu.CompilerParams(dimension_semantics=("parallel",),
                                   vmem_limit_bytes=VMEM_LIMIT)
    if scale is None:
        return pl.pallas_call(
            _matmul_kernel,
            out_shape=jax.ShapeDtypeStruct((m, nd), jnp.bfloat16),
            grid=grid,
            in_specs=[pl.BlockSpec((tm, cin), lambda i: (i, 0)),
                      pl.BlockSpec((cin, nd), lambda i: (0, 0))],
            out_specs=pl.BlockSpec((tm, nd), lambda i: (i, 0)),
            compiler_params=cparams,
        )(x_flat, w_mat)
    return pl.pallas_call(
        _bn_relu_matmul_kernel,
        out_shape=jax.ShapeDtypeStruct((m, nd), jnp.bfloat16),
        grid=grid,
        in_specs=[pl.BlockSpec((tm, cin), lambda i: (i, 0)),
                  pl.BlockSpec((1, cin), lambda i: (0, 0)),
                  pl.BlockSpec((1, cin), lambda i: (0, 0)),
                  pl.BlockSpec((cin, nd), lambda i: (0, 0))],
        out_specs=pl.BlockSpec((tm, nd), lambda i: (i, 0)),
        compiler_params=cparams,
    )(x_flat, scale, shift, w_mat)


def _channel_stats(o_flat):
    # TODO(synk): fully removing this pass would need an in-kernel (Pallas)
    # col2im with fused sum/sum^2 accumulators; o_flat is bf16 so the pass is
    # already half the bytes of the previous version.
    m, c = o_flat.shape
    tm = _pick_tile(m, 2 * c, 0)
    return pl.pallas_call(
        _stats_kernel,
        out_shape=(jax.ShapeDtypeStruct((1, c), jnp.float32),
                   jax.ShapeDtypeStruct((1, c), jnp.float32)),
        grid=(m // tm,),
        in_specs=[pl.BlockSpec((tm, c), lambda i: (i, 0))],
        out_specs=(pl.BlockSpec((1, c), lambda i: (0, 0)),
                   pl.BlockSpec((1, c), lambda i: (0, 0))),
        compiler_params=pltpu.CompilerParams(
            dimension_semantics=("arbitrary",), vmem_limit_bytes=VMEM_LIMIT),
    )(o_flat)


def _bn_scale_shift(o_flat, gamma, beta, eps=1e-5):
    s, sq = _channel_stats(o_flat)
    m = jnp.float32(o_flat.shape[0])
    mean = s / m
    var = jnp.maximum(sq / m - mean * mean, 0.0)       # biased variance, clamped
    scale = gamma[None, :] / jnp.sqrt(var + eps)
    shift = beta[None, :] - mean * scale
    return scale, shift


def _tanh(x_flat):
    m, c = x_flat.shape
    total = m * c
    cparams = pltpu.CompilerParams(dimension_semantics=("parallel",),
                                   vmem_limit_bytes=VMEM_LIMIT)
    if total % 128 == 0:                 # lane-dense reshape for the epilogue
        rows = total // 128
        xr = x_flat.reshape(rows, 128)
        tm = _pick_tile(rows, 2 * 128, 4 * 128, want_split=True)
        out = pl.pallas_call(
            _tanh_kernel,
            out_shape=jax.ShapeDtypeStruct((rows, 128), jnp.float32),
            grid=(rows // tm,),
            in_specs=[pl.BlockSpec((tm, 128), lambda i: (i, 0))],
            out_specs=pl.BlockSpec((tm, 128), lambda i: (i, 0)),
            compiler_params=cparams,
        )(xr)
        return out.reshape(m, c)
    tm = _pick_tile(m, 2 * c, 4 * c, want_split=True)
    return pl.pallas_call(
        _tanh_kernel,
        out_shape=jax.ShapeDtypeStruct((m, c), jnp.float32),
        grid=(m // tm,),
        in_specs=[pl.BlockSpec((tm, c), lambda i: (i, 0))],
        out_specs=pl.BlockSpec((tm, c), lambda i: (i, 0)),
        compiler_params=cparams,
    )(x_flat)


# ------------------------------ model layers --------------------------------

def _deconv_s2(x_flat, nhw, w_mat, *, scale, shift):
    """ConvTranspose2d(k=4, stride=2, pad=1) in col2im form, with the previous
    layer's BN affine + ReLU fused into the matmul prologue.  x_flat is the
    *raw* (pre-BN/ReLU) NHWC-flat bf16 output of the previous layer."""
    n, h, w = nhw
    cout = w_mat.shape[1] // (KSIZE * KSIZE)
    y = _deconv_matmul(x_flat, w_mat, scale, shift)
    # TODO(synk): restructuring as 4 phase matmuls with K'=4*cin (in-kernel
    # window gather) would remove this XLA overlap-add entirely.
    o = _col2im_s2p1(y, n, h, w, cout)
    return o.reshape(n * 2 * h * 2 * w, cout), (n, 2 * h, 2 * w)


def netg_forward(z, params, ncc):
    """z: (N, nzc, 1, 1) NCHW -> (N, ncc, 64, 64) NCHW."""
    n, nzc = z.shape[0], z.shape[1]
    x = z.reshape(n, nzc)                      # H=W=1: NCHW == NHWC flat

    # Layer 1: ConvTranspose2d(nzc, 8*ngf, 4, 1, 0): 1x1 input -> 4x4 output,
    # so col2im is a pure reshape of the (ky, kx, cout) matmul columns.
    c1 = params["wm1"].shape[1] // (KSIZE * KSIZE)
    o1 = _deconv_matmul(x, params["wm1"]).reshape(n * KSIZE * KSIZE, c1)
    nhw = (n, KSIZE, KSIZE)
    s1, h1 = _bn_scale_shift(o1, params["g1"], params["b1"])

    o2, nhw = _deconv_s2(o1, nhw, params["wm2"], scale=s1, shift=h1)   # 8x8
    s2, h2 = _bn_scale_shift(o2, params["g2"], params["b2"])

    o3, nhw = _deconv_s2(o2, nhw, params["wm3"], scale=s2, shift=h2)   # 16x16
    s3, h3 = _bn_scale_shift(o3, params["g3"], params["b3"])

    o4, nhw = _deconv_s2(o3, nhw, params["wm4"], scale=s3, shift=h3)   # 32x32
    s4, h4 = _bn_scale_shift(o4, params["g4"], params["b4"])

    o5, (n, hout, wout) = _deconv_s2(o4, nhw, params["wm5"],
                                     scale=s4, shift=h4)               # 64x64
    cpad = params["wm5"].shape[1] // (KSIZE * KSIZE)

    out = _tanh(o5)                                    # (n*hout*wout, cpad) f32
    out = out.reshape(n, hout, wout, cpad).transpose(0, 3, 1, 2)
    return out[:, :ncc]                                # drop lane-pad channels


# ------------------------------- parameters ---------------------------------

def init_params(key, nzc, ngf, ncc):
    """Weights in PyTorch ConvTranspose2d layout (Cin, Cout, k, k), bias=False,
    plus BatchNorm2d affine params (gamma=1, beta=0 defaults)."""
    ks = jax.random.split(key, 5)

    def w(k, cin, cout):
        return jax.random.normal(k, (cin, cout, KSIZE, KSIZE), jnp.float32) * 0.05

    def bn(c):
        return jnp.ones((c,), jnp.float32), jnp.zeros((c,), jnp.float32)

    g1, b1 = bn(ngf * 8)
    g2, b2 = bn(ngf * 4)
    g3, b3 = bn(ngf * 2)
    g4, b4 = bn(ngf)
    return {
        "w1": w(ks[0], nzc, ngf * 8), "g1": g1, "b1": b1,
        "w2": w(ks[1], ngf * 8, ngf * 4), "g2": g2, "b2": b2,
        "w3": w(ks[2], ngf * 4, ngf * 2), "g3": g3, "b3": b3,
        "w4": w(ks[3], ngf * 2, ngf), "g4": g4, "b4": b4,
        "w5": w(ks[4], ngf, ncc),
    }


def prepare_params(raw):
    """One-time prep (outside jit): col2im weight matrices in bf16; layer-5
    output channels zero-padded to a multiple of 8 so 16*cout is lane-dense."""
    cout5 = raw["w5"].shape[1]
    cpad5 = -(-cout5 // 8) * 8
    p = {
        "wm1": _weight_matrix(raw["w1"]),
        "wm2": _weight_matrix(raw["w2"]),
        "wm3": _weight_matrix(raw["w3"]),
        "wm4": _weight_matrix(raw["w4"]),
        "wm5": _weight_matrix(raw["w5"], cout_pad=cpad5),
    }
    for k in ("g1", "b1", "g2", "b2", "g3", "b3", "g4", "b4"):
        p[k] = raw[k]
    return p


if __name__ == "__main__":
    # Small config consistent with the module's hyperparameters.
    batch, nc, num_classes, nz, ngf = 2, 3, 4, 8, 16
    ncc = nc + num_classes       # 7
    nzc = nz + num_classes       # 12

    key = jax.random.PRNGKey(0)
    kz, kp = jax.random.split(key)
    z = jax.random.normal(kz, (batch, nzc, 1, 1), jnp.float32)
    raw = init_params(kp, nzc, ngf, ncc)
    params = prepare_params(raw)          # weight prep hoisted out of the jit

    fwd = jax.jit(netg_forward, static_argnames=("ncc",))
    out = fwd(z, params, ncc=ncc)
    out = jax.block_until_ready(out)

    assert out.shape == (batch, ncc, 64, 64), out.shape
    assert bool(jnp.all(jnp.isfinite(out)))
    assert bool(jnp.all(jnp.abs(out) <= 1.0))
    print("KERNEL_OK")
</pallas_src>

<mosaic_0001>
module attributes {stable_mosaic.version = 11 : i64} {
  func.func @_matmul_kernel(%arg0: i32, %arg1: memref<2x12xf32, #tpu.memory_space<vmem>>, %arg2: memref<12x2048xbf16, #tpu.memory_space<vmem>>, %arg3: memref<2x2048xbf16, #tpu.memory_space<vmem>>) attributes {dimension_semantics = [#tpu.dimension_semantics<parallel>], iteration_bounds = array<i64: 1>, scalar_prefetch = 0 : i64, scratch_operands = 0 : i64, tpu.core_type = #tpu.core_type<tc>, window_params = [{transform_indices = @transform_0, window_bounds = array<i64: 2, 12>}, {pipeline_mode = #tpu.pipeline_mode<synchronous>, transform_indices = @transform_1, window_bounds = array<i64: 12, 2048>}, {transform_indices = @transform_2, window_bounds = array<i64: 2, 2048>}]} {
    %c0 = arith.constant 0 : index
    %c0_0 = arith.constant 0 : index
    %0 = vector.load %arg1[%c0, %c0_0] : memref<2x12xf32, #tpu.memory_space<vmem>>, vector<2x12xf32>
    %1 = arith.truncf %0 : vector<2x12xf32> to vector<2x12xbf16>
    %c0_1 = arith.constant 0 : index
    %c0_2 = arith.constant 0 : index
    %2 = vector.load %arg2[%c0_1, %c0_2] : memref<12x2048xbf16, #tpu.memory_space<vmem>>, vector<12x2048xbf16>
    %cst = arith.constant dense<0.000000e+00> : vector<2x2048xf32>
    %3 = tpu.matmul %1, %2, %cst {dimension_numbers = #tpu.dot_dimension_numbers<[1], [0], [0], [1], [0, 0, 1, 1], [], []>} : vector<2x12xbf16>, vector<12x2048xbf16>, vector<2x2048xf32> -> vector<2x2048xf32>
    %4 = arith.truncf %3 : vector<2x2048xf32> to vector<2x2048xbf16>
    %c0_3 = arith.constant 0 : index
    %c0_4 = arith.constant 0 : index
    %5 = vector.load %arg3[%c0_3, %c0_4] : memref<2x2048xbf16, #tpu.memory_space<vmem>>, vector<2x2048xbf16>
    tpu.vector_store %arg3[%c0_3, %c0_4], %4 {strides = array<i32>} : memref<2x2048xbf16, #tpu.memory_space<vmem>>, vector<2x2048xbf16>,
    return
  }
  func.func @transform_0(%arg0: i32) -> (i32, i32) {
    %c0_i32 = arith.constant 0 : i32
    %c0_i32_0 = arith.constant 0 : i32
    return %arg0, %c0_i32 : i32, i32
  }
  func.func @transform_1(%arg0: i32) -> (i32, i32) {
    %c0_i32 = arith.constant 0 : i32
    %c0_i32_0 = arith.constant 0 : i32
    %c0_i32_1 = arith.constant 0 : i32
    return %c0_i32, %c0_i32_0 : i32, i32
  }
  func.func @transform_2(%arg0: i32) -> (i32, i32) {
    %c0_i32 = arith.constant 0 : i32
    %c0_i32_0 = arith.constant 0 : i32
    return %arg0, %c0_i32 : i32, i32
  }
}

module attributes {stable_mosaic.version = 11 : i64} {
  func.func @_stats_kernel(%arg0: i32, %arg1: memref<32x128xbf16, #tpu.memory_space<vmem>>, %arg2: memref<1x128xf32, #tpu.memory_space<vmem>>, %arg3: memref<1x128xf32, #tpu.memory_space<vmem>>) attributes {dimension_semantics = [#tpu.dimension_semantics<arbitrary>], iteration_bounds = array<i64: 1>, scalar_prefetch = 0 : i64, scratch_operands = 0 : i64, tpu.core_type = #tpu.core_type<tc>, window_params = [{transform_indices = @transform_0, window_bounds = array<i64: 32, 128>}, {pipeline_mode = #tpu.pipeline_mode<synchronous>, transform_indices = @transform_1, window_bounds = array<i64: 1, 128>}, {pipeline_mode = #tpu.pipeline_mode<synchronous>, transform_indices = @transform_2, window_bounds = array<i64: 1, 128>}]} {
    %c0_i32 = arith.constant 0 : i32
    %0 = arith.cmpi eq, %arg0, %c0_i32 : i32
    %1 = arith.extui %0 : i1 to i32
    %c0_i32_0 = arith.constant 0 : i32
    %2 = arith.cmpi ne, %1, %c0_i32_0 : i32
    scf.if %2 {
      %cst_11 = arith.constant 0.000000e+00 : f32
      %16 = vector.broadcast %cst_11 : f32 to vector<1x128xf32>
      %c0_12 = arith.constant 0 : index
      %c0_13 = arith.constant 0 : index
      %17 = vector.load %arg2[%c0_12, %c0_13] : memref<1x128xf32, #tpu.memory_space<vmem>>, vector<1x128xf32>
      tpu.vector_store %arg2[%c0_12, %c0_13], %16 {strides = array<i32>} : memref<1x128xf32, #tpu.memory_space<vmem>>, vector<1x128xf32>,
      %cst_14 = arith.constant 0.000000e+00 : f32
      %18 = vector.broadcast %cst_14 : f32 to vector<1x128xf32>
      %c0_15 = arith.constant 0 : index
      %c0_16 = arith.constant 0 : index
      %19 = vector.load %arg3[%c0_15, %c0_16] : memref<1x128xf32, #tpu.memory_space<vmem>>, vector<1x128xf32>
      tpu.vector_store %arg3[%c0_15, %c0_16], %18 {strides = array<i32>} : memref<1x128xf32, #tpu.memory_space<vmem>>, vector<1x128xf32>,
    } else {
    }
    %c0 = arith.constant 0 : index
    %c0_1 = arith.constant 0 : index
    %3 = vector.load %arg1[%c0, %c0_1] : memref<32x128xbf16, #tpu.memory_space<vmem>>, vector<32x128xbf16>
    %4 = arith.extf %3 : vector<32x128xbf16> to vector<32x128xf32>
    %c0_2 = arith.constant 0 : index
    %c0_3 = arith.constant 0 : index
    %5 = vector.load %arg2[%c0_2, %c0_3] : memref<1x128xf32, #tpu.memory_space<vmem>>, vector<1x128xf32>
    %cst = arith.constant dense<0.000000e+00> : vector<128xf32>
    %6 = vector.multi_reduction <add>, %4, %cst [0] : vector<32x128xf32> to vector<128xf32>
    %7 = vector.shape_cast %6 : vector<128xf32> to vector<1x128xf32>
    %8 = arith.addf %5, %7 : vector<1x128xf32>
    %c0_4 = arith.constant 0 : index
    %c0_5 = arith.constant 0 : index
    %9 = vector.load %arg2[%c0_4, %c0_5] : memref<1x128xf32, #tpu.memory_space<vmem>>, vector<1x128xf32>
    tpu.vector_store %arg2[%c0_4, %c0_5], %8 {strides = array<i32>} : memref<1x128xf32, #tpu.memory_space<vmem>>, vector<1x128xf32>,
    %c0_6 = arith.constant 0 : index
    %c0_7 = arith.constant 0 : index
    %10 = vector.load %arg3[%c0_6, %c0_7] : memref<1x128xf32, #tpu.memory_space<vmem>>, vector<1x128xf32>
    %11 = arith.mulf %4, %4 : vector<32x128xf32>
    %cst_8 = arith.constant dense<0.000000e+00> : vector<128xf32>
    %12 = vector.multi_reduction <add>, %11, %cst_8 [0] : vector<32x128xf32> to vector<128xf32>
    %13 = vector.shape_cast %12 : vector<128xf32> to vector<1x128xf32>
    %14 = arith.addf %10, %13 : vector<1x128xf32>
    %c0_9 = arith.constant 0 : index
    %c0_10 = arith.constant 0 : index
    %15 = vector.load %arg3[%c0_9, %c0_10] : memref<1x128xf32, #tpu.memory_space<vmem>>, vector<1x128xf32>
    tpu.vector_store %arg3[%c0_9, %c0_10], %14 {strides = array<i32>} : memref<1x128xf32, #tpu.memory_space<vmem>>, vector<1x128xf32>,
    return
  }
  func.func @transform_0(%arg0: i32) -> (i32, i32) {
    %c0_i32 = arith.constant 0 : i32
    %c0_i32_0 = arith.constant 0 : i32
    return %arg0, %c0_i32 : i32, i32
  }
  func.func @transform_1(%arg0: i32) -> (i32, i32) {
    %c0_i32 = arith.constant 0 : i32
    %c0_i32_0 = arith.constant 0 : i32
    %c0_i32_1 = arith.constant 0 : i32
    return %c0_i32, %c0_i32_0 : i32, i32
  }
  func.func @transform_2(%arg0: i32) -> (i32, i32) {
    %c0_i32 = arith.constant 0 : i32
    %c0_i32_0 = arith.constant 0 : i32
    %c0_i32_1 = arith.constant 0 : i32
    return %c0_i32, %c0_i32_0 : i32, i32
  }
}

module attributes {stable_mosaic.version = 11 : i64} {
  func.func @_bn_relu_matmul_kernel(%arg0: i32, %arg1: memref<16x128xbf16, #tpu.memory_space<vmem>>, %arg2: memref<1x128xf32, #tpu.memory_space<vmem>>, %arg3: memref<1x128xf32, #tpu.memory_space<vmem>>, %arg4: memref<128x1024xbf16, #tpu.memory_space<vmem>>, %arg5: memref<16x1024xbf16, #tpu.memory_space<vmem>>) attributes {dimension_semantics = [#tpu.dimension_semantics<parallel>], iteration_bounds = array<i64: 2>, scalar_prefetch = 0 : i64, scratch_operands = 0 : i64, tpu.core_type = #tpu.core_type<tc>, window_params = [{transform_indices = @transform_0, window_bounds = array<i64: 16, 128>}, {pipeline_mode = #tpu.pipeline_mode<synchronous>, transform_indices = @transform_1, window_bounds = array<i64: 1, 128>}, {pipeline_mode = #tpu.pipeline_mode<synchronous>, transform_indices = @transform_2, window_bounds = array<i64: 1, 128>}, {pipeline_mode = #tpu.pipeline_mode<synchronous>, transform_indices = @transform_3, window_bounds = array<i64: 128, 1024>}, {transform_indices = @transform_4, window_bounds = array<i64: 16, 1024>}]} {
    %c0 = arith.constant 0 : index
    %c0_0 = arith.constant 0 : index
    %0 = vector.load %arg1[%c0, %c0_0] : memref<16x128xbf16, #tpu.memory_space<vmem>>, vector<16x128xbf16>
    %1 = arith.extf %0 : vector<16x128xbf16> to vector<16x128xf32>
    %c0_1 = arith.constant 0 : index
    %c0_2 = arith.constant 0 : index
    %2 = vector.load %arg2[%c0_1, %c0_2] : memref<1x128xf32, #tpu.memory_space<vmem>>, vector<1x128xf32>
    %3 = vector.broadcast %2 : vector<1x128xf32> to vector<16x128xf32>
    %4 = arith.mulf %1, %3 : vector<16x128xf32>
    %c0_3 = arith.constant 0 : index
    %c0_4 = arith.constant 0 : index
    %5 = vector.load %arg3[%c0_3, %c0_4] : memref<1x128xf32, #tpu.memory_space<vmem>>, vector<1x128xf32>
    %6 = vector.broadcast %5 : vector<1x128xf32> to vector<16x128xf32>
    %7 = arith.addf %4, %6 : vector<16x128xf32>
    %cst = arith.constant 0.000000e+00 : f32
    %8 = vector.broadcast %cst : f32 to vector<16x128xf32>
    %9 = arith.maximumf %7, %8 : vector<16x128xf32>
    %10 = arith.truncf %9 : vector<16x128xf32> to vector<16x128xbf16>
    %c0_5 = arith.constant 0 : index
    %c0_6 = arith.constant 0 : index
    %11 = vector.load %arg4[%c0_5, %c0_6] : memref<128x1024xbf16, #tpu.memory_space<vmem>>, vector<128x1024xbf16>
    %cst_7 = arith.constant dense<0.000000e+00> : vector<16x1024xf32>
    %12 = tpu.matmul %10, %11, %cst_7 {dimension_numbers = #tpu.dot_dimension_numbers<[1], [0], [0], [1], [0, 0, 1, 1], [], []>} : vector<16x128xbf16>, vector<128x1024xbf16>, vector<16x1024xf32> -> vector<16x1024xf32>
    %13 = arith.truncf %12 : vector<16x1024xf32> to vector<16x1024xbf16>
    %c0_8 = arith.constant 0 : index
    %c0_9 = arith.constant 0 : index
    %14 = vector.load %arg5[%c0_8, %c0_9] : memref<16x1024xbf16, #tpu.memory_space<vmem>>, vector<16x1024xbf16>
    tpu.vector_store %arg5[%c0_8, %c0_9], %13 {strides = array<i32>} : memref<16x1024xbf16, #tpu.memory_space<vmem>>, vector<16x1024xbf16>,
    return
  }
  func.func @transform_0(%arg0: i32) -> (i32, i32) {
    %c0_i32 = arith.constant 0 : i32
    %c0_i32_0 = arith.constant 0 : i32
    return %arg0, %c0_i32 : i32, i32
  }
  func.func @transform_1(%arg0: i32) -> (i32, i32) {
    %c0_i32 = arith.constant 0 : i32
    %c0_i32_0 = arith.constant 0 : i32
    %c0_i32_1 = arith.constant 0 : i32
    return %c0_i32, %c0_i32_0 : i32, i32
  }
  func.func @transform_2(%arg0: i32) -> (i32, i32) {
    %c0_i32 = arith.constant 0 : i32
    %c0_i32_0 = arith.constant 0 : i32
    %c0_i32_1 = arith.constant 0 : i32
    return %c0_i32, %c0_i32_0 : i32, i32
  }
  func.func @transform_3(%arg0: i32) -> (i32, i32) {
    %c0_i32 = arith.constant 0 : i32
    %c0_i32_0 = arith.constant 0 : i32
    %c0_i32_1 = arith.constant 0 : i32
    return %c0_i32, %c0_i32_0 : i32, i32
  }
  func.func @transform_4(%arg0: i32) -> (i32, i32) {
    %c0_i32 = arith.constant 0 : i32
    %c0_i32_0 = arith.constant 0 : i32
    return %arg0, %c0_i32 : i32, i32
  }
}

module attributes {stable_mosaic.version = 11 : i64} {
  func.func @_stats_kernel(%arg0: i32, %arg1: memref<128x64xbf16, #tpu.memory_space<vmem>>, %arg2: memref<1x64xf32, #tpu.memory_space<vmem>>, %arg3: memref<1x64xf32, #tpu.memory_space<vmem>>) attributes {dimension_semantics = [#tpu.dimension_semantics<arbitrary>], iteration_bounds = array<i64: 1>, scalar_prefetch = 0 : i64, scratch_operands = 0 : i64, tpu.core_type = #tpu.core_type<tc>, window_params = [{transform_indices = @transform_0, window_bounds = array<i64: 128, 64>}, {pipeline_mode = #tpu.pipeline_mode<synchronous>, transform_indices = @transform_1, window_bounds = array<i64: 1, 64>}, {pipeline_mode = #tpu.pipeline_mode<synchronous>, transform_indices = @transform_2, window_bounds = array<i64: 1, 64>}]} {
    %c0_i32 = arith.constant 0 : i32
    %0 = arith.cmpi eq, %arg0, %c0_i32 : i32
    %1 = arith.extui %0 : i1 to i32
    %c0_i32_0 = arith.constant 0 : i32
    %2 = arith.cmpi ne, %1, %c0_i32_0 : i32
    scf.if %2 {
      %cst_11 = arith.constant 0.000000e+00 : f32
      %16 = vector.broadcast %cst_11 : f32 to vector<1x64xf32>
      %c0_12 = arith.constant 0 : index
      %c0_13 = arith.constant 0 : index
      %17 = vector.load %arg2[%c0_12, %c0_13] : memref<1x64xf32, #tpu.memory_space<vmem>>, vector<1x64xf32>
      tpu.vector_store %arg2[%c0_12, %c0_13], %16 {strides = array<i32>} : memref<1x64xf32, #tpu.memory_space<vmem>>, vector<1x64xf32>,
      %cst_14 = arith.constant 0.000000e+00 : f32
      %18 = vector.broadcast %cst_14 : f32 to vector<1x64xf32>
      %c0_15 = arith.constant 0 : index
      %c0_16 = arith.constant 0 : index
      %19 = vector.load %arg3[%c0_15, %c0_16] : memref<1x64xf32, #tpu.memory_space<vmem>>, vector<1x64xf32>
      tpu.vector_store %arg3[%c0_15, %c0_16], %18 {strides = array<i32>} : memref<1x64xf32, #tpu.memory_space<vmem>>, vector<1x64xf32>,
    } else {
    }
    %c0 = arith.constant 0 : index
    %c0_1 = arith.constant 0 : index
    %3 = vector.load %arg1[%c0, %c0_1] : memref<128x64xbf16, #tpu.memory_space<vmem>>, vector<128x64xbf16>
    %4 = arith.extf %3 : vector<128x64xbf16> to vector<128x64xf32>
    %c0_2 = arith.constant 0 : index
    %c0_3 = arith.constant 0 : index
    %5 = vector.load %arg2[%c0_2, %c0_3] : memref<1x64xf32, #tpu.memory_space<vmem>>, vector<1x64xf32>
    %cst = arith.constant dense<0.000000e+00> : vector<64xf32>
    %6 = vector.multi_reduction <add>, %4, %cst [0] : vector<128x64xf32> to vector<64xf32>
    %7 = vector.shape_cast %6 : vector<64xf32> to vector<1x64xf32>
    %8 = arith.addf %5, %7 : vector<1x64xf32>
    %c0_4 = arith.constant 0 : index
    %c0_5 = arith.constant 0 : index
    %9 = vector.load %arg2[%c0_4, %c0_5] : memref<1x64xf32, #tpu.memory_space<vmem>>, vector<1x64xf32>
    tpu.vector_store %arg2[%c0_4, %c0_5], %8 {strides = array<i32>} : memref<1x64xf32, #tpu.memory_space<vmem>>, vector<1x64xf32>,
    %c0_6 = arith.constant 0 : index
    %c0_7 = arith.constant 0 : index
    %10 = vector.load %arg3[%c0_6, %c0_7] : memref<1x64xf32, #tpu.memory_space<vmem>>, vector<1x64xf32>
    %11 = arith.mulf %4, %4 : vector<128x64xf32>
    %cst_8 = arith.constant dense<0.000000e+00> : vector<64xf32>
    %12 = vector.multi_reduction <add>, %11, %cst_8 [0] : vector<128x64xf32> to vector<64xf32>
    %13 = vector.shape_cast %12 : vector<64xf32> to vector<1x64xf32>
    %14 = arith.addf %10, %13 : vector<1x64xf32>
    %c0_9 = arith.constant 0 : index
    %c0_10 = arith.constant 0 : index
    %15 = vector.load %arg3[%c0_9, %c0_10] : memref<1x64xf32, #tpu.memory_space<vmem>>, vector<1x64xf32>
    tpu.vector_store %arg3[%c0_9, %c0_10], %14 {strides = array<i32>} : memref<1x64xf32, #tpu.memory_space<vmem>>, vector<1x64xf32>,
    return
  }
  func.func @transform_0(%arg0: i32) -> (i32, i32) {
    %c0_i32 = arith.constant 0 : i32
    %c0_i32_0 = arith.constant 0 : i32
    return %arg0, %c0_i32 : i32, i32
  }
  func.func @transform_1(%arg0: i32) -> (i32, i32) {
    %c0_i32 = arith.constant 0 : i32
    %c0_i32_0 = arith.constant 0 : i32
    %c0_i32_1 = arith.constant 0 : i32
    return %c0_i32, %c0_i32_0 : i32, i32
  }
  func.func @transform_2(%arg0: i32) -> (i32, i32) {
    %c0_i32 = arith.constant 0 : i32
    %c0_i32_0 = arith.constant 0 : i32
    %c0_i32_1 = arith.constant 0 : i32
    return %c0_i32, %c0_i32_0 : i32, i32
  }
}

module attributes {stable_mosaic.version = 11 : i64} {
  func.func @_bn_relu_matmul_kernel(%arg0: i32, %arg1: memref<64x64xbf16, #tpu.memory_space<vmem>>, %arg2: memref<1x64xf32, #tpu.memory_space<vmem>>, %arg3: memref<1x64xf32, #tpu.memory_space<vmem>>, %arg4: memref<64x512xbf16, #tpu.memory_space<vmem>>, %arg5: memref<64x512xbf16, #tpu.memory_space<vmem>>) attributes {dimension_semantics = [#tpu.dimension_semantics<parallel>], iteration_bounds = array<i64: 2>, scalar_prefetch = 0 : i64, scratch_operands = 0 : i64, tpu.core_type = #tpu.core_type<tc>, window_params = [{transform_indices = @transform_0, window_bounds = array<i64: 64, 64>}, {pipeline_mode = #tpu.pipeline_mode<synchronous>, transform_indices = @transform_1, window_bounds = array<i64: 1, 64>}, {pipeline_mode = #tpu.pipeline_mode<synchronous>, transform_indices = @transform_2, window_bounds = array<i64: 1, 64>}, {pipeline_mode = #tpu.pipeline_mode<synchronous>, transform_indices = @transform_3, window_bounds = array<i64: 64, 512>}, {transform_indices = @transform_4, window_bounds = array<i64: 64, 512>}]} {
    %c0 = arith.constant 0 : index
    %c0_0 = arith.constant 0 : index
    %0 = vector.load %arg1[%c0, %c0_0] : memref<64x64xbf16, #tpu.memory_space<vmem>>, vector<64x64xbf16>
    %1 = arith.extf %0 : vector<64x64xbf16> to vector<64x64xf32>
    %c0_1 = arith.constant 0 : index
    %c0_2 = arith.constant 0 : index
    %2 = vector.load %arg2[%c0_1, %c0_2] : memref<1x64xf32, #tpu.memory_space<vmem>>, vector<1x64xf32>
    %3 = vector.broadcast %2 : vector<1x64xf32> to vector<64x64xf32>
    %4 = arith.mulf %1, %3 : vector<64x64xf32>
    %c0_3 = arith.constant 0 : index
    %c0_4 = arith.constant 0 : index
    %5 = vector.load %arg3[%c0_3, %c0_4] : memref<1x64xf32, #tpu.memory_space<vmem>>, vector<1x64xf32>
    %6 = vector.broadcast %5 : vector<1x64xf32> to vector<64x64xf32>
    %7 = arith.addf %4, %6 : vector<64x64xf32>
    %cst = arith.constant 0.000000e+00 : f32
    %8 = vector.broadcast %cst : f32 to vector<64x64xf32>
    %9 = arith.maximumf %7, %8 : vector<64x64xf32>
    %10 = arith.truncf %9 : vector<64x64xf32> to vector<64x64xbf16>
    %c0_5 = arith.constant 0 : index
    %c0_6 = arith.constant 0 : index
    %11 = vector.load %arg4[%c0_5, %c0_6] : memref<64x512xbf16, #tpu.memory_space<vmem>>, vector<64x512xbf16>
    %cst_7 = arith.constant dense<0.000000e+00> : vector<64x512xf32>
    %12 = tpu.matmul %10, %11, %cst_7 {dimension_numbers = #tpu.dot_dimension_numbers<[1], [0], [0], [1], [0, 0, 1, 1], [], []>} : vector<64x64xbf16>, vector<64x512xbf16>, vector<64x512xf32> -> vector<64x512xf32>
    %13 = arith.truncf %12 : vector<64x512xf32> to vector<64x512xbf16>
    %c0_8 = arith.constant 0 : index
    %c0_9 = arith.constant 0 : index
    %14 = vector.load %arg5[%c0_8, %c0_9] : memref<64x512xbf16, #tpu.memory_space<vmem>>, vector<64x512xbf16>
    tpu.vector_store %arg5[%c0_8, %c0_9], %13 {strides = array<i32>} : memref<64x512xbf16, #tpu.memory_space<vmem>>, vector<64x512xbf16>,
    return
  }
  func.func @transform_0(%arg0: i32) -> (i32, i32) {
    %c0_i32 = arith.constant 0 : i32
    %c0_i32_0 = arith.constant 0 : i32
    return %arg0, %c0_i32 : i32, i32
  }
  func.func @transform_1(%arg0: i32) -> (i32, i32) {
    %c0_i32 = arith.constant 0 : i32
    %c0_i32_0 = arith.constant 0 : i32
    %c0_i32_1 = arith.constant 0 : i32
    return %c0_i32, %c0_i32_0 : i32, i32
  }
  func.func @transform_2(%arg0: i32) -> (i32, i32) {
    %c0_i32 = arith.constant 0 : i32
    %c0_i32_0 = arith.constant 0 : i32
    %c0_i32_1 = arith.constant 0 : i32
    return %c0_i32, %c0_i32_0 : i32, i32
  }
  func.func @transform_3(%arg0: i32) -> (i32, i32) {
    %c0_i32 = arith.constant 0 : i32
    %c0_i32_0 = arith.constant 0 : i32
    %c0_i32_1 = arith.constant 0 : i32
    return %c0_i32, %c0_i32_0 : i32, i32
  }
  func.func @transform_4(%arg0: i32) -> (i32, i32) {
    %c0_i32 = arith.constant 0 : i32
    %c0_i32_0 = arith.constant 0 : i32
    return %arg0, %c0_i32 : i32, i32
  }
}

module attributes {stable_mosaic.version = 11 : i64} {
  func.func @_bn_relu_matmul_kernel(%arg0: i32, %arg1: memref<256x32xbf16, #tpu.memory_space<vmem>>, %arg2: memref<1x32xf32, #tpu.memory_space<vmem>>, %arg3: memref<1x32xf32, #tpu.memory_space<vmem>>, %arg4: memref<32x256xbf16, #tpu.memory_space<vmem>>, %arg5: memref<256x256xbf16, #tpu.memory_space<vmem>>) attributes {dimension_semantics = [#tpu.dimension_semantics<parallel>], iteration_bounds = array<i64: 2>, scalar_prefetch = 0 : i64, scratch_operands = 0 : i64, tpu.core_type = #tpu.core_type<tc>, window_params = [{transform_indices = @transform_0, window_bounds = array<i64: 256, 32>}, {pipeline_mode = #tpu.pipeline_mode<synchronous>, transform_indices = @transform_1, window_bounds = array<i64: 1, 32>}, {pipeline_mode = #tpu.pipeline_mode<synchronous>, transform_indices = @transform_2, window_bounds = array<i64: 1, 32>}, {pipeline_mode = #tpu.pipeline_mode<synchronous>, transform_indices = @transform_3, window_bounds = array<i64: 32, 256>}, {transform_indices = @transform_4, window_bounds = array<i64: 256, 256>}]} {
    %c0 = arith.constant 0 : index
    %c0_0 = arith.constant 0 : index
    %0 = vector.load %arg1[%c0, %c0_0] : memref<256x32xbf16, #tpu.memory_space<vmem>>, vector<256x32xbf16>
    %1 = arith.extf %0 : vector<256x32xbf16> to vector<256x32xf32>
    %c0_1 = arith.constant 0 : index
    %c0_2 = arith.constant 0 : index
    %2 = vector.load %arg2[%c0_1, %c0_2] : memref<1x32xf32, #tpu.memory_space<vmem>>, vector<1x32xf32>
    %3 = vector.broadcast %2 : vector<1x32xf32> to vector<256x32xf32>
    %4 = arith.mulf %1, %3 : vector<256x32xf32>
    %c0_3 = arith.constant 0 : index
    %c0_4 = arith.constant 0 : index
    %5 = vector.load %arg3[%c0_3, %c0_4] : memref<1x32xf32, #tpu.memory_space<vmem>>, vector<1x32xf32>
    %6 = vector.broadcast %5 : vector<1x32xf32> to vector<256x32xf32>
    %7 = arith.addf %4, %6 : vector<256x32xf32>
    %cst = arith.constant 0.000000e+00 : f32
    %8 = vector.broadcast %cst : f32 to vector<256x32xf32>
    %9 = arith.maximumf %7, %8 : vector<256x32xf32>
    %10 = arith.truncf %9 : vector<256x32xf32> to vector<256x32xbf16>
    %c0_5 = arith.constant 0 : index
    %c0_6 = arith.constant 0 : index
    %11 = vector.load %arg4[%c0_5, %c0_6] : memref<32x256xbf16, #tpu.memory_space<vmem>>, vector<32x256xbf16>
    %cst_7 = arith.constant dense<0.000000e+00> : vector<256x256xf32>
    %12 = tpu.matmul %10, %11, %cst_7 {dimension_numbers = #tpu.dot_dimension_numbers<[1], [0], [0], [1], [0, 0, 1, 1], [], []>} : vector<256x32xbf16>, vector<32x256xbf16>, vector<256x256xf32> -> vector<256x256xf32>
    %13 = arith.truncf %12 : vector<256x256xf32> to vector<256x256xbf16>
    %c0_8 = arith.constant 0 : index
    %c0_9 = arith.constant 0 : index
    %14 = vector.load %arg5[%c0_8, %c0_9] : memref<256x256xbf16, #tpu.memory_space<vmem>>, vector<256x256xbf16>
    tpu.vector_store %arg5[%c0_8, %c0_9], %13 {strides = array<i32>} : memref<256x256xbf16, #tpu.memory_space<vmem>>, vector<256x256xbf16>,
    return
  }
  func.func @transform_0(%arg0: i32) -> (i32, i32) {
    %c0_i32 = arith.constant 0 : i32
    %c0_i32_0 = arith.constant 0 : i32
    return %arg0, %c0_i32 : i32, i32
  }
  func.func @transform_1(%arg0: i32) -> (i32, i32) {
    %c0_i32 = arith.constant 0 : i32
    %c0_i32_0 = arith.constant 0 : i32
    %c0_i32_1 = arith.constant 0 : i32
    return %c0_i32, %c0_i32_0 : i32, i32
  }
  func.func @transform_2(%arg0: i32) -> (i32, i32) {
    %c0_i32 = arith.constant 0 : i32
    %c0_i32_0 = arith.constant 0 : i32
    %c0_i32_1 = arith.constant 0 : i32
    return %c0_i32, %c0_i32_0 : i32, i32
  }
  func.func @transform_3(%arg0: i32) -> (i32, i32) {
    %c0_i32 = arith.constant 0 : i32
    %c0_i32_0 = arith.constant 0 : i32
    %c0_i32_1 = arith.constant 0 : i32
    return %c0_i32, %c0_i32_0 : i32, i32
  }
  func.func @transform_4(%arg0: i32) -> (i32, i32) {
    %c0_i32 = arith.constant 0 : i32
    %c0_i32_0 = arith.constant 0 : i32
    return %arg0, %c0_i32 : i32, i32
  }
}

module attributes {stable_mosaic.version = 11 : i64} {
  func.func @_stats_kernel(%arg0: i32, %arg1: memref<512x32xbf16, #tpu.memory_space<vmem>>, %arg2: memref<1x32xf32, #tpu.memory_space<vmem>>, %arg3: memref<1x32xf32, #tpu.memory_space<vmem>>) attributes {dimension_semantics = [#tpu.dimension_semantics<arbitrary>], iteration_bounds = array<i64: 1>, scalar_prefetch = 0 : i64, scratch_operands = 0 : i64, tpu.core_type = #tpu.core_type<tc>, window_params = [{transform_indices = @transform_0, window_bounds = array<i64: 512, 32>}, {pipeline_mode = #tpu.pipeline_mode<synchronous>, transform_indices = @transform_1, window_bounds = array<i64: 1, 32>}, {pipeline_mode = #tpu.pipeline_mode<synchronous>, transform_indices = @transform_2, window_bounds = array<i64: 1, 32>}]} {
    %c0_i32 = arith.constant 0 : i32
    %0 = arith.cmpi eq, %arg0, %c0_i32 : i32
    %1 = arith.extui %0 : i1 to i32
    %c0_i32_0 = arith.constant 0 : i32
    %2 = arith.cmpi ne, %1, %c0_i32_0 : i32
    scf.if %2 {
      %cst_11 = arith.constant 0.000000e+00 : f32
      %16 = vector.broadcast %cst_11 : f32 to vector<1x32xf32>
      %c0_12 = arith.constant 0 : index
      %c0_13 = arith.constant 0 : index
      %17 = vector.load %arg2[%c0_12, %c0_13] : memref<1x32xf32, #tpu.memory_space<vmem>>, vector<1x32xf32>
      tpu.vector_store %arg2[%c0_12, %c0_13], %16 {strides = array<i32>} : memref<1x32xf32, #tpu.memory_space<vmem>>, vector<1x32xf32>,
      %cst_14 = arith.constant 0.000000e+00 : f32
      %18 = vector.broadcast %cst_14 : f32 to vector<1x32xf32>
      %c0_15 = arith.constant 0 : index
      %c0_16 = arith.constant 0 : index
      %19 = vector.load %arg3[%c0_15, %c0_16] : memref<1x32xf32, #tpu.memory_space<vmem>>, vector<1x32xf32>
      tpu.vector_store %arg3[%c0_15, %c0_16], %18 {strides = array<i32>} : memref<1x32xf32, #tpu.memory_space<vmem>>, vector<1x32xf32>,
    } else {
    }
    %c0 = arith.constant 0 : index
    %c0_1 = arith.constant 0 : index
    %3 = vector.load %arg1[%c0, %c0_1] : memref<512x32xbf16, #tpu.memory_space<vmem>>, vector<512x32xbf16>
    %4 = arith.extf %3 : vector<512x32xbf16> to vector<512x32xf32>
    %c0_2 = arith.constant 0 : index
    %c0_3 = arith.constant 0 : index
    %5 = vector.load %arg2[%c0_2, %c0_3] : memref<1x32xf32, #tpu.memory_space<vmem>>, vector<1x32xf32>
    %cst = arith.constant dense<0.000000e+00> : vector<32xf32>
    %6 = vector.multi_reduction <add>, %4, %cst [0] : vector<512x32xf32> to vector<32xf32>
    %7 = vector.shape_cast %6 : vector<32xf32> to vector<1x32xf32>
    %8 = arith.addf %5, %7 : vector<1x32xf32>
    %c0_4 = arith.constant 0 : index
    %c0_5 = arith.constant 0 : index
    %9 = vector.load %arg2[%c0_4, %c0_5] : memref<1x32xf32, #tpu.memory_space<vmem>>, vector<1x32xf32>
    tpu.vector_store %arg2[%c0_4, %c0_5], %8 {strides = array<i32>} : memref<1x32xf32, #tpu.memory_space<vmem>>, vector<1x32xf32>,
    %c0_6 = arith.constant 0 : index
    %c0_7 = arith.constant 0 : index
    %10 = vector.load %arg3[%c0_6, %c0_7] : memref<1x32xf32, #tpu.memory_space<vmem>>, vector<1x32xf32>
    %11 = arith.mulf %4, %4 : vector<512x32xf32>
    %cst_8 = arith.constant dense<0.000000e+00> : vector<32xf32>
    %12 = vector.multi_reduction <add>, %11, %cst_8 [0] : vector<512x32xf32> to vector<32xf32>
    %13 = vector.shape_cast %12 : vector<32xf32> to vector<1x32xf32>
    %14 = arith.addf %10, %13 : vector<1x32xf32>
    %c0_9 = arith.constant 0 : index
    %c0_10 = arith.constant 0 : index
    %15 = vector.load %arg3[%c0_9, %c0_10] : memref<1x32xf32, #tpu.memory_space<vmem>>, vector<1x32xf32>
    tpu.vector_store %arg3[%c0_9, %c0_10], %14 {strides = array<i32>} : memref<1x32xf32, #tpu.memory_space<vmem>>, vector<1x32xf32>,
    return
  }
  func.func @transform_0(%arg0: i32) -> (i32, i32) {
    %c0_i32 = arith.constant 0 : i32
    %c0_i32_0 = arith.constant 0 : i32
    return %arg0, %c0_i32 : i32, i32
  }
  func.func @transform_1(%arg0: i32) -> (i32, i32) {
    %c0_i32 = arith.constant 0 : i32
    %c0_i32_0 = arith.constant 0 : i32
    %c0_i32_1 = arith.constant 0 : i32
    return %c0_i32, %c0_i32_0 : i32, i32
  }
  func.func @transform_2(%arg0: i32) -> (i32, i32) {
    %c0_i32 = arith.constant 0 : i32
    %c0_i32_0 = arith.constant 0 : i32
    %c0_i32_1 = arith.constant 0 : i32
    return %c0_i32, %c0_i32_0 : i32, i32
  }
}

module attributes {stable_mosaic.version = 11 : i64} {
  func.func @_stats_kernel(%arg0: i32, %arg1: memref<2048x16xbf16, #tpu.memory_space<vmem>>, %arg2: memref<1x16xf32, #tpu.memory_space<vmem>>, %arg3: memref<1x16xf32, #tpu.memory_space<vmem>>) attributes {dimension_semantics = [#tpu.dimension_semantics<arbitrary>], iteration_bounds = array<i64: 1>, scalar_prefetch = 0 : i64, scratch_operands = 0 : i64, tpu.core_type = #tpu.core_type<tc>, window_params = [{transform_indices = @transform_0, window_bounds = array<i64: 2048, 16>}, {pipeline_mode = #tpu.pipeline_mode<synchronous>, transform_indices = @transform_1, window_bounds = array<i64: 1, 16>}, {pipeline_mode = #tpu.pipeline_mode<synchronous>, transform_indices = @transform_2, window_bounds = array<i64: 1, 16>}]} {
    %c0_i32 = arith.constant 0 : i32
    %0 = arith.cmpi eq, %arg0, %c0_i32 : i32
    %1 = arith.extui %0 : i1 to i32
    %c0_i32_0 = arith.constant 0 : i32
    %2 = arith.cmpi ne, %1, %c0_i32_0 : i32
    scf.if %2 {
      %cst_11 = arith.constant 0.000000e+00 : f32
      %16 = vector.broadcast %cst_11 : f32 to vector<1x16xf32>
      %c0_12 = arith.constant 0 : index
      %c0_13 = arith.constant 0 : index
      %17 = vector.load %arg2[%c0_12, %c0_13] : memref<1x16xf32, #tpu.memory_space<vmem>>, vector<1x16xf32>
      tpu.vector_store %arg2[%c0_12, %c0_13], %16 {strides = array<i32>} : memref<1x16xf32, #tpu.memory_space<vmem>>, vector<1x16xf32>,
      %cst_14 = arith.constant 0.000000e+00 : f32
      %18 = vector.broadcast %cst_14 : f32 to vector<1x16xf32>
      %c0_15 = arith.constant 0 : index
      %c0_16 = arith.constant 0 : index
      %19 = vector.load %arg3[%c0_15, %c0_16] : memref<1x16xf32, #tpu.memory_space<vmem>>, vector<1x16xf32>
      tpu.vector_store %arg3[%c0_15, %c0_16], %18 {strides = array<i32>} : memref<1x16xf32, #tpu.memory_space<vmem>>, vector<1x16xf32>,
    } else {
    }
    %c0 = arith.constant 0 : index
    %c0_1 = arith.constant 0 : index
    %3 = vector.load %arg1[%c0, %c0_1] : memref<2048x16xbf16, #tpu.memory_space<vmem>>, vector<2048x16xbf16>
    %4 = arith.extf %3 : vector<2048x16xbf16> to vector<2048x16xf32>
    %c0_2 = arith.constant 0 : index
    %c0_3 = arith.constant 0 : index
    %5 = vector.load %arg2[%c0_2, %c0_3] : memref<1x16xf32, #tpu.memory_space<vmem>>, vector<1x16xf32>
    %cst = arith.constant dense<0.000000e+00> : vector<16xf32>
    %6 = vector.multi_reduction <add>, %4, %cst [0] : vector<2048x16xf32> to vector<16xf32>
    %7 = vector.shape_cast %6 : vector<16xf32> to vector<1x16xf32>
    %8 = arith.addf %5, %7 : vector<1x16xf32>
    %c0_4 = arith.constant 0 : index
    %c0_5 = arith.constant 0 : index
    %9 = vector.load %arg2[%c0_4, %c0_5] : memref<1x16xf32, #tpu.memory_space<vmem>>, vector<1x16xf32>
    tpu.vector_store %arg2[%c0_4, %c0_5], %8 {strides = array<i32>} : memref<1x16xf32, #tpu.memory_space<vmem>>, vector<1x16xf32>,
    %c0_6 = arith.constant 0 : index
    %c0_7 = arith.constant 0 : index
    %10 = vector.load %arg3[%c0_6, %c0_7] : memref<1x16xf32, #tpu.memory_space<vmem>>, vector<1x16xf32>
    %11 = arith.mulf %4, %4 : vector<2048x16xf32>
    %cst_8 = arith.constant dense<0.000000e+00> : vector<16xf32>
    %12 = vector.multi_reduction <add>, %11, %cst_8 [0] : vector<2048x16xf32> to vector<16xf32>
    %13 = vector.shape_cast %12 : vector<16xf32> to vector<1x16xf32>
    %14 = arith.addf %10, %13 : vector<1x16xf32>
    %c0_9 = arith.constant 0 : index
    %c0_10 = arith.constant 0 : index
    %15 = vector.load %arg3[%c0_9, %c0_10] : memref<1x16xf32, #tpu.memory_space<vmem>>, vector<1x16xf32>
    tpu.vector_store %arg3[%c0_9, %c0_10], %14 {strides = array<i32>} : memref<1x16xf32, #tpu.memory_space<vmem>>, vector<1x16xf32>,
    return
  }
  func.func @transform_0(%arg0: i32) -> (i32, i32) {
    %c0_i32 = arith.constant 0 : i32
    %c0_i32_0 = arith.constant 0 : i32
    return %arg0, %c0_i32 : i32, i32
  }
  func.func @transform_1(%arg0: i32) -> (i32, i32) {
    %c0_i32 = arith.constant 0 : i32
    %c0_i32_0 = arith.constant 0 : i32
    %c0_i32_1 = arith.constant 0 : i32
    return %c0_i32, %c0_i32_0 : i32, i32
  }
  func.func @transform_2(%arg0: i32) -> (i32, i32) {
    %c0_i32 = arith.constant 0 : i32
    %c0_i32_0 = arith.constant 0 : i32
    %c0_i32_1 = arith.constant 0 : i32
    return %c0_i32, %c0_i32_0 : i32, i32
  }
}

module attributes {stable_mosaic.version = 11 : i64} {
  func.func @_bn_relu_matmul_kernel(%arg0: i32, %arg1: memref<1024x16xbf16, #tpu.memory_space<vmem>>, %arg2: memref<1x16xf32, #tpu.memory_space<vmem>>, %arg3: memref<1x16xf32, #tpu.memory_space<vmem>>, %arg4: memref<16x128xbf16, #tpu.memory_space<vmem>>, %arg5: memref<1024x128xbf16, #tpu.memory_space<vmem>>) attributes {dimension_semantics = [#tpu.dimension_semantics<parallel>], iteration_bounds = array<i64: 2>, scalar_prefetch = 0 : i64, scratch_operands = 0 : i64, tpu.core_type = #tpu.core_type<tc>, window_params = [{transform_indices = @transform_0, window_bounds = array<i64: 1024, 16>}, {pipeline_mode = #tpu.pipeline_mode<synchronous>, transform_indices = @transform_1, window_bounds = array<i64: 1, 16>}, {pipeline_mode = #tpu.pipeline_mode<synchronous>, transform_indices = @transform_2, window_bounds = array<i64: 1, 16>}, {pipeline_mode = #tpu.pipeline_mode<synchronous>, transform_indices = @transform_3, window_bounds = array<i64: 16, 128>}, {transform_indices = @transform_4, window_bounds = array<i64: 1024, 128>}]} {
    %c0 = arith.constant 0 : index
    %c0_0 = arith.constant 0 : index
    %0 = vector.load %arg1[%c0, %c0_0] : memref<1024x16xbf16, #tpu.memory_space<vmem>>, vector<1024x16xbf16>
    %1 = arith.extf %0 : vector<1024x16xbf16> to vector<1024x16xf32>
    %c0_1 = arith.constant 0 : index
    %c0_2 = arith.constant 0 : index
    %2 = vector.load %arg2[%c0_1, %c0_2] : memref<1x16xf32, #tpu.memory_space<vmem>>, vector<1x16xf32>
    %3 = vector.broadcast %2 : vector<1x16xf32> to vector<1024x16xf32>
    %4 = arith.mulf %1, %3 : vector<1024x16xf32>
    %c0_3 = arith.constant 0 : index
    %c0_4 = arith.constant 0 : index
    %5 = vector.load %arg3[%c0_3, %c0_4] : memref<1x16xf32, #tpu.memory_space<vmem>>, vector<1x16xf32>
    %6 = vector.broadcast %5 : vector<1x16xf32> to vector<1024x16xf32>
    %7 = arith.addf %4, %6 : vector<1024x16xf32>
    %cst = arith.constant 0.000000e+00 : f32
    %8 = vector.broadcast %cst : f32 to vector<1024x16xf32>
    %9 = arith.maximumf %7, %8 : vector<1024x16xf32>
    %10 = arith.truncf %9 : vector<1024x16xf32> to vector<1024x16xbf16>
    %c0_5 = arith.constant 0 : index
    %c0_6 = arith.constant 0 : index
    %11 = vector.load %arg4[%c0_5, %c0_6] : memref<16x128xbf16, #tpu.memory_space<vmem>>, vector<16x128xbf16>
    %cst_7 = arith.constant dense<0.000000e+00> : vector<1024x128xf32>
    %12 = tpu.matmul %10, %11, %cst_7 {dimension_numbers = #tpu.dot_dimension_numbers<[1], [0], [0], [1], [0, 0, 1, 1], [], []>} : vector<1024x16xbf16>, vector<16x128xbf16>, vector<1024x128xf32> -> vector<1024x128xf32>
    %13 = arith.truncf %12 : vector<1024x128xf32> to vector<1024x128xbf16>
    %c0_8 = arith.constant 0 : index
    %c0_9 = arith.constant 0 : index
    %14 = vector.load %arg5[%c0_8, %c0_9] : memref<1024x128xbf16, #tpu.memory_space<vmem>>, vector<1024x128xbf16>
    tpu.vector_store %arg5[%c0_8, %c0_9], %13 {strides = array<i32>} : memref<1024x128xbf16, #tpu.memory_space<vmem>>, vector<1024x128xbf16>,
    return
  }
  func.func @transform_0(%arg0: i32) -> (i32, i32) {
    %c0_i32 = arith.constant 0 : i32
    %c0_i32_0 = arith.constant 0 : i32
    return %arg0, %c0_i32 : i32, i32
  }
  func.func @transform_1(%arg0: i32) -> (i32, i32) {
    %c0_i32 = arith.constant 0 : i32
    %c0_i32_0 = arith.constant 0 : i32
    %c0_i32_1 = arith.constant 0 : i32
    return %c0_i32, %c0_i32_0 : i32, i32
  }
  func.func @transform_2(%arg0: i32) -> (i32, i32) {
    %c0_i32 = arith.constant 0 : i32
    %c0_i32_0 = arith.constant 0 : i32
    %c0_i32_1 = arith.constant 0 : i32
    return %c0_i32, %c0_i32_0 : i32, i32
  }
  func.func @transform_3(%arg0: i32) -> (i32, i32) {
    %c0_i32 = arith.constant 0 : i32
    %c0_i32_0 = arith.constant 0 : i32
    %c0_i32_1 = arith.constant 0 : i32
    return %c0_i32, %c0_i32_0 : i32, i32
  }
  func.func @transform_4(%arg0: i32) -> (i32, i32) {
    %c0_i32 = arith.constant 0 : i32
    %c0_i32_0 = arith.constant 0 : i32
    return %arg0, %c0_i32 : i32, i32
  }
}

module attributes {stable_mosaic.version = 11 : i64} {
  func.func @_tanh_kernel(%arg0: i32, %arg1: memref<256x128xbf16, #tpu.memory_space<vmem>>, %arg2: memref<256x128xf32, #tpu.memory_space<vmem>>) attributes {dimension_semantics = [#tpu.dimension_semantics<parallel>], iteration_bounds = array<i64: 2>, scalar_prefetch = 0 : i64, scratch_operands = 0 : i64, tpu.core_type = #tpu.core_type<tc>, window_params = [{transform_indices = @transform_0, window_bounds = array<i64: 256, 128>}, {transform_indices = @transform_1, window_bounds = array<i64: 256, 128>}]} {
    %c0 = arith.constant 0 : index
    %c0_0 = arith.constant 0 : index
    %0 = vector.load %arg1[%c0, %c0_0] : memref<256x128xbf16, #tpu.memory_space<vmem>>, vector<256x128xbf16>
    %1 = arith.extf %0 : vector<256x128xbf16> to vector<256x128xf32>
    %2 = math.tanh %1 : vector<256x128xf32>
    %c0_1 = arith.constant 0 : index
    %c0_2 = arith.constant 0 : index
    %3 = vector.load %arg2[%c0_1, %c0_2] : memref<256x128xf32, #tpu.memory_space<vmem>>, vector<256x128xf32>
    tpu.vector_store %arg2[%c0_1, %c0_2], %2 {strides = array<i32>} : memref<256x128xf32, #tpu.memory_space<vmem>>, vector<256x128xf32>,
    return
  }
  func.func @transform_0(%arg0: i32) -> (i32, i32) {
    %c0_i32 = arith.constant 0 : i32
    %c0_i32_0 = arith.constant 0 : i32
    return %arg0, %c0_i32 : i32, i32
  }
  func.func @transform_1(%arg0: i32) -> (i32, i32) {
    %c0_i32 = arith.constant 0 : i32
    %c0_i32_0 = arith.constant 0 : i32
    return %arg0, %c0_i32 : i32, i32
  }
}

</mosaic_0001>

<bundles_post_ra>
// kernel: netg_forward.10
= control target key start
LH: loop header
LB: loop body
LE: loop exit
PB: predicated region body
PF: predicated region fallthrough
CT: control target
= control target key end

     0   :  { %7 = vsyncpa [#allocation3], 0  ;;  %s709_s0 = inlined_call_operand.hbm [shape: f32[2,12], index: 0, kind: input, shape index: {}]   ;;  %s710_s1 = inlined_call_operand.hbm [shape: bf16[12,2048], index: 1, kind: input, shape index: {}]   ;;  %s711_s2 = inlined_call_operand.vmem [shape: bf16[2,2048], index: 2, kind: output, shape index: {}]  }
   0x1   :  { %s14_s11 = sshll.u32 %s709_s0, 4  ;;  %s15_s11 = int_to_ptr.hbm [resolvable:$true] %s14_s11 }
   0x2   :  { %8 = vsyncpa [#allocation5], 0  ;;  %s614_s12 = smov [#allocation2]   ;;  %s24_s16 = sshll.u32 %s710_s1, 4  ;;  %s25_s16 = int_to_ptr.hbm [resolvable:$true] %s24_s16 }
   0x3   :  { %s16_s13 = sshll.u32 %s614_s12, 4  ;;  %s615_s17 = smov [#allocation4]   ;;  %s17_s13 = int_to_ptr.vmem [resolvable:$true] %s16_s13 }
   0x4   :  { %19 = dma.hbm_to_vmem [thread:$0]  %s15_s11, 32, %s17_s13, [#allocation3]  }
   0x5   :  { %s26_s18 = sshll.u32 %s615_s17, 4  ;;  %s616_s19 = smov 1024   ;;  %s27_s18 = int_to_ptr.vmem [resolvable:$true] %s26_s18 }
   0x6   :  { %s617_s20 = smov 64  }
   0x7   :  { %32 = dma.hbm_to_vmem [thread:$0]  %s25_s16, 2048, %s27_s18, [#allocation5], %s616_s19, %s616_s19, %s617_s20  }
   0x8   :  { %610 = dma.done.wait [#allocation3], 32  }
   0x9   :  { %611 = vsyncadd [#allocation3], 4294967264 }
   0xa   :  { %612 = dma.done.wait [#allocation5], 2048  }
   0xb   :  { %613 = vsyncadd [#allocation5], 4294965248  ;;  %vm128_vm0 = vcmask 1045504   ;;  %v464_v0 = vld [vmem:[#allocation4] sm:$0xf]  ;;  %vm124_vm1 = vcmask 97280  }
   0xc   :  { %v550_v1 = vld [vmem:[#allocation4 + $0x3c] sm:$0x30]  ;;  %v542_v2 = vld [vmem:[#allocation4 + $0x4] sm:$0xf]  ;;  %v472_v5 = vld [vmem:[#allocation4 + $0x8] sm:$0xf] }
   0xd   :  { %v465_v3 = vor.u32 %v550_v1, %v464_v0  ;;  %v466_v4 = vld [vmem:[#allocation4 + $0x40] sm:$0x30]  ;;  %v551_v6 = vld [vmem:[#allocation4 + $0x44] sm:$0x30]  ;;  %v543_v9 = vld [vmem:[#allocation4 + $0xc] sm:$0xf] }
   0xe   :  { %v469_v7 = vor.u32 %v542_v2, %v466_v4  ;;  %v473_v8 = vor.u32 %v551_v6, %v472_v5  ;;  %v474_v10 = vld [vmem:[#allocation4 + $0x48] sm:$0x30]  ;;  %v42_v11 = vld [vmem:[#allocation2] sm:$0x3]  ;;  %v488_v15 = vld [vmem:[#allocation4 + $0x18] sm:$0xf] }
   0xf   :  { %v130_v12 = vsel %vm128_vm0, %v465_v3, 0  ;;  %v477_v13 = vor.u32 %v543_v9, %v474_v10  ;;  %v640_v14 = vpack.c.bf16 %v42_v11, %v42_v11  ;;  %v553_v16 = vld [vmem:[#allocation4 + $0x54] sm:$0x30]  ;;  %v545_v20 = vld [vmem:[#allocation4 + $0x1c] sm:$0xf]  ;;  %vm419_vm2 = vcmask 1042434  }
  0x10   :  { %184 = vmatpush.bf16.msra.mxu0 %v130_v12  ;;  %v133_v17 = vsel %vm128_vm0, %v469_v7, 0  ;;  %v136_v18 = vsel %vm128_vm0, %v473_v8, 0  ;;  %v489_v19 = vor.u32 %v553_v16, %v488_v15  ;;  %v490_v21 = vld [vmem:[#allocation4 + $0x58] sm:$0x30]  ;;  %v480_v24 = vld [vmem:[#allocation4 + $0x10] sm:$0xf] }
  0x11   :  { %197 = vmatpush.bf16.msra.mxu1 %v133_v17  ;;  %210 = vmatpush.bf16.msra.mxu2 %v136_v18  ;;  %v139_v22 = vsel %vm128_vm0, %v477_v13, 0  ;;  %v493_v23 = vor.u32 %v545_v20, %v490_v21  ;;  %v552_v25 = vld [vmem:[#allocation4 + $0x4c] sm:$0x30]  ;;  %v544_v28 = vld [vmem:[#allocation4 + $0x14] sm:$0xf]  ;;  %vm425_vm3 = vcmask 1044484  }
  0x12   :  { %223 = vmatpush.bf16.msra.mxu3 %v139_v22  ;;  %v148_v26 = vsel %vm128_vm0, %v489_v19, 0  ;;  %v481_v27 = vor.u32 %v552_v25, %v480_v24  ;;  %v482_v29 = vld [vmem:[#allocation4 + $0x50] sm:$0x30]  ;;  %v504_v32 = vld [vmem:[#allocation4 + $0x28] sm:$0xf]  ;;  %vm415_vm4 = vcmask 1040384  }
  0x13   :  { %526 = vmatmul.msk.bf16.vlgmr.msra.gmra.mxu0 %vm124_vm1, %v640_v14  ;;  %v151_v30 = vsel %vm128_vm0, %v493_v23, 0  ;;  %v485_v31 = vor.u32 %v544_v28, %v482_v29  ;;  %v555_v33 = vld [vmem:[#allocation4 + $0x64] sm:$0x30]  ;;  %v547_v36 = vld [vmem:[#allocation4 + $0x2c] sm:$0xf]  ;;  %vm423_vm5 = vcmask 1041408  }
  0x14   :  { %527 = vmatmul.msk.bf16.vlgmr.msra.gmra.mxu1 %vm124_vm1, %v640_v14  ;;  %528 = vmatmul.msk.bf16.vlgmr.msra.gmra.mxu2 %vm124_vm1, %v640_v14  ;;  %v142_v34 = vsel %vm128_vm0, %v481_v27, 0  ;;  %v505_v35 = vor.u32 %v555_v33, %v504_v32  ;;  %v506_v37 = vld [vmem:[#allocation4 + $0x68] sm:$0x30]  ;;  %v496_v40 = vld [vmem:[#allocation4 + $0x20] sm:$0xf]  ;;  %vm429_vm6 = vcmask 1046534  }
  0x15   :  { %262 = vmatpush.bf16.msrb.mxu2 %v148_v26  ;;  %529 = vmatmul.msk.bf16.vlgmr.msra.gmra.mxu3 %vm124_vm1, %v640_v14  ;;  %v145_v38 = vsel %vm128_vm0, %v485_v31, 0  ;;  %v509_v39 = vor.u32 %v547_v36, %v506_v37  ;;  %v554_v41 = vld [vmem:[#allocation4 + $0x5c] sm:$0x30]  ;;  %v546_v44 = vld [vmem:[#allocation4 + $0x24] sm:$0xf]  ;;  %vm433_vm7 = vcmask 1045508  }
  0x16   :  { %236 = vmatpush.bf16.msrb.mxu0 %v142_v34  ;;  %275 = vmatpush.bf16.msrb.mxu3 %v151_v30  ;;  %v160_v42 = vsel %vm128_vm0, %v505_v35, 0  ;;  %v497_v43 = vor.u32 %v554_v41, %v496_v40  ;;  %v498_v45 = vld [vmem:[#allocation4 + $0x60] sm:$0x30]  ;;  %v520_v50 = vld [vmem:[#allocation4 + $0x38] sm:$0xf]  ;;  %vm435_vm8 = vcmask 1043456  }
  0x17   :  { %249 = vmatpush.bf16.msrb.mxu1 %v145_v38  ;;  %v163_v46 = vsel %vm128_vm0, %v509_v39, 0  ;;  %v501_v47 = vor.u32 %v546_v44, %v498_v45  ;;  %v557_v51 = vld [vmem:[#allocation4 + $0x74] sm:$0x30]  ;;  %v549_v52 = vld [vmem:[#allocation4 + $0x3c] sm:$0xf] }
  0x18   :  { %v154_v48 = vsel %vm128_vm0, %v497_v43, 0  ;;  %v522_v53 = vld [vmem:[#allocation4 + $0x78] sm:$0x30]  ;;  %v512_v54 = vld [vmem:[#allocation4 + $0x30] sm:$0xf]  ;;  %v521_v58 = vor.u32 %v557_v51, %v520_v50 }
  0x19   :  { %314 = vmatpush.bf16.msra.mxu2 %v160_v42  ;;  %v157_v49 = vsel %vm128_vm0, %v501_v47, 0  ;;  %v556_v55 = vld [vmem:[#allocation4 + $0x6c] sm:$0x30]  ;;  %v548_v56 = vld [vmem:[#allocation4 + $0x34] sm:$0xf]  ;;  %v525_v59 = vor.u32 %v549_v52, %v522_v53 }
  0x1a   :  { %327 = vmatpush.bf16.msra.mxu3 %v163_v46  ;;  %288 = vmatpush.bf16.msra.mxu0 %v154_v48  ;;  %v514_v57 = vld [vmem:[#allocation4 + $0x70] sm:$0x30]  ;;  %v513_v60 = vor.u32 %v556_v55, %v512_v54  ;;  %v172_v62 = vsel %vm128_vm0, %v521_v58, 0 }
  0x1b   :  { %301 = vmatpush.bf16.msra.mxu1 %v157_v49  ;;  %v517_v61 = vor.u32 %v548_v56, %v514_v57  ;;  %v175_v63 = vsel %vm128_vm0, %v525_v59, 0 }
  0x1c   :  { %v166_v0 = vsel %vm128_vm0, %v513_v60, 0 }
  0x1d   :  { %v169_v1 = vsel %vm128_vm0, %v517_v61, 0 }
  0x23   :  { %530 = vmatmul.msk.bf16.vlgmr.msrb.gmra.mxu0 %vm124_vm1, %v640_v14 }
  0x24   :  { %531 = vmatmul.msk.bf16.vlgmr.msrb.gmra.mxu1 %vm124_vm1, %v640_v14  ;;  %532 = vmatmul.msk.bf16.vlgmr.msrb.gmra.mxu2 %vm124_vm1, %v640_v14 }
  0x25   :  { %533 = vmatmul.msk.bf16.vlgmr.msrb.gmra.mxu3 %vm124_vm1, %v640_v14  ;;  %366 = vmatpush.bf16.msrb.mxu2 %v172_v62 }
  0x26   :  { %379 = vmatpush.bf16.msrb.mxu3 %v175_v63  ;;  %340 = vmatpush.bf16.msrb.mxu0 %v166_v0 }
  0x27   :  { %353 = vmatpush.bf16.msrb.mxu1 %v169_v1 }
  0x33   :  { %534 = vmatmul.msk.bf16.vlgmr.msra.gmra.mxu0 %vm124_vm1, %v640_v14 }
  0x34   :  { %535 = vmatmul.msk.bf16.vlgmr.msra.gmra.mxu1 %vm124_vm1, %v640_v14  ;;  %536 = vmatmul.msk.bf16.vlgmr.msra.gmra.mxu2 %vm124_vm1, %v640_v14 }
  0x35   :  { %537 = vmatmul.msk.bf16.vlgmr.msra.gmra.mxu3 %vm124_vm1, %v640_v14 }
  0x43   :  { %538 = vmatmul.msk.bf16.vlgmr.msrb.gmra.mxu0 %vm124_vm1, %v640_v14 }
  0x44   :  { %539 = vmatmul.msk.bf16.vlgmr.msrb.gmra.mxu1 %vm124_vm1, %v640_v14  ;;  %540 = vmatmul.msk.bf16.vlgmr.msrb.gmra.mxu2 %vm124_vm1, %v640_v14 }
  0x45   :  { %541 = vmatmul.msk.bf16.vlgmr.msrb.gmra.mxu3 %vm124_vm1, %v640_v14 }
  0x90   :  { %v186_v2 = vpop.f32.mrf.mxu0 }
  0x91   :  { %v199_v3 = vpop.f32.mrf.mxu1 }
  0x92   :  { %v385_v15 = vpack.c.bf16 %v199_v3, %v186_v2 }
  0x94   :  { %v401_v22 = vrot.slane %v385_v15, 3 }
  0x96   :  { %v418_v29 = vsel %vm415_vm4, %v385_v15, %v401_v22 }
  0x97   :  { %v212_v4 = vpop.f32.mrf.mxu2 }
  0x98   :  { %v225_v5 = vpop.f32.mrf.mxu3  ;;  %v188_v6 = vpop.f32.mrf.mxu0 }
  0x99   :  { %v201_v7 = vpop.f32.mrf.mxu1  ;;  %v386_v12 = vpack.c.bf16 %v225_v5, %v212_v4 }
  0x9b   :  { %v402_v16 = vrot.slane %v386_v12, 6  ;;  %v403_v17 = vrot.slane %v386_v12, 1 }
  0x9d   :  { %v422_v25 = vsel %vm419_vm2, %v402_v16, %v403_v17 }
  0x9e   :  { %v424_v31 = vsel %vm423_vm5, %v418_v29, %v422_v25 }
  0x9f   :  { %v214_v8 = vpop.f32.mrf.mxu2 }
  0xa0   :  { %v227_v9 = vpop.f32.mrf.mxu3  ;;  %v238_v10 = vpop.f32.mrf.mxu0 }
  0xa1   :  { %v251_v11 = vpop.f32.mrf.mxu1 }
  0xa2   :  { %v387_v13 = vpack.c.bf16 %v251_v11, %v238_v10 }
  0xa4   :  { %v404_v18 = vrot.slane %v387_v13, 4  ;;  %v405_v19 = vrot.slane %v387_v13, 7 }
  0xa6   :  { %v428_v26 = vsel %vm425_vm3, %v404_v18, %v405_v19 }
  0xa7   :  { %v264_v20 = vpop.f32.mrf.mxu2 }
  0xa8   :  { %v277_v14 = vpop.f32.mrf.mxu3  ;;  %v240_v21 = vpop.f32.mrf.mxu0 }
  0xa9   :  { %v388_v23 = vpack.c.bf16 %v277_v14, %v264_v20  ;;  %v253_v24 = vpop.f32.mrf.mxu1 }
  0xab   :  { %v406_v27 = vrot.slane %v388_v23, 2  ;;  %v407_v28 = vrot.slane %v388_v23, 5 }
  0xad   :  { %v432_v30 = vsel %vm429_vm6, %v406_v27, %v407_v28 }
  0xae   :  { %v434_v32 = vsel %vm433_vm7, %v428_v26, %v432_v30 }
  0xaf   :  { %v436_v33 = vsel %vm435_vm8, %v424_v31, %v434_v32  ;;  %v266_v34 = vpop.f32.mrf.mxu2 }
  0xb0   :  { %454 = vst [vmem:[%s711_s2] sm:$0xff] %v436_v33  ;;  %v279_v35 = vpop.f32.mrf.mxu3  ;;  %v290_v36 = vpop.f32.mrf.mxu0 }
  0xb1   :  { %v303_v37 = vpop.f32.mrf.mxu1 }
  0xb2   :  { %v389_v48 = vpack.c.bf16 %v303_v37, %v290_v36 }
  0xb4   :  { %v408_v56 = vrot.slane %v389_v48, 3 }
  0xb6   :  { %v439_v63 = vsel %vm415_vm4, %v389_v48, %v408_v56 }
  0xb7   :  { %v316_v38 = vpop.f32.mrf.mxu2 }
  0xb8   :  { %v329_v39 = vpop.f32.mrf.mxu3  ;;  %v292_v40 = vpop.f32.mrf.mxu0 }
  0xb9   :  { %v305_v41 = vpop.f32.mrf.mxu1  ;;  %v390_v46 = vpack.c.bf16 %v329_v39, %v316_v38 }
  0xbb   :  { %v409_v49 = vrot.slane %v390_v46, 6  ;;  %v410_v50 = vrot.slane %v390_v46, 1 }
  0xbd   :  { %v442_v59 = vsel %vm419_vm2, %v409_v49, %v410_v50 }
  0xbe   :  { %v443_v1 = vsel %vm423_vm5, %v439_v63, %v442_v59 }
  0xbf   :  { %v318_v42 = vpop.f32.mrf.mxu2 }
  0xc0   :  { %v331_v43 = vpop.f32.mrf.mxu3  ;;  %v342_v44 = vpop.f32.mrf.mxu0 }
  0xc1   :  { %v355_v45 = vpop.f32.mrf.mxu1 }
  0xc2   :  { %v391_v47 = vpack.c.bf16 %v355_v45, %v342_v44 }
  0xc4   :  { %v411_v51 = vrot.slane %v391_v47, 4  ;;  %v412_v52 = vrot.slane %v391_v47, 7 }
  0xc6   :  { %v446_v60 = vsel %vm425_vm3, %v411_v51, %v412_v52 }
  0xc7   :  { %v368_v53 = vpop.f32.mrf.mxu2 }
  0xc8   :  { %v381_v54 = vpop.f32.mrf.mxu3  ;;  %v344_v55 = vpop.f32.mrf.mxu0 }
  0xc9   :  { %v392_v57 = vpack.c.bf16 %v381_v54, %v368_v53  ;;  %v357_v58 = vpop.f32.mrf.mxu1 }
  0xcb   :  { %v413_v61 = vrot.slane %v392_v57, 2  ;;  %v414_v62 = vrot.slane %v392_v57, 5 }
  0xcd   :  { %v449_v0 = vsel %vm429_vm6, %v413_v61, %v414_v62 }
  0xce   :  { %v450_v2 = vsel %vm433_vm7, %v446_v60, %v449_v0 }
  0xcf   :  { %v451_v3 = vsel %vm435_vm8, %v443_v1, %v450_v2  ;;  %v370_v4 = vpop.f32.mrf.mxu2 }
  0xd0   :  { %455 = vst [vmem:[%s711_s2 + $0x8] sm:$0xff] %v451_v3  ;;  %v383_v5 = vpop.f32.mrf.mxu3 }
  0xd1   :  { %460 = vsyncpa [#allocation3], 1 }
  0xd2   :  { %461 = vsyncpa [#allocation5], 1 }

// kernel: netg_forward.11
= control target key start
LH: loop header
LB: loop body
LE: loop exit
PB: predicated region body
PF: predicated region fallthrough
CT: control target
= control target key end

     0   :  { %v70_v0 = vmov 0.0   ;;  %s110_s1 = inlined_call_operand.vmem [shape: f32[1,128], index: 1, kind: output, shape index: {0}]   ;;  %s111_s2 = inlined_call_operand.vmem [shape: f32[1,128], index: 2, kind: output, shape index: {1}]   ;;  %s112_s0 = inlined_call_operand.vmem [shape: bf16[32,128], index: 0, kind: input, shape index: {}]  }
   0x1   :  { %14 = vst [vmem:[%s110_s1] sm:$0x1] %v70_v0  ;;  %v61_v1 = vld [vmem:[%s112_s0] sm:$0xff]   ;;  %v68_v2 = vld [vmem:[%s112_s0 + $0x8] sm:$0xff]  }
   0x2   :  { %15 = vst [vmem:[%s111_s2] sm:$0x1] %v70_v0  ;;  %v62_v3 = vunpack.c.l.bf16 %v61_v1  ;;  %v63_v4 = vunpack.c.h.bf16 %v61_v1  ;;  %v66_v5 = vunpack.c.l.bf16 %v68_v2  ;;  %v67_v6 = vunpack.c.h.bf16 %v68_v2 }
   0x4   :  { %v25_v7 = vadd.f32 %v63_v4, %v62_v3  ;;  %v37_v8 = vmul.f32 %v62_v3, %v62_v3  ;;  %v38_v9 = vmul.f32 %v63_v4, %v63_v4  ;;  %v39_v10 = vmul.f32 %v66_v5, %v66_v5 }
   0x5   :  { %v40_v12 = vmul.f32 %v67_v6, %v67_v6 }
   0x6   :  { %v26_v11 = vadd.f32 %v66_v5, %v25_v7  ;;  %v41_v13 = vadd.f32 %v38_v9, %v37_v8 }
   0x8   :  { %v27_v14 = vadd.f32 %v67_v6, %v26_v11  ;;  %v42_v15 = vadd.f32 %v41_v13, %v39_v10  ;;  %v24_v26 = vld [vmem:[%s110_s1] sm:$0x1] }
   0x9   :  { %v36_v29 = vld [vmem:[%s111_s2] sm:$0x1] }
   0xa   :  { %v28_v16 = vrot.slane %v27_v14, 4  ;;  %v43_v17 = vadd.f32 %v42_v15, %v40_v12 }
   0xc   :  { %v29_v18 = vadd.f32 %v28_v16, %v27_v14  ;;  %v44_v19 = vrot.slane %v43_v17, 4 }
   0xe   :  { %v30_v20 = vrot.slane %v29_v18, 2  ;;  %v45_v21 = vadd.f32 %v44_v19, %v43_v17 }
  0x10   :  { %v31_v22 = vadd.f32 %v30_v20, %v29_v18  ;;  %v46_v23 = vrot.slane %v45_v21, 2 }
  0x12   :  { %v32_v24 = vrot.slane %v31_v22, 1  ;;  %v47_v25 = vadd.f32 %v46_v23, %v45_v21 }
  0x14   :  { %v33_v27 = vadd.f32 %v32_v24, %v31_v22  ;;  %v48_v28 = vrot.slane %v47_v25, 1 }
  0x16   :  { %v34_v30 = vadd.f32 %v33_v27, %v24_v26  ;;  %v49_v31 = vadd.f32 %v48_v28, %v47_v25 }
  0x18   :  { %35 = vst [vmem:[%s110_s1] sm:$0x1] %v34_v30  ;;  %v50_v32 = vadd.f32 %v49_v31, %v36_v29 }
  0x1a   :  { %51 = vst [vmem:[%s111_s2] sm:$0x1] %v50_v32 }

// kernel: netg_forward.12
= control target key start
LH: loop header
LB: loop body
LE: loop exit
PB: predicated region body
PF: predicated region fallthrough
CT: control target
= control target key end

     0   :  { %9 = vsyncpa [#allocation3], 0  ;;  %s1253_s15 = smov 0   ;;  %s1309_s0 = inlined_call_operand.vmem [shape: bf16[32,128], index: 0, kind: input, shape index: {}]   ;;  %s1310_s1 = inlined_call_operand.vmem [shape: f32[1,128], index: 1, kind: input, shape index: {}]   ;;  %s1311_s2 = inlined_call_operand.vmem [shape: f32[1,128], index: 2, kind: input, shape index: {}]   ;;  %s1312_s3 = inlined_call_operand.hbm [shape: bf16[128,1024], index: 3, kind: input, shape index: {}]   ;;  %s1313_s4 = inlined_call_operand.vmem [shape: bf16[32,1024], index: 4, kind: output, shape index: {}]  }
   0x1 LB: > { %s152_s18 = sshll.u32 %s1312_s3, 4  ;;  %s821_s19 = sadd.s32 4294967295, %s1223_s15   ;;  %s1223_s15 = sphi %s1253_s15, %s15_s15   ;;  %s153_s18 = int_to_ptr.hbm [resolvable:$true] %s152_s18 }
   0x2   : > { %p823_p0 = scmp.ge.s32.totalorder %s1223_s15, 1  ;;  %p135_p1 = scmp.lt.s32.totalorder %s1223_s15, 3 }
   0x3   : > { %p1168_p2 = scmp.eq.s32.totalorder %s821_s19, 0  ;;  %s1225_s20 = smov [#allocation2]  }
   0x4   : > { %p136_p3 = pnand %p823_p0, %p135_p1  ;;  %s154_s21 = sshll.u32 %s1225_s20, 4  ;;  %s155_s21 = int_to_ptr.vmem [resolvable:$true] %s154_s21 }
   0x5   : > { %s1226_s22 = smov 512   ;;  %s1227_s23 = smov 32  }
   0x6   : > { %p1164_p4 = pneg %p136_p3  ;;  %179 = sbr.rel (%p136_p3) target bundleno = 224 (0xe0), region = 36 }
   0x8   : > { %p1165_p5 = pnand %p1168_p2, %p1164_p4 }
   0xa   : > { %1167 = dma.hbm_to_vmem [thread:$0]  (!%p1165_p5), %s153_s18, 8192, %s155_s21, [#allocation3], %s1226_s22, %s1226_s22, %s1227_s23  }
   0xb   : > { %1218 = dma.done.wait (%p1168_p2), [#allocation3], 8192  }
   0xc   : > { %1220 = vsyncadd (%p1168_p2), [#allocation3], 4294959104  ;;  %s1264_s24 = sshll.u32 %s821_s19, 1  ;;  %v1059_v0 = vld [vmem:[#allocation2 + $0x1c0] sm:$0xf] }
   0xd   : > { %v1152_v1 = vld [vmem:[#allocation2 + $0x1dc] sm:$0xf0]  ;;  %v1148_v2 = vld [vmem:[#allocation2 + $0x1c4] sm:$0xf]  ;;  %v1067_v5 = vld [vmem:[#allocation2 + $0x1c8] sm:$0xf] }
   0xe   : > { %v1060_v3 = vor.u32 %v1152_v1, %v1059_v0  ;;  %v1061_v4 = vld [vmem:[#allocation2 + $0x1e0] sm:$0xf0]  ;;  %v1153_v6 = vld [vmem:[#allocation2 + $0x1e4] sm:$0xf0]  ;;  %v1149_v9 = vld [vmem:[#allocation2 + $0x1cc] sm:$0xf] }
   0xf   : > { %v1064_v7 = vor.u32 %v1148_v2, %v1061_v4  ;;  %v1068_v8 = vor.u32 %v1153_v6, %v1067_v5  ;;  %v1069_v10 = vld [vmem:[#allocation2 + $0x1e8] sm:$0xf0]  ;;  %v1027_v11 = vld [vmem:[#allocation2 + $0x180] sm:$0xf]  ;;  %v1140_v14 = vld [vmem:[#allocation2 + $0x184] sm:$0xf] }
  0x10   : > { %623 = vmatpush.bf16.msra.mxu0 %v1060_v3  ;;  %v1072_v12 = vor.u32 %v1149_v9, %v1069_v10  ;;  %v1144_v13 = vld [vmem:[#allocation2 + $0x19c] sm:$0xf0]  ;;  %v1029_v15 = vld [vmem:[#allocation2 + $0x1a0] sm:$0xf0]  ;;  %v1035_v18 = vld [vmem:[#allocation2 + $0x188] sm:$0xf] }
  0x11   : > { %637 = vmatpush.bf16.msra.mxu1 %v1064_v7  ;;  %651 = vmatpush.bf16.msra.mxu2 %v1068_v8  ;;  %v1028_v16 = vor.u32 %v1144_v13, %v1027_v11  ;;  %v1032_v17 = vor.u32 %v1140_v14, %v1029_v15  ;;  %v1145_v19 = vld [vmem:[#allocation2 + $0x1a4] sm:$0xf0]  ;;  %v1141_v20 = vld [vmem:[#allocation2 + $0x18c] sm:$0xf]  ;;  %v995_v23 = vld [vmem:[#allocation2 + $0x140] sm:$0xf] }
  0x12   : > { %665 = vmatpush.bf16.msra.mxu3 %v1072_v12  ;;  %v1036_v21 = vor.u32 %v1145_v19, %v1035_v18  ;;  %v1037_v22 = vld [vmem:[#allocation2 + $0x1a8] sm:$0xf0]  ;;  %v1136_v24 = vld [vmem:[#allocation2 + $0x15c] sm:$0xf0]  ;;  %v1132_v26 = vld [vmem:[#allocation2 + $0x144] sm:$0xf] }
  0x13   : > { %v1040_v25 = vor.u32 %v1141_v20, %v1037_v22  ;;  %v997_v27 = vld [vmem:[#allocation2 + $0x160] sm:$0xf0]  ;;  %v1003_v28 = vld [vmem:[#allocation2 + $0x148] sm:$0xf]  ;;  %v996_v29 = vor.u32 %v1136_v24, %v995_v23  ;;  %v1133_v31 = vld [vmem:[#allocation2 + $0x14c] sm:$0xf] }
  0x14   : > { %624 = vmatpush.bf16.msra.mxu0 %v1028_v16  ;;  %v1137_v30 = vld [vmem:[#allocation2 + $0x164] sm:$0xf0]  ;;  %v1005_v32 = vld [vmem:[#allocation2 + $0x168] sm:$0xf0]  ;;  %v1000_v33 = vor.u32 %v1132_v26, %v997_v27  ;;  %v963_v35 = vld [vmem:[#allocation2 + $0x100] sm:$0xf] }
  0x15   : > { %638 = vmatpush.bf16.msra.mxu1 %v1032_v17  ;;  %652 = vmatpush.bf16.msra.mxu2 %v1036_v21  ;;  %v1004_v34 = vor.u32 %v1137_v30, %v1003_v28  ;;  %v1128_v36 = vld [vmem:[#allocation2 + $0x11c] sm:$0xf0]  ;;  %v1124_v37 = vld [vmem:[#allocation2 + $0x104] sm:$0xf]  ;;  %v1008_v38 = vor.u32 %v1133_v31, %v1005_v32  ;;  %v971_v40 = vld [vmem:[#allocation2 + $0x108] sm:$0xf] }
  0x16   : > { %666 = vmatpush.bf16.msra.mxu3 %v1040_v25  ;;  %v965_v39 = vld [vmem:[#allocation2 + $0x120] sm:$0xf0]  ;;  %v1129_v41 = vld [vmem:[#allocation2 + $0x124] sm:$0xf0]  ;;  %v1125_v42 = vld [vmem:[#allocation2 + $0x10c] sm:$0xf]  ;;  %v964_v44 = vor.u32 %v1128_v36, %v963_v35 }
  0x17   : > { %v973_v43 = vld [vmem:[#allocation2 + $0x128] sm:$0xf0]  ;;  %p208_p6 = scmp.lt.s32.totalorder %s1264_s24, 3  ;;  %v968_v45 = vor.u32 %v1124_v37, %v965_v39  ;;  %v972_v46 = vor.u32 %v1129_v41, %v971_v40  ;;  %v931_v47 = vld [vmem:[#allocation2 + $0xc0] sm:$0xf] }
  0x18   : > { %625 = vmatpush.bf16.msra.mxu0 %v996_v29  ;;  %v1120_v48 = vld [vmem:[#allocation2 + $0xdc] sm:$0xf0]  ;;  %v1116_v49 = vld [vmem:[#allocation2 + $0xc4] sm:$0xf]  ;;  %v976_v50 = vor.u32 %v1125_v42, %v973_v43  ;;  %v939_v52 = vld [vmem:[#allocation2 + $0xc8] sm:$0xf] }
  0x19   : > { %639 = vmatpush.bf16.msra.mxu1 %v1000_v33  ;;  %653 = vmatpush.bf16.msra.mxu2 %v1004_v34  ;;  %v933_v51 = vld [vmem:[#allocation2 + $0xe0] sm:$0xf0]  ;;  %v1121_v53 = vld [vmem:[#allocation2 + $0xe4] sm:$0xf0]  ;;  %v1117_v54 = vld [vmem:[#allocation2 + $0xcc] sm:$0xf]  ;;  %v932_v56 = vor.u32 %v1120_v48, %v931_v47 }
  0x1a   : > { %667 = vmatpush.bf16.msra.mxu3 %v1008_v38  ;;  %v941_v55 = vld [vmem:[#allocation2 + $0xe8] sm:$0xf0]  ;;  %s1315_s24 = smov (!%p208_p6, %s1264_s24), 3  ;;  %v936_v57 = vor.u32 %v1116_v49, %v933_v51  ;;  %v940_v58 = vor.u32 %v1121_v53, %v939_v52  ;;  %v899_v59 = vld [vmem:[#allocation2 + $0x80] sm:$0xf] }
  0x1b   : > { %v1112_v60 = vld [vmem:[#allocation2 + $0x9c] sm:$0xf0]  ;;  %v1108_v61 = vld [vmem:[#allocation2 + $0x84] sm:$0xf]  ;;  %v944_v62 = vor.u32 %v1117_v54, %v941_v55  ;;  %v907_v0 = vld [vmem:[#allocation2 + $0x88] sm:$0xf] }
  0x1c   : > { %626 = vmatpush.bf16.msra.mxu0 %v964_v44  ;;  %v901_v63 = vld [vmem:[#allocation2 + $0xa0] sm:$0xf0]  ;;  %v1113_v1 = vld [vmem:[#allocation2 + $0xa4] sm:$0xf0]  ;;  %v1109_v2 = vld [vmem:[#allocation2 + $0x8c] sm:$0xf]  ;;  %v900_v4 = vor.u32 %v1112_v60, %v899_v59 }
  0x1d   : > { %640 = vmatpush.bf16.msra.mxu1 %v968_v45  ;;  %654 = vmatpush.bf16.msra.mxu2 %v972_v46  ;;  %v909_v3 = vld [vmem:[#allocation2 + $0xa8] sm:$0xf0]  ;;  %v867_v5 = vld [vmem:[#allocation2 + $0x40] sm:$0xf]  ;;  %s829_s25 = sshll.u32 %s1315_s24, 2  ;;  %v904_v6 = vor.u32 %v1108_v61, %v901_v63  ;;  %v908_v7 = vor.u32 %v1113_v1, %v907_v0  ;;  %s1091_s7 = sshll.u32 %s1315_s24, 5 }
  0x1e   : > { %668 = vmatpush.bf16.msra.mxu3 %v976_v50  ;;  %v1104_v8 = vld [vmem:[#allocation2 + $0x5c] sm:$0xf0]  ;;  %v1100_v9 = vld [vmem:[#allocation2 + $0x44] sm:$0xf]  ;;  %v912_v11 = vor.u32 %v1109_v2, %v909_v3  ;;  %v875_v12 = vld [vmem:[#allocation2 + $0x48] sm:$0xf]  ;;  %s211_s28 = scalar_lea.vmem %s1309_s0, %s829_s25  ;;  %s1296_s10 = scalar_lea.vmem %s1313_s4, %s1091_s7 }
  0x1f   : > { %v869_v10 = vld [vmem:[#allocation2 + $0x60] sm:$0xf0]  ;;  %v1105_v13 = vld [vmem:[#allocation2 + $0x64] sm:$0xf0]  ;;  %v1101_v14 = vld [vmem:[#allocation2 + $0x4c] sm:$0xf]  ;;  %v868_v18 = vor.u32 %v1104_v8, %v867_v5 }
  0x20   : > { %627 = vmatpush.bf16.msra.mxu0 %v932_v56  ;;  %v877_v15 = vld [vmem:[#allocation2 + $0x68] sm:$0xf0]  ;;  %v835_v16 = vld [vmem:[#allocation2] sm:$0xf]  ;;  %v1092_v19 = vld [vmem:[#allocation2 + $0x4] sm:$0xf]  ;;  %v872_v23 = vor.u32 %v1100_v9, %v869_v10  ;;  %v876_v24 = vor.u32 %v1105_v13, %v875_v12 }
  0x21   : > { %641 = vmatpush.bf16.msra.mxu1 %v936_v57  ;;  %655 = vmatpush.bf16.msra.mxu2 %v940_v58  ;;  %v1096_v17 = vld [vmem:[#allocation2 + $0x1c] sm:$0xf0]  ;;  %v837_v20 = vld [vmem:[#allocation2 + $0x20] sm:$0xf0]  ;;  %v843_v21 = vld [vmem:[#allocation2 + $0x8] sm:$0xf]  ;;  %v880_v28 = vor.u32 %v1101_v14, %v877_v15 }
  0x22   : > { %669 = vmatpush.bf16.msra.mxu3 %v944_v62  ;;  %v1097_v22 = vld [vmem:[#allocation2 + $0x24] sm:$0xf0]  ;;  %v1093_v25 = vld [vmem:[#allocation2 + $0xc] sm:$0xf]  ;;  %v1075_v27 = vld [vmem:[#allocation2 + $0x1d0] sm:$0xf]  ;;  %v836_v35 = vor.u32 %v1096_v17, %v835_v16  ;;  %v840_v39 = vor.u32 %v1092_v19, %v837_v20 }
  0x23   : > { %v845_v26 = vld [vmem:[#allocation2 + $0x28] sm:$0xf0]  ;;  %v1154_v29 = vld [vmem:[#allocation2 + $0x1ec] sm:$0xf0]  ;;  %v1150_v30 = vld [vmem:[#allocation2 + $0x1d4] sm:$0xf]  ;;  %v844_v40 = vor.u32 %v1097_v22, %v843_v21 }
  0x24   : > { %628 = vmatpush.bf16.msra.mxu0 %v900_v4  ;;  %v1077_v31 = vld [vmem:[#allocation2 + $0x1f0] sm:$0xf0]  ;;  %v1083_v32 = vld [vmem:[#allocation2 + $0x1d8] sm:$0xf]  ;;  %v1157_v34 = vld [vmem:[%s211_s28] sm:$0xff]   ;;  %v848_v44 = vor.u32 %v1093_v25, %v845_v26  ;;  %v1076_v45 = vor.u32 %v1154_v29, %v1075_v27 }
  0x25   : > { %642 = vmatpush.bf16.msra.mxu1 %v904_v6  ;;  %656 = vmatpush.bf16.msra.mxu2 %v908_v7  ;;  %v1155_v33 = vld [vmem:[#allocation2 + $0x1f4] sm:$0xf0]  ;;  %v1158_v36 = vunpack.c.l.bf16 %v1157_v34  ;;  %v1159_v37 = vunpack.c.h.bf16 %v1157_v34  ;;  %v1181_v38 = vld [vmem:[%s1310_s1] ss:$0 sm:$0xff]  ;;  %v1151_v41 = vld [vmem:[#allocation2 + $0x1dc] sm:$0xf]  ;;  %v1080_v48 = vor.u32 %v1150_v30, %v1077_v31 }
  0x26   : > { %670 = vmatpush.bf16.msra.mxu3 %v912_v11  ;;  %v1085_v42 = vld [vmem:[#allocation2 + $0x1f8] sm:$0xf0]  ;;  %v1182_v43 = vld [vmem:[%s1311_s2] ss:$0 sm:$0xff]  ;;  %v1084_v49 = vor.u32 %v1155_v33, %v1083_v32  ;;  %v1043_v50 = vld [vmem:[#allocation2 + $0x190] sm:$0xf] }
  0x27   : > { %v228_v46 = vmul.f32 %v1181_v38, %v1158_v36  ;;  %v229_v47 = vmul.f32 %v1181_v38, %v1159_v37  ;;  %v1146_v51 = vld [vmem:[#allocation2 + $0x1ac] sm:$0xf0]  ;;  %v1142_v52 = vld [vmem:[#allocation2 + $0x194] sm:$0xf]  ;;  %v1088_v53 = vor.u32 %v1151_v41, %v1085_v42  ;;  %v1051_v55 = vld [vmem:[#allocation2 + $0x198] sm:$0xf] }
  0x28   : > { %629 = vmatpush.bf16.msra.mxu0 %v868_v18  ;;  %v1045_v54 = vld [vmem:[#allocation2 + $0x1b0] sm:$0xf0]  ;;  %v1147_v56 = vld [vmem:[#allocation2 + $0x1b4] sm:$0xf0]  ;;  %v1143_v59 = vld [vmem:[#allocation2 + $0x19c] sm:$0xf]  ;;  %v1044_v61 = vor.u32 %v1146_v51, %v1043_v50 }
  0x29   : > { %643 = vmatpush.bf16.msra.mxu1 %v872_v23  ;;  %657 = vmatpush.bf16.msra.mxu2 %v876_v24  ;;  %v234_v57 = vadd.f32 %v1182_v43, %v228_v46  ;;  %v235_v58 = vadd.f32 %v1182_v43, %v229_v47  ;;  %v1053_v60 = vld [vmem:[#allocation2 + $0x1b8] sm:$0xf0]  ;;  %v1048_v0 = vor.u32 %v1142_v52, %v1045_v54  ;;  %v1011_v2 = vld [vmem:[#allocation2 + $0x150] sm:$0xf]  ;;  %v1134_v4 = vld [vmem:[#allocation2 + $0x154] sm:$0xf] }
  0x2a   : > { %671 = vmatpush.bf16.msra.mxu3 %v880_v28  ;;  %v1052_v1 = vor.u32 %v1147_v56, %v1051_v55  ;;  %v1138_v3 = vld [vmem:[#allocation2 + $0x16c] sm:$0xf0]  ;;  %v1056_v5 = vor.u32 %v1143_v59, %v1053_v60  ;;  %v1013_v7 = vld [vmem:[#allocation2 + $0x170] sm:$0xf0]  ;;  %v1019_v8 = vld [vmem:[#allocation2 + $0x158] sm:$0xf] }
  0x2b   : > { %v236_v62 = vmax.f32 %v234_v57, 0.0  ;;  %v237_v63 = vmax.f32 %v235_v58, 0.0  ;;  %v1139_v9 = vld [vmem:[#allocation2 + $0x174] sm:$0xf0]  ;;  %v1135_v10 = vld [vmem:[#allocation2 + $0x15c] sm:$0xf]  ;;  %v1012_v12 = vor.u32 %v1138_v3, %v1011_v2  ;;  %v1016_v13 = vor.u32 %v1134_v4, %v1013_v7 }
  0x2c   : > { %630 = vmatpush.bf16.msra.mxu0 %v836_v35  ;;  %v1021_v11 = vld [vmem:[#allocation2 + $0x178] sm:$0xf0]  ;;  %v1020_v14 = vor.u32 %v1139_v9, %v1019_v8  ;;  %v979_v15 = vld [vmem:[#allocation2 + $0x110] sm:$0xf]  ;;  %v1126_v17 = vld [vmem:[#allocation2 + $0x114] sm:$0xf] }
  0x2d   : > { %644 = vmatpush.bf16.msra.mxu1 %v840_v39  ;;  %658 = vmatpush.bf16.msra.mxu2 %v844_v40  ;;  %v1282_v6 = vpack.c.bf16 %v237_v63, %v236_v62  ;;  %v1130_v16 = vld [vmem:[#allocation2 + $0x12c] sm:$0xf0]  ;;  %v1024_v18 = vor.u32 %v1135_v10, %v1021_v11  ;;  %v981_v19 = vld [vmem:[#allocation2 + $0x130] sm:$0xf0]  ;;  %v987_v20 = vld [vmem:[#allocation2 + $0x118] sm:$0xf] }
  0x2e   : > { %672 = vmatpush.bf16.msra.mxu3 %v848_v44  ;;  %v1131_v21 = vld [vmem:[#allocation2 + $0x134] sm:$0xf0]  ;;  %v1127_v22 = vld [vmem:[#allocation2 + $0x11c] sm:$0xf]  ;;  %v980_v24 = vor.u32 %v1130_v16, %v979_v15  ;;  %v984_v25 = vor.u32 %v1126_v17, %v981_v19  ;;  %v947_v27 = vld [vmem:[#allocation2 + $0xd0] sm:$0xf] }
  0x2f   : > { %631 = vmatmul.bf16.vlgmr.msra.gmra.mxu0 %v1282_v6  ;;  %v989_v23 = vld [vmem:[#allocation2 + $0x138] sm:$0xf0]  ;;  %v988_v26 = vor.u32 %v1131_v21, %v987_v20  ;;  %v1122_v28 = vld [vmem:[#allocation2 + $0xec] sm:$0xf0]  ;;  %v1118_v29 = vld [vmem:[#allocation2 + $0xd4] sm:$0xf] }
  0x30   : > { %679 = vmatpush.bf16.msrb.mxu0 %v1076_v45  ;;  %659 = vmatmul.bf16.vlgmr.msra.gmra.mxu2 %v1282_v6  ;;  %v992_v30 = vor.u32 %v1127_v22, %v989_v23  ;;  %v949_v31 = vld [vmem:[#allocation2 + $0xf0] sm:$0xf0]  ;;  %v955_v32 = vld [vmem:[#allocation2 + $0xd8] sm:$0xf]  ;;  %v1119_v34 = vld [vmem:[#allocation2 + $0xdc] sm:$0xf]  ;;  %v948_v36 = vor.u32 %v1122_v28, %v947_v27 }
  0x31   : > { %693 = vmatpush.bf16.msrb.mxu1 %v1080_v48  ;;  %707 = vmatpush.bf16.msrb.mxu2 %v1084_v49  ;;  %v1123_v33 = vld [vmem:[#allocation2 + $0xf4] sm:$0xf0]  ;;  %v957_v35 = vld [vmem:[#allocation2 + $0xf8] sm:$0xf0]  ;;  %v952_v37 = vor.u32 %v1118_v29, %v949_v31  ;;  %v915_v39 = vld [vmem:[#allocation2 + $0x90] sm:$0xf] }
  0x32   : > { %721 = vmatpush.bf16.msrb.mxu3 %v1088_v53  ;;  %645 = vmatmul.bf16.vlgmr.msra.gmra.mxu1 %v1282_v6  ;;  %v956_v38 = vor.u32 %v1123_v33, %v955_v32  ;;  %v1114_v40 = vld [vmem:[#allocation2 + $0xac] sm:$0xf0]  ;;  %v1110_v41 = vld [vmem:[#allocation2 + $0x94] sm:$0xf]  ;;  %v960_v42 = vor.u32 %v1119_v34, %v957_v35  ;;  %v923_v44 = vld [vmem:[#allocation2 + $0x98] sm:$0xf] }
  0x33   : > { %673 = vmatmul.bf16.vlgmr.msra.gmra.mxu3 %v1282_v6  ;;  %v917_v43 = vld [vmem:[#allocation2 + $0xb0] sm:$0xf0]  ;;  %v1115_v45 = vld [vmem:[#allocation2 + $0xb4] sm:$0xf0]  ;;  %v1111_v46 = vld [vmem:[#allocation2 + $0x9c] sm:$0xf]  ;;  %v916_v48 = vor.u32 %v1114_v40, %v915_v39 }
  0x34   : > { %680 = vmatpush.bf16.msrb.mxu0 %v1044_v61  ;;  %v925_v47 = vld [vmem:[#allocation2 + $0xb8] sm:$0xf0]  ;;  %v920_v49 = vor.u32 %v1110_v41, %v917_v43  ;;  %v924_v50 = vor.u32 %v1115_v45, %v923_v44  ;;  %v883_v51 = vld [vmem:[#allocation2 + $0x50] sm:$0xf]  ;;  %v1102_v53 = vld [vmem:[#allocation2 + $0x54] sm:$0xf] }
  0x35   : > { %694 = vmatpush.bf16.msrb.mxu1 %v1048_v0  ;;  %708 = vmatpush.bf16.msrb.mxu2 %v1052_v1  ;;  %v1106_v52 = vld [vmem:[#allocation2 + $0x6c] sm:$0xf0]  ;;  %v928_v54 = vor.u32 %v1111_v46, %v925_v47  ;;  %v885_v55 = vld [vmem:[#allocation2 + $0x70] sm:$0xf0]  ;;  %v891_v56 = vld [vmem:[#allocation2 + $0x58] sm:$0xf] }
  0x36   : > { %722 = vmatpush.bf16.msrb.mxu3 %v1056_v5  ;;  %v1107_v57 = vld [vmem:[#allocation2 + $0x74] sm:$0xf0]  ;;  %v1103_v58 = vld [vmem:[#allocation2 + $0x5c] sm:$0xf]  ;;  %v884_v60 = vor.u32 %v1106_v52, %v883_v51  ;;  %v888_v61 = vor.u32 %v1102_v53, %v885_v55  ;;  %v851_v63 = vld [vmem:[#allocation2 + $0x10] sm:$0xf] }
  0x37   : > { %v893_v59 = vld [vmem:[#allocation2 + $0x78] sm:$0xf0]  ;;  %v892_v62 = vor.u32 %v1107_v57, %v891_v56  ;;  %v1098_v0 = vld [vmem:[#allocation2 + $0x2c] sm:$0xf0]  ;;  %v1094_v1 = vld [vmem:[#allocation2 + $0x14] sm:$0xf] }
  0x38   : > { %681 = vmatpush.bf16.msrb.mxu0 %v1012_v12  ;;  %v896_v2 = vor.u32 %v1103_v58, %v893_v59  ;;  %v853_v3 = vld [vmem:[#allocation2 + $0x30] sm:$0xf0]  ;;  %v859_v4 = vld [vmem:[#allocation2 + $0x18] sm:$0xf]  ;;  %v1095_v7 = vld [vmem:[#allocation2 + $0x1c] sm:$0xf]  ;;  %v852_v9 = vor.u32 %v1098_v0, %v851_v63 }
  0x39   : > { %695 = vmatpush.bf16.msrb.mxu1 %v1016_v13  ;;  %709 = vmatpush.bf16.msrb.mxu2 %v1020_v14  ;;  %v1099_v5 = vld [vmem:[#allocation2 + $0x34] sm:$0xf0]  ;;  %v861_v8 = vld [vmem:[#allocation2 + $0x38] sm:$0xf0]  ;;  %v856_v10 = vor.u32 %v1094_v1, %v853_v3 }
  0x3a   : > { %723 = vmatpush.bf16.msrb.mxu3 %v1024_v18  ;;  %v860_v11 = vor.u32 %v1099_v5, %v859_v4  ;;  %v864_v12 = vor.u32 %v1095_v7, %v861_v8 }
  0x3c   : > { %682 = vmatpush.bf16.msrb.mxu0 %v980_v24 }
  0x3d   : > { %696 = vmatpush.bf16.msrb.mxu1 %v984_v25  ;;  %710 = vmatpush.bf16.msrb.mxu2 %v988_v26 }
  0x3e   : > { %724 = vmatpush.bf16.msrb.mxu3 %v992_v30 }
  0x40   : > { %683 = vmatpush.bf16.msrb.mxu0 %v948_v36 }
  0x41   : > { %697 = vmatpush.bf16.msrb.mxu1 %v952_v37  ;;  %711 = vmatpush.bf16.msrb.mxu2 %v956_v38 }
  0x42   : > { %725 = vmatpush.bf16.msrb.mxu3 %v960_v42 }
  0x44   : > { %684 = vmatpush.bf16.msrb.mxu0 %v916_v48 }
  0x45   : > { %698 = vmatpush.bf16.msrb.mxu1 %v920_v49  ;;  %712 = vmatpush.bf16.msrb.mxu2 %v924_v50 }
  0x46   : > { %726 = vmatpush.bf16.msrb.mxu3 %v928_v54 }
  0x48   : > { %685 = vmatpush.bf16.msrb.mxu0 %v884_v60 }
  0x49   : > { %699 = vmatpush.bf16.msrb.mxu1 %v888_v61  ;;  %713 = vmatpush.bf16.msrb.mxu2 %v892_v62 }
  0x4a   : > { %727 = vmatpush.bf16.msrb.mxu3 %v896_v2 }
  0x4c   : > { %686 = vmatpush.bf16.msrb.mxu0 %v852_v9 }
  0x4d   : > { %700 = vmatpush.bf16.msrb.mxu1 %v856_v10  ;;  %714 = vmatpush.bf16.msrb.mxu2 %v860_v11 }
  0x4e   : > { %728 = vmatpush.bf16.msrb.mxu3 %v864_v12 }
  0x4f   : > { %687 = vmatmul.bf16.vlgmr.msrb.gmra.mxu0 %v1282_v6 }
  0x50   : > { %701 = vmatmul.bf16.vlgmr.msrb.gmra.mxu1 %v1282_v6  ;;  %715 = vmatmul.bf16.vlgmr.msrb.gmra.mxu2 %v1282_v6 }
  0x51   : > { %729 = vmatmul.bf16.vlgmr.msrb.gmra.mxu3 %v1282_v6 }
  0xac   : > { %v632_v13 = vpop.f32.mrf.mxu0 }
  0xaf   : > { %v646_v14 = vpop.f32.mrf.mxu1 }
  0xb0   : > { %v735_v15 = vpack.c.bf16 %v646_v14, %v632_v13 }
  0xb2   : > { %743 = vst [vmem:[%s1296_s10] sm:$0xff] %v735_v15 }
  0xb3   : > { %v660_v16 = vpop.f32.mrf.mxu2 }
  0xb4   : > { %v634_v19 = vpop.f32.mrf.mxu0 }
  0xb6   : > { %v674_v17 = vpop.f32.mrf.mxu3 }
  0xb7   : > { %v736_v18 = vpack.c.bf16 %v674_v17, %v660_v16  ;;  %v648_v6 = vpop.f32.mrf.mxu1 }
  0xb8   : > { %v739_v20 = vpack.c.bf16 %v648_v6, %v634_v19 }
  0xb9   : > { %744 = vst [vmem:[%s1296_s10 + $0x8] sm:$0xff] %v736_v18 }
  0xba   : > { %747 = vst [vmem:[%s1296_s10 + $0x20] sm:$0xff] %v739_v20 }
  0xbb   : > { %v662_v21 = vpop.f32.mrf.mxu2 }
  0xbe   : > { %v676_v22 = vpop.f32.mrf.mxu3 }
  0xbf   : > { %v740_v23 = vpack.c.bf16 %v676_v22, %v662_v21 }
  0xc1   : > { %748 = vst [vmem:[%s1296_s10 + $0x28] sm:$0xff] %v740_v23 }
  0xcc   : > { %v688_v24 = vpop.f32.mrf.mxu0 }
  0xcd   : > { %v702_v25 = vpop.f32.mrf.mxu1 }
  0xce   : > { %v737_v26 = vpack.c.bf16 %v702_v25, %v688_v24 }
  0xd0   : > { %745 = vst [vmem:[%s1296_s10 + $0x10] sm:$0xff] %v737_v26 }
  0xd3   : > { %v716_v27 = vpop.f32.mrf.mxu2 }
  0xd4   : > { %v730_v28 = vpop.f32.mrf.mxu3  ;;  %v690_v29 = vpop.f32.mrf.mxu0 }
  0xd5   : > { %v738_v30 = vpack.c.bf16 %v730_v28, %v716_v27  ;;  %v704_v31 = vpop.f32.mrf.mxu1 }
  0xd6   : > { %v741_v32 = vpack.c.bf16 %v704_v31, %v690_v29 }
  0xd7   : > { %746 = vst [vmem:[%s1296_s10 + $0x18] sm:$0xff] %v738_v30 }
  0xd8   : > { %749 = vst [vmem:[%s1296_s10 + $0x30] sm:$0xff] %v741_v32 }
  0xdb   : > { %v718_v33 = vpop.f32.mrf.mxu2 }
  0xdc   : > { %v732_v34 = vpop.f32.mrf.mxu3 }
  0xdd   : > { %v742_v35 = vpack.c.bf16 %v732_v34, %v718_v33 }
  0xdf   : > { %750 = vst [vmem:[%s1296_s10 + $0x38] sm:$0xff] %v742_v35 }
  0xe0 PF: > { %s15_s15 = sadd.s32 1, %s1223_s15  }
  0xe1   : > { %p12_p7 = scmp.ge.s32.totalorder %s15_s15, 4  }
  0xe3   :  { %14 = sbr.rel (!%p12_p7) target bundleno = 1 (0x1), region = 71 }
  0xe8   :  { %775 = vsyncpa [#allocation3], 1 }
  0xe9   :  { %777 = vsyncpa [#allocation3 + $0x1], 1 }

// kernel: netg_forward.13
= control target key start
LH: loop header
LB: loop body
LE: loop exit
PB: predicated region body
PF: predicated region fallthrough
CT: control target
= control target key end

     0   :  { %vm14_vm0 = vcmask 516096   ;;  %v195_v0 = vmov 0.0   ;;  %vm50_vm1 = vcmask 523264   ;;  %s289_s0 = inlined_call_operand.vmem [shape: bf16[128,64], index: 0, kind: input, shape index: {}]   ;;  %s290_s1 = inlined_call_operand.vmem [shape: f32[1,64], index: 1, kind: output, shape index: {0}]   ;;  %s291_s2 = inlined_call_operand.vmem [shape: f32[1,64], index: 2, kind: output, shape index: {1}]  }
   0x1   :  { %15 = vst.msk [vmem:[%s290_s1] sm:$0x1] %vm14_vm0, %v195_v0  ;;  %v156_v1 = vld [vmem:[%s289_s0] sm:$0xff]   ;;  %v187_v2 = vld [vmem:[%s289_s0 + $0x8] sm:$0xff]   ;;  %v188_v6 = vld [vmem:[%s289_s0 + $0x10] sm:$0xff]  }
   0x2   :  { %16 = vst.msk [vmem:[%s291_s2] sm:$0x1] %vm14_vm0, %v195_v0  ;;  %v157_v3 = vunpack.c.l.bf16 %v156_v1  ;;  %v158_v4 = vunpack.c.h.bf16 %v156_v1  ;;  %v161_v5 = vunpack.c.l.bf16 %v187_v2  ;;  %v162_v7 = vunpack.c.h.bf16 %v187_v2  ;;  %v189_v14 = vld [vmem:[%s289_s0 + $0x18] sm:$0xff]   ;;  %v190_v24 = vld [vmem:[%s289_s0 + $0x20] sm:$0xff]   ;;  %v191_v37 = vld [vmem:[%s289_s0 + $0x28] sm:$0xff]  }
   0x3   :  { %v165_v12 = vunpack.c.l.bf16 %v188_v6  ;;  %v166_v16 = vunpack.c.h.bf16 %v188_v6  ;;  %v169_v22 = vunpack.c.l.bf16 %v189_v14  ;;  %v170_v27 = vunpack.c.h.bf16 %v189_v14  ;;  %v192_v50 = vld [vmem:[%s289_s0 + $0x30] sm:$0xff]   ;;  %v193_v63 = vld [vmem:[%s289_s0 + $0x38] sm:$0xff]  }
   0x4   :  { %v51_v8 = vsel %vm50_vm1, %v157_v3, 0.0  ;;  %v52_v9 = vsel %vm50_vm1, %v158_v4, 0.0  ;;  %v54_v10 = vsel %vm50_vm1, %v161_v5, 0.0  ;;  %v56_v13 = vsel %vm50_vm1, %v162_v7, 0.0 }
   0x5   :  { %v53_v11 = vadd.f32 %v52_v9, %v51_v8  ;;  %v58_v17 = vsel %vm50_vm1, %v165_v12, 0.0  ;;  %v92_v19 = vmul.f32 %v157_v3, %v157_v3  ;;  %v93_v20 = vmul.f32 %v158_v4, %v158_v4 }
   0x6   :  { %v94_v21 = vmul.f32 %v161_v5, %v161_v5  ;;  %v60_v23 = vsel %vm50_vm1, %v166_v16, 0.0  ;;  %v95_v26 = vmul.f32 %v162_v7, %v162_v7  ;;  %v62_v28 = vsel %vm50_vm1, %v169_v22, 0.0 }
   0x7   :  { %v55_v15 = vadd.f32 %v54_v10, %v53_v11  ;;  %v96_v29 = vmul.f32 %v165_v12, %v165_v12  ;;  %v108_v31 = vsel %vm50_vm1, %v92_v19, 0.0  ;;  %v109_v32 = vsel %vm50_vm1, %v93_v20, 0.0 }
   0x8   :  { %v111_v33 = vsel %vm50_vm1, %v94_v21, 0.0  ;;  %v173_v34 = vunpack.c.l.bf16 %v190_v24  ;;  %v64_v35 = vsel %vm50_vm1, %v170_v27, 0.0  ;;  %v110_v36 = vadd.f32 %v109_v32, %v108_v31 }
   0x9   :  { %v57_v18 = vadd.f32 %v56_v13, %v55_v15  ;;  %v97_v39 = vmul.f32 %v166_v16, %v166_v16  ;;  %v113_v40 = vsel %vm50_vm1, %v95_v26, 0.0  ;;  %v174_v41 = vunpack.c.h.bf16 %v190_v24 }
   0xa   :  { %v66_v42 = vsel %vm50_vm1, %v173_v34, 0.0  ;;  %v112_v43 = vadd.f32 %v111_v33, %v110_v36  ;;  %v98_v45 = vmul.f32 %v169_v22, %v169_v22  ;;  %v115_v46 = vsel %vm50_vm1, %v96_v29, 0.0 }
   0xb   :  { %v59_v25 = vadd.f32 %v58_v17, %v57_v18  ;;  %v177_v47 = vunpack.c.l.bf16 %v191_v37  ;;  %v68_v48 = vsel %vm50_vm1, %v174_v41, 0.0  ;;  %v99_v52 = vmul.f32 %v170_v27, %v170_v27 }
   0xc   :  { %v114_v49 = vadd.f32 %v113_v40, %v112_v43  ;;  %v117_v53 = vsel %vm50_vm1, %v97_v39, 0.0  ;;  %v178_v54 = vunpack.c.h.bf16 %v191_v37  ;;  %v100_v58 = vmul.f32 %v173_v34, %v173_v34 }
   0xd   :  { %v61_v30 = vadd.f32 %v60_v23, %v59_v25  ;;  %v70_v55 = vsel %vm50_vm1, %v177_v47, 0.0  ;;  %v119_v59 = vsel %vm50_vm1, %v98_v45, 0.0  ;;  %v181_v60 = vunpack.c.l.bf16 %v192_v50 }
   0xe   :  { %v116_v56 = vadd.f32 %v115_v46, %v114_v49  ;;  %v72_v61 = vsel %vm50_vm1, %v178_v54, 0.0  ;;  %v101_v1 = vmul.f32 %v174_v41, %v174_v41  ;;  %v121_v2 = vsel %vm50_vm1, %v99_v52, 0.0  ;;  %v91_v52 = vld [vmem:[%s291_s2] sm:$0x1] }
   0xf   :  { %v63_v38 = vadd.f32 %v62_v28, %v61_v30  ;;  %v182_v3 = vunpack.c.h.bf16 %v192_v50  ;;  %v74_v4 = vsel %vm50_vm1, %v181_v60, 0.0  ;;  %v102_v7 = vmul.f32 %v177_v47, %v177_v47 }
  0x10   :  { %v118_v62 = vadd.f32 %v117_v53, %v116_v56  ;;  %v123_v8 = vsel %vm50_vm1, %v100_v58, 0.0  ;;  %v185_v9 = vunpack.c.l.bf16 %v193_v63  ;;  %v103_v13 = vmul.f32 %v178_v54, %v178_v54 }
  0x11   :  { %v65_v44 = vadd.f32 %v64_v35, %v63_v38  ;;  %v76_v10 = vsel %vm50_vm1, %v182_v3, 0.0  ;;  %v125_v14 = vsel %vm50_vm1, %v101_v1, 0.0  ;;  %v186_v15 = vunpack.c.h.bf16 %v193_v63 }
  0x12   :  { %v120_v5 = vadd.f32 %v119_v59, %v118_v62  ;;  %v78_v16 = vsel %vm50_vm1, %v185_v9, 0.0  ;;  %v104_v19 = vmul.f32 %v181_v60, %v181_v60  ;;  %v127_v20 = vsel %vm50_vm1, %v102_v7, 0.0 }
  0x13   :  { %v67_v51 = vadd.f32 %v66_v42, %v65_v44  ;;  %v80_v21 = vsel %vm50_vm1, %v186_v15, 0.0  ;;  %v105_v24 = vmul.f32 %v182_v3, %v182_v3  ;;  %v129_v25 = vsel %vm50_vm1, %v103_v13, 0.0  ;;  %v49_v44 = vld [vmem:[%s290_s1] sm:$0x1] }
  0x14   :  { %v122_v11 = vadd.f32 %v121_v2, %v120_v5  ;;  %v106_v28 = vmul.f32 %v185_v9, %v185_v9  ;;  %v131_v29 = vsel %vm50_vm1, %v104_v19, 0.0  ;;  %v107_v32 = vmul.f32 %v186_v15, %v186_v15 }
  0x15   :  { %v69_v57 = vadd.f32 %v68_v48, %v67_v51  ;;  %v133_v33 = vsel %vm50_vm1, %v105_v24, 0.0 }
  0x16   :  { %v124_v17 = vadd.f32 %v123_v8, %v122_v11  ;;  %v135_v36 = vsel %vm50_vm1, %v106_v28, 0.0  ;;  %v137_v39 = vsel %vm50_vm1, %v107_v32, 0.0 }
  0x17   :  { %v71_v0 = vadd.f32 %v70_v55, %v69_v57 }
  0x18   :  { %v126_v22 = vadd.f32 %v125_v14, %v124_v17 }
  0x19   :  { %v73_v6 = vadd.f32 %v72_v61, %v71_v0 }
  0x1a   :  { %v128_v26 = vadd.f32 %v127_v20, %v126_v22 }
  0x1b   :  { %v75_v12 = vadd.f32 %v74_v4, %v73_v6 }
  0x1c   :  { %v130_v30 = vadd.f32 %v129_v25, %v128_v26 }
  0x1d   :  { %v77_v18 = vadd.f32 %v76_v10, %v75_v12 }
  0x1e   :  { %v132_v34 = vadd.f32 %v131_v29, %v130_v30 }
  0x1f   :  { %v79_v23 = vadd.f32 %v78_v16, %v77_v18 }
  0x20   :  { %v134_v37 = vadd.f32 %v133_v33, %v132_v34 }
  0x21   :  { %v81_v27 = vadd.f32 %v80_v21, %v79_v23 }
  0x22   :  { %v136_v40 = vadd.f32 %v135_v36, %v134_v37 }
  0x23   :  { %v82_v31 = vrot.slane %v81_v27, 4 }
  0x24   :  { %v138_v42 = vadd.f32 %v137_v39, %v136_v40 }
  0x25   :  { %v83_v35 = vadd.f32 %v82_v31, %v81_v27 }
  0x26   :  { %v139_v45 = vrot.slane %v138_v42, 4 }
  0x27   :  { %v84_v38 = vrot.slane %v83_v35, 2 }
  0x28   :  { %v140_v47 = vadd.f32 %v139_v45, %v138_v42 }
  0x29   :  { %v85_v41 = vadd.f32 %v84_v38, %v83_v35 }
  0x2a   :  { %v141_v49 = vrot.slane %v140_v47, 2 }
  0x2b   :  { %v86_v43 = vrot.slane %v85_v41, 1 }
  0x2c   :  { %v142_v50 = vadd.f32 %v141_v49, %v140_v47 }
  0x2d   :  { %v87_v46 = vadd.f32 %v86_v43, %v85_v41 }
  0x2e   :  { %v143_v51 = vrot.slane %v142_v50, 1 }
  0x2f   :  { %v88_v48 = vadd.f32 %v87_v46, %v49_v44 }
  0x30   :  { %v144_v53 = vadd.f32 %v143_v51, %v142_v50 }
  0x31   :  { %90 = vst.msk [vmem:[%s290_s1] sm:$0x1] %vm14_vm0, %v88_v48 }
  0x32   :  { %v145_v54 = vadd.f32 %v144_v53, %v91_v52 }
  0x34   :  { %146 = vst.msk [vmem:[%s291_s2] sm:$0x1] %vm14_vm0, %v145_v54 }

// kernel: netg_forward.14
= control target key start
LH: loop header
LB: loop body
LE: loop exit
PB: predicated region body
PF: predicated region fallthrough
CT: control target
= control target key end

     0   :  { %9 = vsyncpa [#allocation3], 0  ;;  %s823_s15 = smov 0   ;;  %s895_s0 = inlined_call_operand.vmem [shape: bf16[128,64], index: 0, kind: input, shape index: {}]   ;;  %s896_s1 = inlined_call_operand.vmem [shape: f32[1,64], index: 1, kind: input, shape index: {}]   ;;  %s897_s2 = inlined_call_operand.vmem [shape: f32[1,64], index: 2, kind: input, shape index: {}]   ;;  %s898_s3 = inlined_call_operand.hbm [shape: bf16[64,512], index: 3, kind: input, shape index: {}]   ;;  %s899_s4 = inlined_call_operand.vmem [shape: bf16[128,512], index: 4, kind: output, shape index: {}]  }
   0x1 LB: > { %s152_s18 = sshll.u32 %s898_s3, 4  ;;  %s600_s19 = sadd.s32 4294967295, %s793_s15   ;;  %s793_s15 = sphi %s823_s15, %s15_s15   ;;  %s153_s18 = int_to_ptr.hbm [resolvable:$true] %s152_s18 }
   0x2   : > { %p602_p0 = scmp.ge.s32.totalorder %s793_s15, 1  ;;  %p135_p1 = scmp.lt.s32.totalorder %s793_s15, 3 }
   0x3   : > { %p738_p2 = scmp.eq.s32.totalorder %s600_s19, 0  ;;  %s795_s20 = smov [#allocation2]  }
   0x4   : > { %p136_p3 = pnand %p602_p0, %p135_p1  ;;  %s154_s21 = sshll.u32 %s795_s20, 4  ;;  %s155_s21 = int_to_ptr.vmem [resolvable:$true] %s154_s21 }
   0x5   : > { %s796_s22 = smov 256   ;;  %s797_s23 = smov 16  }
   0x6   : > { %p734_p4 = pneg %p136_p3  ;;  %179 = sbr.rel (%p136_p3) target bundleno = 227 (0xe3), region = 36 }
   0x8   : > { %p735_p5 = pnand %p738_p2, %p734_p4 }
   0xa   : > { %737 = dma.hbm_to_vmem [thread:$0]  (!%p735_p5), %s153_s18, 2048, %s155_s21, [#allocation3], %s796_s22, %s796_s22, %s797_s23  }
   0xb   : > { %788 = dma.done.wait (%p738_p2), [#allocation3], 2048  }
   0xc   : > { %790 = vsyncadd (%p738_p2), [#allocation3], 4294965248  ;;  %s607_s24 = sshll.u32 %s600_s19, 3  ;;  %v662_v0 = vld [vmem:[#allocation2 + $0x60] sm:$0xf]  ;;  %vm369_vm0 = vcmask 523264  }
   0xd   : > { %p208_p6 = scmp.lt.s32.totalorder %s607_s24, 15  ;;  %v709_v1 = vld [vmem:[#allocation2 + $0x6c] sm:$0xf0]  ;;  %v707_v2 = vld [vmem:[#allocation2 + $0x64] sm:$0xf] }
   0xe   : > { %v663_v3 = vor.u32 %v709_v1, %v662_v0  ;;  %v664_v4 = vld [vmem:[#allocation2 + $0x70] sm:$0xf0]  ;;  %v670_v5 = vld [vmem:[#allocation2 + $0x68] sm:$0xf]  ;;  %v710_v6 = vld [vmem:[#allocation2 + $0x74] sm:$0xf0] }
   0xf   : > { %s901_s24 = smov (!%p208_p6, %s607_s24), 15  ;;  %v667_v7 = vor.u32 %v707_v2, %v664_v4  ;;  %v671_v8 = vor.u32 %v710_v6, %v670_v5  ;;  %v708_v9 = vld [vmem:[#allocation2 + $0x6c] sm:$0xf]  ;;  %v672_v10 = vld [vmem:[#allocation2 + $0x78] sm:$0xf0] }
  0x10   : > { %s608_s25 = sshll.u32 %s901_s24, 2  ;;  %v646_v11 = vld [vmem:[#allocation2 + $0x40] sm:$0xf]  ;;  %386 = vmatpush.bf16.msra.mxu0 %v663_v3  ;;  %v675_v12 = vor.u32 %v708_v9, %v672_v10  ;;  %v705_v13 = vld [vmem:[#allocation2 + $0x4c] sm:$0xf0]  ;;  %s694_s7 = sshll.u32 %s901_s24, 4 }
  0x11   : > { %v703_v14 = vld [vmem:[#allocation2 + $0x44] sm:$0xf]  ;;  %v648_v15 = vld [vmem:[#allocation2 + $0x50] sm:$0xf0]  ;;  %415 = vmatpush.bf16.msra.mxu1 %v667_v7  ;;  %444 = vmatpush.bf16.msra.mxu2 %v671_v8  ;;  %v647_v16 = vor.u32 %v705_v13, %v646_v11  ;;  %v654_v18 = vld [vmem:[#allocation2 + $0x48] sm:$0xf]  ;;  %s842_s28 = scalar_lea.vmem %s895_s0, %s608_s25  ;;  %s874_s10 = scalar_lea.vmem %s899_s4, %s694_s7 }
  0x12   : > { %v651_v17 = vor.u32 %v703_v14, %v648_v15  ;;  %v706_v19 = vld [vmem:[#allocation2 + $0x54] sm:$0xf0]  ;;  %v704_v20 = vld [vmem:[#allocation2 + $0x4c] sm:$0xf]  ;;  %473 = vmatpush.bf16.msra.mxu3 %v675_v12  ;;  %v656_v22 = vld [vmem:[#allocation2 + $0x58] sm:$0xf0] }
  0x13   : > { %v655_v21 = vor.u32 %v706_v19, %v654_v18  ;;  %v630_v23 = vld [vmem:[#allocation2 + $0x20] sm:$0xf]  ;;  %v701_v24 = vld [vmem:[#allocation2 + $0x2c] sm:$0xf0]  ;;  %v659_v25 = vor.u32 %v704_v20, %v656_v22  ;;  %v699_v26 = vld [vmem:[#allocation2 + $0x24] sm:$0xf] }
  0x14   : > { %v632_v27 = vld [vmem:[#allocation2 + $0x30] sm:$0xf0]  ;;  %v638_v28 = vld [vmem:[#allocation2 + $0x28] sm:$0xf]  ;;  %387 = vmatpush.bf16.msra.mxu0 %v647_v16  ;;  %v631_v29 = vor.u32 %v701_v24, %v630_v23  ;;  %v702_v30 = vld [vmem:[#allocation2 + $0x34] sm:$0xf0] }
  0x15   : > { %v700_v31 = vld [vmem:[#allocation2 + $0x2c] sm:$0xf]  ;;  %v640_v32 = vld [vmem:[#allocation2 + $0x38] sm:$0xf0]  ;;  %416 = vmatpush.bf16.msra.mxu1 %v651_v17  ;;  %445 = vmatpush.bf16.msra.mxu2 %v655_v21  ;;  %v635_v33 = vor.u32 %v699_v26, %v632_v27  ;;  %v639_v34 = vor.u32 %v702_v30, %v638_v28  ;;  %v614_v35 = vld [vmem:[#allocation2] sm:$0xf] }
  0x16   : > { %v697_v36 = vld [vmem:[#allocation2 + $0xc] sm:$0xf0]  ;;  %v695_v37 = vld [vmem:[#allocation2 + $0x4] sm:$0xf]  ;;  %474 = vmatpush.bf16.msra.mxu3 %v659_v25  ;;  %v643_v38 = vor.u32 %v700_v31, %v640_v32  ;;  %v616_v39 = vld [vmem:[#allocation2 + $0x10] sm:$0xf0] }
  0x17   : > { %v622_v40 = vld [vmem:[#allocation2 + $0x8] sm:$0xf]  ;;  %v698_v41 = vld [vmem:[#allocation2 + $0x14] sm:$0xf0]  ;;  %v696_v42 = vld [vmem:[#allocation2 + $0xc] sm:$0xf]  ;;  %v615_v45 = vor.u32 %v697_v36, %v614_v35  ;;  %v619_v49 = vor.u32 %v695_v37, %v616_v39 }
  0x18   : > { %v624_v43 = vld [vmem:[#allocation2 + $0x18] sm:$0xf0]  ;;  %v712_v44 = vld [vmem:[%s842_s28] sm:$0xff]   ;;  %388 = vmatpush.bf16.msra.mxu0 %v631_v29  ;;  %v623_v50 = vor.u32 %v698_v41, %v622_v40  ;;  %v727_v55 = vld [vmem:[%s842_s28 + $0x8] sm:$0xff]  }
  0x19   : > { %v713_v46 = vunpack.c.l.bf16 %v712_v44  ;;  %v714_v47 = vunpack.c.h.bf16 %v712_v44  ;;  %v751_v48 = vld [vmem:[%s896_s1] ss:$0 sm:$0xff]  ;;  %417 = vmatpush.bf16.msra.mxu1 %v635_v33  ;;  %446 = vmatpush.bf16.msra.mxu2 %v639_v34  ;;  %v627_v52 = vor.u32 %v696_v42, %v624_v43  ;;  %v717_v60 = vunpack.c.l.bf16 %v727_v55  ;;  %v728_v5 = vld [vmem:[%s842_s28 + $0x10] sm:$0xff]   ;;  %v729_v15 = vld [vmem:[%s842_s28 + $0x18] sm:$0xff]  }
  0x1a   : > { %v752_v51 = vld [vmem:[%s897_s2] ss:$0 sm:$0xff]  ;;  %475 = vmatpush.bf16.msra.mxu3 %v643_v38  ;;  %v718_v61 = vunpack.c.h.bf16 %v727_v55  ;;  %v721_v7 = vunpack.c.l.bf16 %v728_v5  ;;  %v722_v8 = vunpack.c.h.bf16 %v728_v5  ;;  %v725_v17 = vunpack.c.l.bf16 %v729_v15 }
  0x1b   : > { %v241_v53 = vmul.f32 %v751_v48, %v713_v46  ;;  %v242_v54 = vmul.f32 %v751_v48, %v714_v47  ;;  %v243_v63 = vmul.f32 %v751_v48, %v717_v60  ;;  %v726_v18 = vunpack.c.h.bf16 %v729_v15 }
  0x1c   : > { %389 = vmatpush.bf16.msra.mxu0 %v615_v45  ;;  %v244_v0 = vmul.f32 %v751_v48, %v718_v61  ;;  %v245_v9 = vmul.f32 %v751_v48, %v721_v7  ;;  %v246_v10 = vmul.f32 %v751_v48, %v722_v8  ;;  %v247_v19 = vmul.f32 %v751_v48, %v725_v17 }
  0x1d   : > { %v253_v56 = vadd.f32 %v752_v51, %v241_v53  ;;  %v254_v57 = vadd.f32 %v752_v51, %v242_v54  ;;  %418 = vmatpush.bf16.msra.mxu1 %v619_v49  ;;  %447 = vmatpush.bf16.msra.mxu2 %v623_v50  ;;  %v255_v1 = vadd.f32 %v752_v51, %v243_v63 }
  0x1e   : > { %476 = vmatpush.bf16.msra.mxu3 %v627_v52  ;;  %v256_v2 = vadd.f32 %v752_v51, %v244_v0  ;;  %v257_v11 = vadd.f32 %v752_v51, %v245_v9  ;;  %v258_v12 = vadd.f32 %v752_v51, %v246_v10  ;;  %v248_v20 = vmul.f32 %v751_v48, %v726_v18 }
  0x1f   : > { %v261_v58 = vmax.f32 %v253_v56, 0.0  ;;  %v262_v59 = vmax.f32 %v254_v57, 0.0  ;;  %v263_v3 = vmax.f32 %v255_v1, 0.0  ;;  %v259_v21 = vadd.f32 %v752_v51, %v247_v19 }
  0x20   : > { %v264_v4 = vmax.f32 %v256_v2, 0.0  ;;  %v265_v13 = vmax.f32 %v257_v11, 0.0  ;;  %v266_v14 = vmax.f32 %v258_v12, 0.0  ;;  %v260_v22 = vadd.f32 %v752_v51, %v248_v20 }
  0x21   : > { %v269_v62 = vpack.c.bf16 %v262_v59, %v261_v58  ;;  %v267_v23 = vmax.f32 %v259_v21, 0.0 }
  0x22   : > { %v270_v6 = vpack.c.bf16 %v264_v4, %v263_v3  ;;  %v271_v16 = vpack.c.bf16 %v266_v14, %v265_v13  ;;  %v268_v24 = vmax.f32 %v260_v22, 0.0 }
  0x23   : > { %676 = vmatmul.msk.bf16.vlgmr.msra.gmra.mxu0 %vm369_vm0, %v269_v62  ;;  %680 = vmatmul.msk.bf16.vlgmr.msra.gmra.mxu1 %vm369_vm0, %v269_v62 }
  0x24   : > { %684 = vmatmul.msk.bf16.vlgmr.msra.gmra.mxu2 %vm369_vm0, %v269_v62  ;;  %688 = vmatmul.msk.bf16.vlgmr.msra.gmra.mxu3 %vm369_vm0, %v269_v62  ;;  %v272_v25 = vpack.c.bf16 %v268_v24, %v267_v23 }
  0x33   : > { %677 = vmatmul.msk.bf16.gmra.mxu0 %vm369_vm0, %v270_v6  ;;  %681 = vmatmul.msk.bf16.gmra.mxu1 %vm369_vm0, %v270_v6 }
  0x34   : > { %685 = vmatmul.msk.bf16.gmra.mxu2 %vm369_vm0, %v270_v6  ;;  %689 = vmatmul.msk.bf16.gmra.mxu3 %vm369_vm0, %v270_v6 }
  0x43   : > { %678 = vmatmul.msk.bf16.gmra.mxu0 %vm369_vm0, %v271_v16  ;;  %682 = vmatmul.msk.bf16.gmra.mxu1 %vm369_vm0, %v271_v16 }
  0x44   : > { %686 = vmatmul.msk.bf16.gmra.mxu2 %vm369_vm0, %v271_v16  ;;  %690 = vmatmul.msk.bf16.gmra.mxu3 %vm369_vm0, %v271_v16 }
  0x53   : > { %679 = vmatmul.msk.bf16.gmra.mxu0 %vm369_vm0, %v272_v25  ;;  %683 = vmatmul.msk.bf16.gmra.mxu1 %vm369_vm0, %v272_v25 }
  0x54   : > { %687 = vmatmul.msk.bf16.gmra.mxu2 %vm369_vm0, %v272_v25  ;;  %691 = vmatmul.msk.bf16.gmra.mxu3 %vm369_vm0, %v272_v25 }
  0xa0   : > { %v391_v26 = vpop.f32.mrf.mxu0  ;;  %v420_v27 = vpop.f32.mrf.mxu1 }
  0xa1   : > { %v498_v28 = vpack.c.bf16 %v420_v27, %v391_v26 }
  0xa3   : > { %514 = vst [vmem:[%s874_s10] sm:$0xff] %v498_v28 }
  0xa7   : > { %v449_v29 = vpop.f32.mrf.mxu2  ;;  %v478_v30 = vpop.f32.mrf.mxu3 }
  0xa8   : > { %v499_v31 = vpack.c.bf16 %v478_v30, %v449_v29  ;;  %v393_v32 = vpop.f32.mrf.mxu0  ;;  %v422_v33 = vpop.f32.mrf.mxu1 }
  0xa9   : > { %v500_v34 = vpack.c.bf16 %v422_v33, %v393_v32 }
  0xaa   : > { %515 = vst [vmem:[%s874_s10 + $0x8] sm:$0xff] %v499_v31 }
  0xab   : > { %516 = vst [vmem:[%s874_s10 + $0x10] sm:$0xff] %v500_v34 }
  0xaf   : > { %v451_v35 = vpop.f32.mrf.mxu2  ;;  %v480_v36 = vpop.f32.mrf.mxu3 }
  0xb0   : > { %v501_v37 = vpack.c.bf16 %v480_v36, %v451_v35  ;;  %v396_v38 = vpop.f32.mrf.mxu0  ;;  %v425_v39 = vpop.f32.mrf.mxu1 }
  0xb1   : > { %v502_v40 = vpack.c.bf16 %v425_v39, %v396_v38 }
  0xb2   : > { %517 = vst [vmem:[%s874_s10 + $0x18] sm:$0xff] %v501_v37 }
  0xb3   : > { %518 = vst [vmem:[%s874_s10 + $0x20] sm:$0xff] %v502_v40 }
  0xb7   : > { %v454_v41 = vpop.f32.mrf.mxu2  ;;  %v483_v42 = vpop.f32.mrf.mxu3 }
  0xb8   : > { %v503_v43 = vpack.c.bf16 %v483_v42, %v454_v41  ;;  %v398_v44 = vpop.f32.mrf.mxu0  ;;  %v427_v45 = vpop.f32.mrf.mxu1 }
  0xb9   : > { %v504_v46 = vpack.c.bf16 %v427_v45, %v398_v44 }
  0xba   : > { %519 = vst [vmem:[%s874_s10 + $0x28] sm:$0xff] %v503_v43 }
  0xbb   : > { %520 = vst [vmem:[%s874_s10 + $0x30] sm:$0xff] %v504_v46 }
  0xbf   : > { %v456_v47 = vpop.f32.mrf.mxu2  ;;  %v485_v48 = vpop.f32.mrf.mxu3 }
  0xc0   : > { %v505_v49 = vpack.c.bf16 %v485_v48, %v456_v47  ;;  %v401_v50 = vpop.f32.mrf.mxu0  ;;  %v430_v51 = vpop.f32.mrf.mxu1 }
  0xc1   : > { %v506_v52 = vpack.c.bf16 %v430_v51, %v401_v50 }
  0xc2   : > { %521 = vst [vmem:[%s874_s10 + $0x38] sm:$0xff] %v505_v49 }
  0xc3   : > { %522 = vst [vmem:[%s874_s10 + $0x40] sm:$0xff] %v506_v52 }
  0xc7   : > { %v459_v53 = vpop.f32.mrf.mxu2  ;;  %v488_v54 = vpop.f32.mrf.mxu3 }
  0xc8   : > { %v507_v55 = vpack.c.bf16 %v488_v54, %v459_v53  ;;  %v403_v56 = vpop.f32.mrf.mxu0  ;;  %v432_v57 = vpop.f32.mrf.mxu1 }
  0xc9   : > { %v508_v58 = vpack.c.bf16 %v432_v57, %v403_v56 }
  0xca   : > { %523 = vst [vmem:[%s874_s10 + $0x48] sm:$0xff] %v507_v55 }
  0xcb   : > { %524 = vst [vmem:[%s874_s10 + $0x50] sm:$0xff] %v508_v58 }
  0xcf   : > { %v461_v59 = vpop.f32.mrf.mxu2  ;;  %v490_v60 = vpop.f32.mrf.mxu3 }
  0xd0   : > { %v509_v61 = vpack.c.bf16 %v490_v60, %v461_v59  ;;  %v406_v62 = vpop.f32.mrf.mxu0  ;;  %v435_v63 = vpop.f32.mrf.mxu1 }
  0xd1   : > { %v510_v0 = vpack.c.bf16 %v435_v63, %v406_v62 }
  0xd2   : > { %525 = vst [vmem:[%s874_s10 + $0x58] sm:$0xff] %v509_v61 }
  0xd3   : > { %526 = vst [vmem:[%s874_s10 + $0x60] sm:$0xff] %v510_v0 }
  0xd7   : > { %v464_v1 = vpop.f32.mrf.mxu2  ;;  %v493_v2 = vpop.f32.mrf.mxu3 }
  0xd8   : > { %v511_v3 = vpack.c.bf16 %v493_v2, %v464_v1  ;;  %v408_v4 = vpop.f32.mrf.mxu0  ;;  %v437_v5 = vpop.f32.mrf.mxu1 }
  0xd9   : > { %v512_v6 = vpack.c.bf16 %v437_v5, %v408_v4 }
  0xda   : > { %527 = vst [vmem:[%s874_s10 + $0x68] sm:$0xff] %v511_v3 }
  0xdb   : > { %528 = vst [vmem:[%s874_s10 + $0x70] sm:$0xff] %v512_v6 }
  0xdf   : > { %v466_v7 = vpop.f32.mrf.mxu2  ;;  %v495_v8 = vpop.f32.mrf.mxu3 }
  0xe0   : > { %v513_v9 = vpack.c.bf16 %v495_v8, %v466_v7 }
  0xe2   : > { %529 = vst [vmem:[%s874_s10 + $0x78] sm:$0xff] %v513_v9 }
  0xe3 PF: > { %s15_s15 = sadd.s32 1, %s793_s15  }
  0xe4   : > { %p12_p7 = scmp.ge.s32.totalorder %s15_s15, 4  }
  0xe6   :  { %14 = sbr.rel (!%p12_p7) target bundleno = 1 (0x1), region = 71 }
  0xeb   :  { %554 = vsyncpa [#allocation3], 1 }
  0xec   :  { %556 = vsyncpa [#allocation3 + $0x1], 1 }

// kernel: netg_forward.16
= control target key start
LH: loop header
LB: loop body
LE: loop exit
PB: predicated region body
PF: predicated region fallthrough
CT: control target
= control target key end

     0   :  { %s952_s15 = smov 0   ;;  %s1155_s0 = inlined_call_operand.vmem [shape: bf16[512,32], index: 0, kind: input, shape index: {}]   ;;  %s1156_s1 = inlined_call_operand.vmem [shape: f32[1,32], index: 1, kind: input, shape index: {}]   ;;  %s1157_s2 = inlined_call_operand.vmem [shape: f32[1,32], index: 2, kind: input, shape index: {}]   ;;  %s1158_s3 = inlined_call_operand.vmem [shape: bf16[32,256], index: 3, kind: input, shape index: {}]   ;;  %s1159_s4 = inlined_call_operand.vmem [shape: bf16[512,256], index: 4, kind: output, shape index: {}]  }
   0x1 LB: > { %s761_s16 = sadd.s32 4294967295, %s925_s15   ;;  %p765_p0 = scmp.ge.s32.totalorder %s925_s15, 1  ;;  %s925_s15 = sphi %s952_s15, %s14_s15  }
   0x2   : > { %p163_p1 = scmp.lt.s32.totalorder %s925_s15, 3 }
   0x4   : > { %p164_p2 = pnand %p765_p0, %p163_p1 }
   0x5   : > { %s766_s7 = sshll.u32 (!%p164_p2), %s761_s16, 5 }
   0x6   : > { %167 = sbr.rel (%p164_p2) target bundleno = 283 (0x11b), region = 36  ;;  %p191_p3 = scmp.lt.s32.totalorder (!%p164_p2), %s766_s7, 63 }
   0xb   : > { %v781_v0 = vld [vmem:[%s1158_s3 + $0x10] sm:$0xf]  ;;  %v825_v1 = vld [vmem:[%s1158_s3 + $0x14] sm:$0xf0]  ;;  %v824_v2 = vld [vmem:[%s1158_s3 + $0x14] sm:$0xf] }
   0xc   : > { %v782_v3 = vor.u32 %v825_v1, %v781_v0  ;;  %v783_v4 = vld [vmem:[%s1158_s3 + $0x18] sm:$0xf0]  ;;  %v773_v5 = vld [vmem:[%s1158_s3] sm:$0xf]  ;;  %v823_v6 = vld [vmem:[%s1158_s3 + $0x4] sm:$0xf0] }
   0xd   : > { %v786_v7 = vor.u32 %v824_v2, %v783_v4  ;;  %v822_v8 = vld [vmem:[%s1158_s3 + $0x4] sm:$0xf]  ;;  %v775_v9 = vld [vmem:[%s1158_s3 + $0x8] sm:$0xf0]  ;;  %v774_v10 = vor.u32 %v823_v6, %v773_v5  ;;  %s1161_s7 = smov (!%p191_p3, %s766_s7), 63  ;;  %vm412_vm0 = vcmask 261120  }
   0xe   : > { %467 = vmatpush.bf16.msra.mxu0 %v782_v3  ;;  %905 = vmatpush.bf16.msra.mxu2 %v782_v3  ;;  %v778_v11 = vor.u32 %v822_v8, %v775_v9  ;;  %s767_s8 = sshll.u32 %s1161_s7, 2  ;;  %v995_v12 = vld [vmem:[%s1156_s1] ss:$0 sm:$0xff]  ;;  %s821_s17 = sshll.u32 %s1161_s7, 3 }
   0xf   : > { %556 = vmatpush.bf16.msra.mxu1 %v786_v7  ;;  %907 = vmatpush.bf16.msra.mxu3 %v786_v7  ;;  %s990_s11 = scalar_lea.vmem %s1155_s0, %s767_s8  ;;  %v1002_v17 = vld [vmem:[%s1157_s2] ss:$0 sm:$0xff]  ;;  %s1118_s20 = scalar_lea.vmem %s1159_s4, %s821_s17 }
  0x10   : > { %v827_v13 = vld [vmem:[%s990_s11] sm:$0xff]   ;;  %v890_v24 = vld [vmem:[%s990_s11 + $0x8] sm:$0xff]   ;;  %v891_v52 = vld [vmem:[%s990_s11 + $0x10] sm:$0xff]  }
  0x11   : > { %v897_v14 = vld [vmem:[%s990_s11 + $0x40] sm:$0xff]   ;;  %v828_v15 = vunpack.c.l.bf16 %v827_v13  ;;  %v829_v16 = vunpack.c.h.bf16 %v827_v13  ;;  %v898_v25 = vld [vmem:[%s990_s11 + $0x48] sm:$0xff]   ;;  %v832_v30 = vunpack.c.l.bf16 %v890_v24  ;;  %v833_v31 = vunpack.c.h.bf16 %v890_v24  ;;  %v899_v53 = vld [vmem:[%s990_s11 + $0x50] sm:$0xff]  }
  0x12   : > { %468 = vmatpush.bf16.msra.mxu0 %v774_v10  ;;  %906 = vmatpush.bf16.msra.mxu2 %v774_v10  ;;  %v860_v18 = vunpack.c.l.bf16 %v897_v14  ;;  %v861_v19 = vunpack.c.h.bf16 %v897_v14  ;;  %v864_v32 = vunpack.c.l.bf16 %v898_v25  ;;  %v865_v33 = vunpack.c.h.bf16 %v898_v25  ;;  %v892_v8 = vld [vmem:[%s990_s11 + $0x18] sm:$0xff]  }
  0x13   : > { %557 = vmatpush.bf16.msra.mxu1 %v778_v11  ;;  %908 = vmatpush.bf16.msra.mxu3 %v778_v11  ;;  %v272_v20 = vmul.f32 %v995_v12, %v828_v15  ;;  %v273_v21 = vmul.f32 %v995_v12, %v829_v16  ;;  %v274_v40 = vmul.f32 %v995_v12, %v832_v30  ;;  %v836_v54 = vunpack.c.l.bf16 %v891_v52  ;;  %v900_v9 = vld [vmem:[%s990_s11 + $0x58] sm:$0xff]   ;;  %v893_v30 = vld [vmem:[%s990_s11 + $0x20] sm:$0xff]  }
  0x14   : > { %v288_v22 = vmul.f32 %v995_v12, %v860_v18  ;;  %v289_v23 = vmul.f32 %v995_v12, %v861_v19  ;;  %v275_v41 = vmul.f32 %v995_v12, %v833_v31  ;;  %v290_v42 = vmul.f32 %v995_v12, %v864_v32  ;;  %v901_v31 = vld [vmem:[%s990_s11 + $0x60] sm:$0xff]  }
  0x15   : > { %v308_v26 = vadd.f32 %v1002_v17, %v272_v20  ;;  %v309_v27 = vadd.f32 %v1002_v17, %v273_v21  ;;  %v291_v43 = vmul.f32 %v995_v12, %v865_v33  ;;  %v310_v44 = vadd.f32 %v1002_v17, %v274_v40 }
  0x16   : > { %v324_v28 = vadd.f32 %v1002_v17, %v288_v22  ;;  %v325_v29 = vadd.f32 %v1002_v17, %v289_v23  ;;  %v311_v45 = vadd.f32 %v1002_v17, %v275_v41  ;;  %v326_v46 = vadd.f32 %v1002_v17, %v290_v42 }
  0x17   : > { %v340_v34 = vmax.f32 %v308_v26, 0.0  ;;  %v341_v35 = vmax.f32 %v309_v27, 0.0  ;;  %v327_v47 = vadd.f32 %v1002_v17, %v291_v43  ;;  %v342_v48 = vmax.f32 %v310_v44, 0.0 }
  0x18   : > { %v356_v36 = vmax.f32 %v324_v28, 0.0  ;;  %v357_v37 = vmax.f32 %v325_v29, 0.0  ;;  %v343_v49 = vmax.f32 %v311_v45, 0.0  ;;  %v358_v50 = vmax.f32 %v326_v46, 0.0 }
  0x19   : > { %v372_v38 = vpack.c.bf16 %v341_v35, %v340_v34  ;;  %v359_v51 = vmax.f32 %v327_v47, 0.0  ;;  %v837_v55 = vunpack.c.h.bf16 %v891_v52  ;;  %v868_v58 = vunpack.c.l.bf16 %v899_v53 }
  0x1a   : > { %v380_v39 = vpack.c.bf16 %v357_v37, %v356_v36  ;;  %v373_v56 = vpack.c.bf16 %v343_v49, %v342_v48  ;;  %v869_v59 = vunpack.c.h.bf16 %v899_v53  ;;  %v276_v60 = vmul.f32 %v995_v12, %v836_v54 }
  0x1b   : > { %787 = vmatmul.msk.bf16.vlgmr.msra.gmra.mxu0 %vm412_vm0, %v372_v38  ;;  %803 = vmatmul.msk.bf16.vlgmr.msra.gmra.mxu1 %vm412_vm0, %v372_v38  ;;  %v381_v57 = vpack.c.bf16 %v359_v51, %v358_v50  ;;  %v277_v61 = vmul.f32 %v995_v12, %v837_v55  ;;  %v292_v62 = vmul.f32 %v995_v12, %v868_v58  ;;  %v840_v10 = vunpack.c.l.bf16 %v892_v8  ;;  %v894_v50 = vld [vmem:[%s990_s11 + $0x28] sm:$0xff]  }
  0x1c   : > { %795 = vmatmul.msk.bf16.vlgmr.msra.gmra.mxu2 %vm412_vm0, %v380_v39  ;;  %811 = vmatmul.msk.bf16.vlgmr.msra.gmra.mxu3 %vm412_vm0, %v380_v39  ;;  %v293_v63 = vmul.f32 %v995_v12, %v869_v59  ;;  %v312_v0 = vadd.f32 %v1002_v17, %v276_v60  ;;  %v841_v11 = vunpack.c.h.bf16 %v892_v8  ;;  %v872_v15 = vunpack.c.l.bf16 %v900_v9  ;;  %v902_v51 = vld [vmem:[%s990_s11 + $0x68] sm:$0xff]  }
  0x1d   : > { %v313_v1 = vadd.f32 %v1002_v17, %v277_v61  ;;  %v328_v2 = vadd.f32 %v1002_v17, %v292_v62  ;;  %v873_v16 = vunpack.c.h.bf16 %v900_v9  ;;  %v278_v18 = vmul.f32 %v995_v12, %v840_v10 }
  0x1e   : > { %v329_v3 = vadd.f32 %v1002_v17, %v293_v63  ;;  %v344_v4 = vmax.f32 %v312_v0, 0.0  ;;  %v279_v19 = vmul.f32 %v995_v12, %v841_v11  ;;  %v294_v20 = vmul.f32 %v995_v12, %v872_v15 }
  0x1f   : > { %v345_v5 = vmax.f32 %v313_v1, 0.0  ;;  %v360_v6 = vmax.f32 %v328_v2, 0.0  ;;  %v295_v21 = vmul.f32 %v995_v12, %v873_v16  ;;  %v314_v22 = vadd.f32 %v1002_v17, %v278_v18 }
  0x20   : > { %v361_v7 = vmax.f32 %v329_v3, 0.0  ;;  %v315_v23 = vadd.f32 %v1002_v17, %v279_v19  ;;  %v330_v24 = vadd.f32 %v1002_v17, %v294_v20  ;;  %v844_v32 = vunpack.c.l.bf16 %v893_v30 }
  0x21   : > { %v374_v13 = vpack.c.bf16 %v345_v5, %v344_v4  ;;  %v331_v25 = vadd.f32 %v1002_v17, %v295_v21  ;;  %v346_v26 = vmax.f32 %v314_v22, 0.0  ;;  %v845_v33 = vunpack.c.h.bf16 %v893_v30 }
  0x22   : > { %v382_v14 = vpack.c.bf16 %v361_v7, %v360_v6  ;;  %v347_v27 = vmax.f32 %v315_v23, 0.0  ;;  %v362_v28 = vmax.f32 %v330_v24, 0.0  ;;  %v876_v36 = vunpack.c.l.bf16 %v901_v31  ;;  %v895_v6 = vld [vmem:[%s990_s11 + $0x30] sm:$0xff]  }
  0x23   : > { %v363_v29 = vmax.f32 %v331_v25, 0.0  ;;  %v877_v37 = vunpack.c.h.bf16 %v901_v31  ;;  %v280_v38 = vmul.f32 %v995_v12, %v844_v32  ;;  %v281_v39 = vmul.f32 %v995_v12, %v845_v33  ;;  %v903_v7 = vld [vmem:[%s990_s11 + $0x70] sm:$0xff]  }
  0x24   : > { %v375_v34 = vpack.c.bf16 %v347_v27, %v346_v26  ;;  %v296_v40 = vmul.f32 %v995_v12, %v876_v36  ;;  %v848_v53 = vunpack.c.l.bf16 %v894_v50  ;;  %v849_v55 = vunpack.c.h.bf16 %v894_v50 }
  0x25   : > { %v383_v35 = vpack.c.bf16 %v363_v29, %v362_v28  ;;  %v297_v41 = vmul.f32 %v995_v12, %v877_v37  ;;  %v316_v42 = vadd.f32 %v1002_v17, %v280_v38  ;;  %v317_v43 = vadd.f32 %v1002_v17, %v281_v39  ;;  %v896_v28 = vld [vmem:[%s990_s11 + $0x38] sm:$0xff]  }
  0x26   : > { %v332_v44 = vadd.f32 %v1002_v17, %v296_v40  ;;  %v282_v58 = vmul.f32 %v995_v12, %v848_v53  ;;  %v283_v59 = vmul.f32 %v995_v12, %v849_v55  ;;  %v852_v8 = vunpack.c.l.bf16 %v895_v6  ;;  %v904_v29 = vld [vmem:[%s990_s11 + $0x78] sm:$0xff]  }
  0x27   : > { %v333_v45 = vadd.f32 %v1002_v17, %v297_v41  ;;  %v348_v46 = vmax.f32 %v316_v42, 0.0  ;;  %v349_v47 = vmax.f32 %v317_v43, 0.0  ;;  %v853_v9 = vunpack.c.h.bf16 %v895_v6 }
  0x28   : > { %v364_v48 = vmax.f32 %v332_v44, 0.0  ;;  %v318_v62 = vadd.f32 %v1002_v17, %v282_v58  ;;  %v319_v63 = vadd.f32 %v1002_v17, %v283_v59  ;;  %v284_v15 = vmul.f32 %v995_v12, %v852_v8 }
  0x29   : > { %v365_v49 = vmax.f32 %v333_v45, 0.0  ;;  %v376_v52 = vpack.c.bf16 %v349_v47, %v348_v46  ;;  %v285_v16 = vmul.f32 %v995_v12, %v853_v9  ;;  %v856_v31 = vunpack.c.l.bf16 %v896_v28 }
  0x2a   : > { %v350_v2 = vmax.f32 %v318_v62, 0.0  ;;  %v351_v3 = vmax.f32 %v319_v63, 0.0  ;;  %v320_v20 = vadd.f32 %v1002_v17, %v284_v15  ;;  %v857_v33 = vunpack.c.h.bf16 %v896_v28 }
  0x2b   : > { %788 = vmatmul.msk.bf16.gmra.mxu0 %vm412_vm0, %v373_v56  ;;  %804 = vmatmul.msk.bf16.gmra.mxu1 %vm412_vm0, %v373_v56  ;;  %v384_v54 = vpack.c.bf16 %v365_v49, %v364_v48  ;;  %v880_v56 = vunpack.c.l.bf16 %v902_v51  ;;  %v321_v21 = vadd.f32 %v1002_v17, %v285_v16  ;;  %v286_v36 = vmul.f32 %v995_v12, %v856_v31 }
  0x2c   : > { %796 = vmatmul.msk.bf16.gmra.mxu2 %vm412_vm0, %v381_v57  ;;  %812 = vmatmul.msk.bf16.gmra.mxu3 %vm412_vm0, %v381_v57  ;;  %v881_v57 = vunpack.c.h.bf16 %v902_v51  ;;  %v377_v10 = vpack.c.bf16 %v351_v3, %v350_v2  ;;  %v352_v24 = vmax.f32 %v320_v20, 0.0  ;;  %v287_v37 = vmul.f32 %v995_v12, %v857_v33 }
  0x2d   : > { %v298_v60 = vmul.f32 %v995_v12, %v880_v56  ;;  %v353_v25 = vmax.f32 %v321_v21, 0.0  ;;  %v322_v40 = vadd.f32 %v1002_v17, %v286_v36 }
  0x2e   : > { %v299_v61 = vmul.f32 %v995_v12, %v881_v57  ;;  %v323_v41 = vadd.f32 %v1002_v17, %v287_v37 }
  0x2f   : > { %v334_v0 = vadd.f32 %v1002_v17, %v298_v60  ;;  %v378_v30 = vpack.c.bf16 %v353_v25, %v352_v24  ;;  %v354_v44 = vmax.f32 %v322_v40, 0.0 }
  0x30   : > { %v335_v1 = vadd.f32 %v1002_v17, %v299_v61  ;;  %v355_v45 = vmax.f32 %v323_v41, 0.0 }
  0x31   : > { %v366_v4 = vmax.f32 %v334_v0, 0.0 }
  0x32   : > { %v367_v5 = vmax.f32 %v335_v1, 0.0  ;;  %v379_v48 = vpack.c.bf16 %v355_v45, %v354_v44 }
  0x34   : > { %v385_v11 = vpack.c.bf16 %v367_v5, %v366_v4 }
  0x3b   : > { %789 = vmatmul.msk.bf16.gmra.mxu0 %vm412_vm0, %v374_v13  ;;  %805 = vmatmul.msk.bf16.gmra.mxu1 %vm412_vm0, %v374_v13  ;;  %v884_v13 = vunpack.c.l.bf16 %v903_v7 }
  0x3c   : > { %797 = vmatmul.msk.bf16.gmra.mxu2 %vm412_vm0, %v382_v14  ;;  %813 = vmatmul.msk.bf16.gmra.mxu3 %vm412_vm0, %v382_v14  ;;  %v885_v14 = vunpack.c.h.bf16 %v903_v7 }
  0x3d   : > { %v300_v18 = vmul.f32 %v995_v12, %v884_v13 }
  0x3e   : > { %v301_v19 = vmul.f32 %v995_v12, %v885_v14 }
  0x3f   : > { %v336_v22 = vadd.f32 %v1002_v17, %v300_v18 }
  0x40   : > { %v337_v23 = vadd.f32 %v1002_v17, %v301_v19 }
  0x41   : > { %v368_v26 = vmax.f32 %v336_v22, 0.0 }
  0x42   : > { %v369_v27 = vmax.f32 %v337_v23, 0.0 }
  0x44   : > { %v386_v32 = vpack.c.bf16 %v369_v27, %v368_v26 }
  0x4b   : > { %790 = vmatmul.msk.bf16.gmra.mxu0 %vm412_vm0, %v375_v34  ;;  %806 = vmatmul.msk.bf16.gmra.mxu1 %vm412_vm0, %v375_v34  ;;  %v888_v34 = vunpack.c.l.bf16 %v904_v29 }
  0x4c   : > { %798 = vmatmul.msk.bf16.gmra.mxu2 %vm412_vm0, %v383_v35  ;;  %814 = vmatmul.msk.bf16.gmra.mxu3 %vm412_vm0, %v383_v35  ;;  %v889_v35 = vunpack.c.h.bf16 %v904_v29 }
  0x4d   : > { %v302_v38 = vmul.f32 %v995_v12, %v888_v34 }
  0x4e   : > { %v303_v39 = vmul.f32 %v995_v12, %v889_v35 }
  0x4f   : > { %v338_v42 = vadd.f32 %v1002_v17, %v302_v38 }
  0x50   : > { %v339_v43 = vadd.f32 %v1002_v17, %v303_v39 }
  0x51   : > { %v370_v46 = vmax.f32 %v338_v42, 0.0 }
  0x52   : > { %v371_v47 = vmax.f32 %v339_v43, 0.0 }
  0x54   : > { %v387_v49 = vpack.c.bf16 %v371_v47, %v370_v46 }
  0x5b   : > { %791 = vmatmul.msk.bf16.gmra.mxu0 %vm412_vm0, %v376_v52  ;;  %807 = vmatmul.msk.bf16.gmra.mxu1 %vm412_vm0, %v376_v52 }
  0x5c   : > { %799 = vmatmul.msk.bf16.gmra.mxu2 %vm412_vm0, %v384_v54  ;;  %815 = vmatmul.msk.bf16.gmra.mxu3 %vm412_vm0, %v384_v54 }
  0x6b   : > { %792 = vmatmul.msk.bf16.gmra.mxu0 %vm412_vm0, %v377_v10  ;;  %808 = vmatmul.msk.bf16.gmra.mxu1 %vm412_vm0, %v377_v10 }
  0x6c   : > { %800 = vmatmul.msk.bf16.gmra.mxu2 %vm412_vm0, %v385_v11  ;;  %816 = vmatmul.msk.bf16.gmra.mxu3 %vm412_vm0, %v385_v11 }
  0x7b   : > { %793 = vmatmul.msk.bf16.gmra.mxu0 %vm412_vm0, %v378_v30  ;;  %809 = vmatmul.msk.bf16.gmra.mxu1 %vm412_vm0, %v378_v30 }
  0x7c   : > { %801 = vmatmul.msk.bf16.gmra.mxu2 %vm412_vm0, %v386_v32  ;;  %817 = vmatmul.msk.bf16.gmra.mxu3 %vm412_vm0, %v386_v32 }
  0x8b   : > { %794 = vmatmul.msk.bf16.gmra.mxu0 %vm412_vm0, %v379_v48  ;;  %810 = vmatmul.msk.bf16.gmra.mxu1 %vm412_vm0, %v379_v48 }
  0x8c   : > { %802 = vmatmul.msk.bf16.gmra.mxu2 %vm412_vm0, %v387_v49  ;;  %818 = vmatmul.msk.bf16.gmra.mxu3 %vm412_vm0, %v387_v49 }
  0x98   : > { %v470_v12 = vpop.f32.mrf.mxu0  ;;  %v559_v17 = vpop.f32.mrf.mxu1 }
  0x99   : > { %v639_v50 = vpack.c.bf16 %v559_v17, %v470_v12 }
  0x9b   : > { %671 = vst [vmem:[%s1118_s20] sm:$0xff] %v639_v50 }
  0x9f   : > { %v510_v51 = vpop.f32.mrf.mxu2  ;;  %v599_v52 = vpop.f32.mrf.mxu3 }
  0xa0   : > { %v655_v53 = vpack.c.bf16 %v599_v52, %v510_v51  ;;  %v472_v54 = vpop.f32.mrf.mxu0  ;;  %v561_v55 = vpop.f32.mrf.mxu1 }
  0xa1   : > { %v640_v56 = vpack.c.bf16 %v561_v55, %v472_v54 }
  0xa2   : > { %687 = vst [vmem:[%s1118_s20 + $0x80] sm:$0xff] %v655_v53 }
  0xa3   : > { %672 = vst [vmem:[%s1118_s20 + $0x8] sm:$0xff] %v640_v56 }
  0xa7   : > { %v512_v57 = vpop.f32.mrf.mxu2  ;;  %v601_v58 = vpop.f32.mrf.mxu3 }
  0xa8   : > { %v656_v59 = vpack.c.bf16 %v601_v58, %v512_v57  ;;  %v475_v60 = vpop.f32.mrf.mxu0  ;;  %v564_v61 = vpop.f32.mrf.mxu1 }
  0xa9   : > { %v641_v62 = vpack.c.bf16 %v564_v61, %v475_v60 }
  0xaa   : > { %688 = vst [vmem:[%s1118_s20 + $0x88] sm:$0xff] %v656_v59 }
  0xab   : > { %673 = vst [vmem:[%s1118_s20 + $0x10] sm:$0xff] %v641_v62 }
  0xaf   : > { %v515_v63 = vpop.f32.mrf.mxu2  ;;  %v604_v0 = vpop.f32.mrf.mxu3 }
  0xb0   : > { %v657_v1 = vpack.c.bf16 %v604_v0, %v515_v63  ;;  %v477_v2 = vpop.f32.mrf.mxu0  ;;  %v566_v3 = vpop.f32.mrf.mxu1 }
  0xb1   : > { %v642_v4 = vpack.c.bf16 %v566_v3, %v477_v2 }
  0xb2   : > { %689 = vst [vmem:[%s1118_s20 + $0x90] sm:$0xff] %v657_v1 }
  0xb3   : > { %674 = vst [vmem:[%s1118_s20 + $0x18] sm:$0xff] %v642_v4 }
  0xb7   : > { %v517_v5 = vpop.f32.mrf.mxu2  ;;  %v606_v6 = vpop.f32.mrf.mxu3 }
  0xb8   : > { %v658_v7 = vpack.c.bf16 %v606_v6, %v517_v5  ;;  %v480_v8 = vpop.f32.mrf.mxu0  ;;  %v569_v9 = vpop.f32.mrf.mxu1 }
  0xb9   : > { %v643_v10 = vpack.c.bf16 %v569_v9, %v480_v8 }
  0xba   : > { %690 = vst [vmem:[%s1118_s20 + $0x98] sm:$0xff] %v658_v7 }
  0xbb   : > { %675 = vst [vmem:[%s1118_s20 + $0x20] sm:$0xff] %v643_v10 }
  0xbf   : > { %v520_v11 = vpop.f32.mrf.mxu2  ;;  %v609_v13 = vpop.f32.mrf.mxu3 }
  0xc0   : > { %v659_v14 = vpack.c.bf16 %v609_v13, %v520_v11  ;;  %v482_v15 = vpop.f32.mrf.mxu0  ;;  %v571_v16 = vpop.f32.mrf.mxu1 }
  0xc1   : > { %v644_v18 = vpack.c.bf16 %v571_v16, %v482_v15 }
  0xc2   : > { %691 = vst [vmem:[%s1118_s20 + $0xa0] sm:$0xff] %v659_v14 }
  0xc3   : > { %676 = vst [vmem:[%s1118_s20 + $0x28] sm:$0xff] %v644_v18 }
  0xc7   : > { %v522_v19 = vpop.f32.mrf.mxu2  ;;  %v611_v20 = vpop.f32.mrf.mxu3 }
  0xc8   : > { %v660_v21 = vpack.c.bf16 %v611_v20, %v522_v19  ;;  %v485_v22 = vpop.f32.mrf.mxu0  ;;  %v574_v23 = vpop.f32.mrf.mxu1 }
  0xc9   : > { %v645_v24 = vpack.c.bf16 %v574_v23, %v485_v22 }
  0xca   : > { %692 = vst [vmem:[%s1118_s20 + $0xa8] sm:$0xff] %v660_v21 }
  0xcb   : > { %677 = vst [vmem:[%s1118_s20 + $0x30] sm:$0xff] %v645_v24 }
  0xcf   : > { %v525_v25 = vpop.f32.mrf.mxu2  ;;  %v614_v26 = vpop.f32.mrf.mxu3 }
  0xd0   : > { %v661_v27 = vpack.c.bf16 %v614_v26, %v525_v25  ;;  %v487_v28 = vpop.f32.mrf.mxu0  ;;  %v576_v29 = vpop.f32.mrf.mxu1 }
  0xd1   : > { %v646_v30 = vpack.c.bf16 %v576_v29, %v487_v28 }
  0xd2   : > { %693 = vst [vmem:[%s1118_s20 + $0xb0] sm:$0xff] %v661_v27 }
  0xd3   : > { %678 = vst [vmem:[%s1118_s20 + $0x38] sm:$0xff] %v646_v30 }
  0xd7   : > { %v527_v31 = vpop.f32.mrf.mxu2  ;;  %v616_v32 = vpop.f32.mrf.mxu3 }
  0xd8   : > { %v662_v33 = vpack.c.bf16 %v616_v32, %v527_v31  ;;  %v490_v34 = vpop.f32.mrf.mxu0  ;;  %v579_v35 = vpop.f32.mrf.mxu1 }
  0xd9   : > { %v647_v36 = vpack.c.bf16 %v579_v35, %v490_v34 }
  0xda   : > { %694 = vst [vmem:[%s1118_s20 + $0xb8] sm:$0xff] %v662_v33 }
  0xdb   : > { %679 = vst [vmem:[%s1118_s20 + $0x40] sm:$0xff] %v647_v36 }
  0xdf   : > { %v530_v37 = vpop.f32.mrf.mxu2  ;;  %v619_v38 = vpop.f32.mrf.mxu3 }
  0xe0   : > { %v663_v39 = vpack.c.bf16 %v619_v38, %v530_v37  ;;  %v492_v40 = vpop.f32.mrf.mxu0  ;;  %v581_v41 = vpop.f32.mrf.mxu1 }
  0xe1   : > { %v648_v42 = vpack.c.bf16 %v581_v41, %v492_v40 }
  0xe2   : > { %695 = vst [vmem:[%s1118_s20 + $0xc0] sm:$0xff] %v663_v39 }
  0xe3   : > { %680 = vst [vmem:[%s1118_s20 + $0x48] sm:$0xff] %v648_v42 }
  0xe7   : > { %v532_v43 = vpop.f32.mrf.mxu2  ;;  %v621_v44 = vpop.f32.mrf.mxu3 }
  0xe8   : > { %v664_v45 = vpack.c.bf16 %v621_v44, %v532_v43  ;;  %v495_v46 = vpop.f32.mrf.mxu0  ;;  %v584_v47 = vpop.f32.mrf.mxu1 }
  0xe9   : > { %v649_v48 = vpack.c.bf16 %v584_v47, %v495_v46 }
  0xea   : > { %696 = vst [vmem:[%s1118_s20 + $0xc8] sm:$0xff] %v664_v45 }
  0xeb   : > { %681 = vst [vmem:[%s1118_s20 + $0x50] sm:$0xff] %v649_v48 }
  0xef   : > { %v535_v49 = vpop.f32.mrf.mxu2  ;;  %v624_v12 = vpop.f32.mrf.mxu3 }
  0xf0   : > { %v665_v17 = vpack.c.bf16 %v624_v12, %v535_v49  ;;  %v497_v50 = vpop.f32.mrf.mxu0  ;;  %v586_v51 = vpop.f32.mrf.mxu1 }
  0xf1   : > { %v650_v52 = vpack.c.bf16 %v586_v51, %v497_v50 }
  0xf2   : > { %697 = vst [vmem:[%s1118_s20 + $0xd0] sm:$0xff] %v665_v17 }
  0xf3   : > { %682 = vst [vmem:[%s1118_s20 + $0x58] sm:$0xff] %v650_v52 }
  0xf7   : > { %v537_v53 = vpop.f32.mrf.mxu2  ;;  %v626_v54 = vpop.f32.mrf.mxu3 }
  0xf8   : > { %v666_v55 = vpack.c.bf16 %v626_v54, %v537_v53  ;;  %v500_v56 = vpop.f32.mrf.mxu0  ;;  %v589_v57 = vpop.f32.mrf.mxu1 }
  0xf9   : > { %v651_v58 = vpack.c.bf16 %v589_v57, %v500_v56 }
  0xfa   : > { %698 = vst [vmem:[%s1118_s20 + $0xd8] sm:$0xff] %v666_v55 }
  0xfb   : > { %683 = vst [vmem:[%s1118_s20 + $0x60] sm:$0xff] %v651_v58 }
  0xff   : > { %v540_v59 = vpop.f32.mrf.mxu2  ;;  %v629_v60 = vpop.f32.mrf.mxu3 }
 0x100   : > { %v667_v61 = vpack.c.bf16 %v629_v60, %v540_v59  ;;  %v502_v62 = vpop.f32.mrf.mxu0  ;;  %v591_v63 = vpop.f32.mrf.mxu1 }
 0x101   : > { %v652_v0 = vpack.c.bf16 %v591_v63, %v502_v62 }
 0x102   : > { %699 = vst [vmem:[%s1118_s20 + $0xe0] sm:$0xff] %v667_v61 }
 0x103   : > { %684 = vst [vmem:[%s1118_s20 + $0x68] sm:$0xff] %v652_v0 }
 0x107   : > { %v542_v1 = vpop.f32.mrf.mxu2  ;;  %v631_v2 = vpop.f32.mrf.mxu3 }
 0x108   : > { %v668_v3 = vpack.c.bf16 %v631_v2, %v542_v1  ;;  %v505_v4 = vpop.f32.mrf.mxu0  ;;  %v594_v5 = vpop.f32.mrf.mxu1 }
 0x109   : > { %v653_v6 = vpack.c.bf16 %v594_v5, %v505_v4 }
 0x10a   : > { %700 = vst [vmem:[%s1118_s20 + $0xe8] sm:$0xff] %v668_v3 }
 0x10b   : > { %685 = vst [vmem:[%s1118_s20 + $0x70] sm:$0xff] %v653_v6 }
 0x10f   : > { %v545_v7 = vpop.f32.mrf.mxu2  ;;  %v634_v8 = vpop.f32.mrf.mxu3 }
 0x110   : > { %v669_v9 = vpack.c.bf16 %v634_v8, %v545_v7  ;;  %v507_v10 = vpop.f32.mrf.mxu0  ;;  %v596_v11 = vpop.f32.mrf.mxu1 }
 0x111   : > { %v654_v13 = vpack.c.bf16 %v596_v11, %v507_v10 }
 0x112   : > { %701 = vst [vmem:[%s1118_s20 + $0xf0] sm:$0xff] %v669_v9 }
 0x113   : > { %686 = vst [vmem:[%s1118_s20 + $0x78] sm:$0xff] %v654_v13 }
 0x117   : > { %v547_v14 = vpop.f32.mrf.mxu2  ;;  %v636_v15 = vpop.f32.mrf.mxu3 }
 0x118   : > { %v670_v16 = vpack.c.bf16 %v636_v15, %v547_v14 }
 0x11a   : > { %702 = vst [vmem:[%s1118_s20 + $0xf8] sm:$0xff] %v670_v16 }
 0x11b PF: > { %s14_s15 = sadd.s32 1, %s925_s15  }
 0x11c   : > { %p11_p4 = scmp.ge.s32.totalorder %s14_s15, 4  }
 0x11e   :  { %13 = sbr.rel (!%p11_p4) target bundleno = 1 (0x1), region = 66 }

// kernel: netg_forward.15
= control target key start
LH: loop header
LB: loop body
LE: loop exit
PB: predicated region body
PF: predicated region fallthrough
CT: control target
= control target key end

     0   :  { %vm14_vm0 = vcmask 253952   ;;  %v651_v0 = vmov 0.0   ;;  %vm146_vm1 = vcmask 261120   ;;  %s913_s1 = inlined_call_operand.vmem [shape: f32[1,32], index: 1, kind: output, shape index: {0}]   ;;  %s914_s2 = inlined_call_operand.vmem [shape: f32[1,32], index: 2, kind: output, shape index: {1}]   ;;  %s915_s0 = inlined_call_operand.vmem [shape: bf16[512,32], index: 0, kind: input, shape index: {}]  }
   0x1   :  { %15 = vst.msk [vmem:[%s913_s1] sm:$0x1] %vm14_vm0, %v651_v0  ;;  %v492_v1 = vld [vmem:[%s915_s0] sm:$0xff]   ;;  %v619_v2 = vld [vmem:[%s915_s0 + $0x8] sm:$0xff]   ;;  %v620_v6 = vld [vmem:[%s915_s0 + $0x10] sm:$0xff]  }
   0x2   :  { %16 = vst.msk [vmem:[%s914_s2] sm:$0x1] %vm14_vm0, %v651_v0  ;;  %v493_v3 = vunpack.c.l.bf16 %v492_v1  ;;  %v494_v4 = vunpack.c.h.bf16 %v492_v1  ;;  %v497_v5 = vunpack.c.l.bf16 %v619_v2  ;;  %v498_v7 = vunpack.c.h.bf16 %v619_v2  ;;  %v621_v14 = vld [vmem:[%s915_s0 + $0x18] sm:$0xff]   ;;  %v622_v21 = vld [vmem:[%s915_s0 + $0x20] sm:$0xff]   ;;  %v623_v31 = vld [vmem:[%s915_s0 + $0x28] sm:$0xff]  }
   0x3   :  { %v501_v12 = vunpack.c.l.bf16 %v620_v6  ;;  %v502_v16 = vunpack.c.h.bf16 %v620_v6  ;;  %v505_v19 = vunpack.c.l.bf16 %v621_v14  ;;  %v506_v23 = vunpack.c.h.bf16 %v621_v14  ;;  %v624_v44 = vld [vmem:[%s915_s0 + $0x30] sm:$0xff]   ;;  %v625_v57 = vld [vmem:[%s915_s0 + $0x38] sm:$0xff]   ;;  %v626_v6 = vld [vmem:[%s915_s0 + $0x40] sm:$0xff]  }
   0x4   :  { %v147_v8 = vsel %vm146_vm1, %v493_v3, 0.0  ;;  %v148_v9 = vsel %vm146_vm1, %v494_v4, 0.0  ;;  %v150_v10 = vsel %vm146_vm1, %v497_v5, 0.0  ;;  %v152_v13 = vsel %vm146_vm1, %v498_v7, 0.0 }
   0x5   :  { %v149_v11 = vadd.f32 %v148_v9, %v147_v8  ;;  %v154_v17 = vsel %vm146_vm1, %v501_v12, 0.0  ;;  %v156_v20 = vsel %vm146_vm1, %v502_v16, 0.0  ;;  %v158_v24 = vsel %vm146_vm1, %v505_v19, 0.0 }
   0x6   :  { %v284_v25 = vmul.f32 %v493_v3, %v493_v3  ;;  %v285_v27 = vmul.f32 %v494_v4, %v494_v4  ;;  %v286_v28 = vmul.f32 %v497_v5, %v497_v5  ;;  %v509_v29 = vunpack.c.l.bf16 %v622_v21 }
   0x7   :  { %v151_v15 = vadd.f32 %v150_v10, %v149_v11  ;;  %v160_v30 = vsel %vm146_vm1, %v506_v23, 0.0  ;;  %v287_v33 = vmul.f32 %v498_v7, %v498_v7  ;;  %v510_v34 = vunpack.c.h.bf16 %v622_v21 }
   0x8   :  { %v162_v35 = vsel %vm146_vm1, %v509_v29, 0.0  ;;  %v348_v36 = vsel %vm146_vm1, %v284_v25, 0.0  ;;  %v288_v38 = vmul.f32 %v501_v12, %v501_v12  ;;  %v349_v39 = vsel %vm146_vm1, %v285_v27, 0.0 }
   0x9   :  { %v153_v18 = vadd.f32 %v152_v13, %v151_v15  ;;  %v351_v40 = vsel %vm146_vm1, %v286_v28, 0.0  ;;  %v513_v41 = vunpack.c.l.bf16 %v623_v31  ;;  %v164_v42 = vsel %vm146_vm1, %v510_v34, 0.0 }
   0xa   :  { %v350_v43 = vadd.f32 %v349_v39, %v348_v36  ;;  %v289_v46 = vmul.f32 %v502_v16, %v502_v16  ;;  %v353_v47 = vsel %vm146_vm1, %v287_v33, 0.0  ;;  %v514_v48 = vunpack.c.h.bf16 %v623_v31 }
   0xb   :  { %v155_v22 = vadd.f32 %v154_v17, %v153_v18  ;;  %v166_v49 = vsel %vm146_vm1, %v513_v41, 0.0  ;;  %v290_v52 = vmul.f32 %v505_v19, %v505_v19  ;;  %v355_v53 = vsel %vm146_vm1, %v288_v38, 0.0  ;;  %v627_v19 = vld [vmem:[%s915_s0 + $0x48] sm:$0xff]  }
   0xc   :  { %v352_v50 = vadd.f32 %v351_v40, %v350_v43  ;;  %v517_v54 = vunpack.c.l.bf16 %v624_v44  ;;  %v168_v55 = vsel %vm146_vm1, %v514_v48, 0.0  ;;  %v291_v59 = vmul.f32 %v506_v23, %v506_v23 }
   0xd   :  { %v157_v26 = vadd.f32 %v156_v20, %v155_v22  ;;  %v357_v60 = vsel %vm146_vm1, %v289_v46, 0.0  ;;  %v518_v61 = vunpack.c.h.bf16 %v624_v44  ;;  %v292_v1 = vmul.f32 %v509_v29, %v509_v29 }
   0xe   :  { %v354_v56 = vadd.f32 %v353_v47, %v352_v50  ;;  %v170_v62 = vsel %vm146_vm1, %v517_v54, 0.0  ;;  %v359_v2 = vsel %vm146_vm1, %v290_v52, 0.0  ;;  %v521_v3 = vunpack.c.l.bf16 %v625_v57 }
   0xf   :  { %v159_v32 = vadd.f32 %v158_v24, %v157_v26  ;;  %v172_v4 = vsel %vm146_vm1, %v518_v61, 0.0  ;;  %v293_v8 = vmul.f32 %v510_v34, %v510_v34  ;;  %v361_v9 = vsel %vm146_vm1, %v291_v59, 0.0 }
  0x10   :  { %v356_v63 = vadd.f32 %v355_v53, %v354_v56  ;;  %v522_v10 = vunpack.c.h.bf16 %v625_v57  ;;  %v174_v11 = vsel %vm146_vm1, %v521_v3, 0.0  ;;  %v294_v14 = vmul.f32 %v513_v41, %v513_v41 }
  0x11   :  { %v161_v37 = vadd.f32 %v160_v30, %v159_v32  ;;  %v363_v15 = vsel %vm146_vm1, %v292_v1, 0.0  ;;  %v525_v16 = vunpack.c.l.bf16 %v626_v6  ;;  %v295_v21 = vmul.f32 %v514_v48, %v514_v48  ;;  %v628_v32 = vld [vmem:[%s915_s0 + $0x50] sm:$0xff]  }
  0x12   :  { %v358_v5 = vadd.f32 %v357_v60, %v356_v63  ;;  %v176_v17 = vsel %vm146_vm1, %v522_v10, 0.0  ;;  %v365_v22 = vsel %vm146_vm1, %v293_v8, 0.0  ;;  %v526_v23 = vunpack.c.h.bf16 %v626_v6 }
  0x13   :  { %v163_v45 = vadd.f32 %v162_v35, %v161_v37  ;;  %v178_v24 = vsel %vm146_vm1, %v525_v16, 0.0  ;;  %v296_v27 = vmul.f32 %v517_v54, %v517_v54  ;;  %v367_v28 = vsel %vm146_vm1, %v294_v14, 0.0 }
  0x14   :  { %v360_v12 = vadd.f32 %v359_v2, %v358_v5  ;;  %v529_v29 = vunpack.c.l.bf16 %v627_v19  ;;  %v180_v30 = vsel %vm146_vm1, %v526_v23, 0.0  ;;  %v297_v34 = vmul.f32 %v518_v61, %v518_v61 }
  0x15   :  { %v165_v51 = vadd.f32 %v164_v42, %v163_v45  ;;  %v369_v35 = vsel %vm146_vm1, %v295_v21, 0.0  ;;  %v530_v36 = vunpack.c.h.bf16 %v627_v19  ;;  %v298_v40 = vmul.f32 %v521_v3, %v521_v3  ;;  %v629_v45 = vld [vmem:[%s915_s0 + $0x58] sm:$0xff]  }
  0x16   :  { %v362_v18 = vadd.f32 %v361_v9, %v360_v12  ;;  %v182_v37 = vsel %vm146_vm1, %v529_v29, 0.0  ;;  %v371_v41 = vsel %vm146_vm1, %v296_v27, 0.0  ;;  %v533_v42 = vunpack.c.l.bf16 %v628_v32 }
  0x17   :  { %v167_v58 = vadd.f32 %v166_v49, %v165_v51  ;;  %v184_v43 = vsel %vm146_vm1, %v530_v36, 0.0  ;;  %v299_v47 = vmul.f32 %v522_v10, %v522_v10  ;;  %v373_v48 = vsel %vm146_vm1, %v297_v34, 0.0 }
  0x18   :  { %v364_v25 = vadd.f32 %v363_v15, %v362_v18  ;;  %v534_v49 = vunpack.c.h.bf16 %v628_v32  ;;  %v186_v50 = vsel %vm146_vm1, %v533_v42, 0.0  ;;  %v300_v53 = vmul.f32 %v525_v16, %v525_v16 }
  0x19   :  { %v169_v0 = vadd.f32 %v168_v55, %v167_v58  ;;  %v375_v54 = vsel %vm146_vm1, %v298_v40, 0.0  ;;  %v537_v55 = vunpack.c.l.bf16 %v629_v45  ;;  %v630_v58 = vld [vmem:[%s915_s0 + $0x60] sm:$0xff]   ;;  %v301_v60 = vmul.f32 %v526_v23, %v526_v23 }
  0x1a   :  { %v366_v31 = vadd.f32 %v365_v22, %v364_v25  ;;  %v188_v56 = vsel %vm146_vm1, %v534_v49, 0.0  ;;  %v377_v61 = vsel %vm146_vm1, %v299_v47, 0.0  ;;  %v302_v2 = vmul.f32 %v529_v29, %v529_v29 }
  0x1b   :  { %v171_v7 = vadd.f32 %v170_v62, %v169_v0  ;;  %v538_v62 = vunpack.c.h.bf16 %v629_v45  ;;  %v190_v63 = vsel %vm146_vm1, %v537_v55, 0.0  ;;  %v379_v3 = vsel %vm146_vm1, %v300_v53, 0.0 }
  0x1c   :  { %v368_v38 = vadd.f32 %v367_v28, %v366_v31  ;;  %v303_v9 = vmul.f32 %v530_v36, %v530_v36  ;;  %v381_v10 = vsel %vm146_vm1, %v301_v60, 0.0  ;;  %v304_v15 = vmul.f32 %v533_v42, %v533_v42 }
  0x1d   :  { %v173_v13 = vadd.f32 %v172_v4, %v171_v7  ;;  %v541_v4 = vunpack.c.l.bf16 %v630_v58  ;;  %v192_v5 = vsel %vm146_vm1, %v538_v62, 0.0  ;;  %v631_v7 = vld [vmem:[%s915_s0 + $0x68] sm:$0xff]   ;;  %v383_v16 = vsel %vm146_vm1, %v302_v2, 0.0 }
  0x1e   :  { %v370_v44 = vadd.f32 %v369_v35, %v368_v38  ;;  %v305_v22 = vmul.f32 %v534_v49, %v534_v49  ;;  %v385_v23 = vsel %vm146_vm1, %v303_v9, 0.0  ;;  %v306_v28 = vmul.f32 %v537_v55, %v537_v55 }
  0x1f   :  { %v175_v20 = vadd.f32 %v174_v11, %v173_v13  ;;  %v542_v11 = vunpack.c.h.bf16 %v630_v58  ;;  %v194_v12 = vsel %vm146_vm1, %v541_v4, 0.0  ;;  %v387_v29 = vsel %vm146_vm1, %v304_v15, 0.0 }
  0x20   :  { %v372_v51 = vadd.f32 %v371_v41, %v370_v44  ;;  %v307_v35 = vmul.f32 %v538_v62, %v538_v62  ;;  %v389_v36 = vsel %vm146_vm1, %v305_v22, 0.0  ;;  %v308_v41 = vmul.f32 %v541_v4, %v541_v4 }
  0x21   :  { %v177_v26 = vadd.f32 %v176_v17, %v175_v20  ;;  %v545_v17 = vunpack.c.l.bf16 %v631_v7  ;;  %v196_v18 = vsel %vm146_vm1, %v542_v11, 0.0  ;;  %v632_v20 = vld [vmem:[%s915_s0 + $0x70] sm:$0xff]   ;;  %v391_v42 = vsel %vm146_vm1, %v306_v28, 0.0 }
  0x22   :  { %v374_v57 = vadd.f32 %v373_v48, %v372_v51  ;;  %v309_v48 = vmul.f32 %v542_v11, %v542_v11  ;;  %v393_v49 = vsel %vm146_vm1, %v307_v35, 0.0  ;;  %v395_v55 = vsel %vm146_vm1, %v308_v41, 0.0 }
  0x23   :  { %v179_v33 = vadd.f32 %v178_v24, %v177_v26  ;;  %v546_v24 = vunpack.c.h.bf16 %v631_v7  ;;  %v198_v25 = vsel %vm146_vm1, %v545_v17, 0.0 }
  0x24   :  { %v376_v0 = vadd.f32 %v375_v54, %v374_v57  ;;  %v310_v54 = vmul.f32 %v545_v17, %v545_v17  ;;  %v397_v62 = vsel %vm146_vm1, %v309_v48, 0.0 }
  0x25   :  { %v181_v39 = vadd.f32 %v180_v30, %v179_v33  ;;  %v549_v30 = vunpack.c.l.bf16 %v632_v20  ;;  %v200_v31 = vsel %vm146_vm1, %v546_v24, 0.0  ;;  %v633_v33 = vld [vmem:[%s915_s0 + $0x78] sm:$0xff]  }
  0x26   :  { %v378_v6 = vadd.f32 %v377_v61, %v376_v0  ;;  %v311_v61 = vmul.f32 %v546_v24, %v546_v24  ;;  %v399_v4 = vsel %vm146_vm1, %v310_v54, 0.0 }
  0x27   :  { %v183_v46 = vadd.f32 %v182_v37, %v181_v39  ;;  %v550_v37 = vunpack.c.h.bf16 %v632_v20  ;;  %v202_v38 = vsel %vm146_vm1, %v549_v30, 0.0 }
  0x28   :  { %v380_v13 = vadd.f32 %v379_v3, %v378_v6  ;;  %v312_v3 = vmul.f32 %v549_v30, %v549_v30  ;;  %v401_v11 = vsel %vm146_vm1, %v311_v61, 0.0 }
  0x29   :  { %v185_v52 = vadd.f32 %v184_v43, %v183_v46  ;;  %v553_v43 = vunpack.c.l.bf16 %v633_v33  ;;  %v204_v44 = vsel %vm146_vm1, %v550_v37, 0.0  ;;  %v634_v46 = vld [vmem:[%s915_s0 + $0x80] sm:$0xff]  }
  0x2a   :  { %v382_v19 = vadd.f32 %v381_v10, %v380_v13  ;;  %v313_v10 = vmul.f32 %v550_v37, %v550_v37  ;;  %v403_v17 = vsel %vm146_vm1, %v312_v3, 0.0 }
  0x2b   :  { %v187_v59 = vadd.f32 %v186_v50, %v185_v52  ;;  %v554_v50 = vunpack.c.h.bf16 %v633_v33  ;;  %v206_v51 = vsel %vm146_vm1, %v553_v43, 0.0 }
  0x2c   :  { %v384_v26 = vadd.f32 %v383_v16, %v382_v19  ;;  %v314_v16 = vmul.f32 %v553_v43, %v553_v43  ;;  %v405_v24 = vsel %vm146_vm1, %v313_v10, 0.0 }
  0x2d   :  { %v189_v1 = vadd.f32 %v188_v56, %v187_v59  ;;  %v557_v56 = vunpack.c.l.bf16 %v634_v46  ;;  %v208_v57 = vsel %vm146_vm1, %v554_v50, 0.0  ;;  %v635_v59 = vld [vmem:[%s915_s0 + $0x88] sm:$0xff]  }
  0x2e   :  { %v386_v32 = vadd.f32 %v385_v23, %v384_v26  ;;  %v315_v23 = vmul.f32 %v554_v50, %v554_v50  ;;  %v407_v30 = vsel %vm146_vm1, %v314_v16, 0.0 }
  0x2f   :  { %v191_v8 = vadd.f32 %v190_v63, %v189_v1  ;;  %v558_v63 = vunpack.c.h.bf16 %v634_v46  ;;  %v210_v0 = vsel %vm146_vm1, %v557_v56, 0.0 }
  0x30   :  { %v388_v39 = vadd.f32 %v387_v29, %v386_v32  ;;  %v316_v29 = vmul.f32 %v557_v56, %v557_v56  ;;  %v409_v37 = vsel %vm146_vm1, %v315_v23, 0.0 }
  0x31   :  { %v193_v14 = vadd.f32 %v192_v5, %v191_v8  ;;  %v561_v5 = vunpack.c.l.bf16 %v635_v59  ;;  %v212_v6 = vsel %vm146_vm1, %v558_v63, 0.0  ;;  %v636_v8 = vld [vmem:[%s915_s0 + $0x90] sm:$0xff]  }
  0x32   :  { %v390_v45 = vadd.f32 %v389_v36, %v388_v39  ;;  %v317_v36 = vmul.f32 %v558_v63, %v558_v63  ;;  %v411_v43 = vsel %vm146_vm1, %v316_v29, 0.0 }
  0x33   :  { %v195_v21 = vadd.f32 %v194_v12, %v193_v14  ;;  %v562_v12 = vunpack.c.h.bf16 %v635_v59  ;;  %v214_v13 = vsel %vm146_vm1, %v561_v5, 0.0 }
  0x34   :  { %v392_v52 = vadd.f32 %v391_v42, %v390_v45  ;;  %v318_v42 = vmul.f32 %v561_v5, %v561_v5  ;;  %v413_v50 = vsel %vm146_vm1, %v317_v36, 0.0 }
  0x35   :  { %v197_v27 = vadd.f32 %v196_v18, %v195_v21  ;;  %v565_v18 = vunpack.c.l.bf16 %v636_v8  ;;  %v216_v19 = vsel %vm146_vm1, %v562_v12, 0.0  ;;  %v637_v21 = vld [vmem:[%s915_s0 + $0x98] sm:$0xff]  }
  0x36   :  { %v394_v58 = vadd.f32 %v393_v49, %v392_v52  ;;  %v319_v49 = vmul.f32 %v562_v12, %v562_v12  ;;  %v415_v56 = vsel %vm146_vm1, %v318_v42, 0.0 }
  0x37   :  { %v199_v34 = vadd.f32 %v198_v25, %v197_v27  ;;  %v566_v25 = vunpack.c.h.bf16 %v636_v8  ;;  %v218_v26 = vsel %vm146_vm1, %v565_v18, 0.0 }
  0x38   :  { %v396_v1 = vadd.f32 %v395_v55, %v394_v58  ;;  %v320_v55 = vmul.f32 %v565_v18, %v565_v18  ;;  %v417_v63 = vsel %vm146_vm1, %v319_v49, 0.0 }
  0x39   :  { %v201_v40 = vadd.f32 %v200_v31, %v199_v34  ;;  %v569_v31 = vunpack.c.l.bf16 %v637_v21  ;;  %v220_v32 = vsel %vm146_vm1, %v566_v25, 0.0  ;;  %v638_v34 = vld [vmem:[%s915_s0 + $0xa0] sm:$0xff]  }
  0x3a   :  { %v398_v7 = vadd.f32 %v397_v62, %v396_v1  ;;  %v321_v62 = vmul.f32 %v566_v25, %v566_v25  ;;  %v419_v5 = vsel %vm146_vm1, %v320_v55, 0.0 }
  0x3b   :  { %v203_v47 = vadd.f32 %v202_v38, %v201_v40  ;;  %v570_v38 = vunpack.c.h.bf16 %v637_v21  ;;  %v222_v39 = vsel %vm146_vm1, %v569_v31, 0.0 }
  0x3c   :  { %v400_v14 = vadd.f32 %v399_v4, %v398_v7  ;;  %v322_v4 = vmul.f32 %v569_v31, %v569_v31  ;;  %v421_v12 = vsel %vm146_vm1, %v321_v62, 0.0 }
  0x3d   :  { %v205_v53 = vadd.f32 %v204_v44, %v203_v47  ;;  %v573_v44 = vunpack.c.l.bf16 %v638_v34  ;;  %v224_v45 = vsel %vm146_vm1, %v570_v38, 0.0  ;;  %v639_v47 = vld [vmem:[%s915_s0 + $0xa8] sm:$0xff]  }
  0x3e   :  { %v402_v20 = vadd.f32 %v401_v11, %v400_v14  ;;  %v323_v11 = vmul.f32 %v570_v38, %v570_v38  ;;  %v423_v18 = vsel %vm146_vm1, %v322_v4, 0.0 }
  0x3f   :  { %v207_v60 = vadd.f32 %v206_v51, %v205_v53  ;;  %v574_v51 = vunpack.c.h.bf16 %v638_v34  ;;  %v226_v52 = vsel %vm146_vm1, %v573_v44, 0.0 }
  0x40   :  { %v404_v27 = vadd.f32 %v403_v17, %v402_v20  ;;  %v324_v17 = vmul.f32 %v573_v44, %v573_v44  ;;  %v425_v25 = vsel %vm146_vm1, %v323_v11, 0.0 }
  0x41   :  { %v209_v2 = vadd.f32 %v208_v57, %v207_v60  ;;  %v577_v57 = vunpack.c.l.bf16 %v639_v47  ;;  %v228_v58 = vsel %vm146_vm1, %v574_v51, 0.0  ;;  %v640_v60 = vld [vmem:[%s915_s0 + $0xb0] sm:$0xff]  }
  0x42   :  { %v406_v33 = vadd.f32 %v405_v24, %v404_v27  ;;  %v325_v24 = vmul.f32 %v574_v51, %v574_v51  ;;  %v427_v31 = vsel %vm146_vm1, %v324_v17, 0.0 }
  0x43   :  { %v211_v9 = vadd.f32 %v210_v0, %v209_v2  ;;  %v578_v0 = vunpack.c.h.bf16 %v639_v47  ;;  %v230_v1 = vsel %vm146_vm1, %v577_v57, 0.0 }
  0x44   :  { %v408_v40 = vadd.f32 %v407_v30, %v406_v33  ;;  %v326_v30 = vmul.f32 %v577_v57, %v577_v57  ;;  %v429_v38 = vsel %vm146_vm1, %v325_v24, 0.0 }
  0x45   :  { %v213_v15 = vadd.f32 %v212_v6, %v211_v9  ;;  %v581_v6 = vunpack.c.l.bf16 %v640_v60  ;;  %v232_v7 = vsel %vm146_vm1, %v578_v0, 0.0  ;;  %v641_v9 = vld [vmem:[%s915_s0 + $0xb8] sm:$0xff]  }
  0x46   :  { %v410_v46 = vadd.f32 %v409_v37, %v408_v40  ;;  %v327_v37 = vmul.f32 %v578_v0, %v578_v0  ;;  %v431_v44 = vsel %vm146_vm1, %v326_v30, 0.0 }
  0x47   :  { %v215_v22 = vadd.f32 %v214_v13, %v213_v15  ;;  %v582_v13 = vunpack.c.h.bf16 %v640_v60  ;;  %v234_v14 = vsel %vm146_vm1, %v581_v6, 0.0 }
  0x48   :  { %v412_v53 = vadd.f32 %v411_v43, %v410_v46  ;;  %v328_v43 = vmul.f32 %v581_v6, %v581_v6  ;;  %v433_v51 = vsel %vm146_vm1, %v327_v37, 0.0 }
  0x49   :  { %v217_v28 = vadd.f32 %v216_v19, %v215_v22  ;;  %v585_v19 = vunpack.c.l.bf16 %v641_v9  ;;  %v236_v20 = vsel %vm146_vm1, %v582_v13, 0.0  ;;  %v642_v22 = vld [vmem:[%s915_s0 + $0xc0] sm:$0xff]  }
  0x4a   :  { %v414_v59 = vadd.f32 %v413_v50, %v412_v53  ;;  %v329_v50 = vmul.f32 %v582_v13, %v582_v13  ;;  %v435_v57 = vsel %vm146_vm1, %v328_v43, 0.0 }
  0x4b   :  { %v219_v35 = vadd.f32 %v218_v26, %v217_v28  ;;  %v586_v26 = vunpack.c.h.bf16 %v641_v9  ;;  %v238_v27 = vsel %vm146_vm1, %v585_v19, 0.0 }
  0x4c   :  { %v416_v2 = vadd.f32 %v415_v56, %v414_v59  ;;  %v330_v56 = vmul.f32 %v585_v19, %v585_v19  ;;  %v437_v0 = vsel %vm146_vm1, %v329_v50, 0.0 }
  0x4d   :  { %v221_v41 = vadd.f32 %v220_v32, %v219_v35  ;;  %v589_v32 = vunpack.c.l.bf16 %v642_v22  ;;  %v240_v33 = vsel %vm146_vm1, %v586_v26, 0.0  ;;  %v643_v35 = vld [vmem:[%s915_s0 + $0xc8] sm:$0xff]  }
  0x4e   :  { %v418_v8 = vadd.f32 %v417_v63, %v416_v2  ;;  %v331_v63 = vmul.f32 %v586_v26, %v586_v26  ;;  %v439_v6 = vsel %vm146_vm1, %v330_v56, 0.0 }
  0x4f   :  { %v223_v48 = vadd.f32 %v222_v39, %v221_v41  ;;  %v590_v39 = vunpack.c.h.bf16 %v642_v22  ;;  %v242_v40 = vsel %vm146_vm1, %v589_v32, 0.0 }
  0x50   :  { %v420_v15 = vadd.f32 %v419_v5, %v418_v8  ;;  %v332_v5 = vmul.f32 %v589_v32, %v589_v32  ;;  %v441_v13 = vsel %vm146_vm1, %v331_v63, 0.0 }
  0x51   :  { %v225_v54 = vadd.f32 %v224_v45, %v223_v48  ;;  %v593_v45 = vunpack.c.l.bf16 %v643_v35  ;;  %v244_v46 = vsel %vm146_vm1, %v590_v39, 0.0  ;;  %v644_v48 = vld [vmem:[%s915_s0 + $0xd0] sm:$0xff]  }
  0x52   :  { %v422_v21 = vadd.f32 %v421_v12, %v420_v15  ;;  %v333_v12 = vmul.f32 %v590_v39, %v590_v39  ;;  %v443_v19 = vsel %vm146_vm1, %v332_v5, 0.0 }
  0x53   :  { %v227_v61 = vadd.f32 %v226_v52, %v225_v54  ;;  %v594_v52 = vunpack.c.h.bf16 %v643_v35  ;;  %v246_v53 = vsel %vm146_vm1, %v593_v45, 0.0 }
  0x54   :  { %v424_v28 = vadd.f32 %v423_v18, %v422_v21  ;;  %v334_v18 = vmul.f32 %v593_v45, %v593_v45  ;;  %v445_v26 = vsel %vm146_vm1, %v333_v12, 0.0 }
  0x55   :  { %v229_v3 = vadd.f32 %v228_v58, %v227_v61  ;;  %v597_v58 = vunpack.c.l.bf16 %v644_v48  ;;  %v248_v59 = vsel %vm146_vm1, %v594_v52, 0.0  ;;  %v645_v61 = vld [vmem:[%s915_s0 + $0xd8] sm:$0xff]  }
  0x56   :  { %v426_v34 = vadd.f32 %v425_v25, %v424_v28  ;;  %v335_v25 = vmul.f32 %v594_v52, %v594_v52  ;;  %v447_v32 = vsel %vm146_vm1, %v334_v18, 0.0 }
  0x57   :  { %v231_v10 = vadd.f32 %v230_v1, %v229_v3  ;;  %v598_v1 = vunpack.c.h.bf16 %v644_v48  ;;  %v250_v2 = vsel %vm146_vm1, %v597_v58, 0.0 }
  0x58   :  { %v428_v41 = vadd.f32 %v427_v31, %v426_v34  ;;  %v336_v31 = vmul.f32 %v597_v58, %v597_v58  ;;  %v449_v39 = vsel %vm146_vm1, %v335_v25, 0.0 }
  0x59   :  { %v233_v16 = vadd.f32 %v232_v7, %v231_v10  ;;  %v601_v7 = vunpack.c.l.bf16 %v645_v61  ;;  %v252_v8 = vsel %vm146_vm1, %v598_v1, 0.0  ;;  %v646_v10 = vld [vmem:[%s915_s0 + $0xe0] sm:$0xff]  }
  0x5a   :  { %v430_v47 = vadd.f32 %v429_v38, %v428_v41  ;;  %v337_v38 = vmul.f32 %v598_v1, %v598_v1  ;;  %v451_v45 = vsel %vm146_vm1, %v336_v31, 0.0 }
  0x5b   :  { %v235_v23 = vadd.f32 %v234_v14, %v233_v16  ;;  %v602_v14 = vunpack.c.h.bf16 %v645_v61  ;;  %v254_v15 = vsel %vm146_vm1, %v601_v7, 0.0 }
  0x5c   :  { %v432_v54 = vadd.f32 %v431_v44, %v430_v47  ;;  %v338_v44 = vmul.f32 %v601_v7, %v601_v7  ;;  %v453_v52 = vsel %vm146_vm1, %v337_v38, 0.0 }
  0x5d   :  { %v237_v29 = vadd.f32 %v236_v20, %v235_v23  ;;  %v605_v20 = vunpack.c.l.bf16 %v646_v10  ;;  %v256_v21 = vsel %vm146_vm1, %v602_v14, 0.0  ;;  %v647_v23 = vld [vmem:[%s915_s0 + $0xe8] sm:$0xff]  }
  0x5e   :  { %v434_v60 = vadd.f32 %v433_v51, %v432_v54  ;;  %v339_v51 = vmul.f32 %v602_v14, %v602_v14  ;;  %v455_v58 = vsel %vm146_vm1, %v338_v44, 0.0  ;;  %v283_v44 = vld [vmem:[%s914_s2] sm:$0x1] }
  0x5f   :  { %v239_v36 = vadd.f32 %v238_v27, %v237_v29  ;;  %v606_v27 = vunpack.c.h.bf16 %v646_v10  ;;  %v258_v28 = vsel %vm146_vm1, %v605_v20, 0.0 }
  0x60   :  { %v436_v3 = vadd.f32 %v435_v57, %v434_v60  ;;  %v340_v57 = vmul.f32 %v605_v20, %v605_v20 }
  0x61   :  { %v241_v42 = vadd.f32 %v240_v33, %v239_v36  ;;  %v609_v33 = vunpack.c.l.bf16 %v647_v23  ;;  %v260_v34 = vsel %vm146_vm1, %v606_v27, 0.0  ;;  %v648_v36 = vld [vmem:[%s915_s0 + $0xf0] sm:$0xff]   ;;  %v341_v63 = vmul.f32 %v606_v27, %v606_v27 }
  0x62   :  { %v438_v9 = vadd.f32 %v437_v0, %v436_v3  ;;  %v457_v0 = vsel %vm146_vm1, %v339_v51, 0.0 }
  0x63   :  { %v243_v49 = vadd.f32 %v242_v40, %v241_v42  ;;  %v610_v40 = vunpack.c.h.bf16 %v647_v23  ;;  %v262_v41 = vsel %vm146_vm1, %v609_v33, 0.0  ;;  %v342_v5 = vmul.f32 %v609_v33, %v609_v33 }
  0x64   :  { %v440_v16 = vadd.f32 %v439_v6, %v438_v9  ;;  %v459_v6 = vsel %vm146_vm1, %v340_v57, 0.0 }
  0x65   :  { %v245_v55 = vadd.f32 %v244_v46, %v243_v49  ;;  %v613_v46 = vunpack.c.l.bf16 %v648_v36  ;;  %v264_v47 = vsel %vm146_vm1, %v610_v40, 0.0  ;;  %v649_v49 = vld [vmem:[%s915_s0 + $0xf8] sm:$0xff]   ;;  %v343_v10 = vmul.f32 %v610_v40, %v610_v40 }
  0x66   :  { %v442_v22 = vadd.f32 %v441_v13, %v440_v16  ;;  %v618_v1 = vunpack.c.h.bf16 %v649_v49 }
  0x67   :  { %v247_v62 = vadd.f32 %v246_v53, %v245_v55  ;;  %v614_v53 = vunpack.c.h.bf16 %v648_v36  ;;  %v266_v54 = vsel %vm146_vm1, %v613_v46, 0.0  ;;  %v344_v14 = vmul.f32 %v613_v46, %v613_v46 }
  0x68   :  { %v444_v29 = vadd.f32 %v443_v19, %v442_v22  ;;  %v272_v7 = vsel %vm146_vm1, %v618_v1, 0.0  ;;  %v465_v19 = vsel %vm146_vm1, %v343_v10, 0.0 }
  0x69   :  { %v249_v4 = vadd.f32 %v248_v59, %v247_v62  ;;  %v617_v59 = vunpack.c.l.bf16 %v649_v49  ;;  %v268_v60 = vsel %vm146_vm1, %v614_v53, 0.0  ;;  %v345_v18 = vmul.f32 %v614_v53, %v614_v53 }
  0x6a   :  { %v446_v35 = vadd.f32 %v445_v26, %v444_v29  ;;  %v467_v23 = vsel %vm146_vm1, %v344_v14, 0.0  ;;  %v347_v26 = vmul.f32 %v618_v1, %v618_v1 }
  0x6b   :  { %v251_v11 = vadd.f32 %v250_v2, %v249_v4  ;;  %v270_v2 = vsel %vm146_vm1, %v617_v59, 0.0  ;;  %v346_v22 = vmul.f32 %v617_v59, %v617_v59  ;;  %v469_v27 = vsel %vm146_vm1, %v345_v18, 0.0 }
  0x6c   :  { %v448_v42 = vadd.f32 %v447_v32, %v446_v35  ;;  %v473_v33 = vsel %vm146_vm1, %v347_v26, 0.0 }
  0x6d   :  { %v253_v17 = vadd.f32 %v252_v8, %v251_v11  ;;  %v461_v11 = vsel %vm146_vm1, %v341_v63, 0.0 }
  0x6e   :  { %v450_v48 = vadd.f32 %v449_v39, %v448_v42 }
  0x6f   :  { %v255_v24 = vadd.f32 %v254_v15, %v253_v17  ;;  %v463_v15 = vsel %vm146_vm1, %v342_v5, 0.0 }
  0x70   :  { %v452_v55 = vadd.f32 %v451_v45, %v450_v48 }
  0x71   :  { %v257_v30 = vadd.f32 %v256_v21, %v255_v24 }
  0x72   :  { %v454_v61 = vadd.f32 %v453_v52, %v452_v55 }
  0x73   :  { %v259_v37 = vadd.f32 %v258_v28, %v257_v30  ;;  %v471_v30 = vsel %vm146_vm1, %v346_v22, 0.0 }
  0x74   :  { %v456_v3 = vadd.f32 %v455_v58, %v454_v61 }
  0x75   :  { %v261_v43 = vadd.f32 %v260_v34, %v259_v37  ;;  %v145_v34 = vld [vmem:[%s913_s1] sm:$0x1] }
  0x76   :  { %v458_v8 = vadd.f32 %v457_v0, %v456_v3 }
  0x77   :  { %v263_v50 = vadd.f32 %v262_v41, %v261_v43 }
  0x78   :  { %v460_v12 = vadd.f32 %v459_v6, %v458_v8 }
  0x79   :  { %v265_v56 = vadd.f32 %v264_v47, %v263_v50 }
  0x7a   :  { %v462_v16 = vadd.f32 %v461_v11, %v460_v12 }
  0x7b   :  { %v267_v62 = vadd.f32 %v266_v54, %v265_v56 }
  0x7c   :  { %v464_v20 = vadd.f32 %v463_v15, %v462_v16 }
  0x7d   :  { %v269_v4 = vadd.f32 %v268_v60, %v267_v62 }
  0x7e   :  { %v466_v24 = vadd.f32 %v465_v19, %v464_v20 }
  0x7f   :  { %v271_v9 = vadd.f32 %v270_v2, %v269_v4 }
  0x80   :  { %v468_v28 = vadd.f32 %v467_v23, %v466_v24 }
  0x81   :  { %v273_v13 = vadd.f32 %v272_v7, %v271_v9 }
  0x82   :  { %v470_v31 = vadd.f32 %v469_v27, %v468_v28 }
  0x83   :  { %v274_v17 = vrot.slane %v273_v13, 4 }
  0x84   :  { %v472_v35 = vadd.f32 %v471_v30, %v470_v31 }
  0x85   :  { %v275_v21 = vadd.f32 %v274_v17, %v273_v13 }
  0x86   :  { %v474_v37 = vadd.f32 %v473_v33, %v472_v35 }
  0x87   :  { %v276_v25 = vrot.slane %v275_v21, 2 }
  0x88   :  { %v475_v39 = vrot.slane %v474_v37, 4 }
  0x89   :  { %v277_v29 = vadd.f32 %v276_v25, %v275_v21 }
  0x8a   :  { %v476_v40 = vadd.f32 %v475_v39, %v474_v37 }
  0x8b   :  { %v278_v32 = vrot.slane %v277_v29, 1 }
  0x8c   :  { %v477_v41 = vrot.slane %v476_v40, 2 }
  0x8d   :  { %v279_v36 = vadd.f32 %v278_v32, %v277_v29 }
  0x8e   :  { %v478_v42 = vadd.f32 %v477_v41, %v476_v40 }
  0x8f   :  { %v280_v38 = vadd.f32 %v279_v36, %v145_v34 }
  0x90   :  { %v479_v43 = vrot.slane %v478_v42, 1 }
  0x91   :  { %282 = vst.msk [vmem:[%s913_s1] sm:$0x1] %vm14_vm0, %v280_v38 }
  0x92   :  { %v480_v45 = vadd.f32 %v479_v43, %v478_v42 }
  0x94   :  { %v481_v46 = vadd.f32 %v480_v45, %v283_v44 }
  0x96   :  { %482 = vst.msk [vmem:[%s914_s2] sm:$0x1] %vm14_vm0, %v481_v46 }

// kernel: netg_forward.17
= control target key start
LH: loop header
LB: loop body
LE: loop exit
PB: predicated region body
PF: predicated region fallthrough
CT: control target
= control target key end

     0   :  { %vm14_vm0 = vcmask 122880   ;;  %v2475_v0 = vmov 0.0   ;;  %vm530_vm1 = vcmask 130048   ;;  %s3409_s1 = inlined_call_operand.vmem [shape: f32[1,16], index: 1, kind: output, shape index: {0}]   ;;  %s3410_s2 = inlined_call_operand.vmem [shape: f32[1,16], index: 2, kind: output, shape index: {1}]   ;;  %s3411_s0 = inlined_call_operand.vmem [shape: bf16[2048,16], index: 0, kind: input, shape index: {}]  }
   0x1   :  { %15 = vst.msk [vmem:[%s3409_s1] sm:$0x1] %vm14_vm0, %v2475_v0  ;;  %v1836_v1 = vld [vmem:[%s3411_s0] sm:$0xff]   ;;  %v2347_v2 = vld [vmem:[%s3411_s0 + $0x8] sm:$0xff]   ;;  %v2348_v6 = vld [vmem:[%s3411_s0 + $0x10] sm:$0xff]  }
   0x2   :  { %16 = vst.msk [vmem:[%s3410_s2] sm:$0x1] %vm14_vm0, %v2475_v0  ;;  %v1837_v3 = vunpack.c.l.bf16 %v1836_v1  ;;  %v1838_v4 = vunpack.c.h.bf16 %v1836_v1  ;;  %v1841_v5 = vunpack.c.l.bf16 %v2347_v2  ;;  %v1842_v7 = vunpack.c.h.bf16 %v2347_v2  ;;  %v2349_v14 = vld [vmem:[%s3411_s0 + $0x18] sm:$0xff]   ;;  %v2350_v21 = vld [vmem:[%s3411_s0 + $0x20] sm:$0xff]   ;;  %v2351_v31 = vld [vmem:[%s3411_s0 + $0x28] sm:$0xff]  }
   0x3   :  { %v1845_v12 = vunpack.c.l.bf16 %v2348_v6  ;;  %v1846_v16 = vunpack.c.h.bf16 %v2348_v6  ;;  %v1849_v19 = vunpack.c.l.bf16 %v2349_v14  ;;  %v1850_v23 = vunpack.c.h.bf16 %v2349_v14  ;;  %v2352_v44 = vld [vmem:[%s3411_s0 + $0x30] sm:$0xff]   ;;  %v2353_v57 = vld [vmem:[%s3411_s0 + $0x38] sm:$0xff]   ;;  %v2354_v6 = vld [vmem:[%s3411_s0 + $0x40] sm:$0xff]  }
   0x4   :  { %v531_v8 = vsel %vm530_vm1, %v1837_v3, 0.0  ;;  %v532_v9 = vsel %vm530_vm1, %v1838_v4, 0.0  ;;  %v534_v10 = vsel %vm530_vm1, %v1841_v5, 0.0  ;;  %v536_v13 = vsel %vm530_vm1, %v1842_v7, 0.0 }
   0x5   :  { %v533_v11 = vadd.f32 %v532_v9, %v531_v8  ;;  %v538_v17 = vsel %vm530_vm1, %v1845_v12, 0.0  ;;  %v540_v20 = vsel %vm530_vm1, %v1846_v16, 0.0  ;;  %v542_v24 = vsel %vm530_vm1, %v1849_v19, 0.0 }
   0x6   :  { %v1052_v25 = vmul.f32 %v1837_v3, %v1837_v3  ;;  %v1053_v27 = vmul.f32 %v1838_v4, %v1838_v4  ;;  %v1054_v28 = vmul.f32 %v1841_v5, %v1841_v5  ;;  %v1853_v29 = vunpack.c.l.bf16 %v2350_v21 }
   0x7   :  { %v535_v15 = vadd.f32 %v534_v10, %v533_v11  ;;  %v544_v30 = vsel %vm530_vm1, %v1850_v23, 0.0  ;;  %v1055_v33 = vmul.f32 %v1842_v7, %v1842_v7  ;;  %v1854_v34 = vunpack.c.h.bf16 %v2350_v21 }
   0x8   :  { %v546_v35 = vsel %vm530_vm1, %v1853_v29, 0.0  ;;  %v1308_v36 = vsel %vm530_vm1, %v1052_v25, 0.0  ;;  %v1056_v38 = vmul.f32 %v1845_v12, %v1845_v12  ;;  %v1309_v39 = vsel %vm530_vm1, %v1053_v27, 0.0 }
   0x9   :  { %v537_v18 = vadd.f32 %v536_v13, %v535_v15  ;;  %v1311_v40 = vsel %vm530_vm1, %v1054_v28, 0.0  ;;  %v1857_v41 = vunpack.c.l.bf16 %v2351_v31  ;;  %v548_v42 = vsel %vm530_vm1, %v1854_v34, 0.0 }
   0xa   :  { %v1310_v43 = vadd.f32 %v1309_v39, %v1308_v36  ;;  %v1057_v46 = vmul.f32 %v1846_v16, %v1846_v16  ;;  %v1313_v47 = vsel %vm530_vm1, %v1055_v33, 0.0  ;;  %v1858_v48 = vunpack.c.h.bf16 %v2351_v31 }
   0xb   :  { %v539_v22 = vadd.f32 %v538_v17, %v537_v18  ;;  %v550_v49 = vsel %vm530_vm1, %v1857_v41, 0.0  ;;  %v1058_v52 = vmul.f32 %v1849_v19, %v1849_v19  ;;  %v1315_v53 = vsel %vm530_vm1, %v1056_v38, 0.0  ;;  %v2355_v19 = vld [vmem:[%s3411_s0 + $0x48] sm:$0xff]  }
   0xc   :  { %v1312_v50 = vadd.f32 %v1311_v40, %v1310_v43  ;;  %v1861_v54 = vunpack.c.l.bf16 %v2352_v44  ;;  %v552_v55 = vsel %vm530_vm1, %v1858_v48, 0.0  ;;  %v1059_v59 = vmul.f32 %v1850_v23, %v1850_v23 }
   0xd   :  { %v541_v26 = vadd.f32 %v540_v20, %v539_v22  ;;  %v1317_v60 = vsel %vm530_vm1, %v1057_v46, 0.0  ;;  %v1862_v61 = vunpack.c.h.bf16 %v2352_v44  ;;  %v1060_v1 = vmul.f32 %v1853_v29, %v1853_v29 }
   0xe   :  { %v1314_v56 = vadd.f32 %v1313_v47, %v1312_v50  ;;  %v554_v62 = vsel %vm530_vm1, %v1861_v54, 0.0  ;;  %v1319_v2 = vsel %vm530_vm1, %v1058_v52, 0.0  ;;  %v1865_v3 = vunpack.c.l.bf16 %v2353_v57 }
   0xf   :  { %v543_v32 = vadd.f32 %v542_v24, %v541_v26  ;;  %v556_v4 = vsel %vm530_vm1, %v1862_v61, 0.0  ;;  %v1061_v8 = vmul.f32 %v1854_v34, %v1854_v34  ;;  %v1321_v9 = vsel %vm530_vm1, %v1059_v59, 0.0 }
  0x10   :  { %v1316_v63 = vadd.f32 %v1315_v53, %v1314_v56  ;;  %v1866_v10 = vunpack.c.h.bf16 %v2353_v57  ;;  %v558_v11 = vsel %vm530_vm1, %v1865_v3, 0.0  ;;  %v1062_v14 = vmul.f32 %v1857_v41, %v1857_v41 }
  0x11   :  { %v545_v37 = vadd.f32 %v544_v30, %v543_v32  ;;  %v1323_v15 = vsel %vm530_vm1, %v1060_v1, 0.0  ;;  %v1869_v16 = vunpack.c.l.bf16 %v2354_v6  ;;  %v1063_v21 = vmul.f32 %v1858_v48, %v1858_v48  ;;  %v2356_v32 = vld [vmem:[%s3411_s0 + $0x50] sm:$0xff]  }
  0x12   :  { %v1318_v5 = vadd.f32 %v1317_v60, %v1316_v63  ;;  %v560_v17 = vsel %vm530_vm1, %v1866_v10, 0.0  ;;  %v1325_v22 = vsel %vm530_vm1, %v1061_v8, 0.0  ;;  %v1870_v23 = vunpack.c.h.bf16 %v2354_v6 }
  0x13   :  { %v547_v45 = vadd.f32 %v546_v35, %v545_v37  ;;  %v562_v24 = vsel %vm530_vm1, %v1869_v16, 0.0  ;;  %v1064_v27 = vmul.f32 %v1861_v54, %v1861_v54  ;;  %v1327_v28 = vsel %vm530_vm1, %v1062_v14, 0.0 }
  0x14   :  { %v1320_v12 = vadd.f32 %v1319_v2, %v1318_v5  ;;  %v1873_v29 = vunpack.c.l.bf16 %v2355_v19  ;;  %v564_v30 = vsel %vm530_vm1, %v1870_v23, 0.0  ;;  %v1065_v34 = vmul.f32 %v1862_v61, %v1862_v61 }
  0x15   :  { %v549_v51 = vadd.f32 %v548_v42, %v547_v45  ;;  %v1329_v35 = vsel %vm530_vm1, %v1063_v21, 0.0  ;;  %v1874_v36 = vunpack.c.h.bf16 %v2355_v19  ;;  %v1066_v40 = vmul.f32 %v1865_v3, %v1865_v3  ;;  %v2357_v45 = vld [vmem:[%s3411_s0 + $0x58] sm:$0xff]  }
  0x16   :  { %v1322_v18 = vadd.f32 %v1321_v9, %v1320_v12  ;;  %v566_v37 = vsel %vm530_vm1, %v1873_v29, 0.0  ;;  %v1331_v41 = vsel %vm530_vm1, %v1064_v27, 0.0  ;;  %v1877_v42 = vunpack.c.l.bf16 %v2356_v32 }
  0x17   :  { %v551_v58 = vadd.f32 %v550_v49, %v549_v51  ;;  %v568_v43 = vsel %vm530_vm1, %v1874_v36, 0.0  ;;  %v1067_v47 = vmul.f32 %v1866_v10, %v1866_v10  ;;  %v1333_v48 = vsel %vm530_vm1, %v1065_v34, 0.0 }
  0x18   :  { %v1324_v25 = vadd.f32 %v1323_v15, %v1322_v18  ;;  %v1878_v49 = vunpack.c.h.bf16 %v2356_v32  ;;  %v570_v50 = vsel %vm530_vm1, %v1877_v42, 0.0  ;;  %v1068_v53 = vmul.f32 %v1869_v16, %v1869_v16 }
  0x19   :  { %v553_v0 = vadd.f32 %v552_v55, %v551_v58  ;;  %v1335_v54 = vsel %vm530_vm1, %v1066_v40, 0.0  ;;  %v1881_v55 = vunpack.c.l.bf16 %v2357_v45  ;;  %v2358_v58 = vld [vmem:[%s3411_s0 + $0x60] sm:$0xff]   ;;  %v1069_v60 = vmul.f32 %v1870_v23, %v1870_v23 }
  0x1a   :  { %v1326_v31 = vadd.f32 %v1325_v22, %v1324_v25  ;;  %v572_v56 = vsel %vm530_vm1, %v1878_v49, 0.0  ;;  %v1337_v61 = vsel %vm530_vm1, %v1067_v47, 0.0  ;;  %v1070_v2 = vmul.f32 %v1873_v29, %v1873_v29 }
  0x1b   :  { %v555_v7 = vadd.f32 %v554_v62, %v553_v0  ;;  %v1882_v62 = vunpack.c.h.bf16 %v2357_v45  ;;  %v574_v63 = vsel %vm530_vm1, %v1881_v55, 0.0  ;;  %v1339_v3 = vsel %vm530_vm1, %v1068_v53, 0.0 }
  0x1c   :  { %v1328_v38 = vadd.f32 %v1327_v28, %v1326_v31  ;;  %v1071_v9 = vmul.f32 %v1874_v36, %v1874_v36  ;;  %v1341_v10 = vsel %vm530_vm1, %v1069_v60, 0.0  ;;  %v1072_v15 = vmul.f32 %v1877_v42, %v1877_v42 }
  0x1d   :  { %v557_v13 = vadd.f32 %v556_v4, %v555_v7  ;;  %v1885_v4 = vunpack.c.l.bf16 %v2358_v58  ;;  %v576_v5 = vsel %vm530_vm1, %v1882_v62, 0.0  ;;  %v2359_v7 = vld [vmem:[%s3411_s0 + $0x68] sm:$0xff]   ;;  %v1343_v16 = vsel %vm530_vm1, %v1070_v2, 0.0 }
  0x1e   :  { %v1330_v44 = vadd.f32 %v1329_v35, %v1328_v38  ;;  %v1073_v22 = vmul.f32 %v1878_v49, %v1878_v49  ;;  %v1345_v23 = vsel %vm530_vm1, %v1071_v9, 0.0  ;;  %v1074_v28 = vmul.f32 %v1881_v55, %v1881_v55 }
  0x1f   :  { %v559_v20 = vadd.f32 %v558_v11, %v557_v13  ;;  %v1886_v11 = vunpack.c.h.bf16 %v2358_v58  ;;  %v578_v12 = vsel %vm530_vm1, %v1885_v4, 0.0  ;;  %v1347_v29 = vsel %vm530_vm1, %v1072_v15, 0.0 }
  0x20   :  { %v1332_v51 = vadd.f32 %v1331_v41, %v1330_v44  ;;  %v1075_v35 = vmul.f32 %v1882_v62, %v1882_v62  ;;  %v1349_v36 = vsel %vm530_vm1, %v1073_v22, 0.0  ;;  %v1076_v41 = vmul.f32 %v1885_v4, %v1885_v4 }
  0x21   :  { %v561_v26 = vadd.f32 %v560_v17, %v559_v20  ;;  %v1889_v17 = vunpack.c.l.bf16 %v2359_v7  ;;  %v580_v18 = vsel %vm530_vm1, %v1886_v11, 0.0  ;;  %v2360_v20 = vld [vmem:[%s3411_s0 + $0x70] sm:$0xff]   ;;  %v1351_v42 = vsel %vm530_vm1, %v1074_v28, 0.0 }
  0x22   :  { %v1334_v57 = vadd.f32 %v1333_v48, %v1332_v51  ;;  %v1077_v48 = vmul.f32 %v1886_v11, %v1886_v11  ;;  %v1353_v49 = vsel %vm530_vm1, %v1075_v35, 0.0  ;;  %v1355_v55 = vsel %vm530_vm1, %v1076_v41, 0.0 }
  0x23   :  { %v563_v33 = vadd.f32 %v562_v24, %v561_v26  ;;  %v1890_v24 = vunpack.c.h.bf16 %v2359_v7  ;;  %v582_v25 = vsel %vm530_vm1, %v1889_v17, 0.0 }
  0x24   :  { %v1336_v0 = vadd.f32 %v1335_v54, %v1334_v57  ;;  %v1078_v54 = vmul.f32 %v1889_v17, %v1889_v17  ;;  %v1357_v62 = vsel %vm530_vm1, %v1077_v48, 0.0 }
  0x25   :  { %v565_v39 = vadd.f32 %v564_v30, %v563_v33  ;;  %v1893_v30 = vunpack.c.l.bf16 %v2360_v20  ;;  %v584_v31 = vsel %vm530_vm1, %v1890_v24, 0.0  ;;  %v2361_v33 = vld [vmem:[%s3411_s0 + $0x78] sm:$0xff]  }
  0x26   :  { %v1338_v6 = vadd.f32 %v1337_v61, %v1336_v0  ;;  %v1079_v61 = vmul.f32 %v1890_v24, %v1890_v24  ;;  %v1359_v4 = vsel %vm530_vm1, %v1078_v54, 0.0 }
  0x27   :  { %v567_v46 = vadd.f32 %v566_v37, %v565_v39  ;;  %v1894_v37 = vunpack.c.h.bf16 %v2360_v20  ;;  %v586_v38 = vsel %vm530_vm1, %v1893_v30, 0.0 }
  0x28   :  { %v1340_v13 = vadd.f32 %v1339_v3, %v1338_v6  ;;  %v1080_v3 = vmul.f32 %v1893_v30, %v1893_v30  ;;  %v1361_v11 = vsel %vm530_vm1, %v1079_v61, 0.0 }
  0x29   :  { %v569_v52 = vadd.f32 %v568_v43, %v567_v46  ;;  %v1897_v43 = vunpack.c.l.bf16 %v2361_v33  ;;  %v588_v44 = vsel %vm530_vm1, %v1894_v37, 0.0  ;;  %v2362_v46 = vld [vmem:[%s3411_s0 + $0x80] sm:$0xff]  }
  0x2a   :  { %v1342_v19 = vadd.f32 %v1341_v10, %v1340_v13  ;;  %v1081_v10 = vmul.f32 %v1894_v37, %v1894_v37  ;;  %v1363_v17 = vsel %vm530_vm1, %v1080_v3, 0.0 }
  0x2b   :  { %v571_v59 = vadd.f32 %v570_v50, %v569_v52  ;;  %v1898_v50 = vunpack.c.h.bf16 %v2361_v33  ;;  %v590_v51 = vsel %vm530_vm1, %v1897_v43, 0.0 }
  0x2c   :  { %v1344_v26 = vadd.f32 %v1343_v16, %v1342_v19  ;;  %v1082_v16 = vmul.f32 %v1897_v43, %v1897_v43  ;;  %v1365_v24 = vsel %vm530_vm1, %v1081_v10, 0.0 }
  0x2d   :  { %v573_v1 = vadd.f32 %v572_v56, %v571_v59  ;;  %v1901_v56 = vunpack.c.l.bf16 %v2362_v46  ;;  %v592_v57 = vsel %vm530_vm1, %v1898_v50, 0.0  ;;  %v2363_v59 = vld [vmem:[%s3411_s0 + $0x88] sm:$0xff]  }
  0x2e   :  { %v1346_v32 = vadd.f32 %v1345_v23, %v1344_v26  ;;  %v1083_v23 = vmul.f32 %v1898_v50, %v1898_v50  ;;  %v1367_v30 = vsel %vm530_vm1, %v1082_v16, 0.0 }
  0x2f   :  { %v575_v8 = vadd.f32 %v574_v63, %v573_v1  ;;  %v1902_v63 = vunpack.c.h.bf16 %v2362_v46  ;;  %v594_v0 = vsel %vm530_vm1, %v1901_v56, 0.0 }
  0x30   :  { %v1348_v39 = vadd.f32 %v1347_v29, %v1346_v32  ;;  %v1084_v29 = vmul.f32 %v1901_v56, %v1901_v56  ;;  %v1369_v37 = vsel %vm530_vm1, %v1083_v23, 0.0 }
  0x31   :  { %v577_v14 = vadd.f32 %v576_v5, %v575_v8  ;;  %v1905_v5 = vunpack.c.l.bf16 %v2363_v59  ;;  %v596_v6 = vsel %vm530_vm1, %v1902_v63, 0.0  ;;  %v2364_v8 = vld [vmem:[%s3411_s0 + $0x90] sm:$0xff]  }
  0x32   :  { %v1350_v45 = vadd.f32 %v1349_v36, %v1348_v39  ;;  %v1085_v36 = vmul.f32 %v1902_v63, %v1902_v63  ;;  %v1371_v43 = vsel %vm530_vm1, %v1084_v29, 0.0 }
  0x33   :  { %v579_v21 = vadd.f32 %v578_v12, %v577_v14  ;;  %v1906_v12 = vunpack.c.h.bf16 %v2363_v59  ;;  %v598_v13 = vsel %vm530_vm1, %v1905_v5, 0.0 }
  0x34   :  { %v1352_v52 = vadd.f32 %v1351_v42, %v1350_v45  ;;  %v1086_v42 = vmul.f32 %v1905_v5, %v1905_v5  ;;  %v1373_v50 = vsel %vm530_vm1, %v1085_v36, 0.0 }
  0x35   :  { %v581_v27 = vadd.f32 %v580_v18, %v579_v21  ;;  %v1909_v18 = vunpack.c.l.bf16 %v2364_v8  ;;  %v600_v19 = vsel %vm530_vm1, %v1906_v12, 0.0  ;;  %v2365_v21 = vld [vmem:[%s3411_s0 + $0x98] sm:$0xff]  }
  0x36   :  { %v1354_v58 = vadd.f32 %v1353_v49, %v1352_v52  ;;  %v1087_v49 = vmul.f32 %v1906_v12, %v1906_v12  ;;  %v1375_v56 = vsel %vm530_vm1, %v1086_v42, 0.0 }
  0x37   :  { %v583_v34 = vadd.f32 %v582_v25, %v581_v27  ;;  %v1910_v25 = vunpack.c.h.bf16 %v2364_v8  ;;  %v602_v26 = vsel %vm530_vm1, %v1909_v18, 0.0 }
  0x38   :  { %v1356_v1 = vadd.f32 %v1355_v55, %v1354_v58  ;;  %v1088_v55 = vmul.f32 %v1909_v18, %v1909_v18  ;;  %v1377_v63 = vsel %vm530_vm1, %v1087_v49, 0.0 }
  0x39   :  { %v585_v40 = vadd.f32 %v584_v31, %v583_v34  ;;  %v1913_v31 = vunpack.c.l.bf16 %v2365_v21  ;;  %v604_v32 = vsel %vm530_vm1, %v1910_v25, 0.0  ;;  %v2366_v34 = vld [vmem:[%s3411_s0 + $0xa0] sm:$0xff]  }
  0x3a   :  { %v1358_v7 = vadd.f32 %v1357_v62, %v1356_v1  ;;  %v1089_v62 = vmul.f32 %v1910_v25, %v1910_v25  ;;  %v1379_v5 = vsel %vm530_vm1, %v1088_v55, 0.0 }
  0x3b   :  { %v587_v47 = vadd.f32 %v586_v38, %v585_v40  ;;  %v1914_v38 = vunpack.c.h.bf16 %v2365_v21  ;;  %v606_v39 = vsel %vm530_vm1, %v1913_v31, 0.0 }
  0x3c   :  { %v1360_v14 = vadd.f32 %v1359_v4, %v1358_v7  ;;  %v1090_v4 = vmul.f32 %v1913_v31, %v1913_v31  ;;  %v1381_v12 = vsel %vm530_vm1, %v1089_v62, 0.0 }
  0x3d   :  { %v589_v53 = vadd.f32 %v588_v44, %v587_v47  ;;  %v1917_v44 = vunpack.c.l.bf16 %v2366_v34  ;;  %v608_v45 = vsel %vm530_vm1, %v1914_v38, 0.0  ;;  %v2367_v47 = vld [vmem:[%s3411_s0 + $0xa8] sm:$0xff]  }
  0x3e   :  { %v1362_v20 = vadd.f32 %v1361_v11, %v1360_v14  ;;  %v1091_v11 = vmul.f32 %v1914_v38, %v1914_v38  ;;  %v1383_v18 = vsel %vm530_vm1, %v1090_v4, 0.0 }
  0x3f   :  { %v591_v60 = vadd.f32 %v590_v51, %v589_v53  ;;  %v1918_v51 = vunpack.c.h.bf16 %v2366_v34  ;;  %v610_v52 = vsel %vm530_vm1, %v1917_v44, 0.0 }
  0x40   :  { %v1364_v27 = vadd.f32 %v1363_v17, %v1362_v20  ;;  %v1092_v17 = vmul.f32 %v1917_v44, %v1917_v44  ;;  %v1385_v25 = vsel %vm530_vm1, %v1091_v11, 0.0 }
  0x41   :  { %v593_v2 = vadd.f32 %v592_v57, %v591_v60  ;;  %v1921_v57 = vunpack.c.l.bf16 %v2367_v47  ;;  %v612_v58 = vsel %vm530_vm1, %v1918_v51, 0.0  ;;  %v2368_v60 = vld [vmem:[%s3411_s0 + $0xb0] sm:$0xff]  }
  0x42   :  { %v1366_v33 = vadd.f32 %v1365_v24, %v1364_v27  ;;  %v1093_v24 = vmul.f32 %v1918_v51, %v1918_v51  ;;  %v1387_v31 = vsel %vm530_vm1, %v1092_v17, 0.0 }
  0x43   :  { %v595_v9 = vadd.f32 %v594_v0, %v593_v2  ;;  %v1922_v0 = vunpack.c.h.bf16 %v2367_v47  ;;  %v614_v1 = vsel %vm530_vm1, %v1921_v57, 0.0 }
  0x44   :  { %v1368_v40 = vadd.f32 %v1367_v30, %v1366_v33  ;;  %v1094_v30 = vmul.f32 %v1921_v57, %v1921_v57  ;;  %v1389_v38 = vsel %vm530_vm1, %v1093_v24, 0.0 }
  0x45   :  { %v597_v15 = vadd.f32 %v596_v6, %v595_v9  ;;  %v1925_v6 = vunpack.c.l.bf16 %v2368_v60  ;;  %v616_v7 = vsel %vm530_vm1, %v1922_v0, 0.0  ;;  %v2369_v9 = vld [vmem:[%s3411_s0 + $0xb8] sm:$0xff]  }
  0x46   :  { %v1370_v46 = vadd.f32 %v1369_v37, %v1368_v40  ;;  %v1095_v37 = vmul.f32 %v1922_v0, %v1922_v0  ;;  %v1391_v44 = vsel %vm530_vm1, %v1094_v30, 0.0 }
  0x47   :  { %v599_v22 = vadd.f32 %v598_v13, %v597_v15  ;;  %v1926_v13 = vunpack.c.h.bf16 %v2368_v60  ;;  %v618_v14 = vsel %vm530_vm1, %v1925_v6, 0.0 }
  0x48   :  { %v1372_v53 = vadd.f32 %v1371_v43, %v1370_v46  ;;  %v1096_v43 = vmul.f32 %v1925_v6, %v1925_v6  ;;  %v1393_v51 = vsel %vm530_vm1, %v1095_v37, 0.0 }
  0x49   :  { %v601_v28 = vadd.f32 %v600_v19, %v599_v22  ;;  %v1929_v19 = vunpack.c.l.bf16 %v2369_v9  ;;  %v620_v20 = vsel %vm530_vm1, %v1926_v13, 0.0  ;;  %v2370_v22 = vld [vmem:[%s3411_s0 + $0xc0] sm:$0xff]  }
  0x4a   :  { %v1374_v59 = vadd.f32 %v1373_v50, %v1372_v53  ;;  %v1097_v50 = vmul.f32 %v1926_v13, %v1926_v13  ;;  %v1395_v57 = vsel %vm530_vm1, %v1096_v43, 0.0 }
  0x4b   :  { %v603_v35 = vadd.f32 %v602_v26, %v601_v28  ;;  %v1930_v26 = vunpack.c.h.bf16 %v2369_v9  ;;  %v622_v27 = vsel %vm530_vm1, %v1929_v19, 0.0 }
  0x4c   :  { %v1376_v2 = vadd.f32 %v1375_v56, %v1374_v59  ;;  %v1098_v56 = vmul.f32 %v1929_v19, %v1929_v19  ;;  %v1397_v0 = vsel %vm530_vm1, %v1097_v50, 0.0 }
  0x4d   :  { %v605_v41 = vadd.f32 %v604_v32, %v603_v35  ;;  %v1933_v32 = vunpack.c.l.bf16 %v2370_v22  ;;  %v624_v33 = vsel %vm530_vm1, %v1930_v26, 0.0  ;;  %v2371_v35 = vld [vmem:[%s3411_s0 + $0xc8] sm:$0xff]  }
  0x4e   :  { %v1378_v8 = vadd.f32 %v1377_v63, %v1376_v2  ;;  %v1099_v63 = vmul.f32 %v1930_v26, %v1930_v26  ;;  %v1399_v6 = vsel %vm530_vm1, %v1098_v56, 0.0 }
  0x4f   :  { %v607_v48 = vadd.f32 %v606_v39, %v605_v41  ;;  %v1934_v39 = vunpack.c.h.bf16 %v2370_v22  ;;  %v626_v40 = vsel %vm530_vm1, %v1933_v32, 0.0 }
  0x50   :  { %v1380_v15 = vadd.f32 %v1379_v5, %v1378_v8  ;;  %v1100_v5 = vmul.f32 %v1933_v32, %v1933_v32  ;;  %v1401_v13 = vsel %vm530_vm1, %v1099_v63, 0.0 }
  0x51   :  { %v609_v54 = vadd.f32 %v608_v45, %v607_v48  ;;  %v1937_v45 = vunpack.c.l.bf16 %v2371_v35  ;;  %v628_v46 = vsel %vm530_vm1, %v1934_v39, 0.0  ;;  %v2372_v48 = vld [vmem:[%s3411_s0 + $0xd0] sm:$0xff]  }
  0x52   :  { %v1382_v21 = vadd.f32 %v1381_v12, %v1380_v15  ;;  %v1101_v12 = vmul.f32 %v1934_v39, %v1934_v39  ;;  %v1403_v19 = vsel %vm530_vm1, %v1100_v5, 0.0 }
  0x53   :  { %v611_v61 = vadd.f32 %v610_v52, %v609_v54  ;;  %v1938_v52 = vunpack.c.h.bf16 %v2371_v35  ;;  %v630_v53 = vsel %vm530_vm1, %v1937_v45, 0.0 }
  0x54   :  { %v1384_v28 = vadd.f32 %v1383_v18, %v1382_v21  ;;  %v1102_v18 = vmul.f32 %v1937_v45, %v1937_v45  ;;  %v1405_v26 = vsel %vm530_vm1, %v1101_v12, 0.0 }
  0x55   :  { %v613_v3 = vadd.f32 %v612_v58, %v611_v61  ;;  %v1941_v58 = vunpack.c.l.bf16 %v2372_v48  ;;  %v632_v59 = vsel %vm530_vm1, %v1938_v52, 0.0  ;;  %v2373_v61 = vld [vmem:[%s3411_s0 + $0xd8] sm:$0xff]  }
  0x56   :  { %v1386_v34 = vadd.f32 %v1385_v25, %v1384_v28  ;;  %v1103_v25 = vmul.f32 %v1938_v52, %v1938_v52  ;;  %v1407_v32 = vsel %vm530_vm1, %v1102_v18, 0.0 }
  0x57   :  { %v615_v10 = vadd.f32 %v614_v1, %v613_v3  ;;  %v1942_v1 = vunpack.c.h.bf16 %v2372_v48  ;;  %v634_v2 = vsel %vm530_vm1, %v1941_v58, 0.0 }
  0x58   :  { %v1388_v41 = vadd.f32 %v1387_v31, %v1386_v34  ;;  %v1104_v31 = vmul.f32 %v1941_v58, %v1941_v58  ;;  %v1409_v39 = vsel %vm530_vm1, %v1103_v25, 0.0 }
  0x59   :  { %v617_v16 = vadd.f32 %v616_v7, %v615_v10  ;;  %v1945_v7 = vunpack.c.l.bf16 %v2373_v61  ;;  %v636_v8 = vsel %vm530_vm1, %v1942_v1, 0.0  ;;  %v2374_v10 = vld [vmem:[%s3411_s0 + $0xe0] sm:$0xff]  }
  0x5a   :  { %v1390_v47 = vadd.f32 %v1389_v38, %v1388_v41  ;;  %v1105_v38 = vmul.f32 %v1942_v1, %v1942_v1  ;;  %v1411_v45 = vsel %vm530_vm1, %v1104_v31, 0.0 }
  0x5b   :  { %v619_v23 = vadd.f32 %v618_v14, %v617_v16  ;;  %v1946_v14 = vunpack.c.h.bf16 %v2373_v61  ;;  %v638_v15 = vsel %vm530_vm1, %v1945_v7, 0.0 }
  0x5c   :  { %v1392_v54 = vadd.f32 %v1391_v44, %v1390_v47  ;;  %v1106_v44 = vmul.f32 %v1945_v7, %v1945_v7  ;;  %v1413_v52 = vsel %vm530_vm1, %v1105_v38, 0.0 }
  0x5d   :  { %v621_v29 = vadd.f32 %v620_v20, %v619_v23  ;;  %v1949_v20 = vunpack.c.l.bf16 %v2374_v10  ;;  %v640_v21 = vsel %vm530_vm1, %v1946_v14, 0.0  ;;  %v2375_v23 = vld [vmem:[%s3411_s0 + $0xe8] sm:$0xff]  }
  0x5e   :  { %v1394_v60 = vadd.f32 %v1393_v51, %v1392_v54  ;;  %v1107_v51 = vmul.f32 %v1946_v14, %v1946_v14  ;;  %v1415_v58 = vsel %vm530_vm1, %v1106_v44, 0.0 }
  0x5f   :  { %v623_v36 = vadd.f32 %v622_v27, %v621_v29  ;;  %v1950_v27 = vunpack.c.h.bf16 %v2374_v10  ;;  %v642_v28 = vsel %vm530_vm1, %v1949_v20, 0.0 }
  0x60   :  { %v1396_v3 = vadd.f32 %v1395_v57, %v1394_v60  ;;  %v1108_v57 = vmul.f32 %v1949_v20, %v1949_v20  ;;  %v1417_v1 = vsel %vm530_vm1, %v1107_v51, 0.0 }
  0x61   :  { %v625_v42 = vadd.f32 %v624_v33, %v623_v36  ;;  %v1953_v33 = vunpack.c.l.bf16 %v2375_v23  ;;  %v644_v34 = vsel %vm530_vm1, %v1950_v27, 0.0  ;;  %v2376_v36 = vld [vmem:[%s3411_s0 + $0xf0] sm:$0xff]  }
  0x62   :  { %v1398_v9 = vadd.f32 %v1397_v0, %v1396_v3  ;;  %v1109_v0 = vmul.f32 %v1950_v27, %v1950_v27  ;;  %v1419_v7 = vsel %vm530_vm1, %v1108_v57, 0.0 }
  0x63   :  { %v627_v49 = vadd.f32 %v626_v40, %v625_v42  ;;  %v1954_v40 = vunpack.c.h.bf16 %v2375_v23  ;;  %v646_v41 = vsel %vm530_vm1, %v1953_v33, 0.0 }
  0x64   :  { %v1400_v16 = vadd.f32 %v1399_v6, %v1398_v9  ;;  %v1110_v6 = vmul.f32 %v1953_v33, %v1953_v33  ;;  %v1421_v14 = vsel %vm530_vm1, %v1109_v0, 0.0 }
  0x65   :  { %v629_v55 = vadd.f32 %v628_v46, %v627_v49  ;;  %v1957_v46 = vunpack.c.l.bf16 %v2376_v36  ;;  %v648_v47 = vsel %vm530_vm1, %v1954_v40, 0.0  ;;  %v2377_v49 = vld [vmem:[%s3411_s0 + $0xf8] sm:$0xff]  }
  0x66   :  { %v1402_v22 = vadd.f32 %v1401_v13, %v1400_v16  ;;  %v1111_v13 = vmul.f32 %v1954_v40, %v1954_v40  ;;  %v1423_v20 = vsel %vm530_vm1, %v1110_v6, 0.0 }
  0x67   :  { %v631_v62 = vadd.f32 %v630_v53, %v629_v55  ;;  %v1958_v53 = vunpack.c.h.bf16 %v2376_v36  ;;  %v650_v54 = vsel %vm530_vm1, %v1957_v46, 0.0 }
  0x68   :  { %v1404_v29 = vadd.f32 %v1403_v19, %v1402_v22  ;;  %v1112_v19 = vmul.f32 %v1957_v46, %v1957_v46  ;;  %v1425_v27 = vsel %vm530_vm1, %v1111_v13, 0.0 }
  0x69   :  { %v633_v4 = vadd.f32 %v632_v59, %v631_v62  ;;  %v1961_v59 = vunpack.c.l.bf16 %v2377_v49  ;;  %v652_v60 = vsel %vm530_vm1, %v1958_v53, 0.0  ;;  %v2378_v62 = vld [vmem:[%s3411_s0 + $0x100] sm:$0xff]  }
  0x6a   :  { %v1406_v35 = vadd.f32 %v1405_v26, %v1404_v29  ;;  %v1113_v26 = vmul.f32 %v1958_v53, %v1958_v53  ;;  %v1427_v33 = vsel %vm530_vm1, %v1112_v19, 0.0 }
  0x6b   :  { %v635_v11 = vadd.f32 %v634_v2, %v633_v4  ;;  %v1962_v2 = vunpack.c.h.bf16 %v2377_v49  ;;  %v654_v3 = vsel %vm530_vm1, %v1961_v59, 0.0 }
  0x6c   :  { %v1408_v42 = vadd.f32 %v1407_v32, %v1406_v35  ;;  %v1114_v32 = vmul.f32 %v1961_v59, %v1961_v59  ;;  %v1429_v40 = vsel %vm530_vm1, %v1113_v26, 0.0 }
  0x6d   :  { %v637_v17 = vadd.f32 %v636_v8, %v635_v11  ;;  %v1965_v8 = vunpack.c.l.bf16 %v2378_v62  ;;  %v656_v9 = vsel %vm530_vm1, %v1962_v2, 0.0  ;;  %v2379_v11 = vld [vmem:[%s3411_s0 + $0x108] sm:$0xff]  }
  0x6e   :  { %v1410_v48 = vadd.f32 %v1409_v39, %v1408_v42  ;;  %v1115_v39 = vmul.f32 %v1962_v2, %v1962_v2  ;;  %v1431_v46 = vsel %vm530_vm1, %v1114_v32, 0.0 }
  0x6f   :  { %v639_v24 = vadd.f32 %v638_v15, %v637_v17  ;;  %v1966_v15 = vunpack.c.h.bf16 %v2378_v62  ;;  %v658_v16 = vsel %vm530_vm1, %v1965_v8, 0.0 }
  0x70   :  { %v1412_v55 = vadd.f32 %v1411_v45, %v1410_v48  ;;  %v1116_v45 = vmul.f32 %v1965_v8, %v1965_v8  ;;  %v1433_v53 = vsel %vm530_vm1, %v1115_v39, 0.0 }
  0x71   :  { %v641_v30 = vadd.f32 %v640_v21, %v639_v24  ;;  %v1969_v21 = vunpack.c.l.bf16 %v2379_v11  ;;  %v660_v22 = vsel %vm530_vm1, %v1966_v15, 0.0  ;;  %v2380_v24 = vld [vmem:[%s3411_s0 + $0x110] sm:$0xff]  }
  0x72   :  { %v1414_v61 = vadd.f32 %v1413_v52, %v1412_v55  ;;  %v1117_v52 = vmul.f32 %v1966_v15, %v1966_v15  ;;  %v1435_v59 = vsel %vm530_vm1, %v1116_v45, 0.0 }
  0x73   :  { %v643_v37 = vadd.f32 %v642_v28, %v641_v30  ;;  %v1970_v28 = vunpack.c.h.bf16 %v2379_v11  ;;  %v662_v29 = vsel %vm530_vm1, %v1969_v21, 0.0 }
  0x74   :  { %v1416_v4 = vadd.f32 %v1415_v58, %v1414_v61  ;;  %v1118_v58 = vmul.f32 %v1969_v21, %v1969_v21  ;;  %v1437_v2 = vsel %vm530_vm1, %v1117_v52, 0.0 }
  0x75   :  { %v645_v43 = vadd.f32 %v644_v34, %v643_v37  ;;  %v1973_v34 = vunpack.c.l.bf16 %v2380_v24  ;;  %v664_v35 = vsel %vm530_vm1, %v1970_v28, 0.0  ;;  %v2381_v37 = vld [vmem:[%s3411_s0 + $0x118] sm:$0xff]  }
  0x76   :  { %v1418_v10 = vadd.f32 %v1417_v1, %v1416_v4  ;;  %v1119_v1 = vmul.f32 %v1970_v28, %v1970_v28  ;;  %v1439_v8 = vsel %vm530_vm1, %v1118_v58, 0.0 }
  0x77   :  { %v647_v50 = vadd.f32 %v646_v41, %v645_v43  ;;  %v1974_v41 = vunpack.c.h.bf16 %v2380_v24  ;;  %v666_v42 = vsel %vm530_vm1, %v1973_v34, 0.0 }
  0x78   :  { %v1420_v17 = vadd.f32 %v1419_v7, %v1418_v10  ;;  %v1120_v7 = vmul.f32 %v1973_v34, %v1973_v34  ;;  %v1441_v15 = vsel %vm530_vm1, %v1119_v1, 0.0 }
  0x79   :  { %v649_v56 = vadd.f32 %v648_v47, %v647_v50  ;;  %v1977_v47 = vunpack.c.l.bf16 %v2381_v37  ;;  %v668_v48 = vsel %vm530_vm1, %v1974_v41, 0.0  ;;  %v2382_v50 = vld [vmem:[%s3411_s0 + $0x120] sm:$0xff]  }
  0x7a   :  { %v1422_v23 = vadd.f32 %v1421_v14, %v1420_v17  ;;  %v1121_v14 = vmul.f32 %v1974_v41, %v1974_v41  ;;  %v1443_v21 = vsel %vm530_vm1, %v1120_v7, 0.0 }
  0x7b   :  { %v651_v63 = vadd.f32 %v650_v54, %v649_v56  ;;  %v1978_v54 = vunpack.c.h.bf16 %v2381_v37  ;;  %v670_v55 = vsel %vm530_vm1, %v1977_v47, 0.0 }
  0x7c   :  { %v1424_v30 = vadd.f32 %v1423_v20, %v1422_v23  ;;  %v1122_v20 = vmul.f32 %v1977_v47, %v1977_v47  ;;  %v1445_v28 = vsel %vm530_vm1, %v1121_v14, 0.0 }
  0x7d   :  { %v653_v5 = vadd.f32 %v652_v60, %v651_v63  ;;  %v1981_v60 = vunpack.c.l.bf16 %v2382_v50  ;;  %v672_v61 = vsel %vm530_vm1, %v1978_v54, 0.0  ;;  %v2383_v63 = vld [vmem:[%s3411_s0 + $0x128] sm:$0xff]  }
  0x7e   :  { %v1426_v36 = vadd.f32 %v1425_v27, %v1424_v30  ;;  %v1123_v27 = vmul.f32 %v1978_v54, %v1978_v54  ;;  %v1447_v34 = vsel %vm530_vm1, %v1122_v20, 0.0 }
  0x7f   :  { %v655_v12 = vadd.f32 %v654_v3, %v653_v5  ;;  %v1982_v3 = vunpack.c.h.bf16 %v2382_v50  ;;  %v674_v4 = vsel %vm530_vm1, %v1981_v60, 0.0 }
  0x80   :  { %v1428_v43 = vadd.f32 %v1427_v33, %v1426_v36  ;;  %v1124_v33 = vmul.f32 %v1981_v60, %v1981_v60  ;;  %v1449_v41 = vsel %vm530_vm1, %v1123_v27, 0.0 }
  0x81   :  { %v657_v18 = vadd.f32 %v656_v9, %v655_v12  ;;  %v1985_v9 = vunpack.c.l.bf16 %v2383_v63  ;;  %v676_v10 = vsel %vm530_vm1, %v1982_v3, 0.0  ;;  %v2384_v12 = vld [vmem:[%s3411_s0 + $0x130] sm:$0xff]  }
  0x82   :  { %v1430_v49 = vadd.f32 %v1429_v40, %v1428_v43  ;;  %v1125_v40 = vmul.f32 %v1982_v3, %v1982_v3  ;;  %v1451_v47 = vsel %vm530_vm1, %v1124_v33, 0.0 }
  0x83   :  { %v659_v25 = vadd.f32 %v658_v16, %v657_v18  ;;  %v1986_v16 = vunpack.c.h.bf16 %v2383_v63  ;;  %v678_v17 = vsel %vm530_vm1, %v1985_v9, 0.0 }
  0x84   :  { %v1432_v56 = vadd.f32 %v1431_v46, %v1430_v49  ;;  %v1126_v46 = vmul.f32 %v1985_v9, %v1985_v9  ;;  %v1453_v54 = vsel %vm530_vm1, %v1125_v40, 0.0 }
  0x85   :  { %v661_v31 = vadd.f32 %v660_v22, %v659_v25  ;;  %v1989_v22 = vunpack.c.l.bf16 %v2384_v12  ;;  %v680_v23 = vsel %vm530_vm1, %v1986_v16, 0.0  ;;  %v2385_v25 = vld [vmem:[%s3411_s0 + $0x138] sm:$0xff]  }
  0x86   :  { %v1434_v62 = vadd.f32 %v1433_v53, %v1432_v56  ;;  %v1127_v53 = vmul.f32 %v1986_v16, %v1986_v16  ;;  %v1455_v60 = vsel %vm530_vm1, %v1126_v46, 0.0 }
  0x87   :  { %v663_v38 = vadd.f32 %v662_v29, %v661_v31  ;;  %v1990_v29 = vunpack.c.h.bf16 %v2384_v12  ;;  %v682_v30 = vsel %vm530_vm1, %v1989_v22, 0.0 }
  0x88   :  { %v1436_v5 = vadd.f32 %v1435_v59, %v1434_v62  ;;  %v1128_v59 = vmul.f32 %v1989_v22, %v1989_v22  ;;  %v1457_v3 = vsel %vm530_vm1, %v1127_v53, 0.0 }
  0x89   :  { %v665_v44 = vadd.f32 %v664_v35, %v663_v38  ;;  %v1993_v35 = vunpack.c.l.bf16 %v2385_v25  ;;  %v684_v36 = vsel %vm530_vm1, %v1990_v29, 0.0  ;;  %v2386_v38 = vld [vmem:[%s3411_s0 + $0x140] sm:$0xff]  }
  0x8a   :  { %v1438_v11 = vadd.f32 %v1437_v2, %v1436_v5  ;;  %v1129_v2 = vmul.f32 %v1990_v29, %v1990_v29  ;;  %v1459_v9 = vsel %vm530_vm1, %v1128_v59, 0.0 }
  0x8b   :  { %v667_v51 = vadd.f32 %v666_v42, %v665_v44  ;;  %v1994_v42 = vunpack.c.h.bf16 %v2385_v25  ;;  %v686_v43 = vsel %vm530_vm1, %v1993_v35, 0.0 }
  0x8c   :  { %v1440_v18 = vadd.f32 %v1439_v8, %v1438_v11  ;;  %v1130_v8 = vmul.f32 %v1993_v35, %v1993_v35  ;;  %v1461_v16 = vsel %vm530_vm1, %v1129_v2, 0.0 }
  0x8d   :  { %v669_v57 = vadd.f32 %v668_v48, %v667_v51  ;;  %v1997_v48 = vunpack.c.l.bf16 %v2386_v38  ;;  %v688_v49 = vsel %vm530_vm1, %v1994_v42, 0.0  ;;  %v2387_v51 = vld [vmem:[%s3411_s0 + $0x148] sm:$0xff]  }
  0x8e   :  { %v1442_v24 = vadd.f32 %v1441_v15, %v1440_v18  ;;  %v1131_v15 = vmul.f32 %v1994_v42, %v1994_v42  ;;  %v1463_v22 = vsel %vm530_vm1, %v1130_v8, 0.0 }
  0x8f   :  { %v671_v0 = vadd.f32 %v670_v55, %v669_v57  ;;  %v1998_v55 = vunpack.c.h.bf16 %v2386_v38  ;;  %v690_v56 = vsel %vm530_vm1, %v1997_v48, 0.0 }
  0x90   :  { %v1444_v31 = vadd.f32 %v1443_v21, %v1442_v24  ;;  %v1132_v21 = vmul.f32 %v1997_v48, %v1997_v48  ;;  %v1465_v29 = vsel %vm530_vm1, %v1131_v15, 0.0 }
  0x91   :  { %v673_v6 = vadd.f32 %v672_v61, %v671_v0  ;;  %v2001_v61 = vunpack.c.l.bf16 %v2387_v51  ;;  %v692_v62 = vsel %vm530_vm1, %v1998_v55, 0.0  ;;  %v2388_v0 = vld [vmem:[%s3411_s0 + $0x150] sm:$0xff]  }
  0x92   :  { %v1446_v37 = vadd.f32 %v1445_v28, %v1444_v31  ;;  %v1133_v28 = vmul.f32 %v1998_v55, %v1998_v55  ;;  %v1467_v35 = vsel %vm530_vm1, %v1132_v21, 0.0 }
  0x93   :  { %v675_v13 = vadd.f32 %v674_v4, %v673_v6  ;;  %v2002_v4 = vunpack.c.h.bf16 %v2387_v51  ;;  %v694_v5 = vsel %vm530_vm1, %v2001_v61, 0.0 }
  0x94   :  { %v1448_v44 = vadd.f32 %v1447_v34, %v1446_v37  ;;  %v1134_v34 = vmul.f32 %v2001_v61, %v2001_v61  ;;  %v1469_v42 = vsel %vm530_vm1, %v1133_v28, 0.0 }
  0x95   :  { %v677_v19 = vadd.f32 %v676_v10, %v675_v13  ;;  %v2005_v10 = vunpack.c.l.bf16 %v2388_v0  ;;  %v696_v11 = vsel %vm530_vm1, %v2002_v4, 0.0  ;;  %v2389_v13 = vld [vmem:[%s3411_s0 + $0x158] sm:$0xff]  }
  0x96   :  { %v1450_v50 = vadd.f32 %v1449_v41, %v1448_v44  ;;  %v1135_v41 = vmul.f32 %v2002_v4, %v2002_v4  ;;  %v1471_v48 = vsel %vm530_vm1, %v1134_v34, 0.0 }
  0x97   :  { %v679_v26 = vadd.f32 %v678_v17, %v677_v19  ;;  %v2006_v17 = vunpack.c.h.bf16 %v2388_v0  ;;  %v698_v18 = vsel %vm530_vm1, %v2005_v10, 0.0 }
  0x98   :  { %v1452_v57 = vadd.f32 %v1451_v47, %v1450_v50  ;;  %v1136_v47 = vmul.f32 %v2005_v10, %v2005_v10  ;;  %v1473_v55 = vsel %vm530_vm1, %v1135_v41, 0.0 }
  0x99   :  { %v681_v32 = vadd.f32 %v680_v23, %v679_v26  ;;  %v2009_v23 = vunpack.c.l.bf16 %v2389_v13  ;;  %v700_v24 = vsel %vm530_vm1, %v2006_v17, 0.0  ;;  %v2390_v26 = vld [vmem:[%s3411_s0 + $0x160] sm:$0xff]  }
  0x9a   :  { %v1454_v63 = vadd.f32 %v1453_v54, %v1452_v57  ;;  %v1137_v54 = vmul.f32 %v2006_v17, %v2006_v17  ;;  %v1475_v61 = vsel %vm530_vm1, %v1136_v47, 0.0 }
  0x9b   :  { %v683_v39 = vadd.f32 %v682_v30, %v681_v32  ;;  %v2010_v30 = vunpack.c.h.bf16 %v2389_v13  ;;  %v702_v31 = vsel %vm530_vm1, %v2009_v23, 0.0 }
  0x9c   :  { %v1456_v6 = vadd.f32 %v1455_v60, %v1454_v63  ;;  %v1138_v60 = vmul.f32 %v2009_v23, %v2009_v23  ;;  %v1477_v4 = vsel %vm530_vm1, %v1137_v54, 0.0 }
  0x9d   :  { %v685_v45 = vadd.f32 %v684_v36, %v683_v39  ;;  %v2013_v36 = vunpack.c.l.bf16 %v2390_v26  ;;  %v704_v37 = vsel %vm530_vm1, %v2010_v30, 0.0  ;;  %v2391_v39 = vld [vmem:[%s3411_s0 + $0x168] sm:$0xff]  }
  0x9e   :  { %v1458_v12 = vadd.f32 %v1457_v3, %v1456_v6  ;;  %v1139_v3 = vmul.f32 %v2010_v30, %v2010_v30  ;;  %v1479_v10 = vsel %vm530_vm1, %v1138_v60, 0.0 }
  0x9f   :  { %v687_v52 = vadd.f32 %v686_v43, %v685_v45  ;;  %v2014_v43 = vunpack.c.h.bf16 %v2390_v26  ;;  %v706_v44 = vsel %vm530_vm1, %v2013_v36, 0.0 }
  0xa0   :  { %v1460_v19 = vadd.f32 %v1459_v9, %v1458_v12  ;;  %v1140_v9 = vmul.f32 %v2013_v36, %v2013_v36  ;;  %v1481_v17 = vsel %vm530_vm1, %v1139_v3, 0.0 }
  0xa1   :  { %v689_v58 = vadd.f32 %v688_v49, %v687_v52  ;;  %v2017_v49 = vunpack.c.l.bf16 %v2391_v39  ;;  %v708_v50 = vsel %vm530_vm1, %v2014_v43, 0.0  ;;  %v2392_v52 = vld [vmem:[%s3411_s0 + $0x170] sm:$0xff]  }
  0xa2   :  { %v1462_v25 = vadd.f32 %v1461_v16, %v1460_v19  ;;  %v1141_v16 = vmul.f32 %v2014_v43, %v2014_v43  ;;  %v1483_v23 = vsel %vm530_vm1, %v1140_v9, 0.0 }
  0xa3   :  { %v691_v1 = vadd.f32 %v690_v56, %v689_v58  ;;  %v2018_v56 = vunpack.c.h.bf16 %v2391_v39  ;;  %v710_v57 = vsel %vm530_vm1, %v2017_v49, 0.0 }
  0xa4   :  { %v1464_v32 = vadd.f32 %v1463_v22, %v1462_v25  ;;  %v1142_v22 = vmul.f32 %v2017_v49, %v2017_v49  ;;  %v1485_v30 = vsel %vm530_vm1, %v1141_v16, 0.0 }
  0xa5   :  { %v693_v7 = vadd.f32 %v692_v62, %v691_v1  ;;  %v2021_v62 = vunpack.c.l.bf16 %v2392_v52  ;;  %v712_v63 = vsel %vm530_vm1, %v2018_v56, 0.0  ;;  %v2393_v1 = vld [vmem:[%s3411_s0 + $0x178] sm:$0xff]  }
  0xa6   :  { %v1466_v38 = vadd.f32 %v1465_v29, %v1464_v32  ;;  %v1143_v29 = vmul.f32 %v2018_v56, %v2018_v56  ;;  %v1487_v36 = vsel %vm530_vm1, %v1142_v22, 0.0 }
  0xa7   :  { %v695_v14 = vadd.f32 %v694_v5, %v693_v7  ;;  %v2022_v5 = vunpack.c.h.bf16 %v2392_v52  ;;  %v714_v6 = vsel %vm530_vm1, %v2021_v62, 0.0 }
  0xa8   :  { %v1468_v45 = vadd.f32 %v1467_v35, %v1466_v38  ;;  %v1144_v35 = vmul.f32 %v2021_v62, %v2021_v62  ;;  %v1489_v43 = vsel %vm530_vm1, %v1143_v29, 0.0 }
  0xa9   :  { %v697_v20 = vadd.f32 %v696_v11, %v695_v14  ;;  %v2025_v11 = vunpack.c.l.bf16 %v2393_v1  ;;  %v716_v12 = vsel %vm530_vm1, %v2022_v5, 0.0  ;;  %v2394_v14 = vld [vmem:[%s3411_s0 + $0x180] sm:$0xff]  }
  0xaa   :  { %v1470_v51 = vadd.f32 %v1469_v42, %v1468_v45  ;;  %v1145_v42 = vmul.f32 %v2022_v5, %v2022_v5  ;;  %v1491_v49 = vsel %vm530_vm1, %v1144_v35, 0.0 }
  0xab   :  { %v699_v27 = vadd.f32 %v698_v18, %v697_v20  ;;  %v2026_v18 = vunpack.c.h.bf16 %v2393_v1  ;;  %v718_v19 = vsel %vm530_vm1, %v2025_v11, 0.0 }
  0xac   :  { %v1472_v58 = vadd.f32 %v1471_v48, %v1470_v51  ;;  %v1146_v48 = vmul.f32 %v2025_v11, %v2025_v11  ;;  %v1493_v56 = vsel %vm530_vm1, %v1145_v42, 0.0 }
  0xad   :  { %v701_v33 = vadd.f32 %v700_v24, %v699_v27  ;;  %v2029_v24 = vunpack.c.l.bf16 %v2394_v14  ;;  %v720_v25 = vsel %vm530_vm1, %v2026_v18, 0.0  ;;  %v2395_v27 = vld [vmem:[%s3411_s0 + $0x188] sm:$0xff]  }
  0xae   :  { %v1474_v0 = vadd.f32 %v1473_v55, %v1472_v58  ;;  %v1147_v55 = vmul.f32 %v2026_v18, %v2026_v18  ;;  %v1495_v62 = vsel %vm530_vm1, %v1146_v48, 0.0 }
  0xaf   :  { %v703_v40 = vadd.f32 %v702_v31, %v701_v33  ;;  %v2030_v31 = vunpack.c.h.bf16 %v2394_v14  ;;  %v722_v32 = vsel %vm530_vm1, %v2029_v24, 0.0 }
  0xb0   :  { %v1476_v7 = vadd.f32 %v1475_v61, %v1474_v0  ;;  %v1148_v61 = vmul.f32 %v2029_v24, %v2029_v24  ;;  %v1497_v5 = vsel %vm530_vm1, %v1147_v55, 0.0 }
  0xb1   :  { %v705_v46 = vadd.f32 %v704_v37, %v703_v40  ;;  %v2033_v37 = vunpack.c.l.bf16 %v2395_v27  ;;  %v724_v38 = vsel %vm530_vm1, %v2030_v31, 0.0  ;;  %v2396_v40 = vld [vmem:[%s3411_s0 + $0x190] sm:$0xff]  }
  0xb2   :  { %v1478_v13 = vadd.f32 %v1477_v4, %v1476_v7  ;;  %v1149_v4 = vmul.f32 %v2030_v31, %v2030_v31  ;;  %v1499_v11 = vsel %vm530_vm1, %v1148_v61, 0.0 }
  0xb3   :  { %v707_v53 = vadd.f32 %v706_v44, %v705_v46  ;;  %v2034_v44 = vunpack.c.h.bf16 %v2395_v27  ;;  %v726_v45 = vsel %vm530_vm1, %v2033_v37, 0.0 }
  0xb4   :  { %v1480_v20 = vadd.f32 %v1479_v10, %v1478_v13  ;;  %v1150_v10 = vmul.f32 %v2033_v37, %v2033_v37  ;;  %v1501_v18 = vsel %vm530_vm1, %v1149_v4, 0.0 }
  0xb5   :  { %v709_v59 = vadd.f32 %v708_v50, %v707_v53  ;;  %v2037_v50 = vunpack.c.l.bf16 %v2396_v40  ;;  %v728_v51 = vsel %vm530_vm1, %v2034_v44, 0.0  ;;  %v2397_v53 = vld [vmem:[%s3411_s0 + $0x198] sm:$0xff]  }
  0xb6   :  { %v1482_v26 = vadd.f32 %v1481_v17, %v1480_v20  ;;  %v1151_v17 = vmul.f32 %v2034_v44, %v2034_v44  ;;  %v1503_v24 = vsel %vm530_vm1, %v1150_v10, 0.0 }
  0xb7   :  { %v711_v2 = vadd.f32 %v710_v57, %v709_v59  ;;  %v2038_v57 = vunpack.c.h.bf16 %v2396_v40  ;;  %v730_v58 = vsel %vm530_vm1, %v2037_v50, 0.0 }
  0xb8   :  { %v1484_v33 = vadd.f32 %v1483_v23, %v1482_v26  ;;  %v1152_v23 = vmul.f32 %v2037_v50, %v2037_v50  ;;  %v1505_v31 = vsel %vm530_vm1, %v1151_v17, 0.0 }
  0xb9   :  { %v713_v8 = vadd.f32 %v712_v63, %v711_v2  ;;  %v2041_v63 = vunpack.c.l.bf16 %v2397_v53  ;;  %v732_v0 = vsel %vm530_vm1, %v2038_v57, 0.0  ;;  %v2398_v2 = vld [vmem:[%s3411_s0 + $0x1a0] sm:$0xff]  }
  0xba   :  { %v1486_v39 = vadd.f32 %v1485_v30, %v1484_v33  ;;  %v1153_v30 = vmul.f32 %v2038_v57, %v2038_v57  ;;  %v1507_v37 = vsel %vm530_vm1, %v1152_v23, 0.0 }
  0xbb   :  { %v715_v15 = vadd.f32 %v714_v6, %v713_v8  ;;  %v2042_v6 = vunpack.c.h.bf16 %v2397_v53  ;;  %v734_v7 = vsel %vm530_vm1, %v2041_v63, 0.0 }
  0xbc   :  { %v1488_v46 = vadd.f32 %v1487_v36, %v1486_v39  ;;  %v1154_v36 = vmul.f32 %v2041_v63, %v2041_v63  ;;  %v1509_v44 = vsel %vm530_vm1, %v1153_v30, 0.0 }
  0xbd   :  { %v717_v21 = vadd.f32 %v716_v12, %v715_v15  ;;  %v2045_v12 = vunpack.c.l.bf16 %v2398_v2  ;;  %v736_v13 = vsel %vm530_vm1, %v2042_v6, 0.0  ;;  %v2399_v15 = vld [vmem:[%s3411_s0 + $0x1a8] sm:$0xff]  }
  0xbe   :  { %v1490_v52 = vadd.f32 %v1489_v43, %v1488_v46  ;;  %v1155_v43 = vmul.f32 %v2042_v6, %v2042_v6  ;;  %v1511_v50 = vsel %vm530_vm1, %v1154_v36, 0.0 }
  0xbf   :  { %v719_v28 = vadd.f32 %v718_v19, %v717_v21  ;;  %v2046_v19 = vunpack.c.h.bf16 %v2398_v2  ;;  %v738_v20 = vsel %vm530_vm1, %v2045_v12, 0.0 }
  0xc0   :  { %v1492_v59 = vadd.f32 %v1491_v49, %v1490_v52  ;;  %v1156_v49 = vmul.f32 %v2045_v12, %v2045_v12  ;;  %v1513_v57 = vsel %vm530_vm1, %v1155_v43, 0.0 }
  0xc1   :  { %v721_v34 = vadd.f32 %v720_v25, %v719_v28  ;;  %v2049_v25 = vunpack.c.l.bf16 %v2399_v15  ;;  %v740_v26 = vsel %vm530_vm1, %v2046_v19, 0.0  ;;  %v2400_v28 = vld [vmem:[%s3411_s0 + $0x1b0] sm:$0xff]  }
  0xc2   :  { %v1494_v1 = vadd.f32 %v1493_v56, %v1492_v59  ;;  %v1157_v56 = vmul.f32 %v2046_v19, %v2046_v19  ;;  %v1515_v63 = vsel %vm530_vm1, %v1156_v49, 0.0 }
  0xc3   :  { %v723_v41 = vadd.f32 %v722_v32, %v721_v34  ;;  %v2050_v32 = vunpack.c.h.bf16 %v2399_v15  ;;  %v742_v33 = vsel %vm530_vm1, %v2049_v25, 0.0 }
  0xc4   :  { %v1496_v8 = vadd.f32 %v1495_v62, %v1494_v1  ;;  %v1158_v62 = vmul.f32 %v2049_v25, %v2049_v25  ;;  %v1517_v6 = vsel %vm530_vm1, %v1157_v56, 0.0 }
  0xc5   :  { %v725_v47 = vadd.f32 %v724_v38, %v723_v41  ;;  %v2053_v38 = vunpack.c.l.bf16 %v2400_v28  ;;  %v744_v39 = vsel %vm530_vm1, %v2050_v32, 0.0  ;;  %v2401_v41 = vld [vmem:[%s3411_s0 + $0x1b8] sm:$0xff]  }
  0xc6   :  { %v1498_v14 = vadd.f32 %v1497_v5, %v1496_v8  ;;  %v1159_v5 = vmul.f32 %v2050_v32, %v2050_v32  ;;  %v1519_v12 = vsel %vm530_vm1, %v1158_v62, 0.0 }
  0xc7   :  { %v727_v54 = vadd.f32 %v726_v45, %v725_v47  ;;  %v2054_v45 = vunpack.c.h.bf16 %v2400_v28  ;;  %v746_v46 = vsel %vm530_vm1, %v2053_v38, 0.0 }
  0xc8   :  { %v1500_v21 = vadd.f32 %v1499_v11, %v1498_v14  ;;  %v1160_v11 = vmul.f32 %v2053_v38, %v2053_v38  ;;  %v1521_v19 = vsel %vm530_vm1, %v1159_v5, 0.0 }
  0xc9   :  { %v729_v60 = vadd.f32 %v728_v51, %v727_v54  ;;  %v2057_v51 = vunpack.c.l.bf16 %v2401_v41  ;;  %v748_v52 = vsel %vm530_vm1, %v2054_v45, 0.0  ;;  %v2402_v54 = vld [vmem:[%s3411_s0 + $0x1c0] sm:$0xff]  }
  0xca   :  { %v1502_v27 = vadd.f32 %v1501_v18, %v1500_v21  ;;  %v1161_v18 = vmul.f32 %v2054_v45, %v2054_v45  ;;  %v1523_v25 = vsel %vm530_vm1, %v1160_v11, 0.0 }
  0xcb   :  { %v731_v3 = vadd.f32 %v730_v58, %v729_v60  ;;  %v2058_v58 = vunpack.c.h.bf16 %v2401_v41  ;;  %v750_v59 = vsel %vm530_vm1, %v2057_v51, 0.0 }
  0xcc   :  { %v1504_v34 = vadd.f32 %v1503_v24, %v1502_v27  ;;  %v1162_v24 = vmul.f32 %v2057_v51, %v2057_v51  ;;  %v1525_v32 = vsel %vm530_vm1, %v1161_v18, 0.0 }
  0xcd   :  { %v733_v9 = vadd.f32 %v732_v0, %v731_v3  ;;  %v2061_v0 = vunpack.c.l.bf16 %v2402_v54  ;;  %v752_v1 = vsel %vm530_vm1, %v2058_v58, 0.0  ;;  %v2403_v3 = vld [vmem:[%s3411_s0 + $0x1c8] sm:$0xff]  }
  0xce   :  { %v1506_v40 = vadd.f32 %v1505_v31, %v1504_v34  ;;  %v1163_v31 = vmul.f32 %v2058_v58, %v2058_v58  ;;  %v1527_v38 = vsel %vm530_vm1, %v1162_v24, 0.0 }
  0xcf   :  { %v735_v16 = vadd.f32 %v734_v7, %v733_v9  ;;  %v2062_v7 = vunpack.c.h.bf16 %v2402_v54  ;;  %v754_v8 = vsel %vm530_vm1, %v2061_v0, 0.0 }
  0xd0   :  { %v1508_v47 = vadd.f32 %v1507_v37, %v1506_v40  ;;  %v1164_v37 = vmul.f32 %v2061_v0, %v2061_v0  ;;  %v1529_v45 = vsel %vm530_vm1, %v1163_v31, 0.0 }
  0xd1   :  { %v737_v22 = vadd.f32 %v736_v13, %v735_v16  ;;  %v2065_v13 = vunpack.c.l.bf16 %v2403_v3  ;;  %v756_v14 = vsel %vm530_vm1, %v2062_v7, 0.0  ;;  %v2404_v16 = vld [vmem:[%s3411_s0 + $0x1d0] sm:$0xff]  }
  0xd2   :  { %v1510_v53 = vadd.f32 %v1509_v44, %v1508_v47  ;;  %v1165_v44 = vmul.f32 %v2062_v7, %v2062_v7  ;;  %v1531_v51 = vsel %vm530_vm1, %v1164_v37, 0.0 }
  0xd3   :  { %v739_v29 = vadd.f32 %v738_v20, %v737_v22  ;;  %v2066_v20 = vunpack.c.h.bf16 %v2403_v3  ;;  %v758_v21 = vsel %vm530_vm1, %v2065_v13, 0.0 }
  0xd4   :  { %v1512_v60 = vadd.f32 %v1511_v50, %v1510_v53  ;;  %v1166_v50 = vmul.f32 %v2065_v13, %v2065_v13  ;;  %v1533_v58 = vsel %vm530_vm1, %v1165_v44, 0.0 }
  0xd5   :  { %v741_v35 = vadd.f32 %v740_v26, %v739_v29  ;;  %v2069_v26 = vunpack.c.l.bf16 %v2404_v16  ;;  %v760_v27 = vsel %vm530_vm1, %v2066_v20, 0.0  ;;  %v2405_v29 = vld [vmem:[%s3411_s0 + $0x1d8] sm:$0xff]  }
  0xd6   :  { %v1514_v2 = vadd.f32 %v1513_v57, %v1512_v60  ;;  %v1167_v57 = vmul.f32 %v2066_v20, %v2066_v20  ;;  %v1535_v0 = vsel %vm530_vm1, %v1166_v50, 0.0 }
  0xd7   :  { %v743_v42 = vadd.f32 %v742_v33, %v741_v35  ;;  %v2070_v33 = vunpack.c.h.bf16 %v2404_v16  ;;  %v762_v34 = vsel %vm530_vm1, %v2069_v26, 0.0 }
  0xd8   :  { %v1516_v9 = vadd.f32 %v1515_v63, %v1514_v2  ;;  %v1168_v63 = vmul.f32 %v2069_v26, %v2069_v26  ;;  %v1537_v7 = vsel %vm530_vm1, %v1167_v57, 0.0 }
  0xd9   :  { %v745_v48 = vadd.f32 %v744_v39, %v743_v42  ;;  %v2073_v39 = vunpack.c.l.bf16 %v2405_v29  ;;  %v764_v40 = vsel %vm530_vm1, %v2070_v33, 0.0  ;;  %v2406_v42 = vld [vmem:[%s3411_s0 + $0x1e0] sm:$0xff]  }
  0xda   :  { %v1518_v15 = vadd.f32 %v1517_v6, %v1516_v9  ;;  %v1169_v6 = vmul.f32 %v2070_v33, %v2070_v33  ;;  %v1539_v13 = vsel %vm530_vm1, %v1168_v63, 0.0 }
  0xdb   :  { %v747_v55 = vadd.f32 %v746_v46, %v745_v48  ;;  %v2074_v46 = vunpack.c.h.bf16 %v2405_v29  ;;  %v766_v47 = vsel %vm530_vm1, %v2073_v39, 0.0 }
  0xdc   :  { %v1520_v22 = vadd.f32 %v1519_v12, %v1518_v15  ;;  %v1170_v12 = vmul.f32 %v2073_v39, %v2073_v39  ;;  %v1541_v20 = vsel %vm530_vm1, %v1169_v6, 0.0 }
  0xdd   :  { %v749_v61 = vadd.f32 %v748_v52, %v747_v55  ;;  %v2077_v52 = vunpack.c.l.bf16 %v2406_v42  ;;  %v768_v53 = vsel %vm530_vm1, %v2074_v46, 0.0  ;;  %v2407_v55 = vld [vmem:[%s3411_s0 + $0x1e8] sm:$0xff]  }
  0xde   :  { %v1522_v28 = vadd.f32 %v1521_v19, %v1520_v22  ;;  %v1171_v19 = vmul.f32 %v2074_v46, %v2074_v46  ;;  %v1543_v26 = vsel %vm530_vm1, %v1170_v12, 0.0 }
  0xdf   :  { %v751_v4 = vadd.f32 %v750_v59, %v749_v61  ;;  %v2078_v59 = vunpack.c.h.bf16 %v2406_v42  ;;  %v770_v60 = vsel %vm530_vm1, %v2077_v52, 0.0 }
  0xe0   :  { %v1524_v35 = vadd.f32 %v1523_v25, %v1522_v28  ;;  %v1172_v25 = vmul.f32 %v2077_v52, %v2077_v52  ;;  %v1545_v33 = vsel %vm530_vm1, %v1171_v19, 0.0 }
  0xe1   :  { %v753_v10 = vadd.f32 %v752_v1, %v751_v4  ;;  %v2081_v1 = vunpack.c.l.bf16 %v2407_v55  ;;  %v772_v2 = vsel %vm530_vm1, %v2078_v59, 0.0  ;;  %v2408_v4 = vld [vmem:[%s3411_s0 + $0x1f0] sm:$0xff]  }
  0xe2   :  { %v1526_v41 = vadd.f32 %v1525_v32, %v1524_v35  ;;  %v1173_v32 = vmul.f32 %v2078_v59, %v2078_v59  ;;  %v1547_v39 = vsel %vm530_vm1, %v1172_v25, 0.0 }
  0xe3   :  { %v755_v17 = vadd.f32 %v754_v8, %v753_v10  ;;  %v2082_v8 = vunpack.c.h.bf16 %v2407_v55  ;;  %v774_v9 = vsel %vm530_vm1, %v2081_v1, 0.0 }
  0xe4   :  { %v1528_v48 = vadd.f32 %v1527_v38, %v1526_v41  ;;  %v1174_v38 = vmul.f32 %v2081_v1, %v2081_v1  ;;  %v1549_v46 = vsel %vm530_vm1, %v1173_v32, 0.0 }
  0xe5   :  { %v757_v23 = vadd.f32 %v756_v14, %v755_v17  ;;  %v2085_v14 = vunpack.c.l.bf16 %v2408_v4  ;;  %v776_v15 = vsel %vm530_vm1, %v2082_v8, 0.0  ;;  %v2409_v17 = vld [vmem:[%s3411_s0 + $0x1f8] sm:$0xff]  }
  0xe6   :  { %v1530_v54 = vadd.f32 %v1529_v45, %v1528_v48  ;;  %v1175_v45 = vmul.f32 %v2082_v8, %v2082_v8  ;;  %v1551_v52 = vsel %vm530_vm1, %v1174_v38, 0.0 }
  0xe7   :  { %v759_v30 = vadd.f32 %v758_v21, %v757_v23  ;;  %v2086_v21 = vunpack.c.h.bf16 %v2408_v4  ;;  %v778_v22 = vsel %vm530_vm1, %v2085_v14, 0.0 }
  0xe8   :  { %v1532_v61 = vadd.f32 %v1531_v51, %v1530_v54  ;;  %v1176_v51 = vmul.f32 %v2085_v14, %v2085_v14  ;;  %v1553_v59 = vsel %vm530_vm1, %v1175_v45, 0.0 }
  0xe9   :  { %v761_v36 = vadd.f32 %v760_v27, %v759_v30  ;;  %v2089_v27 = vunpack.c.l.bf16 %v2409_v17  ;;  %v780_v28 = vsel %vm530_vm1, %v2086_v21, 0.0  ;;  %v2410_v30 = vld [vmem:[%s3411_s0 + $0x200] sm:$0xff]  }
  0xea   :  { %v1534_v3 = vadd.f32 %v1533_v58, %v1532_v61  ;;  %v1177_v58 = vmul.f32 %v2086_v21, %v2086_v21  ;;  %v1555_v1 = vsel %vm530_vm1, %v1176_v51, 0.0 }
  0xeb   :  { %v763_v43 = vadd.f32 %v762_v34, %v761_v36  ;;  %v2090_v34 = vunpack.c.h.bf16 %v2409_v17  ;;  %v782_v35 = vsel %vm530_vm1, %v2089_v27, 0.0 }
  0xec   :  { %v1536_v10 = vadd.f32 %v1535_v0, %v1534_v3  ;;  %v1178_v0 = vmul.f32 %v2089_v27, %v2089_v27  ;;  %v1557_v8 = vsel %vm530_vm1, %v1177_v58, 0.0 }
  0xed   :  { %v765_v49 = vadd.f32 %v764_v40, %v763_v43  ;;  %v2093_v40 = vunpack.c.l.bf16 %v2410_v30  ;;  %v784_v41 = vsel %vm530_vm1, %v2090_v34, 0.0  ;;  %v2411_v43 = vld [vmem:[%s3411_s0 + $0x208] sm:$0xff]  }
  0xee   :  { %v1538_v16 = vadd.f32 %v1537_v7, %v1536_v10  ;;  %v1179_v7 = vmul.f32 %v2090_v34, %v2090_v34  ;;  %v1559_v14 = vsel %vm530_vm1, %v1178_v0, 0.0 }
  0xef   :  { %v767_v56 = vadd.f32 %v766_v47, %v765_v49  ;;  %v2094_v47 = vunpack.c.h.bf16 %v2410_v30  ;;  %v786_v48 = vsel %vm530_vm1, %v2093_v40, 0.0 }
  0xf0   :  { %v1540_v23 = vadd.f32 %v1539_v13, %v1538_v16  ;;  %v1180_v13 = vmul.f32 %v2093_v40, %v2093_v40  ;;  %v1561_v21 = vsel %vm530_vm1, %v1179_v7, 0.0 }
  0xf1   :  { %v769_v62 = vadd.f32 %v768_v53, %v767_v56  ;;  %v2097_v53 = vunpack.c.l.bf16 %v2411_v43  ;;  %v788_v54 = vsel %vm530_vm1, %v2094_v47, 0.0  ;;  %v2412_v56 = vld [vmem:[%s3411_s0 + $0x210] sm:$0xff]  }
  0xf2   :  { %v1542_v29 = vadd.f32 %v1541_v20, %v1540_v23  ;;  %v1181_v20 = vmul.f32 %v2094_v47, %v2094_v47  ;;  %v1563_v27 = vsel %vm530_vm1, %v1180_v13, 0.0 }
  0xf3   :  { %v771_v5 = vadd.f32 %v770_v60, %v769_v62  ;;  %v2098_v60 = vunpack.c.h.bf16 %v2411_v43  ;;  %v790_v61 = vsel %vm530_vm1, %v2097_v53, 0.0 }
  0xf4   :  { %v1544_v36 = vadd.f32 %v1543_v26, %v1542_v29  ;;  %v1182_v26 = vmul.f32 %v2097_v53, %v2097_v53  ;;  %v1565_v34 = vsel %vm530_vm1, %v1181_v20, 0.0 }
  0xf5   :  { %v773_v11 = vadd.f32 %v772_v2, %v771_v5  ;;  %v2101_v2 = vunpack.c.l.bf16 %v2412_v56  ;;  %v792_v3 = vsel %vm530_vm1, %v2098_v60, 0.0  ;;  %v2413_v5 = vld [vmem:[%s3411_s0 + $0x218] sm:$0xff]  }
  0xf6   :  { %v1546_v42 = vadd.f32 %v1545_v33, %v1544_v36  ;;  %v1183_v33 = vmul.f32 %v2098_v60, %v2098_v60  ;;  %v1567_v40 = vsel %vm530_vm1, %v1182_v26, 0.0 }
  0xf7   :  { %v775_v18 = vadd.f32 %v774_v9, %v773_v11  ;;  %v2102_v9 = vunpack.c.h.bf16 %v2412_v56  ;;  %v794_v10 = vsel %vm530_vm1, %v2101_v2, 0.0 }
  0xf8   :  { %v1548_v49 = vadd.f32 %v1547_v39, %v1546_v42  ;;  %v1184_v39 = vmul.f32 %v2101_v2, %v2101_v2  ;;  %v1569_v47 = vsel %vm530_vm1, %v1183_v33, 0.0 }
  0xf9   :  { %v777_v24 = vadd.f32 %v776_v15, %v775_v18  ;;  %v2105_v15 = vunpack.c.l.bf16 %v2413_v5  ;;  %v796_v16 = vsel %vm530_vm1, %v2102_v9, 0.0  ;;  %v2414_v18 = vld [vmem:[%s3411_s0 + $0x220] sm:$0xff]  }
  0xfa   :  { %v1550_v55 = vadd.f32 %v1549_v46, %v1548_v49  ;;  %v1185_v46 = vmul.f32 %v2102_v9, %v2102_v9  ;;  %v1571_v53 = vsel %vm530_vm1, %v1184_v39, 0.0 }
  0xfb   :  { %v779_v31 = vadd.f32 %v778_v22, %v777_v24  ;;  %v2106_v22 = vunpack.c.h.bf16 %v2413_v5  ;;  %v798_v23 = vsel %vm530_vm1, %v2105_v15, 0.0 }
  0xfc   :  { %v1552_v62 = vadd.f32 %v1551_v52, %v1550_v55  ;;  %v1186_v52 = vmul.f32 %v2105_v15, %v2105_v15  ;;  %v1573_v60 = vsel %vm530_vm1, %v1185_v46, 0.0 }
  0xfd   :  { %v781_v37 = vadd.f32 %v780_v28, %v779_v31  ;;  %v2109_v28 = vunpack.c.l.bf16 %v2414_v18  ;;  %v800_v29 = vsel %vm530_vm1, %v2106_v22, 0.0  ;;  %v2415_v31 = vld [vmem:[%s3411_s0 + $0x228] sm:$0xff]  }
  0xfe   :  { %v1554_v4 = vadd.f32 %v1553_v59, %v1552_v62  ;;  %v1187_v59 = vmul.f32 %v2106_v22, %v2106_v22  ;;  %v1575_v2 = vsel %vm530_vm1, %v1186_v52, 0.0 }
  0xff   :  { %v783_v44 = vadd.f32 %v782_v35, %v781_v37  ;;  %v2110_v35 = vunpack.c.h.bf16 %v2414_v18  ;;  %v802_v36 = vsel %vm530_vm1, %v2109_v28, 0.0 }
 0x100   :  { %v1556_v11 = vadd.f32 %v1555_v1, %v1554_v4  ;;  %v1188_v1 = vmul.f32 %v2109_v28, %v2109_v28  ;;  %v1577_v9 = vsel %vm530_vm1, %v1187_v59, 0.0 }
 0x101   :  { %v785_v50 = vadd.f32 %v784_v41, %v783_v44  ;;  %v2113_v41 = vunpack.c.l.bf16 %v2415_v31  ;;  %v804_v42 = vsel %vm530_vm1, %v2110_v35, 0.0  ;;  %v2416_v44 = vld [vmem:[%s3411_s0 + $0x230] sm:$0xff]  }
 0x102   :  { %v1558_v17 = vadd.f32 %v1557_v8, %v1556_v11  ;;  %v1189_v8 = vmul.f32 %v2110_v35, %v2110_v35  ;;  %v1579_v15 = vsel %vm530_vm1, %v1188_v1, 0.0 }
 0x103   :  { %v787_v57 = vadd.f32 %v786_v48, %v785_v50  ;;  %v2114_v48 = vunpack.c.h.bf16 %v2415_v31  ;;  %v806_v49 = vsel %vm530_vm1, %v2113_v41, 0.0 }
 0x104   :  { %v1560_v24 = vadd.f32 %v1559_v14, %v1558_v17  ;;  %v1190_v14 = vmul.f32 %v2113_v41, %v2113_v41  ;;  %v1581_v22 = vsel %vm530_vm1, %v1189_v8, 0.0 }
 0x105   :  { %v789_v63 = vadd.f32 %v788_v54, %v787_v57  ;;  %v2117_v54 = vunpack.c.l.bf16 %v2416_v44  ;;  %v808_v55 = vsel %vm530_vm1, %v2114_v48, 0.0  ;;  %v2417_v57 = vld [vmem:[%s3411_s0 + $0x238] sm:$0xff]  }
 0x106   :  { %v1562_v30 = vadd.f32 %v1561_v21, %v1560_v24  ;;  %v1191_v21 = vmul.f32 %v2114_v48, %v2114_v48  ;;  %v1583_v28 = vsel %vm530_vm1, %v1190_v14, 0.0 }
 0x107   :  { %v791_v6 = vadd.f32 %v790_v61, %v789_v63  ;;  %v2118_v61 = vunpack.c.h.bf16 %v2416_v44  ;;  %v810_v62 = vsel %vm530_vm1, %v2117_v54, 0.0 }
 0x108   :  { %v1564_v37 = vadd.f32 %v1563_v27, %v1562_v30  ;;  %v1192_v27 = vmul.f32 %v2117_v54, %v2117_v54  ;;  %v1585_v35 = vsel %vm530_vm1, %v1191_v21, 0.0 }
 0x109   :  { %v793_v12 = vadd.f32 %v792_v3, %v791_v6  ;;  %v2121_v3 = vunpack.c.l.bf16 %v2417_v57  ;;  %v812_v4 = vsel %vm530_vm1, %v2118_v61, 0.0  ;;  %v2418_v6 = vld [vmem:[%s3411_s0 + $0x240] sm:$0xff]  }
 0x10a   :  { %v1566_v43 = vadd.f32 %v1565_v34, %v1564_v37  ;;  %v1193_v34 = vmul.f32 %v2118_v61, %v2118_v61  ;;  %v1587_v41 = vsel %vm530_vm1, %v1192_v27, 0.0 }
 0x10b   :  { %v795_v19 = vadd.f32 %v794_v10, %v793_v12  ;;  %v2122_v10 = vunpack.c.h.bf16 %v2417_v57  ;;  %v814_v11 = vsel %vm530_vm1, %v2121_v3, 0.0 }
 0x10c   :  { %v1568_v50 = vadd.f32 %v1567_v40, %v1566_v43  ;;  %v1194_v40 = vmul.f32 %v2121_v3, %v2121_v3  ;;  %v1589_v48 = vsel %vm530_vm1, %v1193_v34, 0.0 }
 0x10d   :  { %v797_v25 = vadd.f32 %v796_v16, %v795_v19  ;;  %v2125_v16 = vunpack.c.l.bf16 %v2418_v6  ;;  %v816_v17 = vsel %vm530_vm1, %v2122_v10, 0.0  ;;  %v2419_v19 = vld [vmem:[%s3411_s0 + $0x248] sm:$0xff]  }
 0x10e   :  { %v1570_v56 = vadd.f32 %v1569_v47, %v1568_v50  ;;  %v1195_v47 = vmul.f32 %v2122_v10, %v2122_v10  ;;  %v1591_v54 = vsel %vm530_vm1, %v1194_v40, 0.0 }
 0x10f   :  { %v799_v32 = vadd.f32 %v798_v23, %v797_v25  ;;  %v2126_v23 = vunpack.c.h.bf16 %v2418_v6  ;;  %v818_v24 = vsel %vm530_vm1, %v2125_v16, 0.0 }
 0x110   :  { %v1572_v63 = vadd.f32 %v1571_v53, %v1570_v56  ;;  %v1196_v53 = vmul.f32 %v2125_v16, %v2125_v16  ;;  %v1593_v61 = vsel %vm530_vm1, %v1195_v47, 0.0 }
 0x111   :  { %v801_v38 = vadd.f32 %v800_v29, %v799_v32  ;;  %v2129_v29 = vunpack.c.l.bf16 %v2419_v19  ;;  %v820_v30 = vsel %vm530_vm1, %v2126_v23, 0.0  ;;  %v2420_v32 = vld [vmem:[%s3411_s0 + $0x250] sm:$0xff]  }
 0x112   :  { %v1574_v5 = vadd.f32 %v1573_v60, %v1572_v63  ;;  %v1197_v60 = vmul.f32 %v2126_v23, %v2126_v23  ;;  %v1595_v3 = vsel %vm530_vm1, %v1196_v53, 0.0 }
 0x113   :  { %v803_v45 = vadd.f32 %v802_v36, %v801_v38  ;;  %v2130_v36 = vunpack.c.h.bf16 %v2419_v19  ;;  %v822_v37 = vsel %vm530_vm1, %v2129_v29, 0.0 }
 0x114   :  { %v1576_v12 = vadd.f32 %v1575_v2, %v1574_v5  ;;  %v1198_v2 = vmul.f32 %v2129_v29, %v2129_v29  ;;  %v1597_v10 = vsel %vm530_vm1, %v1197_v60, 0.0 }
 0x115   :  { %v805_v51 = vadd.f32 %v804_v42, %v803_v45  ;;  %v2133_v42 = vunpack.c.l.bf16 %v2420_v32  ;;  %v824_v43 = vsel %vm530_vm1, %v2130_v36, 0.0  ;;  %v2421_v45 = vld [vmem:[%s3411_s0 + $0x258] sm:$0xff]  }
 0x116   :  { %v1578_v18 = vadd.f32 %v1577_v9, %v1576_v12  ;;  %v1199_v9 = vmul.f32 %v2130_v36, %v2130_v36  ;;  %v1599_v16 = vsel %vm530_vm1, %v1198_v2, 0.0 }
 0x117   :  { %v807_v58 = vadd.f32 %v806_v49, %v805_v51  ;;  %v2134_v49 = vunpack.c.h.bf16 %v2420_v32  ;;  %v826_v50 = vsel %vm530_vm1, %v2133_v42, 0.0 }
 0x118   :  { %v1580_v25 = vadd.f32 %v1579_v15, %v1578_v18  ;;  %v1200_v15 = vmul.f32 %v2133_v42, %v2133_v42  ;;  %v1601_v23 = vsel %vm530_vm1, %v1199_v9, 0.0 }
 0x119   :  { %v809_v0 = vadd.f32 %v808_v55, %v807_v58  ;;  %v2137_v55 = vunpack.c.l.bf16 %v2421_v45  ;;  %v828_v56 = vsel %vm530_vm1, %v2134_v49, 0.0  ;;  %v2422_v58 = vld [vmem:[%s3411_s0 + $0x260] sm:$0xff]  }
 0x11a   :  { %v1582_v31 = vadd.f32 %v1581_v22, %v1580_v25  ;;  %v1201_v22 = vmul.f32 %v2134_v49, %v2134_v49  ;;  %v1603_v29 = vsel %vm530_vm1, %v1200_v15, 0.0 }
 0x11b   :  { %v811_v7 = vadd.f32 %v810_v62, %v809_v0  ;;  %v2138_v62 = vunpack.c.h.bf16 %v2421_v45  ;;  %v830_v63 = vsel %vm530_vm1, %v2137_v55, 0.0 }
 0x11c   :  { %v1584_v38 = vadd.f32 %v1583_v28, %v1582_v31  ;;  %v1202_v28 = vmul.f32 %v2137_v55, %v2137_v55  ;;  %v1605_v36 = vsel %vm530_vm1, %v1201_v22, 0.0 }
 0x11d   :  { %v813_v13 = vadd.f32 %v812_v4, %v811_v7  ;;  %v2141_v4 = vunpack.c.l.bf16 %v2422_v58  ;;  %v832_v5 = vsel %vm530_vm1, %v2138_v62, 0.0  ;;  %v2423_v7 = vld [vmem:[%s3411_s0 + $0x268] sm:$0xff]  }
 0x11e   :  { %v1586_v44 = vadd.f32 %v1585_v35, %v1584_v38  ;;  %v1203_v35 = vmul.f32 %v2138_v62, %v2138_v62  ;;  %v1607_v42 = vsel %vm530_vm1, %v1202_v28, 0.0 }
 0x11f   :  { %v815_v20 = vadd.f32 %v814_v11, %v813_v13  ;;  %v2142_v11 = vunpack.c.h.bf16 %v2422_v58  ;;  %v834_v12 = vsel %vm530_vm1, %v2141_v4, 0.0 }
 0x120   :  { %v1588_v51 = vadd.f32 %v1587_v41, %v1586_v44  ;;  %v1204_v41 = vmul.f32 %v2141_v4, %v2141_v4  ;;  %v1609_v49 = vsel %vm530_vm1, %v1203_v35, 0.0 }
 0x121   :  { %v817_v26 = vadd.f32 %v816_v17, %v815_v20  ;;  %v2145_v17 = vunpack.c.l.bf16 %v2423_v7  ;;  %v836_v18 = vsel %vm530_vm1, %v2142_v11, 0.0  ;;  %v2424_v20 = vld [vmem:[%s3411_s0 + $0x270] sm:$0xff]  }
 0x122   :  { %v1590_v57 = vadd.f32 %v1589_v48, %v1588_v51  ;;  %v1205_v48 = vmul.f32 %v2142_v11, %v2142_v11  ;;  %v1611_v55 = vsel %vm530_vm1, %v1204_v41, 0.0 }
 0x123   :  { %v819_v33 = vadd.f32 %v818_v24, %v817_v26  ;;  %v2146_v24 = vunpack.c.h.bf16 %v2423_v7  ;;  %v838_v25 = vsel %vm530_vm1, %v2145_v17, 0.0 }
 0x124   :  { %v1592_v0 = vadd.f32 %v1591_v54, %v1590_v57  ;;  %v1206_v54 = vmul.f32 %v2145_v17, %v2145_v17  ;;  %v1613_v62 = vsel %vm530_vm1, %v1205_v48, 0.0 }
 0x125   :  { %v821_v39 = vadd.f32 %v820_v30, %v819_v33  ;;  %v2149_v30 = vunpack.c.l.bf16 %v2424_v20  ;;  %v840_v31 = vsel %vm530_vm1, %v2146_v24, 0.0  ;;  %v2425_v33 = vld [vmem:[%s3411_s0 + $0x278] sm:$0xff]  }
 0x126   :  { %v1594_v6 = vadd.f32 %v1593_v61, %v1592_v0  ;;  %v1207_v61 = vmul.f32 %v2146_v24, %v2146_v24  ;;  %v1615_v4 = vsel %vm530_vm1, %v1206_v54, 0.0 }
 0x127   :  { %v823_v46 = vadd.f32 %v822_v37, %v821_v39  ;;  %v2150_v37 = vunpack.c.h.bf16 %v2424_v20  ;;  %v842_v38 = vsel %vm530_vm1, %v2149_v30, 0.0 }
 0x128   :  { %v1596_v13 = vadd.f32 %v1595_v3, %v1594_v6  ;;  %v1208_v3 = vmul.f32 %v2149_v30, %v2149_v30  ;;  %v1617_v11 = vsel %vm530_vm1, %v1207_v61, 0.0 }
 0x129   :  { %v825_v52 = vadd.f32 %v824_v43, %v823_v46  ;;  %v2153_v43 = vunpack.c.l.bf16 %v2425_v33  ;;  %v844_v44 = vsel %vm530_vm1, %v2150_v37, 0.0  ;;  %v2426_v46 = vld [vmem:[%s3411_s0 + $0x280] sm:$0xff]  }
 0x12a   :  { %v1598_v19 = vadd.f32 %v1597_v10, %v1596_v13  ;;  %v1209_v10 = vmul.f32 %v2150_v37, %v2150_v37  ;;  %v1619_v17 = vsel %vm530_vm1, %v1208_v3, 0.0 }
 0x12b   :  { %v827_v59 = vadd.f32 %v826_v50, %v825_v52  ;;  %v2154_v50 = vunpack.c.h.bf16 %v2425_v33  ;;  %v846_v51 = vsel %vm530_vm1, %v2153_v43, 0.0 }
 0x12c   :  { %v1600_v26 = vadd.f32 %v1599_v16, %v1598_v19  ;;  %v1210_v16 = vmul.f32 %v2153_v43, %v2153_v43  ;;  %v1621_v24 = vsel %vm530_vm1, %v1209_v10, 0.0 }
 0x12d   :  { %v829_v1 = vadd.f32 %v828_v56, %v827_v59  ;;  %v2157_v56 = vunpack.c.l.bf16 %v2426_v46  ;;  %v848_v57 = vsel %vm530_vm1, %v2154_v50, 0.0  ;;  %v2427_v59 = vld [vmem:[%s3411_s0 + $0x288] sm:$0xff]  }
 0x12e   :  { %v1602_v32 = vadd.f32 %v1601_v23, %v1600_v26  ;;  %v1211_v23 = vmul.f32 %v2154_v50, %v2154_v50  ;;  %v1623_v30 = vsel %vm530_vm1, %v1210_v16, 0.0 }
 0x12f   :  { %v831_v8 = vadd.f32 %v830_v63, %v829_v1  ;;  %v2158_v63 = vunpack.c.h.bf16 %v2426_v46  ;;  %v850_v0 = vsel %vm530_vm1, %v2157_v56, 0.0 }
 0x130   :  { %v1604_v39 = vadd.f32 %v1603_v29, %v1602_v32  ;;  %v1212_v29 = vmul.f32 %v2157_v56, %v2157_v56  ;;  %v1625_v37 = vsel %vm530_vm1, %v1211_v23, 0.0 }
 0x131   :  { %v833_v14 = vadd.f32 %v832_v5, %v831_v8  ;;  %v2161_v5 = vunpack.c.l.bf16 %v2427_v59  ;;  %v852_v6 = vsel %vm530_vm1, %v2158_v63, 0.0  ;;  %v2428_v8 = vld [vmem:[%s3411_s0 + $0x290] sm:$0xff]  }
 0x132   :  { %v1606_v45 = vadd.f32 %v1605_v36, %v1604_v39  ;;  %v1213_v36 = vmul.f32 %v2158_v63, %v2158_v63  ;;  %v1627_v43 = vsel %vm530_vm1, %v1212_v29, 0.0 }
 0x133   :  { %v835_v21 = vadd.f32 %v834_v12, %v833_v14  ;;  %v2162_v12 = vunpack.c.h.bf16 %v2427_v59  ;;  %v854_v13 = vsel %vm530_vm1, %v2161_v5, 0.0 }
 0x134   :  { %v1608_v52 = vadd.f32 %v1607_v42, %v1606_v45  ;;  %v1214_v42 = vmul.f32 %v2161_v5, %v2161_v5  ;;  %v1629_v50 = vsel %vm530_vm1, %v1213_v36, 0.0 }
 0x135   :  { %v837_v27 = vadd.f32 %v836_v18, %v835_v21  ;;  %v2165_v18 = vunpack.c.l.bf16 %v2428_v8  ;;  %v856_v19 = vsel %vm530_vm1, %v2162_v12, 0.0  ;;  %v2429_v21 = vld [vmem:[%s3411_s0 + $0x298] sm:$0xff]  }
 0x136   :  { %v1610_v58 = vadd.f32 %v1609_v49, %v1608_v52  ;;  %v1215_v49 = vmul.f32 %v2162_v12, %v2162_v12  ;;  %v1631_v56 = vsel %vm530_vm1, %v1214_v42, 0.0 }
 0x137   :  { %v839_v34 = vadd.f32 %v838_v25, %v837_v27  ;;  %v2166_v25 = vunpack.c.h.bf16 %v2428_v8  ;;  %v858_v26 = vsel %vm530_vm1, %v2165_v18, 0.0 }
 0x138   :  { %v1612_v1 = vadd.f32 %v1611_v55, %v1610_v58  ;;  %v1216_v55 = vmul.f32 %v2165_v18, %v2165_v18  ;;  %v1633_v63 = vsel %vm530_vm1, %v1215_v49, 0.0 }
 0x139   :  { %v841_v40 = vadd.f32 %v840_v31, %v839_v34  ;;  %v2169_v31 = vunpack.c.l.bf16 %v2429_v21  ;;  %v860_v32 = vsel %vm530_vm1, %v2166_v25, 0.0  ;;  %v2430_v34 = vld [vmem:[%s3411_s0 + $0x2a0] sm:$0xff]  }
 0x13a   :  { %v1614_v7 = vadd.f32 %v1613_v62, %v1612_v1  ;;  %v1217_v62 = vmul.f32 %v2166_v25, %v2166_v25  ;;  %v1635_v5 = vsel %vm530_vm1, %v1216_v55, 0.0 }
 0x13b   :  { %v843_v47 = vadd.f32 %v842_v38, %v841_v40  ;;  %v2170_v38 = vunpack.c.h.bf16 %v2429_v21  ;;  %v862_v39 = vsel %vm530_vm1, %v2169_v31, 0.0 }
 0x13c   :  { %v1616_v14 = vadd.f32 %v1615_v4, %v1614_v7  ;;  %v1218_v4 = vmul.f32 %v2169_v31, %v2169_v31  ;;  %v1637_v12 = vsel %vm530_vm1, %v1217_v62, 0.0 }
 0x13d   :  { %v845_v53 = vadd.f32 %v844_v44, %v843_v47  ;;  %v2173_v44 = vunpack.c.l.bf16 %v2430_v34  ;;  %v864_v45 = vsel %vm530_vm1, %v2170_v38, 0.0  ;;  %v2431_v47 = vld [vmem:[%s3411_s0 + $0x2a8] sm:$0xff]  }
 0x13e   :  { %v1618_v20 = vadd.f32 %v1617_v11, %v1616_v14  ;;  %v1219_v11 = vmul.f32 %v2170_v38, %v2170_v38  ;;  %v1639_v18 = vsel %vm530_vm1, %v1218_v4, 0.0 }
 0x13f   :  { %v847_v60 = vadd.f32 %v846_v51, %v845_v53  ;;  %v2174_v51 = vunpack.c.h.bf16 %v2430_v34  ;;  %v866_v52 = vsel %vm530_vm1, %v2173_v44, 0.0 }
 0x140   :  { %v1620_v27 = vadd.f32 %v1619_v17, %v1618_v20  ;;  %v1220_v17 = vmul.f32 %v2173_v44, %v2173_v44  ;;  %v1641_v25 = vsel %vm530_vm1, %v1219_v11, 0.0 }
 0x141   :  { %v849_v2 = vadd.f32 %v848_v57, %v847_v60  ;;  %v2177_v57 = vunpack.c.l.bf16 %v2431_v47  ;;  %v868_v58 = vsel %vm530_vm1, %v2174_v51, 0.0  ;;  %v2432_v60 = vld [vmem:[%s3411_s0 + $0x2b0] sm:$0xff]  }
 0x142   :  { %v1622_v33 = vadd.f32 %v1621_v24, %v1620_v27  ;;  %v1221_v24 = vmul.f32 %v2174_v51, %v2174_v51  ;;  %v1643_v31 = vsel %vm530_vm1, %v1220_v17, 0.0 }
 0x143   :  { %v851_v9 = vadd.f32 %v850_v0, %v849_v2  ;;  %v2178_v0 = vunpack.c.h.bf16 %v2431_v47  ;;  %v870_v1 = vsel %vm530_vm1, %v2177_v57, 0.0 }
 0x144   :  { %v1624_v40 = vadd.f32 %v1623_v30, %v1622_v33  ;;  %v1222_v30 = vmul.f32 %v2177_v57, %v2177_v57  ;;  %v1645_v38 = vsel %vm530_vm1, %v1221_v24, 0.0 }
 0x145   :  { %v853_v15 = vadd.f32 %v852_v6, %v851_v9  ;;  %v2181_v6 = vunpack.c.l.bf16 %v2432_v60  ;;  %v872_v7 = vsel %vm530_vm1, %v2178_v0, 0.0  ;;  %v2433_v9 = vld [vmem:[%s3411_s0 + $0x2b8] sm:$0xff]  }
 0x146   :  { %v1626_v46 = vadd.f32 %v1625_v37, %v1624_v40  ;;  %v1223_v37 = vmul.f32 %v2178_v0, %v2178_v0  ;;  %v1647_v44 = vsel %vm530_vm1, %v1222_v30, 0.0 }
 0x147   :  { %v855_v22 = vadd.f32 %v854_v13, %v853_v15  ;;  %v2182_v13 = vunpack.c.h.bf16 %v2432_v60  ;;  %v874_v14 = vsel %vm530_vm1, %v2181_v6, 0.0 }
 0x148   :  { %v1628_v53 = vadd.f32 %v1627_v43, %v1626_v46  ;;  %v1224_v43 = vmul.f32 %v2181_v6, %v2181_v6  ;;  %v1649_v51 = vsel %vm530_vm1, %v1223_v37, 0.0 }
 0x149   :  { %v857_v28 = vadd.f32 %v856_v19, %v855_v22  ;;  %v2185_v19 = vunpack.c.l.bf16 %v2433_v9  ;;  %v876_v20 = vsel %vm530_vm1, %v2182_v13, 0.0  ;;  %v2434_v22 = vld [vmem:[%s3411_s0 + $0x2c0] sm:$0xff]  }
 0x14a   :  { %v1630_v59 = vadd.f32 %v1629_v50, %v1628_v53  ;;  %v1225_v50 = vmul.f32 %v2182_v13, %v2182_v13  ;;  %v1651_v57 = vsel %vm530_vm1, %v1224_v43, 0.0 }
 0x14b   :  { %v859_v35 = vadd.f32 %v858_v26, %v857_v28  ;;  %v2186_v26 = vunpack.c.h.bf16 %v2433_v9  ;;  %v878_v27 = vsel %vm530_vm1, %v2185_v19, 0.0 }
 0x14c   :  { %v1632_v2 = vadd.f32 %v1631_v56, %v1630_v59  ;;  %v1226_v56 = vmul.f32 %v2185_v19, %v2185_v19  ;;  %v1653_v0 = vsel %vm530_vm1, %v1225_v50, 0.0 }
 0x14d   :  { %v861_v41 = vadd.f32 %v860_v32, %v859_v35  ;;  %v2189_v32 = vunpack.c.l.bf16 %v2434_v22  ;;  %v880_v33 = vsel %vm530_vm1, %v2186_v26, 0.0  ;;  %v2435_v35 = vld [vmem:[%s3411_s0 + $0x2c8] sm:$0xff]  }
 0x14e   :  { %v1634_v8 = vadd.f32 %v1633_v63, %v1632_v2  ;;  %v1227_v63 = vmul.f32 %v2186_v26, %v2186_v26  ;;  %v1655_v6 = vsel %vm530_vm1, %v1226_v56, 0.0 }
 0x14f   :  { %v863_v48 = vadd.f32 %v862_v39, %v861_v41  ;;  %v2190_v39 = vunpack.c.h.bf16 %v2434_v22  ;;  %v882_v40 = vsel %vm530_vm1, %v2189_v32, 0.0 }
 0x150   :  { %v1636_v15 = vadd.f32 %v1635_v5, %v1634_v8  ;;  %v1228_v5 = vmul.f32 %v2189_v32, %v2189_v32  ;;  %v1657_v13 = vsel %vm530_vm1, %v1227_v63, 0.0 }
 0x151   :  { %v865_v54 = vadd.f32 %v864_v45, %v863_v48  ;;  %v2193_v45 = vunpack.c.l.bf16 %v2435_v35  ;;  %v884_v46 = vsel %vm530_vm1, %v2190_v39, 0.0  ;;  %v2436_v48 = vld [vmem:[%s3411_s0 + $0x2d0] sm:$0xff]  }
 0x152   :  { %v1638_v21 = vadd.f32 %v1637_v12, %v1636_v15  ;;  %v1229_v12 = vmul.f32 %v2190_v39, %v2190_v39  ;;  %v1659_v19 = vsel %vm530_vm1, %v1228_v5, 0.0 }
 0x153   :  { %v867_v61 = vadd.f32 %v866_v52, %v865_v54  ;;  %v2194_v52 = vunpack.c.h.bf16 %v2435_v35  ;;  %v886_v53 = vsel %vm530_vm1, %v2193_v45, 0.0 }
 0x154   :  { %v1640_v28 = vadd.f32 %v1639_v18, %v1638_v21  ;;  %v1230_v18 = vmul.f32 %v2193_v45, %v2193_v45  ;;  %v1661_v26 = vsel %vm530_vm1, %v1229_v12, 0.0 }
 0x155   :  { %v869_v3 = vadd.f32 %v868_v58, %v867_v61  ;;  %v2197_v58 = vunpack.c.l.bf16 %v2436_v48  ;;  %v888_v59 = vsel %vm530_vm1, %v2194_v52, 0.0  ;;  %v2437_v61 = vld [vmem:[%s3411_s0 + $0x2d8] sm:$0xff]  }
 0x156   :  { %v1642_v34 = vadd.f32 %v1641_v25, %v1640_v28  ;;  %v1231_v25 = vmul.f32 %v2194_v52, %v2194_v52  ;;  %v1663_v32 = vsel %vm530_vm1, %v1230_v18, 0.0 }
 0x157   :  { %v871_v10 = vadd.f32 %v870_v1, %v869_v3  ;;  %v2198_v1 = vunpack.c.h.bf16 %v2436_v48  ;;  %v890_v2 = vsel %vm530_vm1, %v2197_v58, 0.0 }
 0x158   :  { %v1644_v41 = vadd.f32 %v1643_v31, %v1642_v34  ;;  %v1232_v31 = vmul.f32 %v2197_v58, %v2197_v58  ;;  %v1665_v39 = vsel %vm530_vm1, %v1231_v25, 0.0 }
 0x159   :  { %v873_v16 = vadd.f32 %v872_v7, %v871_v10  ;;  %v2201_v7 = vunpack.c.l.bf16 %v2437_v61  ;;  %v892_v8 = vsel %vm530_vm1, %v2198_v1, 0.0  ;;  %v2438_v10 = vld [vmem:[%s3411_s0 + $0x2e0] sm:$0xff]  }
 0x15a   :  { %v1646_v47 = vadd.f32 %v1645_v38, %v1644_v41  ;;  %v1233_v38 = vmul.f32 %v2198_v1, %v2198_v1  ;;  %v1667_v45 = vsel %vm530_vm1, %v1232_v31, 0.0 }
 0x15b   :  { %v875_v23 = vadd.f32 %v874_v14, %v873_v16  ;;  %v2202_v14 = vunpack.c.h.bf16 %v2437_v61  ;;  %v894_v15 = vsel %vm530_vm1, %v2201_v7, 0.0 }
 0x15c   :  { %v1648_v54 = vadd.f32 %v1647_v44, %v1646_v47  ;;  %v1234_v44 = vmul.f32 %v2201_v7, %v2201_v7  ;;  %v1669_v52 = vsel %vm530_vm1, %v1233_v38, 0.0 }
 0x15d   :  { %v877_v29 = vadd.f32 %v876_v20, %v875_v23  ;;  %v2205_v20 = vunpack.c.l.bf16 %v2438_v10  ;;  %v896_v21 = vsel %vm530_vm1, %v2202_v14, 0.0  ;;  %v2439_v23 = vld [vmem:[%s3411_s0 + $0x2e8] sm:$0xff]  }
 0x15e   :  { %v1650_v60 = vadd.f32 %v1649_v51, %v1648_v54  ;;  %v1235_v51 = vmul.f32 %v2202_v14, %v2202_v14  ;;  %v1671_v58 = vsel %vm530_vm1, %v1234_v44, 0.0 }
 0x15f   :  { %v879_v36 = vadd.f32 %v878_v27, %v877_v29  ;;  %v2206_v27 = vunpack.c.h.bf16 %v2438_v10  ;;  %v898_v28 = vsel %vm530_vm1, %v2205_v20, 0.0 }
 0x160   :  { %v1652_v3 = vadd.f32 %v1651_v57, %v1650_v60  ;;  %v1236_v57 = vmul.f32 %v2205_v20, %v2205_v20  ;;  %v1673_v1 = vsel %vm530_vm1, %v1235_v51, 0.0 }
 0x161   :  { %v881_v42 = vadd.f32 %v880_v33, %v879_v36  ;;  %v2209_v33 = vunpack.c.l.bf16 %v2439_v23  ;;  %v900_v34 = vsel %vm530_vm1, %v2206_v27, 0.0  ;;  %v2440_v36 = vld [vmem:[%s3411_s0 + $0x2f0] sm:$0xff]  }
 0x162   :  { %v1654_v9 = vadd.f32 %v1653_v0, %v1652_v3  ;;  %v1237_v0 = vmul.f32 %v2206_v27, %v2206_v27  ;;  %v1675_v7 = vsel %vm530_vm1, %v1236_v57, 0.0 }
 0x163   :  { %v883_v49 = vadd.f32 %v882_v40, %v881_v42  ;;  %v2210_v40 = vunpack.c.h.bf16 %v2439_v23  ;;  %v902_v41 = vsel %vm530_vm1, %v2209_v33, 0.0 }
 0x164   :  { %v1656_v16 = vadd.f32 %v1655_v6, %v1654_v9  ;;  %v1238_v6 = vmul.f32 %v2209_v33, %v2209_v33  ;;  %v1677_v14 = vsel %vm530_vm1, %v1237_v0, 0.0 }
 0x165   :  { %v885_v55 = vadd.f32 %v884_v46, %v883_v49  ;;  %v2213_v46 = vunpack.c.l.bf16 %v2440_v36  ;;  %v904_v47 = vsel %vm530_vm1, %v2210_v40, 0.0  ;;  %v2441_v49 = vld [vmem:[%s3411_s0 + $0x2f8] sm:$0xff]  }
 0x166   :  { %v1658_v22 = vadd.f32 %v1657_v13, %v1656_v16  ;;  %v1239_v13 = vmul.f32 %v2210_v40, %v2210_v40  ;;  %v1679_v20 = vsel %vm530_vm1, %v1238_v6, 0.0 }
 0x167   :  { %v887_v62 = vadd.f32 %v886_v53, %v885_v55  ;;  %v2214_v53 = vunpack.c.h.bf16 %v2440_v36  ;;  %v906_v54 = vsel %vm530_vm1, %v2213_v46, 0.0 }
 0x168   :  { %v1660_v29 = vadd.f32 %v1659_v19, %v1658_v22  ;;  %v1240_v19 = vmul.f32 %v2213_v46, %v2213_v46  ;;  %v1681_v27 = vsel %vm530_vm1, %v1239_v13, 0.0 }
 0x169   :  { %v889_v4 = vadd.f32 %v888_v59, %v887_v62  ;;  %v2217_v59 = vunpack.c.l.bf16 %v2441_v49  ;;  %v908_v60 = vsel %vm530_vm1, %v2214_v53, 0.0  ;;  %v2442_v62 = vld [vmem:[%s3411_s0 + $0x300] sm:$0xff]  }
 0x16a   :  { %v1662_v35 = vadd.f32 %v1661_v26, %v1660_v29  ;;  %v1241_v26 = vmul.f32 %v2214_v53, %v2214_v53  ;;  %v1683_v33 = vsel %vm530_vm1, %v1240_v19, 0.0 }
 0x16b   :  { %v891_v11 = vadd.f32 %v890_v2, %v889_v4  ;;  %v2218_v2 = vunpack.c.h.bf16 %v2441_v49  ;;  %v910_v3 = vsel %vm530_vm1, %v2217_v59, 0.0 }
 0x16c   :  { %v1664_v42 = vadd.f32 %v1663_v32, %v1662_v35  ;;  %v1242_v32 = vmul.f32 %v2217_v59, %v2217_v59  ;;  %v1685_v40 = vsel %vm530_vm1, %v1241_v26, 0.0 }
 0x16d   :  { %v893_v17 = vadd.f32 %v892_v8, %v891_v11  ;;  %v2221_v8 = vunpack.c.l.bf16 %v2442_v62  ;;  %v912_v9 = vsel %vm530_vm1, %v2218_v2, 0.0  ;;  %v2443_v11 = vld [vmem:[%s3411_s0 + $0x308] sm:$0xff]  }
 0x16e   :  { %v1666_v48 = vadd.f32 %v1665_v39, %v1664_v42  ;;  %v1243_v39 = vmul.f32 %v2218_v2, %v2218_v2  ;;  %v1687_v46 = vsel %vm530_vm1, %v1242_v32, 0.0 }
 0x16f   :  { %v895_v24 = vadd.f32 %v894_v15, %v893_v17  ;;  %v2222_v15 = vunpack.c.h.bf16 %v2442_v62  ;;  %v914_v16 = vsel %vm530_vm1, %v2221_v8, 0.0 }
 0x170   :  { %v1668_v55 = vadd.f32 %v1667_v45, %v1666_v48  ;;  %v1244_v45 = vmul.f32 %v2221_v8, %v2221_v8  ;;  %v1689_v53 = vsel %vm530_vm1, %v1243_v39, 0.0 }
 0x171   :  { %v897_v30 = vadd.f32 %v896_v21, %v895_v24  ;;  %v2225_v21 = vunpack.c.l.bf16 %v2443_v11  ;;  %v916_v22 = vsel %vm530_vm1, %v2222_v15, 0.0  ;;  %v2444_v24 = vld [vmem:[%s3411_s0 + $0x310] sm:$0xff]  }
 0x172   :  { %v1670_v61 = vadd.f32 %v1669_v52, %v1668_v55  ;;  %v1245_v52 = vmul.f32 %v2222_v15, %v2222_v15  ;;  %v1691_v59 = vsel %vm530_vm1, %v1244_v45, 0.0 }
 0x173   :  { %v899_v37 = vadd.f32 %v898_v28, %v897_v30  ;;  %v2226_v28 = vunpack.c.h.bf16 %v2443_v11  ;;  %v918_v29 = vsel %vm530_vm1, %v2225_v21, 0.0 }
 0x174   :  { %v1672_v4 = vadd.f32 %v1671_v58, %v1670_v61  ;;  %v1246_v58 = vmul.f32 %v2225_v21, %v2225_v21  ;;  %v1693_v2 = vsel %vm530_vm1, %v1245_v52, 0.0 }
 0x175   :  { %v901_v43 = vadd.f32 %v900_v34, %v899_v37  ;;  %v2229_v34 = vunpack.c.l.bf16 %v2444_v24  ;;  %v920_v35 = vsel %vm530_vm1, %v2226_v28, 0.0  ;;  %v2445_v37 = vld [vmem:[%s3411_s0 + $0x318] sm:$0xff]  }
 0x176   :  { %v1674_v10 = vadd.f32 %v1673_v1, %v1672_v4  ;;  %v1247_v1 = vmul.f32 %v2226_v28, %v2226_v28  ;;  %v1695_v8 = vsel %vm530_vm1, %v1246_v58, 0.0 }
 0x177   :  { %v903_v50 = vadd.f32 %v902_v41, %v901_v43  ;;  %v2230_v41 = vunpack.c.h.bf16 %v2444_v24  ;;  %v922_v42 = vsel %vm530_vm1, %v2229_v34, 0.0 }
 0x178   :  { %v1676_v17 = vadd.f32 %v1675_v7, %v1674_v10  ;;  %v1248_v7 = vmul.f32 %v2229_v34, %v2229_v34  ;;  %v1697_v15 = vsel %vm530_vm1, %v1247_v1, 0.0 }
 0x179   :  { %v905_v56 = vadd.f32 %v904_v47, %v903_v50  ;;  %v2233_v47 = vunpack.c.l.bf16 %v2445_v37  ;;  %v924_v48 = vsel %vm530_vm1, %v2230_v41, 0.0  ;;  %v2446_v50 = vld [vmem:[%s3411_s0 + $0x320] sm:$0xff]  }
 0x17a   :  { %v1678_v23 = vadd.f32 %v1677_v14, %v1676_v17  ;;  %v1249_v14 = vmul.f32 %v2230_v41, %v2230_v41  ;;  %v1699_v21 = vsel %vm530_vm1, %v1248_v7, 0.0 }
 0x17b   :  { %v907_v63 = vadd.f32 %v906_v54, %v905_v56  ;;  %v2234_v54 = vunpack.c.h.bf16 %v2445_v37  ;;  %v926_v55 = vsel %vm530_vm1, %v2233_v47, 0.0 }
 0x17c   :  { %v1680_v30 = vadd.f32 %v1679_v20, %v1678_v23  ;;  %v1250_v20 = vmul.f32 %v2233_v47, %v2233_v47  ;;  %v1701_v28 = vsel %vm530_vm1, %v1249_v14, 0.0 }
 0x17d   :  { %v909_v5 = vadd.f32 %v908_v60, %v907_v63  ;;  %v2237_v60 = vunpack.c.l.bf16 %v2446_v50  ;;  %v928_v61 = vsel %vm530_vm1, %v2234_v54, 0.0  ;;  %v2447_v63 = vld [vmem:[%s3411_s0 + $0x328] sm:$0xff]  }
 0x17e   :  { %v1682_v36 = vadd.f32 %v1681_v27, %v1680_v30  ;;  %v1251_v27 = vmul.f32 %v2234_v54, %v2234_v54  ;;  %v1703_v34 = vsel %vm530_vm1, %v1250_v20, 0.0 }
 0x17f   :  { %v911_v12 = vadd.f32 %v910_v3, %v909_v5  ;;  %v2238_v3 = vunpack.c.h.bf16 %v2446_v50  ;;  %v930_v4 = vsel %vm530_vm1, %v2237_v60, 0.0 }
 0x180   :  { %v1684_v43 = vadd.f32 %v1683_v33, %v1682_v36  ;;  %v1252_v33 = vmul.f32 %v2237_v60, %v2237_v60  ;;  %v1705_v41 = vsel %vm530_vm1, %v1251_v27, 0.0 }
 0x181   :  { %v913_v18 = vadd.f32 %v912_v9, %v911_v12  ;;  %v2241_v9 = vunpack.c.l.bf16 %v2447_v63  ;;  %v932_v10 = vsel %vm530_vm1, %v2238_v3, 0.0  ;;  %v2448_v12 = vld [vmem:[%s3411_s0 + $0x330] sm:$0xff]  }
 0x182   :  { %v1686_v49 = vadd.f32 %v1685_v40, %v1684_v43  ;;  %v1253_v40 = vmul.f32 %v2238_v3, %v2238_v3  ;;  %v1707_v47 = vsel %vm530_vm1, %v1252_v33, 0.0 }
 0x183   :  { %v915_v25 = vadd.f32 %v914_v16, %v913_v18  ;;  %v2242_v16 = vunpack.c.h.bf16 %v2447_v63  ;;  %v934_v17 = vsel %vm530_vm1, %v2241_v9, 0.0 }
 0x184   :  { %v1688_v56 = vadd.f32 %v1687_v46, %v1686_v49  ;;  %v1254_v46 = vmul.f32 %v2241_v9, %v2241_v9  ;;  %v1709_v54 = vsel %vm530_vm1, %v1253_v40, 0.0 }
 0x185   :  { %v917_v31 = vadd.f32 %v916_v22, %v915_v25  ;;  %v2245_v22 = vunpack.c.l.bf16 %v2448_v12  ;;  %v936_v23 = vsel %vm530_vm1, %v2242_v16, 0.0  ;;  %v2449_v25 = vld [vmem:[%s3411_s0 + $0x338] sm:$0xff]  }
 0x186   :  { %v1690_v62 = vadd.f32 %v1689_v53, %v1688_v56  ;;  %v1255_v53 = vmul.f32 %v2242_v16, %v2242_v16  ;;  %v1711_v60 = vsel %vm530_vm1, %v1254_v46, 0.0 }
 0x187   :  { %v919_v38 = vadd.f32 %v918_v29, %v917_v31  ;;  %v2246_v29 = vunpack.c.h.bf16 %v2448_v12  ;;  %v938_v30 = vsel %vm530_vm1, %v2245_v22, 0.0 }
 0x188   :  { %v1692_v5 = vadd.f32 %v1691_v59, %v1690_v62  ;;  %v1256_v59 = vmul.f32 %v2245_v22, %v2245_v22  ;;  %v1713_v3 = vsel %vm530_vm1, %v1255_v53, 0.0 }
 0x189   :  { %v921_v44 = vadd.f32 %v920_v35, %v919_v38  ;;  %v2249_v35 = vunpack.c.l.bf16 %v2449_v25  ;;  %v940_v36 = vsel %vm530_vm1, %v2246_v29, 0.0  ;;  %v2450_v38 = vld [vmem:[%s3411_s0 + $0x340] sm:$0xff]  }
 0x18a   :  { %v1694_v11 = vadd.f32 %v1693_v2, %v1692_v5  ;;  %v1257_v2 = vmul.f32 %v2246_v29, %v2246_v29  ;;  %v1715_v9 = vsel %vm530_vm1, %v1256_v59, 0.0 }
 0x18b   :  { %v923_v51 = vadd.f32 %v922_v42, %v921_v44  ;;  %v2250_v42 = vunpack.c.h.bf16 %v2449_v25  ;;  %v942_v43 = vsel %vm530_vm1, %v2249_v35, 0.0 }
 0x18c   :  { %v1696_v18 = vadd.f32 %v1695_v8, %v1694_v11  ;;  %v1258_v8 = vmul.f32 %v2249_v35, %v2249_v35  ;;  %v1717_v16 = vsel %vm530_vm1, %v1257_v2, 0.0 }
 0x18d   :  { %v925_v57 = vadd.f32 %v924_v48, %v923_v51  ;;  %v2253_v48 = vunpack.c.l.bf16 %v2450_v38  ;;  %v944_v49 = vsel %vm530_vm1, %v2250_v42, 0.0  ;;  %v2451_v51 = vld [vmem:[%s3411_s0 + $0x348] sm:$0xff]  }
 0x18e   :  { %v1698_v24 = vadd.f32 %v1697_v15, %v1696_v18  ;;  %v1259_v15 = vmul.f32 %v2250_v42, %v2250_v42  ;;  %v1719_v22 = vsel %vm530_vm1, %v1258_v8, 0.0 }
 0x18f   :  { %v927_v0 = vadd.f32 %v926_v55, %v925_v57  ;;  %v2254_v55 = vunpack.c.h.bf16 %v2450_v38  ;;  %v946_v56 = vsel %vm530_vm1, %v2253_v48, 0.0 }
 0x190   :  { %v1700_v31 = vadd.f32 %v1699_v21, %v1698_v24  ;;  %v1260_v21 = vmul.f32 %v2253_v48, %v2253_v48  ;;  %v1721_v29 = vsel %vm530_vm1, %v1259_v15, 0.0 }
 0x191   :  { %v929_v6 = vadd.f32 %v928_v61, %v927_v0  ;;  %v2257_v61 = vunpack.c.l.bf16 %v2451_v51  ;;  %v948_v62 = vsel %vm530_vm1, %v2254_v55, 0.0  ;;  %v2452_v0 = vld [vmem:[%s3411_s0 + $0x350] sm:$0xff]  }
 0x192   :  { %v1702_v37 = vadd.f32 %v1701_v28, %v1700_v31  ;;  %v1261_v28 = vmul.f32 %v2254_v55, %v2254_v55  ;;  %v1723_v35 = vsel %vm530_vm1, %v1260_v21, 0.0 }
 0x193   :  { %v931_v13 = vadd.f32 %v930_v4, %v929_v6  ;;  %v2258_v4 = vunpack.c.h.bf16 %v2451_v51  ;;  %v950_v5 = vsel %vm530_vm1, %v2257_v61, 0.0 }
 0x194   :  { %v1704_v44 = vadd.f32 %v1703_v34, %v1702_v37  ;;  %v1262_v34 = vmul.f32 %v2257_v61, %v2257_v61  ;;  %v1725_v42 = vsel %vm530_vm1, %v1261_v28, 0.0 }
 0x195   :  { %v933_v19 = vadd.f32 %v932_v10, %v931_v13  ;;  %v2261_v10 = vunpack.c.l.bf16 %v2452_v0  ;;  %v952_v11 = vsel %vm530_vm1, %v2258_v4, 0.0  ;;  %v2453_v13 = vld [vmem:[%s3411_s0 + $0x358] sm:$0xff]  }
 0x196   :  { %v1706_v50 = vadd.f32 %v1705_v41, %v1704_v44  ;;  %v1263_v41 = vmul.f32 %v2258_v4, %v2258_v4  ;;  %v1727_v48 = vsel %vm530_vm1, %v1262_v34, 0.0 }
 0x197   :  { %v935_v26 = vadd.f32 %v934_v17, %v933_v19  ;;  %v2262_v17 = vunpack.c.h.bf16 %v2452_v0  ;;  %v954_v18 = vsel %vm530_vm1, %v2261_v10, 0.0 }
 0x198   :  { %v1708_v57 = vadd.f32 %v1707_v47, %v1706_v50  ;;  %v1264_v47 = vmul.f32 %v2261_v10, %v2261_v10  ;;  %v1729_v55 = vsel %vm530_vm1, %v1263_v41, 0.0 }
 0x199   :  { %v937_v32 = vadd.f32 %v936_v23, %v935_v26  ;;  %v2265_v23 = vunpack.c.l.bf16 %v2453_v13  ;;  %v956_v24 = vsel %vm530_vm1, %v2262_v17, 0.0  ;;  %v2454_v26 = vld [vmem:[%s3411_s0 + $0x360] sm:$0xff]  }
 0x19a   :  { %v1710_v63 = vadd.f32 %v1709_v54, %v1708_v57  ;;  %v1265_v54 = vmul.f32 %v2262_v17, %v2262_v17  ;;  %v1731_v61 = vsel %vm530_vm1, %v1264_v47, 0.0 }
 0x19b   :  { %v939_v39 = vadd.f32 %v938_v30, %v937_v32  ;;  %v2266_v30 = vunpack.c.h.bf16 %v2453_v13  ;;  %v958_v31 = vsel %vm530_vm1, %v2265_v23, 0.0 }
 0x19c   :  { %v1712_v6 = vadd.f32 %v1711_v60, %v1710_v63  ;;  %v1266_v60 = vmul.f32 %v2265_v23, %v2265_v23  ;;  %v1733_v4 = vsel %vm530_vm1, %v1265_v54, 0.0 }
 0x19d   :  { %v941_v45 = vadd.f32 %v940_v36, %v939_v39  ;;  %v2269_v36 = vunpack.c.l.bf16 %v2454_v26  ;;  %v960_v37 = vsel %vm530_vm1, %v2266_v30, 0.0  ;;  %v2455_v39 = vld [vmem:[%s3411_s0 + $0x368] sm:$0xff]  }
 0x19e   :  { %v1714_v12 = vadd.f32 %v1713_v3, %v1712_v6  ;;  %v1267_v3 = vmul.f32 %v2266_v30, %v2266_v30  ;;  %v1735_v10 = vsel %vm530_vm1, %v1266_v60, 0.0 }
 0x19f   :  { %v943_v52 = vadd.f32 %v942_v43, %v941_v45  ;;  %v2270_v43 = vunpack.c.h.bf16 %v2454_v26  ;;  %v962_v44 = vsel %vm530_vm1, %v2269_v36, 0.0 }
 0x1a0   :  { %v1716_v19 = vadd.f32 %v1715_v9, %v1714_v12  ;;  %v1268_v9 = vmul.f32 %v2269_v36, %v2269_v36  ;;  %v1737_v17 = vsel %vm530_vm1, %v1267_v3, 0.0 }
 0x1a1   :  { %v945_v58 = vadd.f32 %v944_v49, %v943_v52  ;;  %v2273_v49 = vunpack.c.l.bf16 %v2455_v39  ;;  %v964_v50 = vsel %vm530_vm1, %v2270_v43, 0.0  ;;  %v2456_v52 = vld [vmem:[%s3411_s0 + $0x370] sm:$0xff]  }
 0x1a2   :  { %v1718_v25 = vadd.f32 %v1717_v16, %v1716_v19  ;;  %v1269_v16 = vmul.f32 %v2270_v43, %v2270_v43  ;;  %v1739_v23 = vsel %vm530_vm1, %v1268_v9, 0.0 }
 0x1a3   :  { %v947_v1 = vadd.f32 %v946_v56, %v945_v58  ;;  %v2274_v56 = vunpack.c.h.bf16 %v2455_v39  ;;  %v966_v57 = vsel %vm530_vm1, %v2273_v49, 0.0 }
 0x1a4   :  { %v1720_v32 = vadd.f32 %v1719_v22, %v1718_v25  ;;  %v1270_v22 = vmul.f32 %v2273_v49, %v2273_v49  ;;  %v1741_v30 = vsel %vm530_vm1, %v1269_v16, 0.0 }
 0x1a5   :  { %v949_v7 = vadd.f32 %v948_v62, %v947_v1  ;;  %v2277_v62 = vunpack.c.l.bf16 %v2456_v52  ;;  %v968_v63 = vsel %vm530_vm1, %v2274_v56, 0.0  ;;  %v2457_v1 = vld [vmem:[%s3411_s0 + $0x378] sm:$0xff]  }
 0x1a6   :  { %v1722_v38 = vadd.f32 %v1721_v29, %v1720_v32  ;;  %v1271_v29 = vmul.f32 %v2274_v56, %v2274_v56  ;;  %v1743_v36 = vsel %vm530_vm1, %v1270_v22, 0.0 }
 0x1a7   :  { %v951_v14 = vadd.f32 %v950_v5, %v949_v7  ;;  %v2278_v5 = vunpack.c.h.bf16 %v2456_v52  ;;  %v970_v6 = vsel %vm530_vm1, %v2277_v62, 0.0 }
 0x1a8   :  { %v1724_v45 = vadd.f32 %v1723_v35, %v1722_v38  ;;  %v1272_v35 = vmul.f32 %v2277_v62, %v2277_v62  ;;  %v1745_v43 = vsel %vm530_vm1, %v1271_v29, 0.0 }
 0x1a9   :  { %v953_v20 = vadd.f32 %v952_v11, %v951_v14  ;;  %v2281_v11 = vunpack.c.l.bf16 %v2457_v1  ;;  %v972_v12 = vsel %vm530_vm1, %v2278_v5, 0.0  ;;  %v2458_v14 = vld [vmem:[%s3411_s0 + $0x380] sm:$0xff]  }
 0x1aa   :  { %v1726_v51 = vadd.f32 %v1725_v42, %v1724_v45  ;;  %v1273_v42 = vmul.f32 %v2278_v5, %v2278_v5  ;;  %v1747_v49 = vsel %vm530_vm1, %v1272_v35, 0.0 }
 0x1ab   :  { %v955_v27 = vadd.f32 %v954_v18, %v953_v20  ;;  %v2282_v18 = vunpack.c.h.bf16 %v2457_v1  ;;  %v974_v19 = vsel %vm530_vm1, %v2281_v11, 0.0 }
 0x1ac   :  { %v1728_v58 = vadd.f32 %v1727_v48, %v1726_v51  ;;  %v1274_v48 = vmul.f32 %v2281_v11, %v2281_v11  ;;  %v1749_v56 = vsel %vm530_vm1, %v1273_v42, 0.0 }
 0x1ad   :  { %v957_v33 = vadd.f32 %v956_v24, %v955_v27  ;;  %v2285_v24 = vunpack.c.l.bf16 %v2458_v14  ;;  %v976_v25 = vsel %vm530_vm1, %v2282_v18, 0.0  ;;  %v2459_v27 = vld [vmem:[%s3411_s0 + $0x388] sm:$0xff]  }
 0x1ae   :  { %v1730_v0 = vadd.f32 %v1729_v55, %v1728_v58  ;;  %v1275_v55 = vmul.f32 %v2282_v18, %v2282_v18  ;;  %v1751_v62 = vsel %vm530_vm1, %v1274_v48, 0.0 }
 0x1af   :  { %v959_v40 = vadd.f32 %v958_v31, %v957_v33  ;;  %v2286_v31 = vunpack.c.h.bf16 %v2458_v14  ;;  %v978_v32 = vsel %vm530_vm1, %v2285_v24, 0.0 }
 0x1b0   :  { %v1732_v7 = vadd.f32 %v1731_v61, %v1730_v0  ;;  %v1276_v61 = vmul.f32 %v2285_v24, %v2285_v24  ;;  %v1753_v5 = vsel %vm530_vm1, %v1275_v55, 0.0 }
 0x1b1   :  { %v961_v46 = vadd.f32 %v960_v37, %v959_v40  ;;  %v2289_v37 = vunpack.c.l.bf16 %v2459_v27  ;;  %v980_v38 = vsel %vm530_vm1, %v2286_v31, 0.0  ;;  %v2460_v40 = vld [vmem:[%s3411_s0 + $0x390] sm:$0xff]  }
 0x1b2   :  { %v1734_v13 = vadd.f32 %v1733_v4, %v1732_v7  ;;  %v1277_v4 = vmul.f32 %v2286_v31, %v2286_v31  ;;  %v1755_v11 = vsel %vm530_vm1, %v1276_v61, 0.0 }
 0x1b3   :  { %v963_v53 = vadd.f32 %v962_v44, %v961_v46  ;;  %v2290_v44 = vunpack.c.h.bf16 %v2459_v27  ;;  %v982_v45 = vsel %vm530_vm1, %v2289_v37, 0.0 }
 0x1b4   :  { %v1736_v20 = vadd.f32 %v1735_v10, %v1734_v13  ;;  %v1278_v10 = vmul.f32 %v2289_v37, %v2289_v37  ;;  %v1757_v18 = vsel %vm530_vm1, %v1277_v4, 0.0 }
 0x1b5   :  { %v965_v59 = vadd.f32 %v964_v50, %v963_v53  ;;  %v2293_v50 = vunpack.c.l.bf16 %v2460_v40  ;;  %v984_v51 = vsel %vm530_vm1, %v2290_v44, 0.0  ;;  %v2461_v53 = vld [vmem:[%s3411_s0 + $0x398] sm:$0xff]  }
 0x1b6   :  { %v1738_v26 = vadd.f32 %v1737_v17, %v1736_v20  ;;  %v1279_v17 = vmul.f32 %v2290_v44, %v2290_v44  ;;  %v1759_v24 = vsel %vm530_vm1, %v1278_v10, 0.0 }
 0x1b7   :  { %v967_v2 = vadd.f32 %v966_v57, %v965_v59  ;;  %v2294_v57 = vunpack.c.h.bf16 %v2460_v40  ;;  %v986_v58 = vsel %vm530_vm1, %v2293_v50, 0.0 }
 0x1b8   :  { %v1740_v33 = vadd.f32 %v1739_v23, %v1738_v26  ;;  %v1280_v23 = vmul.f32 %v2293_v50, %v2293_v50  ;;  %v1761_v31 = vsel %vm530_vm1, %v1279_v17, 0.0 }
 0x1b9   :  { %v969_v8 = vadd.f32 %v968_v63, %v967_v2  ;;  %v2297_v63 = vunpack.c.l.bf16 %v2461_v53  ;;  %v988_v0 = vsel %vm530_vm1, %v2294_v57, 0.0  ;;  %v2462_v2 = vld [vmem:[%s3411_s0 + $0x3a0] sm:$0xff]  }
 0x1ba   :  { %v1742_v39 = vadd.f32 %v1741_v30, %v1740_v33  ;;  %v1281_v30 = vmul.f32 %v2294_v57, %v2294_v57  ;;  %v1763_v37 = vsel %vm530_vm1, %v1280_v23, 0.0 }
 0x1bb   :  { %v971_v15 = vadd.f32 %v970_v6, %v969_v8  ;;  %v2298_v6 = vunpack.c.h.bf16 %v2461_v53  ;;  %v990_v7 = vsel %vm530_vm1, %v2297_v63, 0.0 }
 0x1bc   :  { %v1744_v46 = vadd.f32 %v1743_v36, %v1742_v39  ;;  %v1282_v36 = vmul.f32 %v2297_v63, %v2297_v63  ;;  %v1765_v44 = vsel %vm530_vm1, %v1281_v30, 0.0 }
 0x1bd   :  { %v973_v21 = vadd.f32 %v972_v12, %v971_v15  ;;  %v2301_v12 = vunpack.c.l.bf16 %v2462_v2  ;;  %v992_v13 = vsel %vm530_vm1, %v2298_v6, 0.0  ;;  %v2463_v15 = vld [vmem:[%s3411_s0 + $0x3a8] sm:$0xff]  }
 0x1be   :  { %v1746_v52 = vadd.f32 %v1745_v43, %v1744_v46  ;;  %v1283_v43 = vmul.f32 %v2298_v6, %v2298_v6  ;;  %v1767_v50 = vsel %vm530_vm1, %v1282_v36, 0.0 }
 0x1bf   :  { %v975_v28 = vadd.f32 %v974_v19, %v973_v21  ;;  %v2302_v19 = vunpack.c.h.bf16 %v2462_v2  ;;  %v994_v20 = vsel %vm530_vm1, %v2301_v12, 0.0 }
 0x1c0   :  { %v1748_v59 = vadd.f32 %v1747_v49, %v1746_v52  ;;  %v1284_v49 = vmul.f32 %v2301_v12, %v2301_v12  ;;  %v1769_v57 = vsel %vm530_vm1, %v1283_v43, 0.0 }
 0x1c1   :  { %v977_v34 = vadd.f32 %v976_v25, %v975_v28  ;;  %v2305_v25 = vunpack.c.l.bf16 %v2463_v15  ;;  %v996_v26 = vsel %vm530_vm1, %v2302_v19, 0.0  ;;  %v2464_v28 = vld [vmem:[%s3411_s0 + $0x3b0] sm:$0xff]  }
 0x1c2   :  { %v1750_v1 = vadd.f32 %v1749_v56, %v1748_v59  ;;  %v1285_v56 = vmul.f32 %v2302_v19, %v2302_v19  ;;  %v1771_v63 = vsel %vm530_vm1, %v1284_v49, 0.0 }
 0x1c3   :  { %v979_v41 = vadd.f32 %v978_v32, %v977_v34  ;;  %v2306_v32 = vunpack.c.h.bf16 %v2463_v15  ;;  %v998_v33 = vsel %vm530_vm1, %v2305_v25, 0.0 }
 0x1c4   :  { %v1752_v8 = vadd.f32 %v1751_v62, %v1750_v1  ;;  %v1286_v62 = vmul.f32 %v2305_v25, %v2305_v25  ;;  %v1773_v6 = vsel %vm530_vm1, %v1285_v56, 0.0 }
 0x1c5   :  { %v981_v47 = vadd.f32 %v980_v38, %v979_v41  ;;  %v2309_v38 = vunpack.c.l.bf16 %v2464_v28  ;;  %v1000_v39 = vsel %vm530_vm1, %v2306_v32, 0.0  ;;  %v2465_v41 = vld [vmem:[%s3411_s0 + $0x3b8] sm:$0xff]  }
 0x1c6   :  { %v1754_v14 = vadd.f32 %v1753_v5, %v1752_v8  ;;  %v1287_v5 = vmul.f32 %v2306_v32, %v2306_v32  ;;  %v1775_v12 = vsel %vm530_vm1, %v1286_v62, 0.0 }
 0x1c7   :  { %v983_v54 = vadd.f32 %v982_v45, %v981_v47  ;;  %v2310_v45 = vunpack.c.h.bf16 %v2464_v28  ;;  %v1002_v46 = vsel %vm530_vm1, %v2309_v38, 0.0 }
 0x1c8   :  { %v1756_v21 = vadd.f32 %v1755_v11, %v1754_v14  ;;  %v1288_v11 = vmul.f32 %v2309_v38, %v2309_v38  ;;  %v1777_v19 = vsel %vm530_vm1, %v1287_v5, 0.0 }
 0x1c9   :  { %v985_v60 = vadd.f32 %v984_v51, %v983_v54  ;;  %v2313_v51 = vunpack.c.l.bf16 %v2465_v41  ;;  %v1004_v52 = vsel %vm530_vm1, %v2310_v45, 0.0  ;;  %v2466_v54 = vld [vmem:[%s3411_s0 + $0x3c0] sm:$0xff]  }
 0x1ca   :  { %v1758_v27 = vadd.f32 %v1757_v18, %v1756_v21  ;;  %v1289_v18 = vmul.f32 %v2310_v45, %v2310_v45  ;;  %v1779_v25 = vsel %vm530_vm1, %v1288_v11, 0.0 }
 0x1cb   :  { %v987_v3 = vadd.f32 %v986_v58, %v985_v60  ;;  %v2314_v58 = vunpack.c.h.bf16 %v2465_v41  ;;  %v1006_v59 = vsel %vm530_vm1, %v2313_v51, 0.0 }
 0x1cc   :  { %v1760_v34 = vadd.f32 %v1759_v24, %v1758_v27  ;;  %v1290_v24 = vmul.f32 %v2313_v51, %v2313_v51  ;;  %v1781_v32 = vsel %vm530_vm1, %v1289_v18, 0.0 }
 0x1cd   :  { %v989_v9 = vadd.f32 %v988_v0, %v987_v3  ;;  %v2317_v0 = vunpack.c.l.bf16 %v2466_v54  ;;  %v1008_v1 = vsel %vm530_vm1, %v2314_v58, 0.0  ;;  %v2467_v3 = vld [vmem:[%s3411_s0 + $0x3c8] sm:$0xff]  }
 0x1ce   :  { %v1762_v40 = vadd.f32 %v1761_v31, %v1760_v34  ;;  %v1291_v31 = vmul.f32 %v2314_v58, %v2314_v58  ;;  %v1783_v38 = vsel %vm530_vm1, %v1290_v24, 0.0 }
 0x1cf   :  { %v991_v16 = vadd.f32 %v990_v7, %v989_v9  ;;  %v2318_v7 = vunpack.c.h.bf16 %v2466_v54  ;;  %v1010_v8 = vsel %vm530_vm1, %v2317_v0, 0.0 }
 0x1d0   :  { %v1764_v47 = vadd.f32 %v1763_v37, %v1762_v40  ;;  %v1292_v37 = vmul.f32 %v2317_v0, %v2317_v0  ;;  %v1785_v45 = vsel %vm530_vm1, %v1291_v31, 0.0 }
 0x1d1   :  { %v993_v22 = vadd.f32 %v992_v13, %v991_v16  ;;  %v2321_v13 = vunpack.c.l.bf16 %v2467_v3  ;;  %v1012_v14 = vsel %vm530_vm1, %v2318_v7, 0.0  ;;  %v2468_v16 = vld [vmem:[%s3411_s0 + $0x3d0] sm:$0xff]  }
 0x1d2   :  { %v1766_v53 = vadd.f32 %v1765_v44, %v1764_v47  ;;  %v1293_v44 = vmul.f32 %v2318_v7, %v2318_v7  ;;  %v1787_v51 = vsel %vm530_vm1, %v1292_v37, 0.0 }
 0x1d3   :  { %v995_v29 = vadd.f32 %v994_v20, %v993_v22  ;;  %v2322_v20 = vunpack.c.h.bf16 %v2467_v3  ;;  %v1014_v21 = vsel %vm530_vm1, %v2321_v13, 0.0 }
 0x1d4   :  { %v1768_v60 = vadd.f32 %v1767_v50, %v1766_v53  ;;  %v1294_v50 = vmul.f32 %v2321_v13, %v2321_v13  ;;  %v1789_v58 = vsel %vm530_vm1, %v1293_v44, 0.0 }
 0x1d5   :  { %v997_v35 = vadd.f32 %v996_v26, %v995_v29  ;;  %v2325_v26 = vunpack.c.l.bf16 %v2468_v16  ;;  %v1016_v27 = vsel %vm530_vm1, %v2322_v20, 0.0  ;;  %v2469_v29 = vld [vmem:[%s3411_s0 + $0x3d8] sm:$0xff]  }
 0x1d6   :  { %v1770_v2 = vadd.f32 %v1769_v57, %v1768_v60  ;;  %v1295_v57 = vmul.f32 %v2322_v20, %v2322_v20  ;;  %v1791_v0 = vsel %vm530_vm1, %v1294_v50, 0.0 }
 0x1d7   :  { %v999_v42 = vadd.f32 %v998_v33, %v997_v35  ;;  %v2326_v33 = vunpack.c.h.bf16 %v2468_v16  ;;  %v1018_v34 = vsel %vm530_vm1, %v2325_v26, 0.0 }
 0x1d8   :  { %v1772_v9 = vadd.f32 %v1771_v63, %v1770_v2  ;;  %v1296_v63 = vmul.f32 %v2325_v26, %v2325_v26  ;;  %v1793_v7 = vsel %vm530_vm1, %v1295_v57, 0.0 }
 0x1d9   :  { %v1001_v48 = vadd.f32 %v1000_v39, %v999_v42  ;;  %v2329_v39 = vunpack.c.l.bf16 %v2469_v29  ;;  %v1020_v40 = vsel %vm530_vm1, %v2326_v33, 0.0  ;;  %v2470_v42 = vld [vmem:[%s3411_s0 + $0x3e0] sm:$0xff]  }
 0x1da   :  { %v1774_v15 = vadd.f32 %v1773_v6, %v1772_v9  ;;  %v1297_v6 = vmul.f32 %v2326_v33, %v2326_v33  ;;  %v1795_v13 = vsel %vm530_vm1, %v1296_v63, 0.0 }
 0x1db   :  { %v1003_v55 = vadd.f32 %v1002_v46, %v1001_v48  ;;  %v2330_v46 = vunpack.c.h.bf16 %v2469_v29  ;;  %v1022_v47 = vsel %vm530_vm1, %v2329_v39, 0.0 }
 0x1dc   :  { %v1776_v22 = vadd.f32 %v1775_v12, %v1774_v15  ;;  %v1298_v12 = vmul.f32 %v2329_v39, %v2329_v39  ;;  %v1797_v20 = vsel %vm530_vm1, %v1297_v6, 0.0 }
 0x1dd   :  { %v1005_v61 = vadd.f32 %v1004_v52, %v1003_v55  ;;  %v2333_v52 = vunpack.c.l.bf16 %v2470_v42  ;;  %v1024_v53 = vsel %vm530_vm1, %v2330_v46, 0.0  ;;  %v2471_v55 = vld [vmem:[%s3411_s0 + $0x3e8] sm:$0xff]  }
 0x1de   :  { %v1778_v28 = vadd.f32 %v1777_v19, %v1776_v22  ;;  %v1299_v19 = vmul.f32 %v2330_v46, %v2330_v46  ;;  %v1799_v26 = vsel %vm530_vm1, %v1298_v12, 0.0  ;;  %v1051_v12 = vld [vmem:[%s3410_s2] sm:$0x1] }
 0x1df   :  { %v1007_v4 = vadd.f32 %v1006_v59, %v1005_v61  ;;  %v2334_v59 = vunpack.c.h.bf16 %v2470_v42  ;;  %v1026_v60 = vsel %vm530_vm1, %v2333_v52, 0.0 }
 0x1e0   :  { %v1780_v35 = vadd.f32 %v1779_v25, %v1778_v28  ;;  %v1300_v25 = vmul.f32 %v2333_v52, %v2333_v52 }
 0x1e1   :  { %v1009_v10 = vadd.f32 %v1008_v1, %v1007_v4  ;;  %v2337_v1 = vunpack.c.l.bf16 %v2471_v55  ;;  %v1028_v2 = vsel %vm530_vm1, %v2334_v59, 0.0  ;;  %v2472_v4 = vld [vmem:[%s3411_s0 + $0x3f0] sm:$0xff]   ;;  %v1301_v31 = vmul.f32 %v2334_v59, %v2334_v59 }
 0x1e2   :  { %v1782_v41 = vadd.f32 %v1781_v32, %v1780_v35  ;;  %v1801_v32 = vsel %vm530_vm1, %v1299_v19, 0.0 }
 0x1e3   :  { %v1011_v17 = vadd.f32 %v1010_v8, %v1009_v10  ;;  %v2338_v8 = vunpack.c.h.bf16 %v2471_v55  ;;  %v1030_v9 = vsel %vm530_vm1, %v2337_v1, 0.0  ;;  %v1302_v37 = vmul.f32 %v2337_v1, %v2337_v1 }
 0x1e4   :  { %v1784_v48 = vadd.f32 %v1783_v38, %v1782_v41  ;;  %v1803_v38 = vsel %vm530_vm1, %v1300_v25, 0.0 }
 0x1e5   :  { %v1013_v23 = vadd.f32 %v1012_v14, %v1011_v17  ;;  %v2341_v14 = vunpack.c.l.bf16 %v2472_v4  ;;  %v1032_v15 = vsel %vm530_vm1, %v2338_v8, 0.0  ;;  %v2473_v17 = vld [vmem:[%s3411_s0 + $0x3f8] sm:$0xff]   ;;  %v1303_v42 = vmul.f32 %v2338_v8, %v2338_v8 }
 0x1e6   :  { %v1786_v54 = vadd.f32 %v1785_v45, %v1784_v48  ;;  %v2346_v33 = vunpack.c.h.bf16 %v2473_v17 }
 0x1e7   :  { %v1015_v30 = vadd.f32 %v1014_v21, %v1013_v23  ;;  %v2342_v21 = vunpack.c.h.bf16 %v2472_v4  ;;  %v1034_v22 = vsel %vm530_vm1, %v2341_v14, 0.0  ;;  %v1304_v46 = vmul.f32 %v2341_v14, %v2341_v14 }
 0x1e8   :  { %v1788_v61 = vadd.f32 %v1787_v51, %v1786_v54  ;;  %v1040_v39 = vsel %vm530_vm1, %v2346_v33, 0.0  ;;  %v1809_v51 = vsel %vm530_vm1, %v1303_v42, 0.0 }
 0x1e9   :  { %v1017_v36 = vadd.f32 %v1016_v27, %v1015_v30  ;;  %v2345_v27 = vunpack.c.l.bf16 %v2473_v17  ;;  %v1036_v28 = vsel %vm530_vm1, %v2342_v21, 0.0  ;;  %v1305_v50 = vmul.f32 %v2342_v21, %v2342_v21 }
 0x1ea   :  { %v1790_v3 = vadd.f32 %v1789_v58, %v1788_v61  ;;  %v1811_v55 = vsel %vm530_vm1, %v1304_v46, 0.0  ;;  %v1307_v58 = vmul.f32 %v2346_v33, %v2346_v33 }
 0x1eb   :  { %v1019_v43 = vadd.f32 %v1018_v34, %v1017_v36  ;;  %v1038_v34 = vsel %vm530_vm1, %v2345_v27, 0.0  ;;  %v1306_v54 = vmul.f32 %v2345_v27, %v2345_v27  ;;  %v1813_v59 = vsel %vm530_vm1, %v1305_v50, 0.0 }
 0x1ec   :  { %v1792_v10 = vadd.f32 %v1791_v0, %v1790_v3  ;;  %v1817_v1 = vsel %vm530_vm1, %v1307_v58, 0.0 }
 0x1ed   :  { %v1021_v49 = vadd.f32 %v1020_v40, %v1019_v43  ;;  %v1805_v43 = vsel %vm530_vm1, %v1301_v31, 0.0 }
 0x1ee   :  { %v1794_v16 = vadd.f32 %v1793_v7, %v1792_v10 }
 0x1ef   :  { %v1023_v56 = vadd.f32 %v1022_v47, %v1021_v49  ;;  %v1807_v47 = vsel %vm530_vm1, %v1302_v37, 0.0 }
 0x1f0   :  { %v1796_v23 = vadd.f32 %v1795_v13, %v1794_v16 }
 0x1f1   :  { %v1025_v62 = vadd.f32 %v1024_v53, %v1023_v56 }
 0x1f2   :  { %v1798_v29 = vadd.f32 %v1797_v20, %v1796_v23 }
 0x1f3   :  { %v1027_v5 = vadd.f32 %v1026_v60, %v1025_v62  ;;  %v1815_v62 = vsel %vm530_vm1, %v1306_v54, 0.0 }
 0x1f4   :  { %v1800_v35 = vadd.f32 %v1799_v26, %v1798_v29 }
 0x1f5   :  { %v1029_v11 = vadd.f32 %v1028_v2, %v1027_v5  ;;  %v529_v2 = vld [vmem:[%s3409_s1] sm:$0x1] }
 0x1f6   :  { %v1802_v40 = vadd.f32 %v1801_v32, %v1800_v35 }
 0x1f7   :  { %v1031_v18 = vadd.f32 %v1030_v9, %v1029_v11 }
 0x1f8   :  { %v1804_v44 = vadd.f32 %v1803_v38, %v1802_v40 }
 0x1f9   :  { %v1033_v24 = vadd.f32 %v1032_v15, %v1031_v18 }
 0x1fa   :  { %v1806_v48 = vadd.f32 %v1805_v43, %v1804_v44 }
 0x1fb   :  { %v1035_v30 = vadd.f32 %v1034_v22, %v1033_v24 }
 0x1fc   :  { %v1808_v52 = vadd.f32 %v1807_v47, %v1806_v48 }
 0x1fd   :  { %v1037_v36 = vadd.f32 %v1036_v28, %v1035_v30 }
 0x1fe   :  { %v1810_v56 = vadd.f32 %v1809_v51, %v1808_v52 }
 0x1ff   :  { %v1039_v41 = vadd.f32 %v1038_v34, %v1037_v36 }
 0x200   :  { %v1812_v60 = vadd.f32 %v1811_v55, %v1810_v56 }
 0x201   :  { %v1041_v45 = vadd.f32 %v1040_v39, %v1039_v41 }
 0x202   :  { %v1814_v63 = vadd.f32 %v1813_v59, %v1812_v60 }
 0x203   :  { %v1042_v49 = vrot.slane %v1041_v45, 4 }
 0x204   :  { %v1816_v3 = vadd.f32 %v1815_v62, %v1814_v63 }
 0x205   :  { %v1043_v53 = vadd.f32 %v1042_v49, %v1041_v45 }
 0x206   :  { %v1818_v5 = vadd.f32 %v1817_v1, %v1816_v3 }
 0x207   :  { %v1044_v57 = vrot.slane %v1043_v53, 2 }
 0x208   :  { %v1819_v7 = vrot.slane %v1818_v5, 4 }
 0x209   :  { %v1045_v61 = vadd.f32 %v1044_v57, %v1043_v53 }
 0x20a   :  { %v1820_v8 = vadd.f32 %v1819_v7, %v1818_v5 }
 0x20b   :  { %v1046_v0 = vrot.slane %v1045_v61, 1 }
 0x20c   :  { %v1821_v9 = vrot.slane %v1820_v8, 2 }
 0x20d   :  { %v1047_v4 = vadd.f32 %v1046_v0, %v1045_v61 }
 0x20e   :  { %v1822_v10 = vadd.f32 %v1821_v9, %v1820_v8 }
 0x20f   :  { %v1048_v6 = vadd.f32 %v1047_v4, %v529_v2 }
 0x210   :  { %v1823_v11 = vrot.slane %v1822_v10, 1 }
 0x211   :  { %1050 = vst.msk [vmem:[%s3409_s1] sm:$0x1] %vm14_vm0, %v1048_v6 }
 0x212   :  { %v1824_v13 = vadd.f32 %v1823_v11, %v1822_v10 }
 0x214   :  { %v1825_v14 = vadd.f32 %v1824_v13, %v1051_v12 }
 0x216   :  { %1826 = vst.msk [vmem:[%s3410_s2] sm:$0x1] %vm14_vm0, %v1825_v14 }

// kernel: netg_forward.18
= control target key start
LH: loop header
LB: loop body
LE: loop exit
PB: predicated region body
PF: predicated region fallthrough
CT: control target
= control target key end

     0   :  { %s2586_s15 = smov 0   ;;  %s3085_s0 = inlined_call_operand.vmem [shape: bf16[2048,16], index: 0, kind: input, shape index: {}]   ;;  %s3086_s1 = inlined_call_operand.vmem [shape: f32[1,16], index: 1, kind: input, shape index: {}]   ;;  %s3087_s2 = inlined_call_operand.vmem [shape: f32[1,16], index: 2, kind: input, shape index: {}]   ;;  %s3088_s3 = inlined_call_operand.vmem [shape: bf16[16,128], index: 3, kind: input, shape index: {}]   ;;  %s3089_s4 = inlined_call_operand.vmem [shape: bf16[2048,128], index: 4, kind: output, shape index: {}]  }
   0x1 LB: > { %s1756_s16 = sadd.s32 4294967295, %s2559_s15   ;;  %p1760_p0 = scmp.ge.s32.totalorder %s2559_s15, 1  ;;  %s2559_s15 = sphi %s2586_s15, %s14_s15  }
   0x2   : > { %p163_p1 = scmp.lt.s32.totalorder %s2559_s15, 3 }
   0x4   : > { %p164_p2 = pnand %p1760_p0, %p163_p1 }
   0x5   : > { %s1761_s19 = sshll.u32 (!%p164_p2), %s1756_s16, 7 }
   0x6   : > { %167 = sbr.rel (%p164_p2) target bundleno = 411 (0x19b), region = 36  ;;  %p190_p3 = scmp.lt.s32.totalorder (!%p164_p2), %s1761_s19, 255 }
   0xb   : > { %v1835_v0 = vld [vmem:[%s3088_s3] sm:$0xff]  ;;  %s3091_s19 = smov (!%p190_p3, %s1761_s19), 255  ;;  %vm922_vm0 = vcmask 130048  }
   0xc   : > { %1122 = vmatpush.bf16.msra.mxu0 %v1835_v0  ;;  %2538 = vmatpush.bf16.msra.mxu1 %v1835_v0  ;;  %s1762_s20 = sshll.u32 %s3091_s19, 2  ;;  %v2610_v1 = vld [vmem:[%s3086_s1] ss:$0 sm:$0xff] }
   0xd   : > { %2539 = vmatpush.bf16.msra.mxu2 %v1835_v0  ;;  %2540 = vmatpush.bf16.msra.mxu3 %v1835_v0  ;;  %s2605_s23 = scalar_lea.vmem %s3085_s0, %s1762_s20  ;;  %v2618_v7 = vld [vmem:[%s3087_s2] ss:$0 sm:$0xff]  ;;  %s2854_s30 = scalar_lea.vmem %s3089_s4, %s1762_s20 }
   0xe   : > { %v1837_v2 = vld [vmem:[%s2605_s23] sm:$0xff]   ;;  %v2412_v31 = vld [vmem:[%s2605_s23 + $0x8] sm:$0xff]  }
   0xf   : > { %v2427_v3 = vld [vmem:[%s2605_s23 + $0x80] sm:$0xff]   ;;  %v1838_v5 = vunpack.c.l.bf16 %v1837_v2  ;;  %v1839_v6 = vunpack.c.h.bf16 %v1837_v2  ;;  %v2428_v36 = vld [vmem:[%s2605_s23 + $0x88] sm:$0xff]   ;;  %v1842_v44 = vunpack.c.l.bf16 %v2412_v31  ;;  %v1843_v45 = vunpack.c.h.bf16 %v2412_v31 }
  0x10   : > { %v2443_v4 = vld [vmem:[%s2605_s23 + $0x100] sm:$0xff]   ;;  %v1902_v8 = vunpack.c.l.bf16 %v2427_v3  ;;  %v1903_v9 = vunpack.c.h.bf16 %v2427_v3  ;;  %v2444_v41 = vld [vmem:[%s2605_s23 + $0x108] sm:$0xff]   ;;  %v1906_v49 = vunpack.c.l.bf16 %v2428_v36  ;;  %v1907_v50 = vunpack.c.h.bf16 %v2428_v36 }
  0x11   : > { %v2459_v10 = vld [vmem:[%s2605_s23 + $0x180] sm:$0xff]   ;;  %v1966_v11 = vunpack.c.l.bf16 %v2443_v4  ;;  %v1967_v12 = vunpack.c.h.bf16 %v2443_v4  ;;  %v462_v15 = vmul.f32 %v2610_v1, %v1838_v5  ;;  %v463_v16 = vmul.f32 %v2610_v1, %v1839_v6  ;;  %v2460_v46 = vld [vmem:[%s2605_s23 + $0x188] sm:$0xff]  }
  0x12   : > { %v2030_v13 = vunpack.c.l.bf16 %v2459_v10  ;;  %v2031_v14 = vunpack.c.h.bf16 %v2459_v10  ;;  %v494_v17 = vmul.f32 %v2610_v1, %v1902_v8  ;;  %v495_v18 = vmul.f32 %v2610_v1, %v1903_v9 }
  0x13   : > { %v526_v19 = vmul.f32 %v2610_v1, %v1966_v11  ;;  %v527_v20 = vmul.f32 %v2610_v1, %v1967_v12  ;;  %v594_v23 = vadd.f32 %v2618_v7, %v462_v15  ;;  %v595_v24 = vadd.f32 %v2618_v7, %v463_v16 }
  0x14   : > { %v558_v21 = vmul.f32 %v2610_v1, %v2030_v13  ;;  %v559_v22 = vmul.f32 %v2610_v1, %v2031_v14  ;;  %v626_v25 = vadd.f32 %v2618_v7, %v494_v17  ;;  %v627_v26 = vadd.f32 %v2618_v7, %v495_v18  ;;  %v2413_v13 = vld [vmem:[%s2605_s23 + $0x10] sm:$0xff]  }
  0x15   : > { %v658_v27 = vadd.f32 %v2618_v7, %v526_v19  ;;  %v659_v28 = vadd.f32 %v2618_v7, %v527_v20  ;;  %v722_v32 = vmax.f32 %v594_v23, 0.0  ;;  %v723_v33 = vmax.f32 %v595_v24, 0.0  ;;  %v2429_v14 = vld [vmem:[%s2605_s23 + $0x90] sm:$0xff]  }
  0x16   : > { %v690_v29 = vadd.f32 %v2618_v7, %v558_v21  ;;  %v691_v30 = vadd.f32 %v2618_v7, %v559_v22  ;;  %v754_v34 = vmax.f32 %v626_v25, 0.0  ;;  %v755_v35 = vmax.f32 %v627_v26, 0.0  ;;  %v2445_v19 = vld [vmem:[%s2605_s23 + $0x110] sm:$0xff]  }
  0x17   : > { %v786_v37 = vmax.f32 %v658_v27, 0.0  ;;  %v787_v38 = vmax.f32 %v659_v28, 0.0  ;;  %v850_v42 = vpack.c.bf16 %v723_v33, %v722_v32  ;;  %v464_v51 = vmul.f32 %v2610_v1, %v1842_v44  ;;  %v2461_v20 = vld [vmem:[%s2605_s23 + $0x190] sm:$0xff]  }
  0x18   : > { %v818_v39 = vmax.f32 %v690_v29, 0.0  ;;  %v819_v40 = vmax.f32 %v691_v30, 0.0  ;;  %v866_v43 = vpack.c.bf16 %v755_v35, %v754_v34  ;;  %v465_v52 = vmul.f32 %v2610_v1, %v1843_v45 }
  0x19   : > { %v882_v47 = vpack.c.bf16 %v787_v38, %v786_v37  ;;  %1769 = vmatmul.msk.bf16.vlgmr.msra.gmra.mxu0 %vm922_vm0, %v850_v42  ;;  %v1970_v53 = vunpack.c.l.bf16 %v2444_v41  ;;  %v1971_v54 = vunpack.c.h.bf16 %v2444_v41  ;;  %v496_v55 = vmul.f32 %v2610_v1, %v1906_v49 }
  0x1a   : > { %v898_v48 = vpack.c.bf16 %v819_v40, %v818_v39  ;;  %1785 = vmatmul.msk.bf16.vlgmr.msra.gmra.mxu1 %vm922_vm0, %v866_v43  ;;  %v497_v56 = vmul.f32 %v2610_v1, %v1907_v50  ;;  %v2034_v57 = vunpack.c.l.bf16 %v2460_v46  ;;  %v2035_v58 = vunpack.c.h.bf16 %v2460_v46 }
  0x1b   : > { %1801 = vmatmul.msk.bf16.vlgmr.msra.gmra.mxu2 %vm922_vm0, %v882_v47  ;;  %v528_v59 = vmul.f32 %v2610_v1, %v1970_v53  ;;  %v529_v60 = vmul.f32 %v2610_v1, %v1971_v54  ;;  %v596_v63 = vadd.f32 %v2618_v7, %v464_v51  ;;  %v597_v0 = vadd.f32 %v2618_v7, %v465_v52 }
  0x1c   : > { %1817 = vmatmul.msk.bf16.vlgmr.msra.gmra.mxu3 %vm922_vm0, %v898_v48  ;;  %v560_v61 = vmul.f32 %v2610_v1, %v2034_v57  ;;  %v561_v62 = vmul.f32 %v2610_v1, %v2035_v58  ;;  %v628_v2 = vadd.f32 %v2618_v7, %v496_v55  ;;  %v629_v3 = vadd.f32 %v2618_v7, %v497_v56  ;;  %v2414_v55 = vld [vmem:[%s2605_s23 + $0x18] sm:$0xff]  }
  0x1d   : > { %v660_v4 = vadd.f32 %v2618_v7, %v528_v59  ;;  %v661_v5 = vadd.f32 %v2618_v7, %v529_v60  ;;  %v724_v9 = vmax.f32 %v596_v63, 0.0  ;;  %v725_v10 = vmax.f32 %v597_v0, 0.0  ;;  %v2430_v58 = vld [vmem:[%s2605_s23 + $0x98] sm:$0xff]  }
  0x1e   : > { %v692_v6 = vadd.f32 %v2618_v7, %v560_v61  ;;  %v693_v8 = vadd.f32 %v2618_v7, %v561_v62  ;;  %v756_v11 = vmax.f32 %v628_v2, 0.0  ;;  %v757_v12 = vmax.f32 %v629_v3, 0.0  ;;  %v2446_v59 = vld [vmem:[%s2605_s23 + $0x118] sm:$0xff]  }
  0x1f   : > { %v788_v15 = vmax.f32 %v660_v4, 0.0  ;;  %v789_v16 = vmax.f32 %v661_v5, 0.0  ;;  %v1846_v21 = vunpack.c.l.bf16 %v2413_v13  ;;  %v1847_v22 = vunpack.c.h.bf16 %v2413_v13  ;;  %v2462_v60 = vld [vmem:[%s2605_s23 + $0x198] sm:$0xff]  }
  0x20   : > { %v820_v17 = vmax.f32 %v692_v6, 0.0  ;;  %v821_v18 = vmax.f32 %v693_v8, 0.0  ;;  %v1910_v23 = vunpack.c.l.bf16 %v2429_v14  ;;  %v1911_v24 = vunpack.c.h.bf16 %v2429_v14 }
  0x21   : > { %v851_v25 = vpack.c.bf16 %v725_v10, %v724_v9  ;;  %v867_v26 = vpack.c.bf16 %v757_v12, %v756_v11  ;;  %v1974_v27 = vunpack.c.l.bf16 %v2445_v19  ;;  %v1975_v28 = vunpack.c.h.bf16 %v2445_v19 }
  0x22   : > { %v883_v29 = vpack.c.bf16 %v789_v16, %v788_v15  ;;  %v899_v30 = vpack.c.bf16 %v821_v18, %v820_v17  ;;  %v2038_v31 = vunpack.c.l.bf16 %v2461_v20  ;;  %v2039_v32 = vunpack.c.h.bf16 %v2461_v20 }
  0x23   : > { %v466_v33 = vmul.f32 %v2610_v1, %v1846_v21  ;;  %v467_v34 = vmul.f32 %v2610_v1, %v1847_v22  ;;  %v498_v35 = vmul.f32 %v2610_v1, %v1910_v23  ;;  %v499_v36 = vmul.f32 %v2610_v1, %v1911_v24 }
  0x24   : > { %v530_v37 = vmul.f32 %v2610_v1, %v1974_v27  ;;  %v531_v38 = vmul.f32 %v2610_v1, %v1975_v28  ;;  %v562_v39 = vmul.f32 %v2610_v1, %v2038_v31  ;;  %v563_v40 = vmul.f32 %v2610_v1, %v2039_v32  ;;  %v2415_v31 = vld [vmem:[%s2605_s23 + $0x20] sm:$0xff]  }
  0x25   : > { %v598_v41 = vadd.f32 %v2618_v7, %v466_v33  ;;  %v599_v42 = vadd.f32 %v2618_v7, %v467_v34  ;;  %v630_v43 = vadd.f32 %v2618_v7, %v498_v35  ;;  %v631_v44 = vadd.f32 %v2618_v7, %v499_v36  ;;  %v2431_v32 = vld [vmem:[%s2605_s23 + $0xa0] sm:$0xff]  }
  0x26   : > { %v662_v45 = vadd.f32 %v2618_v7, %v530_v37  ;;  %v663_v46 = vadd.f32 %v2618_v7, %v531_v38  ;;  %v694_v47 = vadd.f32 %v2618_v7, %v562_v39  ;;  %v695_v48 = vadd.f32 %v2618_v7, %v563_v40  ;;  %v2447_v37 = vld [vmem:[%s2605_s23 + $0x120] sm:$0xff]  }
  0x27   : > { %v726_v49 = vmax.f32 %v598_v41, 0.0  ;;  %v727_v50 = vmax.f32 %v599_v42, 0.0  ;;  %v758_v51 = vmax.f32 %v630_v43, 0.0  ;;  %v759_v52 = vmax.f32 %v631_v44, 0.0  ;;  %v2463_v38 = vld [vmem:[%s2605_s23 + $0x1a0] sm:$0xff]  }
  0x28   : > { %v790_v53 = vmax.f32 %v662_v45, 0.0  ;;  %v791_v54 = vmax.f32 %v663_v46, 0.0  ;;  %v822_v56 = vmax.f32 %v694_v47, 0.0  ;;  %v823_v57 = vmax.f32 %v695_v48, 0.0 }
  0x29   : > { %1770 = vmatmul.msk.bf16.gmra.mxu0 %vm922_vm0, %v851_v25  ;;  %v852_v61 = vpack.c.bf16 %v727_v50, %v726_v49  ;;  %v868_v62 = vpack.c.bf16 %v759_v52, %v758_v51  ;;  %v1850_v63 = vunpack.c.l.bf16 %v2414_v55  ;;  %v1851_v0 = vunpack.c.h.bf16 %v2414_v55 }
  0x2a   : > { %1786 = vmatmul.msk.bf16.gmra.mxu1 %vm922_vm0, %v867_v26  ;;  %v884_v2 = vpack.c.bf16 %v791_v54, %v790_v53  ;;  %v1914_v3 = vunpack.c.l.bf16 %v2430_v58  ;;  %v1915_v4 = vunpack.c.h.bf16 %v2430_v58  ;;  %v1978_v5 = vunpack.c.l.bf16 %v2446_v59 }
  0x2b   : > { %1802 = vmatmul.msk.bf16.gmra.mxu2 %vm922_vm0, %v883_v29  ;;  %v900_v6 = vpack.c.bf16 %v823_v57, %v822_v56  ;;  %v1979_v8 = vunpack.c.h.bf16 %v2446_v59  ;;  %v2042_v9 = vunpack.c.l.bf16 %v2462_v60  ;;  %v2043_v10 = vunpack.c.h.bf16 %v2462_v60 }
  0x2c   : > { %1818 = vmatmul.msk.bf16.gmra.mxu3 %vm922_vm0, %v899_v30  ;;  %v468_v11 = vmul.f32 %v2610_v1, %v1850_v63  ;;  %v469_v12 = vmul.f32 %v2610_v1, %v1851_v0  ;;  %v500_v13 = vmul.f32 %v2610_v1, %v1914_v3  ;;  %v501_v14 = vmul.f32 %v2610_v1, %v1915_v4 }
  0x2d   : > { %v532_v15 = vmul.f32 %v2610_v1, %v1978_v5  ;;  %v533_v16 = vmul.f32 %v2610_v1, %v1979_v8  ;;  %v564_v17 = vmul.f32 %v2610_v1, %v2042_v9  ;;  %v565_v18 = vmul.f32 %v2610_v1, %v2043_v10 }
  0x2e   : > { %v600_v19 = vadd.f32 %v2618_v7, %v468_v11  ;;  %v601_v20 = vadd.f32 %v2618_v7, %v469_v12  ;;  %v632_v21 = vadd.f32 %v2618_v7, %v500_v13  ;;  %v633_v22 = vadd.f32 %v2618_v7, %v501_v14  ;;  %v2416_v11 = vld [vmem:[%s2605_s23 + $0x28] sm:$0xff]  }
  0x2f   : > { %v664_v23 = vadd.f32 %v2618_v7, %v532_v15  ;;  %v665_v24 = vadd.f32 %v2618_v7, %v533_v16  ;;  %v696_v25 = vadd.f32 %v2618_v7, %v564_v17  ;;  %v697_v26 = vadd.f32 %v2618_v7, %v565_v18  ;;  %v2432_v14 = vld [vmem:[%s2605_s23 + $0xa8] sm:$0xff]  }
  0x30   : > { %v728_v27 = vmax.f32 %v600_v19, 0.0  ;;  %v729_v28 = vmax.f32 %v601_v20, 0.0  ;;  %v760_v29 = vmax.f32 %v632_v21, 0.0  ;;  %v761_v30 = vmax.f32 %v633_v22, 0.0  ;;  %v2448_v15 = vld [vmem:[%s2605_s23 + $0x128] sm:$0xff]  }
  0x31   : > { %v792_v33 = vmax.f32 %v664_v23, 0.0  ;;  %v793_v34 = vmax.f32 %v665_v24, 0.0  ;;  %v824_v35 = vmax.f32 %v696_v25, 0.0  ;;  %v825_v36 = vmax.f32 %v697_v26, 0.0  ;;  %v2464_v16 = vld [vmem:[%s2605_s23 + $0x1a8] sm:$0xff]  }
  0x32   : > { %v1854_v39 = vunpack.c.l.bf16 %v2415_v31  ;;  %v1855_v40 = vunpack.c.h.bf16 %v2415_v31  ;;  %v1918_v41 = vunpack.c.l.bf16 %v2431_v32  ;;  %v1919_v42 = vunpack.c.h.bf16 %v2431_v32 }
  0x33   : > { %v853_v43 = vpack.c.bf16 %v729_v28, %v728_v27  ;;  %v869_v44 = vpack.c.bf16 %v761_v30, %v760_v29  ;;  %v1982_v45 = vunpack.c.l.bf16 %v2447_v37  ;;  %v1983_v46 = vunpack.c.h.bf16 %v2447_v37 }
  0x34   : > { %v885_v47 = vpack.c.bf16 %v793_v34, %v792_v33  ;;  %v901_v48 = vpack.c.bf16 %v825_v36, %v824_v35  ;;  %v2046_v49 = vunpack.c.l.bf16 %v2463_v38  ;;  %v2047_v50 = vunpack.c.h.bf16 %v2463_v38 }
  0x35   : > { %v470_v51 = vmul.f32 %v2610_v1, %v1854_v39  ;;  %v471_v52 = vmul.f32 %v2610_v1, %v1855_v40  ;;  %v502_v53 = vmul.f32 %v2610_v1, %v1918_v41  ;;  %v503_v54 = vmul.f32 %v2610_v1, %v1919_v42 }
  0x36   : > { %v534_v55 = vmul.f32 %v2610_v1, %v1982_v45  ;;  %v535_v56 = vmul.f32 %v2610_v1, %v1983_v46  ;;  %v566_v57 = vmul.f32 %v2610_v1, %v2046_v49  ;;  %v567_v58 = vmul.f32 %v2610_v1, %v2047_v50  ;;  %v2417_v49 = vld [vmem:[%s2605_s23 + $0x30] sm:$0xff]  }
  0x37   : > { %v602_v59 = vadd.f32 %v2618_v7, %v470_v51  ;;  %v603_v60 = vadd.f32 %v2618_v7, %v471_v52  ;;  %v1858_v19 = vunpack.c.l.bf16 %v2416_v11  ;;  %v1859_v20 = vunpack.c.h.bf16 %v2416_v11  ;;  %v2433_v50 = vld [vmem:[%s2605_s23 + $0xb0] sm:$0xff]  }
  0x38   : > { %v666_v63 = vadd.f32 %v2618_v7, %v534_v55  ;;  %v667_v0 = vadd.f32 %v2618_v7, %v535_v56  ;;  %v699_v3 = vadd.f32 %v2618_v7, %v567_v58  ;;  %v1922_v22 = vunpack.c.l.bf16 %v2432_v14  ;;  %v2449_v55 = vld [vmem:[%s2605_s23 + $0x130] sm:$0xff]  }
  0x39   : > { %1771 = vmatmul.msk.bf16.gmra.mxu0 %vm922_vm0, %v852_v61  ;;  %v634_v61 = vadd.f32 %v2618_v7, %v502_v53  ;;  %v730_v4 = vmax.f32 %v602_v59, 0.0  ;;  %v731_v5 = vmax.f32 %v603_v60, 0.0  ;;  %v1923_v23 = vunpack.c.h.bf16 %v2432_v14  ;;  %v2465_v56 = vld [vmem:[%s2605_s23 + $0x1b0] sm:$0xff]  }
  0x3a   : > { %1787 = vmatmul.msk.bf16.gmra.mxu1 %vm922_vm0, %v868_v62  ;;  %v635_v62 = vadd.f32 %v2618_v7, %v503_v54  ;;  %v794_v9 = vmax.f32 %v666_v63, 0.0  ;;  %v795_v10 = vmax.f32 %v667_v0, 0.0  ;;  %v827_v13 = vmax.f32 %v699_v3, 0.0 }
  0x3b   : > { %1803 = vmatmul.msk.bf16.gmra.mxu2 %vm922_vm0, %v884_v2  ;;  %v698_v2 = vadd.f32 %v2618_v7, %v566_v57  ;;  %v854_v17 = vpack.c.bf16 %v731_v5, %v730_v4  ;;  %v1986_v24 = vunpack.c.l.bf16 %v2448_v15  ;;  %v1987_v26 = vunpack.c.h.bf16 %v2448_v15 }
  0x3c   : > { %1819 = vmatmul.msk.bf16.gmra.mxu3 %vm922_vm0, %v900_v6  ;;  %v762_v6 = vmax.f32 %v634_v61, 0.0  ;;  %v763_v8 = vmax.f32 %v635_v62, 0.0  ;;  %v886_v21 = vpack.c.bf16 %v795_v10, %v794_v9  ;;  %v2050_v27 = vunpack.c.l.bf16 %v2464_v16 }
  0x3d   : > { %v826_v12 = vmax.f32 %v698_v2, 0.0  ;;  %v2051_v28 = vunpack.c.h.bf16 %v2464_v16  ;;  %v472_v29 = vmul.f32 %v2610_v1, %v1858_v19  ;;  %v473_v30 = vmul.f32 %v2610_v1, %v1859_v20 }
  0x3e   : > { %v870_v18 = vpack.c.bf16 %v763_v8, %v762_v6  ;;  %v504_v31 = vmul.f32 %v2610_v1, %v1922_v22  ;;  %v505_v32 = vmul.f32 %v2610_v1, %v1923_v23  ;;  %v536_v33 = vmul.f32 %v2610_v1, %v1986_v24 }
  0x3f   : > { %v902_v25 = vpack.c.bf16 %v827_v13, %v826_v12  ;;  %v537_v34 = vmul.f32 %v2610_v1, %v1987_v26  ;;  %v568_v35 = vmul.f32 %v2610_v1, %v2050_v27  ;;  %v569_v36 = vmul.f32 %v2610_v1, %v2051_v28 }
  0x40   : > { %v604_v37 = vadd.f32 %v2618_v7, %v472_v29  ;;  %v605_v38 = vadd.f32 %v2618_v7, %v473_v30  ;;  %v636_v39 = vadd.f32 %v2618_v7, %v504_v31  ;;  %v637_v40 = vadd.f32 %v2618_v7, %v505_v32  ;;  %v2418_v29 = vld [vmem:[%s2605_s23 + $0x38] sm:$0xff]  }
  0x41   : > { %v668_v41 = vadd.f32 %v2618_v7, %v536_v33  ;;  %v669_v42 = vadd.f32 %v2618_v7, %v537_v34  ;;  %v1862_v57 = vunpack.c.l.bf16 %v2417_v49  ;;  %v1863_v58 = vunpack.c.h.bf16 %v2417_v49  ;;  %v2434_v32 = vld [vmem:[%s2605_s23 + $0xb8] sm:$0xff]  }
  0x42   : > { %v732_v45 = vmax.f32 %v604_v37, 0.0  ;;  %v733_v46 = vmax.f32 %v605_v38, 0.0  ;;  %v1926_v59 = vunpack.c.l.bf16 %v2433_v50  ;;  %v1927_v60 = vunpack.c.h.bf16 %v2433_v50  ;;  %v2450_v33 = vld [vmem:[%s2605_s23 + $0x138] sm:$0xff]  }
  0x43   : > { %v796_v51 = vmax.f32 %v668_v41, 0.0  ;;  %v797_v52 = vmax.f32 %v669_v42, 0.0  ;;  %v1990_v63 = vunpack.c.l.bf16 %v2449_v55  ;;  %v1991_v0 = vunpack.c.h.bf16 %v2449_v55  ;;  %v2466_v34 = vld [vmem:[%s2605_s23 + $0x1b8] sm:$0xff]  }
  0x44   : > { %v855_v61 = vpack.c.bf16 %v733_v46, %v732_v45  ;;  %v2054_v4 = vunpack.c.l.bf16 %v2465_v56  ;;  %v2055_v5 = vunpack.c.h.bf16 %v2465_v56  ;;  %v474_v6 = vmul.f32 %v2610_v1, %v1862_v57 }
  0x45   : > { %v887_v2 = vpack.c.bf16 %v797_v52, %v796_v51  ;;  %v475_v8 = vmul.f32 %v2610_v1, %v1863_v58  ;;  %v506_v9 = vmul.f32 %v2610_v1, %v1926_v59  ;;  %v507_v10 = vmul.f32 %v2610_v1, %v1927_v60 }
  0x46   : > { %v538_v11 = vmul.f32 %v2610_v1, %v1990_v63  ;;  %v539_v12 = vmul.f32 %v2610_v1, %v1991_v0  ;;  %v570_v13 = vmul.f32 %v2610_v1, %v2054_v4  ;;  %v571_v14 = vmul.f32 %v2610_v1, %v2055_v5  ;;  %v2419_v4 = vld [vmem:[%s2605_s23 + $0x40] sm:$0xff]  }
  0x47   : > { %v606_v15 = vadd.f32 %v2618_v7, %v474_v6  ;;  %v607_v16 = vadd.f32 %v2618_v7, %v475_v8  ;;  %v1866_v37 = vunpack.c.l.bf16 %v2418_v29  ;;  %v1867_v38 = vunpack.c.h.bf16 %v2418_v29  ;;  %v2435_v5 = vld [vmem:[%s2605_s23 + $0xc0] sm:$0xff]  }
  0x48   : > { %v670_v19 = vadd.f32 %v2618_v7, %v538_v11  ;;  %v671_v20 = vadd.f32 %v2618_v7, %v539_v12  ;;  %v703_v22 = vadd.f32 %v2618_v7, %v571_v14  ;;  %v1931_v41 = vunpack.c.h.bf16 %v2434_v32  ;;  %v2451_v11 = vld [vmem:[%s2605_s23 + $0x140] sm:$0xff]  }
  0x49   : > { %1772 = vmatmul.msk.bf16.gmra.mxu0 %vm922_vm0, %v853_v43  ;;  %v700_v43 = vadd.f32 %v2618_v7, %v568_v35  ;;  %v734_v23 = vmax.f32 %v606_v15, 0.0  ;;  %v735_v24 = vmax.f32 %v607_v16, 0.0  ;;  %v1994_v42 = vunpack.c.l.bf16 %v2450_v33  ;;  %v2467_v12 = vld [vmem:[%s2605_s23 + $0x1c0] sm:$0xff]  }
  0x4a   : > { %1788 = vmatmul.msk.bf16.gmra.mxu1 %vm922_vm0, %v869_v44  ;;  %v701_v44 = vadd.f32 %v2618_v7, %v569_v36  ;;  %v798_v27 = vmax.f32 %v670_v19, 0.0  ;;  %v799_v28 = vmax.f32 %v671_v20, 0.0  ;;  %v831_v31 = vmax.f32 %v703_v22, 0.0 }
  0x4b   : > { %1804 = vmatmul.msk.bf16.gmra.mxu2 %vm922_vm0, %v885_v47  ;;  %v764_v47 = vmax.f32 %v636_v39, 0.0  ;;  %v828_v53 = vmax.f32 %v700_v43, 0.0  ;;  %v856_v35 = vpack.c.bf16 %v735_v24, %v734_v23  ;;  %v2058_v45 = vunpack.c.l.bf16 %v2466_v34 }
  0x4c   : > { %1820 = vmatmul.msk.bf16.gmra.mxu3 %vm922_vm0, %v901_v48  ;;  %v765_v48 = vmax.f32 %v637_v40, 0.0  ;;  %v829_v54 = vmax.f32 %v701_v44, 0.0  ;;  %v888_v39 = vpack.c.bf16 %v799_v28, %v798_v27  ;;  %v1930_v40 = vunpack.c.l.bf16 %v2434_v32 }
  0x4d   : > { %v1995_v44 = vunpack.c.h.bf16 %v2450_v33  ;;  %v2059_v46 = vunpack.c.h.bf16 %v2466_v34  ;;  %v509_v50 = vmul.f32 %v2610_v1, %v1931_v41  ;;  %v540_v51 = vmul.f32 %v2610_v1, %v1994_v42 }
  0x4e   : > { %v871_v62 = vpack.c.bf16 %v765_v48, %v764_v47  ;;  %v903_v3 = vpack.c.bf16 %v829_v54, %v828_v53  ;;  %v476_v47 = vmul.f32 %v2610_v1, %v1866_v37  ;;  %v477_v48 = vmul.f32 %v2610_v1, %v1867_v38 }
  0x4f   : > { %v508_v49 = vmul.f32 %v2610_v1, %v1930_v40  ;;  %v541_v52 = vmul.f32 %v2610_v1, %v1995_v44  ;;  %v572_v53 = vmul.f32 %v2610_v1, %v2058_v45  ;;  %v573_v54 = vmul.f32 %v2610_v1, %v2059_v46  ;;  %v2420_v45 = vld [vmem:[%s2605_s23 + $0x48] sm:$0xff]  }
  0x50   : > { %v608_v55 = vadd.f32 %v2618_v7, %v476_v47  ;;  %v609_v56 = vadd.f32 %v2618_v7, %v477_v48  ;;  %v641_v58 = vadd.f32 %v2618_v7, %v509_v50  ;;  %v672_v59 = vadd.f32 %v2618_v7, %v540_v51  ;;  %v2436_v50 = vld [vmem:[%s2605_s23 + $0xc8] sm:$0xff]  }
  0x51   : > { %v640_v57 = vadd.f32 %v2618_v7, %v508_v49  ;;  %v673_v60 = vadd.f32 %v2618_v7, %v541_v52  ;;  %v1871_v14 = vunpack.c.h.bf16 %v2419_v4  ;;  %v1934_v15 = vunpack.c.l.bf16 %v2435_v5  ;;  %v2452_v51 = vld [vmem:[%s2605_s23 + $0x148] sm:$0xff]  }
  0x52   : > { %v736_v63 = vmax.f32 %v608_v55, 0.0  ;;  %v737_v0 = vmax.f32 %v609_v56, 0.0  ;;  %v800_v6 = vmax.f32 %v672_v59, 0.0  ;;  %v1935_v16 = vunpack.c.h.bf16 %v2435_v5 }
  0x53   : > { %v801_v8 = vmax.f32 %v673_v60, 0.0  ;;  %v1998_v19 = vunpack.c.l.bf16 %v2451_v11  ;;  %v1999_v20 = vunpack.c.h.bf16 %v2451_v11  ;;  %v2062_v23 = vunpack.c.l.bf16 %v2467_v12 }
  0x54   : > { %v2063_v24 = vunpack.c.h.bf16 %v2467_v12  ;;  %v510_v27 = vmul.f32 %v2610_v1, %v1934_v15  ;;  %v511_v28 = vmul.f32 %v2610_v1, %v1935_v16  ;;  %v1874_v52 = vunpack.c.l.bf16 %v2420_v45 }
  0x55   : > { %v542_v29 = vmul.f32 %v2610_v1, %v1998_v19  ;;  %v1939_v59 = vunpack.c.h.bf16 %v2436_v50  ;;  %v2002_v60 = vunpack.c.l.bf16 %v2452_v51 }
  0x56   : > { %v575_v32 = vmul.f32 %v2610_v1, %v2063_v24 }
  0x57   : > { %v674_v37 = vadd.f32 %v2618_v7, %v542_v29  ;;  %v2421_v29 = vld [vmem:[%s2605_s23 + $0x50] sm:$0xff]  }
  0x58   : > { %v707_v40 = vadd.f32 %v2618_v7, %v575_v32  ;;  %v2437_v32 = vld [vmem:[%s2605_s23 + $0xd0] sm:$0xff]  }
  0x59   : > { %1773 = vmatmul.msk.bf16.gmra.mxu0 %vm922_vm0, %v854_v17  ;;  %v638_v17 = vadd.f32 %v2618_v7, %v506_v9  ;;  %v802_v46 = vmax.f32 %v674_v37, 0.0 }
  0x5a   : > { %1789 = vmatmul.msk.bf16.gmra.mxu1 %vm922_vm0, %v870_v18  ;;  %v639_v18 = vadd.f32 %v2618_v7, %v507_v10  ;;  %v835_v49 = vmax.f32 %v707_v40, 0.0  ;;  %v1878_v40 = vunpack.c.l.bf16 %v2421_v29 }
  0x5b   : > { %1805 = vmatmul.msk.bf16.gmra.mxu2 %vm922_vm0, %v886_v21  ;;  %v702_v21 = vadd.f32 %v2618_v7, %v570_v13  ;;  %v1870_v13 = vunpack.c.l.bf16 %v2419_v4  ;;  %v480_v4 = vmul.f32 %v2610_v1, %v1874_v52 }
  0x5c   : > { %1821 = vmatmul.msk.bf16.gmra.mxu3 %vm922_vm0, %v902_v25  ;;  %v766_v25 = vmax.f32 %v638_v17, 0.0  ;;  %v767_v26 = vmax.f32 %v639_v18, 0.0  ;;  %v857_v17 = vpack.c.bf16 %v737_v0, %v736_v63  ;;  %v2003_v0 = vunpack.c.h.bf16 %v2452_v51 }
  0x5d   : > { %v830_v30 = vmax.f32 %v702_v21, 0.0  ;;  %v889_v21 = vpack.c.bf16 %v801_v8, %v800_v6  ;;  %v513_v8 = vmul.f32 %v2610_v1, %v1939_v59 }
  0x5e   : > { %v872_v36 = vpack.c.bf16 %v767_v26, %v766_v25  ;;  %v478_v25 = vmul.f32 %v2610_v1, %v1870_v13  ;;  %v479_v26 = vmul.f32 %v2610_v1, %v1871_v14  ;;  %v612_v13 = vadd.f32 %v2618_v7, %v480_v4 }
  0x5f   : > { %v904_v43 = vpack.c.bf16 %v831_v31, %v830_v30  ;;  %v543_v30 = vmul.f32 %v2610_v1, %v1999_v20  ;;  %v574_v31 = vmul.f32 %v2610_v1, %v2062_v23 }
  0x60   : > { %v610_v33 = vadd.f32 %v2618_v7, %v478_v25  ;;  %v611_v34 = vadd.f32 %v2618_v7, %v479_v26 }
  0x61   : > { %v675_v38 = vadd.f32 %v2618_v7, %v543_v30 }
  0x62   : > { %v738_v41 = vmax.f32 %v610_v33, 0.0  ;;  %v739_v42 = vmax.f32 %v611_v34, 0.0  ;;  %v2453_v33 = vld [vmem:[%s2605_s23 + $0x150] sm:$0xff]  }
  0x63   : > { %v803_v47 = vmax.f32 %v675_v38, 0.0  ;;  %v2469_v38 = vld [vmem:[%s2605_s23 + $0x1d0] sm:$0xff]  }
  0x64   : > { %v858_v55 = vpack.c.bf16 %v739_v42, %v738_v41  ;;  %v1879_v41 = vunpack.c.h.bf16 %v2421_v29  ;;  %v1942_v42 = vunpack.c.l.bf16 %v2437_v32 }
  0x66   : > { %v514_v59 = vmul.f32 %v2610_v1, %v1942_v42 }
  0x68   : > { %v646_v4 = vadd.f32 %v2618_v7, %v514_v59 }
  0x69   : > { %1774 = vmatmul.msk.bf16.gmra.mxu0 %vm922_vm0, %v855_v61  ;;  %v704_v61 = vadd.f32 %v2618_v7, %v572_v53  ;;  %v1875_v53 = vunpack.c.h.bf16 %v2420_v45 }
  0x6a   : > { %1790 = vmatmul.msk.bf16.gmra.mxu1 %vm922_vm0, %v871_v62  ;;  %v705_v62 = vadd.f32 %v2618_v7, %v573_v54  ;;  %v2468_v54 = vld [vmem:[%s2605_s23 + $0x1c8] sm:$0xff]  }
  0x6b   : > { %1806 = vmatmul.msk.bf16.gmra.mxu2 %vm922_vm0, %v887_v2  ;;  %v768_v2 = vmax.f32 %v640_v57, 0.0  ;;  %v832_v9 = vmax.f32 %v704_v61, 0.0  ;;  %v890_v57 = vpack.c.bf16 %v803_v47, %v802_v46  ;;  %v481_v5 = vmul.f32 %v2610_v1, %v1875_v53 }
  0x6c   : > { %1822 = vmatmul.msk.bf16.gmra.mxu3 %vm922_vm0, %v903_v3  ;;  %v769_v3 = vmax.f32 %v641_v58, 0.0  ;;  %v833_v10 = vmax.f32 %v705_v62, 0.0  ;;  %v1938_v58 = vunpack.c.l.bf16 %v2436_v50  ;;  %v2071_v50 = vunpack.c.h.bf16 %v2469_v38 }
  0x6d   : > { %v613_v14 = vadd.f32 %v2618_v7, %v481_v5 }
  0x6e   : > { %v873_v18 = vpack.c.bf16 %v769_v3, %v768_v2  ;;  %v905_v22 = vpack.c.bf16 %v833_v10, %v832_v9  ;;  %v2066_v2 = vunpack.c.l.bf16 %v2468_v54  ;;  %v2067_v3 = vunpack.c.h.bf16 %v2468_v54 }
  0x6f   : > { %v512_v6 = vmul.f32 %v2610_v1, %v1938_v58  ;;  %v544_v9 = vmul.f32 %v2610_v1, %v2002_v60  ;;  %v545_v10 = vmul.f32 %v2610_v1, %v2003_v0  ;;  %v483_v58 = vmul.f32 %v2610_v1, %v1879_v41 }
  0x70   : > { %v576_v11 = vmul.f32 %v2610_v1, %v2066_v2  ;;  %v577_v12 = vmul.f32 %v2610_v1, %v2067_v3  ;;  %v579_v0 = vmul.f32 %v2610_v1, %v2071_v50 }
  0x71   : > { %v615_v3 = vadd.f32 %v2618_v7, %v483_v58 }
  0x72   : > { %v708_v23 = vadd.f32 %v2618_v7, %v576_v11  ;;  %v709_v24 = vadd.f32 %v2618_v7, %v577_v12  ;;  %v711_v11 = vadd.f32 %v2618_v7, %v579_v0 }
  0x74   : > { %v837_v37 = vmax.f32 %v709_v24, 0.0 }
  0x79   : > { %1775 = vmatmul.msk.bf16.gmra.mxu0 %vm922_vm0, %v856_v35  ;;  %v642_v35 = vadd.f32 %v2618_v7, %v510_v27  ;;  %v740_v27 = vmax.f32 %v612_v13, 0.0 }
  0x7a   : > { %1791 = vmatmul.msk.bf16.gmra.mxu1 %vm922_vm0, %v872_v36  ;;  %v643_v36 = vadd.f32 %v2618_v7, %v511_v28  ;;  %v741_v28 = vmax.f32 %v613_v14, 0.0 }
  0x7b   : > { %1807 = vmatmul.msk.bf16.gmra.mxu2 %vm922_vm0, %v888_v39  ;;  %v706_v39 = vadd.f32 %v2618_v7, %v574_v31 }
  0x7c   : > { %1823 = vmatmul.msk.bf16.gmra.mxu3 %vm922_vm0, %v904_v43  ;;  %v770_v43 = vmax.f32 %v642_v35, 0.0  ;;  %v771_v44 = vmax.f32 %v643_v36, 0.0  ;;  %v836_v36 = vmax.f32 %v708_v23, 0.0 }
  0x7d   : > { %v834_v48 = vmax.f32 %v706_v39, 0.0  ;;  %v859_v39 = vpack.c.bf16 %v741_v28, %v740_v27 }
  0x7e   : > { %v874_v56 = vpack.c.bf16 %v771_v44, %v770_v43  ;;  %v1943_v43 = vunpack.c.h.bf16 %v2437_v32  ;;  %v2006_v44 = vunpack.c.l.bf16 %v2453_v33 }
  0x7f   : > { %v906_v63 = vpack.c.bf16 %v835_v49, %v834_v48  ;;  %v2007_v48 = vunpack.c.h.bf16 %v2453_v33  ;;  %v2070_v49 = vunpack.c.l.bf16 %v2469_v38 }
  0x80   : > { %v515_v60 = vmul.f32 %v2610_v1, %v1943_v43 }
  0x82   : > { %v647_v5 = vadd.f32 %v2618_v7, %v515_v60 }
  0x89   : > { %1776 = vmatmul.msk.bf16.gmra.mxu0 %vm922_vm0, %v857_v17  ;;  %v644_v17 = vadd.f32 %v2618_v7, %v512_v6 }
  0x8a   : > { %1792 = vmatmul.msk.bf16.gmra.mxu1 %vm922_vm0, %v873_v18  ;;  %v645_v18 = vadd.f32 %v2618_v7, %v513_v8 }
  0x8b   : > { %1808 = vmatmul.msk.bf16.gmra.mxu2 %vm922_vm0, %v889_v21  ;;  %v676_v21 = vadd.f32 %v2618_v7, %v544_v9  ;;  %v772_v30 = vmax.f32 %v644_v17, 0.0  ;;  %v2422_v17 = vld [vmem:[%s2605_s23 + $0x58] sm:$0xff]  }
  0x8c   : > { %1824 = vmatmul.msk.bf16.gmra.mxu3 %vm922_vm0, %v905_v22  ;;  %v677_v22 = vadd.f32 %v2618_v7, %v545_v10  ;;  %v773_v31 = vmax.f32 %v645_v18, 0.0  ;;  %v743_v18 = vmax.f32 %v615_v3, 0.0  ;;  %v1882_v27 = vunpack.c.l.bf16 %v2422_v17 }
  0x8d   : > { %v804_v34 = vmax.f32 %v676_v21, 0.0  ;;  %v1883_v28 = vunpack.c.h.bf16 %v2422_v17 }
  0x8e   : > { %v805_v35 = vmax.f32 %v677_v22, 0.0  ;;  %v875_v47 = vpack.c.bf16 %v773_v31, %v772_v30  ;;  %v2438_v22 = vld [vmem:[%s2605_s23 + $0xd8] sm:$0xff]  }
  0x8f   : > { %v1946_v29 = vunpack.c.l.bf16 %v2438_v22  ;;  %v1947_v30 = vunpack.c.h.bf16 %v2438_v22 }
  0x96   : > { %v1124_v61 = vpop.f32.mrf.mxu0 }
  0x97   : > { %v1204_v62 = vpop.f32.mrf.mxu1 }
  0x99   : > { %1777 = vmatmul.msk.bf16.gmra.mxu0 %vm922_vm0, %v858_v55  ;;  %v891_v55 = vpack.c.bf16 %v805_v35, %v804_v34 }
  0x9a   : > { %1793 = vmatmul.msk.bf16.gmra.mxu1 %vm922_vm0, %v874_v56  ;;  %v907_v56 = vpack.c.bf16 %v837_v37, %v836_v36 }
  0x9b   : > { %1809 = vmatmul.msk.bf16.gmra.mxu2 %vm922_vm0, %v890_v57  ;;  %v482_v57 = vmul.f32 %v2610_v1, %v1878_v40 }
  0x9c   : > { %1825 = vmatmul.msk.bf16.gmra.mxu3 %vm922_vm0, %v906_v63  ;;  %v578_v63 = vmul.f32 %v2610_v1, %v2070_v49 }
  0x9d   : > { %v614_v2 = vadd.f32 %v2618_v7, %v482_v57 }
  0x9e   : > { %v1284_v15 = vpop.f32.mrf.mxu2  ;;  %v1126_v19 = vpop.f32.mrf.mxu0  ;;  %v710_v10 = vadd.f32 %v2618_v7, %v578_v63 }
  0x9f   : > { %v1364_v16 = vpop.f32.mrf.mxu3  ;;  %v1206_v20 = vpop.f32.mrf.mxu1  ;;  %v2095_v25 = vpack.c.bf16 %v1126_v19, %v1124_v61  ;;  %v546_v61 = vmul.f32 %v2610_v1, %v2006_v44  ;;  %v774_v19 = vmax.f32 %v646_v4, 0.0 }
  0xa0   : > { %v2175_v26 = vpack.c.bf16 %v1206_v20, %v1204_v62  ;;  %v547_v62 = vmul.f32 %v2610_v1, %v2007_v48  ;;  %v775_v20 = vmax.f32 %v647_v5, 0.0  ;;  %v838_v24 = vmax.f32 %v710_v10, 0.0 }
  0xa1   : > { %2096 = vst [vmem:[%s2854_s30] sm:$0xff] %v2095_v25   ;;  %v678_v6 = vadd.f32 %v2618_v7, %v546_v61  ;;  %v839_v25 = vmax.f32 %v711_v11, 0.0 }
  0xa2   : > { %2490 = vst [vmem:[%s2854_s30 + $0x80] sm:$0xff] %v2175_v26   ;;  %v679_v1 = vadd.f32 %v2618_v7, %v547_v62  ;;  %v2454_v26 = vld [vmem:[%s2605_s23 + $0x158] sm:$0xff]   ;;  %v876_v38 = vpack.c.bf16 %v775_v20, %v774_v19  ;;  %v2471_v19 = vld [vmem:[%s2605_s23 + $0x1e0] sm:$0xff]  }
  0xa3   : > { %v806_v21 = vmax.f32 %v678_v6, 0.0  ;;  %v2470_v7 = vld [vmem:[%s2605_s23 + $0x1d8] sm:$0xff]   ;;  %v2010_v31 = vunpack.c.l.bf16 %v2454_v26  ;;  %v2011_v32 = vunpack.c.h.bf16 %v2454_v26  ;;  %v908_v40 = vpack.c.bf16 %v839_v25, %v838_v24 }
  0xa4   : > { %v807_v23 = vmax.f32 %v679_v1, 0.0  ;;  %v2074_v33 = vunpack.c.l.bf16 %v2470_v7  ;;  %v2075_v34 = vunpack.c.h.bf16 %v2470_v7 }
  0xa6   : > { %v1286_v45 = vpop.f32.mrf.mxu2  ;;  %v1129_v53 = vpop.f32.mrf.mxu0 }
  0xa7   : > { %v1366_v46 = vpop.f32.mrf.mxu3  ;;  %v2255_v51 = vpack.c.bf16 %v1286_v45, %v1284_v15  ;;  %v1209_v54 = vpop.f32.mrf.mxu1  ;;  %v2897_v45 = vld [vmem:[%s3086_s1] ss:$0 sm:$0xff] }
  0xa8   : > { %v2335_v52 = vpack.c.bf16 %v1366_v46, %v1364_v16  ;;  %v742_v16 = vmax.f32 %v614_v2, 0.0  ;;  %v484_v46 = vmul.f32 %v2897_v45, %v1882_v27  ;;  %v516_v48 = vmul.f32 %v2897_v45, %v1946_v29 }
  0xa9   : > { %2506 = vst [vmem:[%s2854_s30 + $0x100] sm:$0xff] %v2255_v51   ;;  %1778 = vmatmul.msk.bf16.gmra.mxu0 %vm922_vm0, %v859_v39  ;;  %v892_v39 = vpack.c.bf16 %v807_v23, %v806_v21  ;;  %v517_v49 = vmul.f32 %v2897_v45, %v1947_v30  ;;  %v548_v50 = vmul.f32 %v2897_v45, %v2010_v31 }
  0xaa   : > { %2522 = vst [vmem:[%s2854_s30 + $0x180] sm:$0xff] %v2335_v52   ;;  %1794 = vmatmul.msk.bf16.gmra.mxu1 %vm922_vm0, %v875_v47  ;;  %v860_v37 = vpack.c.bf16 %v743_v18, %v742_v16  ;;  %v485_v47 = vmul.f32 %v2897_v45, %v1883_v28  ;;  %v549_v51 = vmul.f32 %v2897_v45, %v2011_v32  ;;  %v2455_v16 = vld [vmem:[%s2605_s23 + $0x160] sm:$0xff]  }
  0xab   : > { %1810 = vmatmul.msk.bf16.gmra.mxu2 %vm922_vm0, %v891_v55  ;;  %v580_v52 = vmul.f32 %v2897_v45, %v2074_v33  ;;  %v2014_v27 = vunpack.c.l.bf16 %v2455_v16  ;;  %v2015_v28 = vunpack.c.h.bf16 %v2455_v16  ;;  %v2078_v33 = vunpack.c.l.bf16 %v2471_v19 }
  0xac   : > { %1826 = vmatmul.msk.bf16.gmra.mxu3 %vm922_vm0, %v907_v56 }
  0xae   : > { %v1289_v8 = vpop.f32.mrf.mxu2  ;;  %v1131_v12 = vpop.f32.mrf.mxu0 }
  0xaf   : > { %v1369_v9 = vpop.f32.mrf.mxu3  ;;  %v1211_v13 = vpop.f32.mrf.mxu1  ;;  %v2100_v14 = vpack.c.bf16 %v1131_v12, %v1129_v53  ;;  %v581_v53 = vmul.f32 %v2897_v45, %v2075_v34  ;;  %v2079_v34 = vunpack.c.h.bf16 %v2471_v19 }
  0xb0   : > { %v2180_v15 = vpack.c.bf16 %v1211_v13, %v1209_v54  ;;  %v2916_v54 = vld [vmem:[%s3087_s2] ss:$0 sm:$0xff] }
  0xb1   : > { %2475 = vst [vmem:[%s2854_s30 + $0x8] sm:$0xff] %v2100_v14   ;;  %v616_v55 = vadd.f32 %v2916_v54, %v484_v46  ;;  %v617_v56 = vadd.f32 %v2916_v54, %v485_v47  ;;  %v648_v57 = vadd.f32 %v2916_v54, %v516_v48  ;;  %v649_v58 = vadd.f32 %v2916_v54, %v517_v49  ;;  %v2423_v14 = vld [vmem:[%s2605_s23 + $0x60] sm:$0xff]  }
  0xb2   : > { %2491 = vst [vmem:[%s2854_s30 + $0x88] sm:$0xff] %v2180_v15   ;;  %v680_v59 = vadd.f32 %v2916_v54, %v548_v50  ;;  %v681_v60 = vadd.f32 %v2916_v54, %v549_v51  ;;  %v712_v61 = vadd.f32 %v2916_v54, %v580_v52  ;;  %v713_v62 = vadd.f32 %v2916_v54, %v581_v53  ;;  %v2439_v15 = vld [vmem:[%s2605_s23 + $0xe0] sm:$0xff]  }
  0xb3   : > { %v744_v4 = vmax.f32 %v616_v55, 0.0  ;;  %v745_v5 = vmax.f32 %v617_v56, 0.0  ;;  %v777_v1 = vmax.f32 %v649_v58, 0.0  ;;  %v1886_v17 = vunpack.c.l.bf16 %v2423_v14 }
  0xb4   : > { %v808_v10 = vmax.f32 %v680_v59, 0.0  ;;  %v809_v11 = vmax.f32 %v681_v60, 0.0  ;;  %v840_v12 = vmax.f32 %v712_v61, 0.0  ;;  %v841_v13 = vmax.f32 %v713_v62, 0.0  ;;  %v2424_v61 = vld [vmem:[%s2605_s23 + $0x68] sm:$0xff]  }
  0xb5   : > { %v1887_v18 = vunpack.c.h.bf16 %v2423_v14  ;;  %v861_v20 = vpack.c.bf16 %v745_v5, %v744_v4  ;;  %v1950_v26 = vunpack.c.l.bf16 %v2439_v15  ;;  %v1951_v7 = vunpack.c.h.bf16 %v2439_v15 }
  0xb6   : > { %v1291_v35 = vpop.f32.mrf.mxu2  ;;  %v1134_v43 = vpop.f32.mrf.mxu0  ;;  %v893_v22 = vpack.c.bf16 %v809_v11, %v808_v10  ;;  %v909_v23 = vpack.c.bf16 %v841_v13, %v840_v12  ;;  %v1891_v10 = vunpack.c.h.bf16 %v2424_v61 }
  0xb7   : > { %v1371_v36 = vpop.f32.mrf.mxu3  ;;  %v2260_v41 = vpack.c.bf16 %v1291_v35, %v1289_v8  ;;  %v1214_v44 = vpop.f32.mrf.mxu1  ;;  %v486_v35 = vmul.f32 %v2897_v45, %v1886_v17 }
  0xb8   : > { %v2340_v42 = vpack.c.bf16 %v1371_v36, %v1369_v9  ;;  %v776_v9 = vmax.f32 %v648_v57, 0.0  ;;  %v487_v36 = vmul.f32 %v2897_v45, %v1887_v18 }
  0xb9   : > { %2507 = vst [vmem:[%s2854_s30 + $0x108] sm:$0xff] %v2260_v41   ;;  %1779 = vmatmul.msk.bf16.gmra.mxu0 %vm922_vm0, %v860_v37  ;;  %v518_v37 = vmul.f32 %v2897_v45, %v1950_v26  ;;  %v582_v41 = vmul.f32 %v2897_v45, %v2078_v33 }
  0xba   : > { %2523 = vst [vmem:[%s2854_s30 + $0x188] sm:$0xff] %v2340_v42   ;;  %1795 = vmatmul.msk.bf16.gmra.mxu1 %vm922_vm0, %v876_v38  ;;  %v877_v21 = vpack.c.bf16 %v777_v1, %v776_v9  ;;  %v519_v38 = vmul.f32 %v2897_v45, %v1951_v7  ;;  %v583_v42 = vmul.f32 %v2897_v45, %v2079_v34  ;;  %v1890_v1 = vunpack.c.l.bf16 %v2424_v61 }
  0xbb   : > { %1811 = vmatmul.msk.bf16.gmra.mxu2 %vm922_vm0, %v892_v39  ;;  %v550_v39 = vmul.f32 %v2897_v45, %v2014_v27  ;;  %v650_v48 = vadd.f32 %v2916_v54, %v518_v37  ;;  %v714_v55 = vadd.f32 %v2916_v54, %v582_v41  ;;  %v489_v7 = vmul.f32 %v2897_v45, %v1891_v10 }
  0xbc   : > { %1827 = vmatmul.msk.bf16.gmra.mxu3 %vm922_vm0, %v908_v40  ;;  %v551_v40 = vmul.f32 %v2897_v45, %v2015_v28  ;;  %v651_v49 = vadd.f32 %v2916_v54, %v519_v38  ;;  %v715_v56 = vadd.f32 %v2916_v54, %v583_v42  ;;  %v488_v26 = vmul.f32 %v2897_v45, %v1890_v1 }
  0xbd   : > { %v682_v52 = vadd.f32 %v2916_v54, %v550_v39  ;;  %v778_v62 = vmax.f32 %v650_v48, 0.0  ;;  %v842_v5 = vmax.f32 %v714_v55, 0.0  ;;  %v621_v34 = vadd.f32 %v2916_v54, %v489_v7  ;;  %v2441_v55 = vld [vmem:[%s2605_s23 + $0xf0] sm:$0xff]  }
  0xbe   : > { %v1294_v63 = vpop.f32.mrf.mxu2  ;;  %v1136_v2 = vpop.f32.mrf.mxu0  ;;  %v683_v53 = vadd.f32 %v2916_v54, %v551_v40  ;;  %v620_v33 = vadd.f32 %v2916_v54, %v488_v26 }
  0xbf   : > { %v1374_v0 = vpop.f32.mrf.mxu3  ;;  %v1216_v3 = vpop.f32.mrf.mxu1  ;;  %v2105_v6 = vpack.c.bf16 %v1136_v2, %v1134_v43  ;;  %v618_v43 = vadd.f32 %v2916_v54, %v486_v35  ;;  %v2456_v2 = vld [vmem:[%s2605_s23 + $0x168] sm:$0xff]  }
  0xc0   : > { %v2185_v8 = vpack.c.bf16 %v1216_v3, %v1214_v44  ;;  %v619_v44 = vadd.f32 %v2916_v54, %v487_v36  ;;  %v810_v3 = vmax.f32 %v682_v52, 0.0  ;;  %v811_v4 = vmax.f32 %v683_v53, 0.0 }
  0xc1   : > { %2476 = vst [vmem:[%s2854_s30 + $0x10] sm:$0xff] %v2105_v6   ;;  %v746_v59 = vmax.f32 %v618_v43, 0.0  ;;  %v843_v6 = vmax.f32 %v715_v56, 0.0  ;;  %v2018_v13 = vunpack.c.l.bf16 %v2456_v2  ;;  %v2019_v17 = vunpack.c.h.bf16 %v2456_v2 }
  0xc2   : > { %2492 = vst [vmem:[%s2854_s30 + $0x90] sm:$0xff] %v2185_v8   ;;  %v747_v60 = vmax.f32 %v619_v44, 0.0  ;;  %v2472_v8 = vld [vmem:[%s2605_s23 + $0x1e8] sm:$0xff]   ;;  %v748_v48 = vmax.f32 %v620_v33, 0.0 }
  0xc3   : > { %v2082_v18 = vunpack.c.l.bf16 %v2472_v8  ;;  %v2083_v19 = vunpack.c.h.bf16 %v2472_v8 }
  0xc4   : > { %v862_v9 = vpack.c.bf16 %v747_v60, %v746_v59  ;;  %v2457_v59 = vld [vmem:[%s2605_s23 + $0x170] sm:$0xff]  }
  0xc5   : > { %v2473_v60 = vld [vmem:[%s2605_s23 + $0x1f0] sm:$0xff]   ;;  %v2022_v2 = vunpack.c.l.bf16 %v2457_v59 }
  0xc6   : > { %v1296_v24 = vpop.f32.mrf.mxu2  ;;  %v1139_v31 = vpop.f32.mrf.mxu0 }
  0xc7   : > { %v1376_v25 = vpop.f32.mrf.mxu3  ;;  %v2265_v29 = vpack.c.bf16 %v1296_v24, %v1294_v63  ;;  %v1219_v32 = vpop.f32.mrf.mxu1  ;;  %v779_v63 = vmax.f32 %v651_v49, 0.0  ;;  %v894_v24 = vpack.c.bf16 %v811_v4, %v810_v3  ;;  %v2425_v49 = vld [vmem:[%s2605_s23 + $0x70] sm:$0xff]   ;;  %v2023_v3 = vunpack.c.h.bf16 %v2457_v59 }
  0xc8   : > { %v2345_v30 = vpack.c.bf16 %v1376_v25, %v1374_v0  ;;  %v2440_v0 = vld [vmem:[%s2605_s23 + $0xe8] sm:$0xff]   ;;  %v910_v25 = vpack.c.bf16 %v843_v6, %v842_v5  ;;  %v1894_v61 = vunpack.c.l.bf16 %v2425_v49  ;;  %v2086_v4 = vunpack.c.l.bf16 %v2473_v60 }
  0xc9   : > { %2508 = vst [vmem:[%s2854_s30 + $0x110] sm:$0xff] %v2265_v29   ;;  %1780 = vmatmul.msk.bf16.gmra.mxu0 %vm922_vm0, %v861_v20  ;;  %v1954_v11 = vunpack.c.l.bf16 %v2440_v0  ;;  %v1955_v12 = vunpack.c.h.bf16 %v2440_v0  ;;  %v878_v16 = vpack.c.bf16 %v779_v63, %v778_v62  ;;  %v552_v29 = vmul.f32 %v2897_v45, %v2018_v13 }
  0xca   : > { %2524 = vst [vmem:[%s2854_s30 + $0x190] sm:$0xff] %v2345_v30   ;;  %1796 = vmatmul.msk.bf16.gmra.mxu1 %vm922_vm0, %v877_v21  ;;  %v553_v30 = vmul.f32 %v2897_v45, %v2019_v17  ;;  %v1895_v62 = vunpack.c.h.bf16 %v2425_v49  ;;  %v1958_v63 = vunpack.c.l.bf16 %v2441_v55  ;;  %v1959_v0 = vunpack.c.h.bf16 %v2441_v55 }
  0xcb   : > { %1812 = vmatmul.msk.bf16.gmra.mxu2 %vm922_vm0, %v893_v22  ;;  %v520_v27 = vmul.f32 %v2897_v45, %v1954_v11  ;;  %v521_v28 = vmul.f32 %v2897_v45, %v1955_v12  ;;  %v684_v37 = vadd.f32 %v2916_v54, %v552_v29  ;;  %v2087_v5 = vunpack.c.h.bf16 %v2473_v60 }
  0xcc   : > { %1828 = vmatmul.msk.bf16.gmra.mxu3 %vm922_vm0, %v909_v23  ;;  %v685_v40 = vadd.f32 %v2916_v54, %v553_v30  ;;  %v491_v17 = vmul.f32 %v2897_v45, %v1895_v62 }
  0xcd   : > { %v652_v35 = vadd.f32 %v2916_v54, %v520_v27  ;;  %v653_v36 = vadd.f32 %v2916_v54, %v521_v28  ;;  %v812_v53 = vmax.f32 %v684_v37, 0.0 }
  0xce   : > { %v1299_v46 = vpop.f32.mrf.mxu2  ;;  %v1141_v50 = vpop.f32.mrf.mxu0  ;;  %v813_v56 = vmax.f32 %v685_v40, 0.0 }
  0xcf   : > { %v1379_v47 = vpop.f32.mrf.mxu3  ;;  %v1221_v51 = vpop.f32.mrf.mxu1  ;;  %v2110_v57 = vpack.c.bf16 %v1141_v50, %v1139_v31  ;;  %v584_v31 = vmul.f32 %v2897_v45, %v2082_v18  ;;  %v749_v50 = vmax.f32 %v621_v34, 0.0  ;;  %v781_v52 = vmax.f32 %v653_v36, 0.0 }
  0xd0   : > { %v2190_v58 = vpack.c.bf16 %v1221_v51, %v1219_v32  ;;  %v585_v32 = vmul.f32 %v2897_v45, %v2083_v19  ;;  %v780_v51 = vmax.f32 %v652_v35, 0.0  ;;  %v895_v10 = vpack.c.bf16 %v813_v56, %v812_v53 }
  0xd1   : > { %2477 = vst [vmem:[%s2854_s30 + $0x18] sm:$0xff] %v2110_v57   ;;  %v716_v41 = vadd.f32 %v2916_v54, %v584_v31  ;;  %v522_v18 = vmul.f32 %v2897_v45, %v1958_v63  ;;  %v523_v19 = vmul.f32 %v2897_v45, %v1959_v0 }
  0xd2   : > { %2493 = vst [vmem:[%s2854_s30 + $0x98] sm:$0xff] %v2190_v58   ;;  %v717_v42 = vadd.f32 %v2916_v54, %v585_v32  ;;  %v879_v1 = vpack.c.bf16 %v781_v52, %v780_v51  ;;  %v2474_v51 = vld [vmem:[%s2605_s23 + $0x1f8] sm:$0xff]  }
  0xd3   : > { %v844_v57 = vmax.f32 %v716_v41, 0.0  ;;  %v654_v26 = vadd.f32 %v2916_v54, %v522_v18  ;;  %v655_v7 = vadd.f32 %v2916_v54, %v523_v19 }
  0xd4   : > { %v845_v58 = vmax.f32 %v717_v42, 0.0 }
  0xd5   : > { %v783_v40 = vmax.f32 %v655_v7, 0.0 }
  0xd6   : > { %v1301_v14 = vpop.f32.mrf.mxu2  ;;  %v1144_v22 = vpop.f32.mrf.mxu0  ;;  %v911_v11 = vpack.c.bf16 %v845_v58, %v844_v57 }
  0xd7   : > { %v1381_v15 = vpop.f32.mrf.mxu3  ;;  %v2270_v20 = vpack.c.bf16 %v1301_v14, %v1299_v46  ;;  %v1224_v23 = vpop.f32.mrf.mxu1 }
  0xd8   : > { %v2350_v21 = vpack.c.bf16 %v1381_v15, %v1379_v47 }
  0xd9   : > { %2509 = vst [vmem:[%s2854_s30 + $0x118] sm:$0xff] %v2270_v20   ;;  %1781 = vmatmul.msk.bf16.gmra.mxu0 %vm922_vm0, %v862_v9  ;;  %v863_v9 = vpack.c.bf16 %v749_v50, %v748_v48  ;;  %v554_v20 = vmul.f32 %v2897_v45, %v2022_v2  ;;  %v2458_v48 = vld [vmem:[%s2605_s23 + $0x178] sm:$0xff]  }
  0xda   : > { %2525 = vst [vmem:[%s2854_s30 + $0x198] sm:$0xff] %v2350_v21   ;;  %1797 = vmatmul.msk.bf16.gmra.mxu1 %vm922_vm0, %v878_v16  ;;  %v490_v16 = vmul.f32 %v2897_v45, %v1894_v61  ;;  %v555_v21 = vmul.f32 %v2897_v45, %v2023_v3  ;;  %v2026_v61 = vunpack.c.l.bf16 %v2458_v48  ;;  %v2027_v62 = vunpack.c.h.bf16 %v2458_v48 }
  0xdb   : > { %1813 = vmatmul.msk.bf16.gmra.mxu2 %vm922_vm0, %v894_v24  ;;  %v686_v27 = vadd.f32 %v2916_v54, %v554_v20 }
  0xdc   : > { %1829 = vmatmul.msk.bf16.gmra.mxu3 %vm922_vm0, %v910_v25  ;;  %v622_v24 = vadd.f32 %v2916_v54, %v490_v16  ;;  %v623_v25 = vadd.f32 %v2916_v54, %v491_v17  ;;  %v687_v28 = vadd.f32 %v2916_v54, %v555_v21 }
  0xdd   : > { %v814_v41 = vmax.f32 %v686_v27, 0.0 }
  0xde   : > { %v1304_v38 = vpop.f32.mrf.mxu2  ;;  %v1146_v43 = vpop.f32.mrf.mxu0  ;;  %v750_v35 = vmax.f32 %v622_v24, 0.0  ;;  %v751_v36 = vmax.f32 %v623_v25, 0.0  ;;  %v815_v42 = vmax.f32 %v687_v28, 0.0 }
  0xdf   : > { %v1384_v39 = vpop.f32.mrf.mxu3  ;;  %v1226_v44 = vpop.f32.mrf.mxu1  ;;  %v2115_v46 = vpack.c.bf16 %v1146_v43, %v1144_v22  ;;  %v586_v22 = vmul.f32 %v2897_v45, %v2086_v4  ;;  %v2090_v4 = vunpack.c.l.bf16 %v2474_v51 }
  0xe0   : > { %v2195_v47 = vpack.c.bf16 %v1226_v44, %v1224_v23  ;;  %v587_v23 = vmul.f32 %v2897_v45, %v2087_v5  ;;  %v864_v49 = vpack.c.bf16 %v751_v36, %v750_v35  ;;  %v896_v52 = vpack.c.bf16 %v815_v42, %v814_v41 }
  0xe1   : > { %2478 = vst [vmem:[%s2854_s30 + $0x20] sm:$0xff] %v2115_v46   ;;  %v718_v29 = vadd.f32 %v2916_v54, %v586_v22  ;;  %v2426_v46 = vld [vmem:[%s2605_s23 + $0x78] sm:$0xff]   ;;  %v2091_v5 = vunpack.c.h.bf16 %v2474_v51 }
  0xe2   : > { %2494 = vst [vmem:[%s2854_s30 + $0xa0] sm:$0xff] %v2195_v47   ;;  %v719_v30 = vadd.f32 %v2916_v54, %v587_v23  ;;  %v2442_v47 = vld [vmem:[%s2605_s23 + $0xf8] sm:$0xff]   ;;  %v1898_v55 = vunpack.c.l.bf16 %v2426_v46  ;;  %v1899_v56 = vunpack.c.h.bf16 %v2426_v46 }
  0xe3   : > { %v846_v43 = vmax.f32 %v718_v29, 0.0  ;;  %v1962_v59 = vunpack.c.l.bf16 %v2442_v47  ;;  %v1963_v60 = vunpack.c.h.bf16 %v2442_v47 }
  0xe4   : > { %v847_v44 = vmax.f32 %v719_v30, 0.0 }
  0xe6   : > { %v1306_v6 = vpop.f32.mrf.mxu2  ;;  %v1149_v14 = vpop.f32.mrf.mxu0  ;;  %v912_v53 = vpack.c.bf16 %v847_v44, %v846_v43 }
  0xe7   : > { %v1386_v8 = vpop.f32.mrf.mxu3  ;;  %v2275_v12 = vpack.c.bf16 %v1306_v6, %v1304_v38  ;;  %v1229_v15 = vpop.f32.mrf.mxu1  ;;  %v492_v6 = vmul.f32 %v2897_v45, %v1898_v55 }
  0xe8   : > { %v2355_v13 = vpack.c.bf16 %v1386_v8, %v1384_v39  ;;  %v782_v39 = vmax.f32 %v654_v26, 0.0  ;;  %v493_v8 = vmul.f32 %v2897_v45, %v1899_v56 }
  0xe9   : > { %2510 = vst [vmem:[%s2854_s30 + $0x120] sm:$0xff] %v2275_v12   ;;  %1782 = vmatmul.msk.bf16.gmra.mxu0 %vm922_vm0, %v863_v9  ;;  %v524_v9 = vmul.f32 %v2897_v45, %v1962_v59  ;;  %v588_v12 = vmul.f32 %v2897_v45, %v2090_v4  ;;  %v624_v16 = vadd.f32 %v2916_v54, %v492_v6 }
  0xea   : > { %2526 = vst [vmem:[%s2854_s30 + $0x1a0] sm:$0xff] %v2355_v13   ;;  %1798 = vmatmul.msk.bf16.gmra.mxu1 %vm922_vm0, %v879_v1  ;;  %v880_v50 = vpack.c.bf16 %v783_v40, %v782_v39  ;;  %v525_v1 = vmul.f32 %v2897_v45, %v1963_v60  ;;  %v589_v13 = vmul.f32 %v2897_v45, %v2091_v5 }
  0xeb   : > { %1814 = vmatmul.msk.bf16.gmra.mxu2 %vm922_vm0, %v895_v10  ;;  %v556_v10 = vmul.f32 %v2897_v45, %v2026_v61  ;;  %v625_v17 = vadd.f32 %v2916_v54, %v493_v8  ;;  %v656_v18 = vadd.f32 %v2916_v54, %v524_v9  ;;  %v720_v24 = vadd.f32 %v2916_v54, %v588_v12 }
  0xec   : > { %1830 = vmatmul.msk.bf16.gmra.mxu3 %vm922_vm0, %v911_v11  ;;  %v557_v11 = vmul.f32 %v2897_v45, %v2027_v62  ;;  %v657_v19 = vadd.f32 %v2916_v54, %v525_v1  ;;  %v721_v45 = vadd.f32 %v2916_v54, %v589_v13  ;;  %v752_v7 = vmax.f32 %v624_v16, 0.0 }
  0xed   : > { %v688_v22 = vadd.f32 %v2916_v54, %v556_v10  ;;  %v753_v27 = vmax.f32 %v625_v17, 0.0  ;;  %v784_v28 = vmax.f32 %v656_v18, 0.0 }
  0xee   : > { %v1309_v31 = vpop.f32.mrf.mxu2  ;;  %v1151_v33 = vpop.f32.mrf.mxu0  ;;  %v689_v23 = vadd.f32 %v2916_v54, %v557_v11  ;;  %v785_v29 = vmax.f32 %v657_v19, 0.0 }
  0xef   : > { %v1389_v32 = vpop.f32.mrf.mxu3  ;;  %v1231_v34 = vpop.f32.mrf.mxu1  ;;  %v2120_v37 = vpack.c.bf16 %v1151_v33, %v1149_v14  ;;  %v816_v30 = vmax.f32 %v688_v22, 0.0  ;;  %v849_v33 = vmax.f32 %v721_v45, 0.0  ;;  %v865_v36 = vpack.c.bf16 %v753_v27, %v752_v7 }
  0xf0   : > { %v2200_v38 = vpack.c.bf16 %v1231_v34, %v1229_v15 }
  0xf1   : > { %2479 = vst [vmem:[%s2854_s30 + $0x28] sm:$0xff] %v2120_v37   ;;  %v881_v37 = vpack.c.bf16 %v785_v29, %v784_v28 }
  0xf2   : > { %2495 = vst [vmem:[%s2854_s30 + $0xa8] sm:$0xff] %v2200_v38  }
  0xf6   : > { %v1311_v57 = vpop.f32.mrf.mxu2  ;;  %v1154_v2 = vpop.f32.mrf.mxu0 }
  0xf7   : > { %v1391_v58 = vpop.f32.mrf.mxu3  ;;  %v2280_v63 = vpack.c.bf16 %v1311_v57, %v1309_v31  ;;  %v1234_v3 = vpop.f32.mrf.mxu1  ;;  %v817_v31 = vmax.f32 %v689_v23, 0.0 }
  0xf8   : > { %v2360_v0 = vpack.c.bf16 %v1391_v58, %v1389_v32  ;;  %v848_v32 = vmax.f32 %v720_v24, 0.0 }
  0xf9   : > { %2511 = vst [vmem:[%s2854_s30 + $0x128] sm:$0xff] %v2280_v63   ;;  %1783 = vmatmul.msk.bf16.gmra.mxu0 %vm922_vm0, %v864_v49  ;;  %v897_v41 = vpack.c.bf16 %v817_v31, %v816_v30 }
  0xfa   : > { %2527 = vst [vmem:[%s2854_s30 + $0x1a8] sm:$0xff] %v2360_v0   ;;  %1799 = vmatmul.msk.bf16.gmra.mxu1 %vm922_vm0, %v880_v50  ;;  %v913_v42 = vpack.c.bf16 %v849_v33, %v848_v32 }
  0xfb   : > { %1815 = vmatmul.msk.bf16.gmra.mxu2 %vm922_vm0, %v896_v52 }
  0xfc   : > { %1831 = vmatmul.msk.bf16.gmra.mxu3 %vm922_vm0, %v912_v53 }
  0xfe   : > { %v1314_v14 = vpop.f32.mrf.mxu2  ;;  %v1156_v20 = vpop.f32.mrf.mxu0 }
  0xff   : > { %v1394_v15 = vpop.f32.mrf.mxu3  ;;  %v1236_v21 = vpop.f32.mrf.mxu1  ;;  %v2125_v25 = vpack.c.bf16 %v1156_v20, %v1154_v2 }
 0x100   : > { %v2205_v26 = vpack.c.bf16 %v1236_v21, %v1234_v3 }
 0x101   : > { %2480 = vst [vmem:[%s2854_s30 + $0x30] sm:$0xff] %v2125_v25  }
 0x102   : > { %2496 = vst [vmem:[%s2854_s30 + $0xb0] sm:$0xff] %v2205_v26  }
 0x106   : > { %v1316_v34 = vpop.f32.mrf.mxu2  ;;  %v1159_v39 = vpop.f32.mrf.mxu0 }
 0x107   : > { %v1396_v35 = vpop.f32.mrf.mxu3  ;;  %v2285_v38 = vpack.c.bf16 %v1316_v34, %v1314_v14  ;;  %v1239_v40 = vpop.f32.mrf.mxu1 }
 0x108   : > { %v2365_v54 = vpack.c.bf16 %v1396_v35, %v1394_v15 }
 0x109   : > { %2512 = vst [vmem:[%s2854_s30 + $0x130] sm:$0xff] %v2285_v38   ;;  %1784 = vmatmul.msk.bf16.gmra.mxu0 %vm922_vm0, %v865_v36 }
 0x10a   : > { %2528 = vst [vmem:[%s2854_s30 + $0x1b0] sm:$0xff] %v2365_v54   ;;  %1800 = vmatmul.msk.bf16.gmra.mxu1 %vm922_vm0, %v881_v37 }
 0x10b   : > { %1816 = vmatmul.msk.bf16.gmra.mxu2 %vm922_vm0, %v897_v41 }
 0x10c   : > { %1832 = vmatmul.msk.bf16.gmra.mxu3 %vm922_vm0, %v913_v42 }
 0x10e   : > { %v1319_v43 = vpop.f32.mrf.mxu2  ;;  %v1161_v46 = vpop.f32.mrf.mxu0 }
 0x10f   : > { %v1399_v44 = vpop.f32.mrf.mxu3  ;;  %v1241_v47 = vpop.f32.mrf.mxu1  ;;  %v2130_v48 = vpack.c.bf16 %v1161_v46, %v1159_v39 }
 0x110   : > { %v2210_v49 = vpack.c.bf16 %v1241_v47, %v1239_v40 }
 0x111   : > { %2481 = vst [vmem:[%s2854_s30 + $0x38] sm:$0xff] %v2130_v48  }
 0x112   : > { %2497 = vst [vmem:[%s2854_s30 + $0xb8] sm:$0xff] %v2210_v49  }
 0x116   : > { %v1321_v50 = vpop.f32.mrf.mxu2  ;;  %v1164_v55 = vpop.f32.mrf.mxu0 }
 0x117   : > { %v1401_v51 = vpop.f32.mrf.mxu3  ;;  %v2290_v52 = vpack.c.bf16 %v1321_v50, %v1319_v43  ;;  %v1244_v56 = vpop.f32.mrf.mxu1 }
 0x118   : > { %v2370_v53 = vpack.c.bf16 %v1401_v51, %v1399_v44 }
 0x119   : > { %2513 = vst [vmem:[%s2854_s30 + $0x138] sm:$0xff] %v2290_v52  }
 0x11a   : > { %2529 = vst [vmem:[%s2854_s30 + $0x1b8] sm:$0xff] %v2370_v53  }
 0x11e   : > { %v1324_v57 = vpop.f32.mrf.mxu2  ;;  %v1166_v59 = vpop.f32.mrf.mxu0 }
 0x11f   : > { %v1404_v58 = vpop.f32.mrf.mxu3  ;;  %v1246_v60 = vpop.f32.mrf.mxu1  ;;  %v2135_v61 = vpack.c.bf16 %v1166_v59, %v1164_v55 }
 0x120   : > { %v2215_v62 = vpack.c.bf16 %v1246_v60, %v1244_v56 }
 0x121   : > { %2482 = vst [vmem:[%s2854_s30 + $0x40] sm:$0xff] %v2135_v61  }
 0x122   : > { %2498 = vst [vmem:[%s2854_s30 + $0xc0] sm:$0xff] %v2215_v62  }
 0x126   : > { %v1326_v63 = vpop.f32.mrf.mxu2  ;;  %v1169_v4 = vpop.f32.mrf.mxu0 }
 0x127   : > { %v1406_v0 = vpop.f32.mrf.mxu3  ;;  %v2295_v2 = vpack.c.bf16 %v1326_v63, %v1324_v57  ;;  %v1249_v5 = vpop.f32.mrf.mxu1 }
 0x128   : > { %v2375_v3 = vpack.c.bf16 %v1406_v0, %v1404_v58 }
 0x129   : > { %2514 = vst [vmem:[%s2854_s30 + $0x140] sm:$0xff] %v2295_v2  }
 0x12a   : > { %2530 = vst [vmem:[%s2854_s30 + $0x1c0] sm:$0xff] %v2375_v3  }
 0x12e   : > { %v1329_v6 = vpop.f32.mrf.mxu2  ;;  %v1171_v9 = vpop.f32.mrf.mxu0 }
 0x12f   : > { %v1409_v8 = vpop.f32.mrf.mxu3  ;;  %v1251_v1 = vpop.f32.mrf.mxu1  ;;  %v2140_v10 = vpack.c.bf16 %v1171_v9, %v1169_v4 }
 0x130   : > { %v2220_v11 = vpack.c.bf16 %v1251_v1, %v1249_v5 }
 0x131   : > { %2483 = vst [vmem:[%s2854_s30 + $0x48] sm:$0xff] %v2140_v10  }
 0x132   : > { %2499 = vst [vmem:[%s2854_s30 + $0xc8] sm:$0xff] %v2220_v11  }
 0x136   : > { %v1331_v12 = vpop.f32.mrf.mxu2  ;;  %v1174_v16 = vpop.f32.mrf.mxu0 }
 0x137   : > { %v1411_v13 = vpop.f32.mrf.mxu3  ;;  %v2300_v14 = vpack.c.bf16 %v1331_v12, %v1329_v6  ;;  %v1254_v17 = vpop.f32.mrf.mxu1 }
 0x138   : > { %v2380_v15 = vpack.c.bf16 %v1411_v13, %v1409_v8 }
 0x139   : > { %2515 = vst [vmem:[%s2854_s30 + $0x148] sm:$0xff] %v2300_v14  }
 0x13a   : > { %2531 = vst [vmem:[%s2854_s30 + $0x1c8] sm:$0xff] %v2380_v15  }
 0x13e   : > { %v1334_v18 = vpop.f32.mrf.mxu2  ;;  %v1176_v20 = vpop.f32.mrf.mxu0 }
 0x13f   : > { %v1414_v19 = vpop.f32.mrf.mxu3  ;;  %v1256_v21 = vpop.f32.mrf.mxu1  ;;  %v2145_v22 = vpack.c.bf16 %v1176_v20, %v1174_v16 }
 0x140   : > { %v2225_v23 = vpack.c.bf16 %v1256_v21, %v1254_v17 }
 0x141   : > { %2484 = vst [vmem:[%s2854_s30 + $0x50] sm:$0xff] %v2145_v22  }
 0x142   : > { %2500 = vst [vmem:[%s2854_s30 + $0xd0] sm:$0xff] %v2225_v23  }
 0x146   : > { %v1336_v24 = vpop.f32.mrf.mxu2  ;;  %v1179_v7 = vpop.f32.mrf.mxu0 }
 0x147   : > { %v1416_v45 = vpop.f32.mrf.mxu3  ;;  %v2305_v25 = vpack.c.bf16 %v1336_v24, %v1334_v18  ;;  %v1259_v27 = vpop.f32.mrf.mxu1 }
 0x148   : > { %v2385_v26 = vpack.c.bf16 %v1416_v45, %v1414_v19 }
 0x149   : > { %2516 = vst [vmem:[%s2854_s30 + $0x150] sm:$0xff] %v2305_v25  }
 0x14a   : > { %2532 = vst [vmem:[%s2854_s30 + $0x1d0] sm:$0xff] %v2385_v26  }
 0x14e   : > { %v1339_v28 = vpop.f32.mrf.mxu2  ;;  %v1181_v30 = vpop.f32.mrf.mxu0 }
 0x14f   : > { %v1419_v29 = vpop.f32.mrf.mxu3  ;;  %v1261_v31 = vpop.f32.mrf.mxu1  ;;  %v2150_v32 = vpack.c.bf16 %v1181_v30, %v1179_v7 }
 0x150   : > { %v2230_v33 = vpack.c.bf16 %v1261_v31, %v1259_v27 }
 0x151   : > { %2485 = vst [vmem:[%s2854_s30 + $0x58] sm:$0xff] %v2150_v32  }
 0x152   : > { %2501 = vst [vmem:[%s2854_s30 + $0xd8] sm:$0xff] %v2230_v33  }
 0x156   : > { %v1341_v34 = vpop.f32.mrf.mxu2  ;;  %v1184_v38 = vpop.f32.mrf.mxu0 }
 0x157   : > { %v1421_v35 = vpop.f32.mrf.mxu3  ;;  %v2310_v36 = vpack.c.bf16 %v1341_v34, %v1339_v28  ;;  %v1264_v54 = vpop.f32.mrf.mxu1 }
 0x158   : > { %v2390_v37 = vpack.c.bf16 %v1421_v35, %v1419_v29 }
 0x159   : > { %2517 = vst [vmem:[%s2854_s30 + $0x158] sm:$0xff] %v2310_v36  }
 0x15a   : > { %2533 = vst [vmem:[%s2854_s30 + $0x1d8] sm:$0xff] %v2390_v37  }
 0x15e   : > { %v1344_v39 = vpop.f32.mrf.mxu2  ;;  %v1186_v41 = vpop.f32.mrf.mxu0 }
 0x15f   : > { %v1424_v40 = vpop.f32.mrf.mxu3  ;;  %v1266_v42 = vpop.f32.mrf.mxu1  ;;  %v2155_v43 = vpack.c.bf16 %v1186_v41, %v1184_v38 }
 0x160   : > { %v2235_v44 = vpack.c.bf16 %v1266_v42, %v1264_v54 }
 0x161   : > { %2486 = vst [vmem:[%s2854_s30 + $0x60] sm:$0xff] %v2155_v43  }
 0x162   : > { %2502 = vst [vmem:[%s2854_s30 + $0xe0] sm:$0xff] %v2235_v44  }
 0x166   : > { %v1346_v46 = vpop.f32.mrf.mxu2  ;;  %v1189_v50 = vpop.f32.mrf.mxu0 }
 0x167   : > { %v1426_v47 = vpop.f32.mrf.mxu3  ;;  %v2315_v48 = vpack.c.bf16 %v1346_v46, %v1344_v39  ;;  %v1269_v51 = vpop.f32.mrf.mxu1 }
 0x168   : > { %v2395_v49 = vpack.c.bf16 %v1426_v47, %v1424_v40 }
 0x169   : > { %2518 = vst [vmem:[%s2854_s30 + $0x160] sm:$0xff] %v2315_v48  }
 0x16a   : > { %2534 = vst [vmem:[%s2854_s30 + $0x1e0] sm:$0xff] %v2395_v49  }
 0x16e   : > { %v1349_v52 = vpop.f32.mrf.mxu2  ;;  %v1191_v55 = vpop.f32.mrf.mxu0 }
 0x16f   : > { %v1429_v53 = vpop.f32.mrf.mxu3  ;;  %v1271_v56 = vpop.f32.mrf.mxu1  ;;  %v2160_v57 = vpack.c.bf16 %v1191_v55, %v1189_v50 }
 0x170   : > { %v2240_v58 = vpack.c.bf16 %v1271_v56, %v1269_v51 }
 0x171   : > { %2487 = vst [vmem:[%s2854_s30 + $0x68] sm:$0xff] %v2160_v57  }
 0x172   : > { %2503 = vst [vmem:[%s2854_s30 + $0xe8] sm:$0xff] %v2240_v58  }
 0x176   : > { %v1351_v59 = vpop.f32.mrf.mxu2  ;;  %v1194_v63 = vpop.f32.mrf.mxu0 }
 0x177   : > { %v1431_v60 = vpop.f32.mrf.mxu3  ;;  %v2320_v61 = vpack.c.bf16 %v1351_v59, %v1349_v52  ;;  %v1274_v0 = vpop.f32.mrf.mxu1 }
 0x178   : > { %v2400_v62 = vpack.c.bf16 %v1431_v60, %v1429_v53 }
 0x179   : > { %2519 = vst [vmem:[%s2854_s30 + $0x168] sm:$0xff] %v2320_v61  }
 0x17a   : > { %2535 = vst [vmem:[%s2854_s30 + $0x1e8] sm:$0xff] %v2400_v62  }
 0x17e   : > { %v1354_v2 = vpop.f32.mrf.mxu2  ;;  %v1196_v4 = vpop.f32.mrf.mxu0 }
 0x17f   : > { %v1434_v3 = vpop.f32.mrf.mxu3  ;;  %v1276_v5 = vpop.f32.mrf.mxu1  ;;  %v2165_v6 = vpack.c.bf16 %v1196_v4, %v1194_v63 }
 0x180   : > { %v2245_v8 = vpack.c.bf16 %v1276_v5, %v1274_v0 }
 0x181   : > { %2488 = vst [vmem:[%s2854_s30 + $0x70] sm:$0xff] %v2165_v6  }
 0x182   : > { %2504 = vst [vmem:[%s2854_s30 + $0xf0] sm:$0xff] %v2245_v8  }
 0x186   : > { %v1356_v9 = vpop.f32.mrf.mxu2  ;;  %v1199_v12 = vpop.f32.mrf.mxu0 }
 0x187   : > { %v1436_v1 = vpop.f32.mrf.mxu3  ;;  %v2325_v10 = vpack.c.bf16 %v1356_v9, %v1354_v2  ;;  %v1279_v13 = vpop.f32.mrf.mxu1 }
 0x188   : > { %v2405_v11 = vpack.c.bf16 %v1436_v1, %v1434_v3 }
 0x189   : > { %2520 = vst [vmem:[%s2854_s30 + $0x170] sm:$0xff] %v2325_v10  }
 0x18a   : > { %2536 = vst [vmem:[%s2854_s30 + $0x1f0] sm:$0xff] %v2405_v11  }
 0x18e   : > { %v1359_v14 = vpop.f32.mrf.mxu2  ;;  %v1201_v16 = vpop.f32.mrf.mxu0 }
 0x18f   : > { %v1439_v15 = vpop.f32.mrf.mxu3  ;;  %v1281_v17 = vpop.f32.mrf.mxu1  ;;  %v2170_v18 = vpack.c.bf16 %v1201_v16, %v1199_v12 }
 0x190   : > { %v2250_v19 = vpack.c.bf16 %v1281_v17, %v1279_v13 }
 0x191   : > { %2489 = vst [vmem:[%s2854_s30 + $0x78] sm:$0xff] %v2170_v18  }
 0x192   : > { %2505 = vst [vmem:[%s2854_s30 + $0xf8] sm:$0xff] %v2250_v19  }
 0x196   : > { %v1361_v20 = vpop.f32.mrf.mxu2 }
 0x197   : > { %v1441_v21 = vpop.f32.mrf.mxu3  ;;  %v2330_v22 = vpack.c.bf16 %v1361_v20, %v1359_v14 }
 0x198   : > { %v2410_v23 = vpack.c.bf16 %v1441_v21, %v1439_v15 }
 0x199   : > { %2521 = vst [vmem:[%s2854_s30 + $0x178] sm:$0xff] %v2330_v22  }
 0x19a   : > { %2537 = vst [vmem:[%s2854_s30 + $0x1f8] sm:$0xff] %v2410_v23  }
 0x19b PF: > { %s14_s15 = sadd.s32 1, %s2559_s15  }
 0x19c   : > { %p11_p4 = scmp.ge.s32.totalorder %s14_s15, 4  }
 0x19e   :  { %13 = sbr.rel (!%p11_p4) target bundleno = 1 (0x1), region = 66 }

// kernel: netg_forward.19
= control target key start
LH: loop header
LB: loop body
LE: loop exit
PB: predicated region body
PF: predicated region fallthrough
CT: control target
= control target key end

     0   :  { %s484_s6 = smov 0   ;;  %s553_s0 = inlined_call_operand.vmem [shape: bf16[512,128], index: 0, kind: input, shape index: {}]   ;;  %s554_s1 = inlined_call_operand.vmem [shape: f32[512,128], index: 1, kind: output, shape index: {}]  }
   0x1 LB: > { %s304_s7 = sadd.s32 4294967295, %s472_s6   ;;  %p308_p0 = scmp.ge.s32.totalorder %s472_s6, 1  ;;  %s472_s6 = sphi %s484_s6, %s11_s6  }
   0x2   : > { %p88_p1 = scmp.lt.s32.totalorder %s472_s6, 3 }
   0x4   : > { %p89_p2 = pnand %p308_p0, %p88_p1 }
   0x5   : > { %s309_s8 = sshll.u32 (!%p89_p2), %s304_s7, 5 }
   0x6   : > { %92 = sbr.rel (%p89_p2) target bundleno = 56 (0x38), region = 24  ;;  %p109_p3 = scmp.lt.s32.totalorder (!%p89_p2), %s309_s8, 63 }
   0xb   : > { %s556_s8 = smov (!%p109_p3, %s309_s8), 63 }
   0xc   : > { %s310_s9 = sshll.u32 %s556_s8, 2  ;;  %s312_s13 = sshll.u32 %s556_s8, 3 }
   0xd   : > { %s495_s12 = scalar_lea.vmem %s553_s0, %s310_s9  ;;  %s506_s16 = scalar_lea.vmem %s554_s1, %s312_s13 }
   0xe   : > { %v316_v0 = vld [vmem:[%s495_s12] sm:$0xff]   ;;  %v379_v1 = vld [vmem:[%s495_s12 + $0x8] sm:$0xff]   ;;  %v380_v2 = vld [vmem:[%s495_s12 + $0x10] sm:$0xff]  }
   0xf   : > { %v317_v3 = vunpack.c.l.bf16 %v316_v0  ;;  %v318_v4 = vunpack.c.h.bf16 %v316_v0  ;;  %v321_v5 = vunpack.c.l.bf16 %v379_v1  ;;  %v322_v6 = vunpack.c.h.bf16 %v379_v1  ;;  %v381_v7 = vld [vmem:[%s495_s12 + $0x18] sm:$0xff]   ;;  %v382_v10 = vld [vmem:[%s495_s12 + $0x20] sm:$0xff]   ;;  %v383_v13 = vld [vmem:[%s495_s12 + $0x28] sm:$0xff]  }
  0x10   : > { %v325_v8 = vunpack.c.l.bf16 %v380_v2  ;;  %v326_v9 = vunpack.c.h.bf16 %v380_v2  ;;  %v329_v11 = vunpack.c.l.bf16 %v381_v7  ;;  %v330_v12 = vunpack.c.h.bf16 %v381_v7  ;;  %v384_v16 = vld [vmem:[%s495_s12 + $0x30] sm:$0xff]   ;;  %v385_v21 = vld [vmem:[%s495_s12 + $0x38] sm:$0xff]   ;;  %v386_v26 = vld [vmem:[%s495_s12 + $0x40] sm:$0xff]  }
  0x11   : > { %402 = vtanh.f32 %v317_v3  ;;  %v333_v14 = vunpack.c.l.bf16 %v382_v10  ;;  %v334_v15 = vunpack.c.h.bf16 %v382_v10  ;;  %v337_v18 = vunpack.c.l.bf16 %v383_v13  ;;  %v387_v31 = vld [vmem:[%s495_s12 + $0x48] sm:$0xff]   ;;  %v388_v36 = vld [vmem:[%s495_s12 + $0x50] sm:$0xff]   ;;  %v389_v41 = vld [vmem:[%s495_s12 + $0x58] sm:$0xff]  }
  0x12   : > { %404 = vtanh.f32 %v318_v4  ;;  %v338_v20 = vunpack.c.h.bf16 %v383_v13  ;;  %v341_v23 = vunpack.c.l.bf16 %v384_v16  ;;  %v342_v25 = vunpack.c.h.bf16 %v384_v16  ;;  %v390_v46 = vld [vmem:[%s495_s12 + $0x60] sm:$0xff]   ;;  %v391_v51 = vld [vmem:[%s495_s12 + $0x68] sm:$0xff]   ;;  %v392_v56 = vld [vmem:[%s495_s12 + $0x70] sm:$0xff]  }
  0x13   : > { %406 = vtanh.f32 %v321_v5  ;;  %v345_v28 = vunpack.c.l.bf16 %v385_v21  ;;  %v346_v30 = vunpack.c.h.bf16 %v385_v21  ;;  %v349_v33 = vunpack.c.l.bf16 %v386_v26  ;;  %v393_v61 = vld [vmem:[%s495_s12 + $0x78] sm:$0xff]  }
  0x14   : > { %408 = vtanh.f32 %v322_v6  ;;  %v350_v35 = vunpack.c.h.bf16 %v386_v26  ;;  %v353_v38 = vunpack.c.l.bf16 %v387_v31  ;;  %v354_v40 = vunpack.c.h.bf16 %v387_v31 }
  0x15   : > { %410 = vtanh.f32 %v325_v8  ;;  %v357_v43 = vunpack.c.l.bf16 %v388_v36  ;;  %v358_v45 = vunpack.c.h.bf16 %v388_v36  ;;  %v361_v48 = vunpack.c.l.bf16 %v389_v41 }
  0x16   : > { %412 = vtanh.f32 %v326_v9  ;;  %v362_v50 = vunpack.c.h.bf16 %v389_v41  ;;  %v365_v53 = vunpack.c.l.bf16 %v390_v46  ;;  %v366_v55 = vunpack.c.h.bf16 %v390_v46 }
  0x17   : > { %v403_v17 = vpop.eup %402  ;;  %414 = vtanh.f32 %v329_v11  ;;  %v369_v58 = vunpack.c.l.bf16 %v391_v51  ;;  %v370_v60 = vunpack.c.h.bf16 %v391_v51  ;;  %v373_v63 = vunpack.c.l.bf16 %v392_v56 }
  0x18   : > { %v405_v19 = vpop.eup %404  ;;  %216 = vst [vmem:[%s506_s16] sm:$0xff] %v403_v17  ;;  %416 = vtanh.f32 %v330_v12  ;;  %v374_v1 = vunpack.c.h.bf16 %v392_v56  ;;  %v377_v3 = vunpack.c.l.bf16 %v393_v61  ;;  %v378_v5 = vunpack.c.h.bf16 %v393_v61 }
  0x19   : > { %v407_v22 = vpop.eup %406  ;;  %217 = vst [vmem:[%s506_s16 + $0x8] sm:$0xff] %v405_v19  ;;  %418 = vtanh.f32 %v333_v14 }
  0x1a   : > { %v409_v24 = vpop.eup %408  ;;  %218 = vst [vmem:[%s506_s16 + $0x10] sm:$0xff] %v407_v22  ;;  %420 = vtanh.f32 %v334_v15 }
  0x1b   : > { %v411_v27 = vpop.eup %410  ;;  %219 = vst [vmem:[%s506_s16 + $0x18] sm:$0xff] %v409_v24  ;;  %422 = vtanh.f32 %v337_v18 }
  0x1c   : > { %v413_v29 = vpop.eup %412  ;;  %220 = vst [vmem:[%s506_s16 + $0x20] sm:$0xff] %v411_v27  ;;  %424 = vtanh.f32 %v338_v20 }
  0x1d   : > { %v415_v32 = vpop.eup %414  ;;  %221 = vst [vmem:[%s506_s16 + $0x28] sm:$0xff] %v413_v29  ;;  %426 = vtanh.f32 %v341_v23 }
  0x1e   : > { %v417_v34 = vpop.eup %416  ;;  %222 = vst [vmem:[%s506_s16 + $0x30] sm:$0xff] %v415_v32  ;;  %428 = vtanh.f32 %v342_v25 }
  0x1f   : > { %v419_v37 = vpop.eup %418  ;;  %223 = vst [vmem:[%s506_s16 + $0x38] sm:$0xff] %v417_v34  ;;  %430 = vtanh.f32 %v345_v28 }
  0x20   : > { %v421_v39 = vpop.eup %420  ;;  %224 = vst [vmem:[%s506_s16 + $0x40] sm:$0xff] %v419_v37  ;;  %432 = vtanh.f32 %v346_v30 }
  0x21   : > { %v423_v42 = vpop.eup %422  ;;  %225 = vst [vmem:[%s506_s16 + $0x48] sm:$0xff] %v421_v39  ;;  %434 = vtanh.f32 %v349_v33 }
  0x22   : > { %v425_v44 = vpop.eup %424  ;;  %226 = vst [vmem:[%s506_s16 + $0x50] sm:$0xff] %v423_v42  ;;  %436 = vtanh.f32 %v350_v35 }
  0x23   : > { %v427_v47 = vpop.eup %426  ;;  %227 = vst [vmem:[%s506_s16 + $0x58] sm:$0xff] %v425_v44  ;;  %438 = vtanh.f32 %v353_v38 }
  0x24   : > { %v429_v49 = vpop.eup %428  ;;  %228 = vst [vmem:[%s506_s16 + $0x60] sm:$0xff] %v427_v47  ;;  %440 = vtanh.f32 %v354_v40 }
  0x25   : > { %v431_v52 = vpop.eup %430  ;;  %229 = vst [vmem:[%s506_s16 + $0x68] sm:$0xff] %v429_v49  ;;  %442 = vtanh.f32 %v357_v43 }
  0x26   : > { %v433_v54 = vpop.eup %432  ;;  %230 = vst [vmem:[%s506_s16 + $0x70] sm:$0xff] %v431_v52  ;;  %444 = vtanh.f32 %v358_v45 }
  0x27   : > { %v435_v57 = vpop.eup %434  ;;  %231 = vst [vmem:[%s506_s16 + $0x78] sm:$0xff] %v433_v54  ;;  %446 = vtanh.f32 %v361_v48 }
  0x28   : > { %v437_v59 = vpop.eup %436  ;;  %232 = vst [vmem:[%s506_s16 + $0x80] sm:$0xff] %v435_v57  ;;  %448 = vtanh.f32 %v362_v50 }
  0x29   : > { %v439_v62 = vpop.eup %438  ;;  %233 = vst [vmem:[%s506_s16 + $0x88] sm:$0xff] %v437_v59  ;;  %450 = vtanh.f32 %v365_v53 }
  0x2a   : > { %v441_v0 = vpop.eup %440  ;;  %234 = vst [vmem:[%s506_s16 + $0x90] sm:$0xff] %v439_v62  ;;  %452 = vtanh.f32 %v366_v55 }
  0x2b   : > { %v443_v2 = vpop.eup %442  ;;  %235 = vst [vmem:[%s506_s16 + $0x98] sm:$0xff] %v441_v0  ;;  %454 = vtanh.f32 %v369_v58 }
  0x2c   : > { %v445_v4 = vpop.eup %444  ;;  %236 = vst [vmem:[%s506_s16 + $0xa0] sm:$0xff] %v443_v2  ;;  %456 = vtanh.f32 %v370_v60 }
  0x2d   : > { %v447_v6 = vpop.eup %446  ;;  %237 = vst [vmem:[%s506_s16 + $0xa8] sm:$0xff] %v445_v4  ;;  %458 = vtanh.f32 %v373_v63 }
  0x2e   : > { %v449_v7 = vpop.eup %448  ;;  %238 = vst [vmem:[%s506_s16 + $0xb0] sm:$0xff] %v447_v6  ;;  %460 = vtanh.f32 %v374_v1 }
  0x2f   : > { %v451_v8 = vpop.eup %450  ;;  %239 = vst [vmem:[%s506_s16 + $0xb8] sm:$0xff] %v449_v7  ;;  %462 = vtanh.f32 %v377_v3 }
  0x30   : > { %v453_v9 = vpop.eup %452  ;;  %240 = vst [vmem:[%s506_s16 + $0xc0] sm:$0xff] %v451_v8  ;;  %464 = vtanh.f32 %v378_v5 }
  0x31   : > { %v455_v10 = vpop.eup %454  ;;  %241 = vst [vmem:[%s506_s16 + $0xc8] sm:$0xff] %v453_v9 }
  0x32   : > { %v457_v11 = vpop.eup %456  ;;  %242 = vst [vmem:[%s506_s16 + $0xd0] sm:$0xff] %v455_v10 }
  0x33   : > { %v459_v12 = vpop.eup %458  ;;  %243 = vst [vmem:[%s506_s16 + $0xd8] sm:$0xff] %v457_v11 }
  0x34   : > { %v461_v13 = vpop.eup %460  ;;  %244 = vst [vmem:[%s506_s16 + $0xe0] sm:$0xff] %v459_v12 }
  0x35   : > { %v463_v14 = vpop.eup %462  ;;  %245 = vst [vmem:[%s506_s16 + $0xe8] sm:$0xff] %v461_v13 }
  0x36   : > { %v465_v15 = vpop.eup %464  ;;  %246 = vst [vmem:[%s506_s16 + $0xf0] sm:$0xff] %v463_v14 }
  0x37   : > { %247 = vst [vmem:[%s506_s16 + $0xf8] sm:$0xff] %v465_v15 }
  0x38 PF: > { %s11_s6 = sadd.s32 1, %s472_s6  }
  0x39   : > { %p8_p4 = scmp.ge.s32.totalorder %s11_s6, 4  }
  0x3b   :  { %10 = sbr.rel (!%p8_p4) target bundleno = 1 (0x1), region = 54 }

</bundles_post_ra>
